<compile_context>
chip_gen: v7x
topology: tpu7x:2x2x1
jax: 0.10.0
libtpu: 0.0.40
codegen_flags: <defaults>
</compile_context>

<pallas_src>
import functools

import jax
import jax.numpy as jnp
from jax.experimental import pallas as pl
from jax.experimental.pallas import tpu as pltpu


# ----------------------------- in-kernel helpers -----------------------------

def _softmax_lastdim(x):
    """Row softmax; the divide goes to the EUP via approx reciprocal."""
    m = jnp.max(x, axis=-1, keepdims=True)
    e = jnp.exp(x - m)
    return e * pl.reciprocal(jnp.sum(e, axis=-1, keepdims=True), approx=True)


# --------------------------------- the kernel --------------------------------

def mmgnn_kernel(
    i_ref, s_ref, v_ref, pi_ref, pst_ref, kb_ref,   # batched tiles
    # fused / pre-split parameters (weights bf16, biases f32); widths padded
    # so every static lane slice below is 128-aligned.
    w_i_f_ref, b_i_f_ref,                       # [im_embed_is | vi.im_embed_is]      (OBJ, ise+isp)
    w_s_f_ref, b_s_f_ref,                       # [sem_embed_is | ss_1 | ss_2]        (SEM, ise+2*sse)
    w_is_a_ref, w_is_b_ref, b_is_ref,           # im_sem_combined (split + row-padded)
    w_ss_a_ref, w_ss_b_ref, b_ss_ref,           # sem_sem_combined (split rows)
    w_sn_f_ref, b_sn_f_ref,                     # [vg.sem_embed_is | vi.sem_embed_is] (SEM, vsp+isp)
    w_vg_ref, b_vg_ref,                         # vg.sem_embed_is (also used on v)
    w_vo_a_ref, w_vo_b_ref, b_vo_ref,           # vg.output_layer (split + row-padded)
    w_vc_a_ref, w_vc_b_ref, b_vc_ref,           # vi.im_sem_combined (split + row-padded)
    # outputs
    i_out_ref, s_out_ref, v_out_ref,
    *, tb, ni, ns, ise, sse, vsp, isp,
):
    f32 = jnp.float32
    bf16 = jnp.bfloat16

    # -- load the folded batch tile and flatten batch*node so every shared
    #    Linear is a single big-M MXU matmul.
    i3 = i_ref[...]
    s3 = s_ref[...]
    v3 = v_ref[...]
    i2 = i3.reshape(tb * ni, -1)
    s2 = s3.reshape(tb * ns, -1)
    v2 = v3.reshape(tb * ns, -1)
    i2b = i2.astype(bf16)
    s2b = s2.astype(bf16)
    v2b = v2.astype(bf16)

    # key-mask bias precomputed in the wrapper: (TB, 1, Ns), 0 on valid key
    # columns, -inf past mask_s (mask clamped to >= 1 there -> no NaN rows).
    key_bias = kb_ref[...]

    def lin(xb, w_ref, b_ref):
        return jnp.maximum(
            jnp.dot(xb, w_ref[...], preferred_element_type=f32) + b_ref[...], 0.0)

    def lin_cat(ab, cb, wa_ref, wb_ref, b_ref):
        # ReLU(concat([a, c], -1) @ W + b) with W pre-split at trace time.
        out = (jnp.dot(ab, wa_ref[...], preferred_element_type=f32)
               + jnp.dot(cb, wb_ref[...], preferred_element_type=f32)
               + b_ref[...])
        return jnp.maximum(out, 0.0)

    # ================= SemanticGraphAggregator (updates s) =================
    ip_all = lin(i2b, w_i_f_ref, b_i_f_ref)          # (TB*Ni, ise+isp)
    sp_all = lin(s2b, w_s_f_ref, b_s_f_ref)          # (TB*Ns, ise+2*sse)

    i_projb = ip_all[:, :ise].astype(bf16)
    iv_projb = ip_all[:, ise:].astype(bf16)          # reused by the visual aggregator
    s_projb = sp_all[:, :ise].astype(bf16)
    sp1b = sp_all[:, ise:ise + sse].astype(bf16)
    sp2b = sp_all[:, ise + sse:].astype(bf16)

    i_proj3 = i_projb.reshape(tb, ni, ise)
    s_proj3 = s_projb.reshape(tb, ns, ise)

    # image -> semantic attention (unmasked, as in the torch code)
    sim_is = jnp.einsum("bqd,bkd->bqk", s_proj3, i_proj3, preferred_element_type=f32)
    att_is = _softmax_lastdim(sim_is)
    i_att = jnp.einsum("bqk,bkd->bqd", att_is.astype(bf16), i_proj3,
                       preferred_element_type=f32)                    # (TB,Ns,ise)
    h_is = lin_cat(s_projb, i_att.reshape(tb * ns, ise).astype(bf16),
                   w_is_a_ref, w_is_b_ref, b_is_ref)                  # (TB*Ns,SEM)

    # semantic -> semantic attention (key-masked)
    sim_ss = jnp.einsum("bqd,bkd->bqk", sp1b.reshape(tb, ns, sse),
                        sp2b.reshape(tb, ns, sse), preferred_element_type=f32)
    att_ss = _softmax_lastdim(sim_ss + key_bias)
    s_att = jnp.einsum("bqk,bkd->bqd", att_ss.astype(bf16),
                       s2b.reshape(tb, ns, -1), preferred_element_type=f32)
    h_ss = lin_cat(s2b, s_att.reshape(tb * ns, -1).astype(bf16),
                   w_ss_a_ref, w_ss_b_ref, b_ss_ref)

    s_new2 = s2 + h_is + h_ss                         # f32 residual, (TB*Ns, SEM)
    s_new2b = s_new2.astype(bf16)

    # ================= ValueGraphAggregator (updates v) =====================
    # NOTE: the torch forward projects BOTH s and v with sem_embed_is
    # (value_embed_is is dead code); reproduced exactly.
    sn_all = lin(s_new2b, w_sn_f_ref, b_sn_f_ref)     # (TB*Ns, vsp+isp), fused with vi.sem_embed_is
    sgb = sn_all[:, :vsp].astype(bf16)
    svb = sn_all[:, vsp:].astype(bf16)                # visual aggregator's s projection
    vgb = lin(v2b, w_vg_ref, b_vg_ref).astype(bf16)   # (TB*Ns, vsp)

    sg3 = sgb.reshape(tb, ns, vsp)
    sim_v = jnp.einsum("bqd,bkd->bqk", sg3, sg3, preferred_element_type=f32)
    att_vv = _softmax_lastdim(sim_v + key_bias)
    v_att = jnp.einsum("bqk,bkd->bqd", att_vv.astype(bf16),
                       vgb.reshape(tb, ns, vsp), preferred_element_type=f32)
    v_add = lin_cat(vgb, v_att.reshape(tb * ns, vsp).astype(bf16),
                    w_vo_a_ref, w_vo_b_ref, b_vo_ref)
    v_new2 = v2 + v_add

    # ================= VisualGraphAggregator (updates i) ====================
    pi3 = pi_ref[...]                                 # (TB,Ni,2)
    pst = pst_ref[...]                                # (TB,2,Ns)  lane-oriented key positions
    xi = pi3[:, :, 0:1]
    yi = pi3[:, :, 1:2]
    xs = pst[:, 0:1, :]
    ys = pst[:, 1:2, :]
    dist = jnp.sqrt((xi - xs) ** 2 + (yi - ys) ** 2)  # (TB,Ni,Ns), f32
    # matches torch: softmax over +distance (farther nodes weighted more).
    att_iv = _softmax_lastdim(dist + key_bias)
    iv_att = jnp.einsum("bqk,bkd->bqd", att_iv.astype(bf16),
                        svb.reshape(tb, ns, isp), preferred_element_type=f32)   # (TB,Ni,isp)
    i_add = lin_cat(iv_projb, iv_att.reshape(tb * ni, isp).astype(bf16),
                    w_vc_a_ref, w_vc_b_ref, b_vc_ref)
    i_new2 = i2 + i_add

    i_out_ref[...] = i_new2.reshape(tb, ni, -1)
    s_out_ref[...] = s_new2.reshape(tb, ns, -1)
    v_out_ref[...] = v_new2.reshape(tb, ns, -1)


# ------------------------- trace-time parameter plumbing -----------------------

def _round_up(x, m=128):
    return ((x + m - 1) // m) * m


def _prepare_params(params, mxu_dtype=jnp.bfloat16):
    """Fuse same-input projections, pre-split concat weights, and zero-pad the
    per-projection output widths to 128-lane boundaries (padded columns/rows
    are exact zeros, so the math is unchanged and slices are vreg-aligned)."""
    ise = params["w_im_is"].shape[1]
    sse = params["w_ss1"].shape[1]
    vsp = params["w_vg_s"].shape[1]
    isp = params["w_vi_im"].shape[1]
    sem = params["w_sem_is"].shape[0]

    ise_p, sse_p, vsp_p, isp_p = (_round_up(d) for d in (ise, sse, vsp, isp))

    def wp(name, width=None):
        w = params["w_" + name].astype(mxu_dtype)
        if width is not None and w.shape[1] != width:
            w = jnp.pad(w, ((0, 0), (0, width - w.shape[1])))
        return w

    def bp(name, width=None):
        b = params["b_" + name].astype(jnp.float32)
        if width is not None and b.shape[1] != width:
            b = jnp.pad(b, ((0, 0), (0, width - b.shape[1])))
        return b

    def rows(w, n_rows):
        if w.shape[0] != n_rows:
            w = jnp.pad(w, ((0, n_rows - w.shape[0]), (0, 0)))
        return w

    w_is, b_is = wp("is_comb"), bp("is_comb")
    w_ss, b_ss = wp("ss_comb"), bp("ss_comb")
    w_vo, b_vo = wp("vg_out"), bp("vg_out")
    w_vc, b_vc = wp("vi_comb"), bp("vi_comb")

    prepped = [
        # fused same-input projections (wide-N matmuls; 128-aligned split points)
        jnp.concatenate([wp("im_is", ise_p), wp("vi_im", isp_p)], axis=1),            # w_i_f
        jnp.concatenate([bp("im_is", ise_p), bp("vi_im", isp_p)], axis=1),            # b_i_f
        jnp.concatenate([wp("sem_is", ise_p), wp("ss1", sse_p), wp("ss2", sse_p)], axis=1),   # w_s_f
        jnp.concatenate([bp("sem_is", ise_p), bp("ss1", sse_p), bp("ss2", sse_p)], axis=1),   # b_s_f
        # pre-split concat-combine weights (rows padded to the padded embeds)
        rows(w_is[:ise], ise_p), rows(w_is[ise:], ise_p), b_is,
        w_ss[:sem], w_ss[sem:], b_ss,
        jnp.concatenate([wp("vg_s", vsp_p), wp("vi_sem", isp_p)], axis=1),            # w_sn_f
        jnp.concatenate([bp("vg_s", vsp_p), bp("vi_sem", isp_p)], axis=1),            # b_sn_f
        wp("vg_s", vsp_p), bp("vg_s", vsp_p),
        rows(w_vo[:vsp], vsp_p), rows(w_vo[vsp:], vsp_p), b_vo,
        rows(w_vc[:isp], isp_p), rows(w_vc[isp:], isp_p), b_vc,
    ]
    dims = dict(ise=ise_p, sse=sse_p, vsp=vsp_p, isp=isp_p)
    return prepped, dims


def _cost_estimate(B, Ni, Ns, OBJ, SEM, ise, sse, vsp, isp, param_bytes):
    mm = 0
    mm += Ni * OBJ * (ise + isp)          # fused image projections
    mm += Ns * SEM * (ise + 2 * sse)      # fused semantic projections
    mm += Ns * Ni * ise * 2               # sim_is + i_att
    mm += Ns * (2 * ise) * SEM            # im_sem_combined
    mm += Ns * Ns * sse + Ns * Ns * SEM   # sim_ss + s_att
    mm += Ns * (2 * SEM) * SEM            # sem_sem_combined
    mm += Ns * SEM * (vsp + isp)          # fused s_new projections
    mm += Ns * SEM * vsp                  # value projection
    mm += Ns * Ns * vsp * 2               # sim_v + v_att
    mm += Ns * (2 * vsp) * SEM            # value output layer
    mm += Ni * Ns * isp                   # visual attention matmul
    mm += Ni * (2 * isp) * OBJ            # visual im_sem_combined
    flops = int(2 * B * mm)
    transcendentals = int(B * (Ns * Ni + 2 * Ns * Ns + 2 * Ni * Ns))  # exp + sqrt
    # f32 activations in/out + positions + key bias, plus the bf16 weight set.
    bytes_accessed = int(
        4 * B * (2 * Ni * OBJ + 4 * Ns * SEM + 2 * Ni + 2 * Ns + Ns) + param_bytes)
    return pl.CostEstimate(flops=flops, transcendentals=transcendentals,
                           bytes_accessed=bytes_accessed)


# --------------------------------- wrapper -----------------------------------

def multimodal_gnn_forward(i, s, v, pi, ps, mask_s, params, *, tb=None):
    """Pallas TPU forward of MultiModalGNN.  Returns (i_new, s_new, v_new)."""
    B, Ni, OBJ = i.shape
    _, Ns, SEM = s.shape

    if tb is None:
        # Keep the batch grid at >= 2 steps so the "parallel" axis can shard
        # across v7x's two TensorCores (no-op on single-TC v5e/v6e).
        tb = B // 2 if (B >= 2 and B % 2 == 0) else B
    assert B % tb == 0, "batch tile size must divide the batch"
    grid = (B // tb,)

    prepped, dims = _prepare_params(params)
    ps_t = jnp.swapaxes(ps, 1, 2)     # layout glue: lane-oriented key positions (B,2,Ns)

    # Precomputed key-mask bias (0 on valid key columns, -inf past mask_s),
    # clamped to >= 1 valid key so an empty row never yields an all--inf softmax.
    nv = jnp.clip(mask_s.astype(jnp.int32), 1, Ns)
    col = jnp.arange(Ns, dtype=jnp.int32)[None, None, :]
    key_bias = jnp.where(col < nv[:, None, None], 0.0, -jnp.inf).astype(jnp.float32)

    kernel = functools.partial(
        mmgnn_kernel, tb=tb, ni=Ni, ns=Ns,
        ise=dims["ise"], sse=dims["sse"], vsp=dims["vsp"], isp=dims["isp"])

    def batched(shape):
        blk = (tb,) + tuple(shape[1:])
        nd = len(shape)
        return pl.BlockSpec(blk, lambda g: (g,) + (0,) * (nd - 1))

    def whole(arr, single_buffer):
        nd = arr.ndim
        idx = lambda g: (0,) * nd
        if single_buffer:
            # Constant index_map -> the second buffer is pure waste; request
            # single buffering for the weight/bias blocks.
            return pl.BlockSpec(tuple(arr.shape), idx, pipeline_mode=pl.Buffered(1))
        return pl.BlockSpec(tuple(arr.shape), idx)

    out_specs = (batched(i.shape), batched(s.shape), batched(v.shape))
    out_shape = (jax.ShapeDtypeStruct(i.shape, jnp.float32),
                 jax.ShapeDtypeStruct(s.shape, jnp.float32),
                 jax.ShapeDtypeStruct(v.shape, jnp.float32))

    # VMEM budget from the actual tile + parameter footprint, clamped to ~85%
    # of the *physical* VMEM of this chip generation (64 MiB/TC on v7x,
    # 128 MiB on v5e/v6e); still raises the small default scope on v5e.
    fb = 4
    in_tile = (tb * Ni * OBJ + 2 * tb * Ns * SEM + 2 * tb * Ni + 2 * tb * Ns + tb * Ns) * fb
    out_tile = (tb * Ni * OBJ + 2 * tb * Ns * SEM) * fb
    param_bytes = sum(int(p.size) * p.dtype.itemsize for p in prepped)
    footprint = 2 * (in_tile + out_tile) + 2 * param_bytes   # worst case (double-buffered)
    try:
        vmem_cap = int(getattr(pltpu.get_tpu_info(), "vmem_capacity_bytes", 64 * 2 ** 20))
    except Exception:
        vmem_cap = 64 * 2 ** 20
    cap = int(vmem_cap * 0.85)
    vmem_limit = int(min(cap, max(32 * 2 ** 20, 4 * footprint)))
    vmem_limit = max(vmem_limit, 16 * 2 ** 20)

    cost = _cost_estimate(B, Ni, Ns, OBJ, SEM, param_bytes=param_bytes, **dims)

    def run(single_buffer_weights):
        in_specs = ([batched(i.shape), batched(s.shape), batched(v.shape),
                     batched(pi.shape), batched(ps_t.shape), batched(key_bias.shape)]
                    + [whole(p, single_buffer_weights) for p in prepped])
        fn = pl.pallas_call(
            kernel,
            out_shape=out_shape,
            grid=grid,
            in_specs=in_specs,
            out_specs=out_specs,
            compiler_params=pltpu.CompilerParams(
                dimension_semantics=("parallel",),   # batch tiles are independent
                vmem_limit_bytes=vmem_limit,
            ),
            cost_estimate=cost,
        )
        outs = fn(i, s, v, pi, ps_t, key_bias, *prepped)
        jax.block_until_ready(outs)
        return outs

    try:
        return run(True)
    except Exception:
        # TODO(synk): pipeline_mode=pl.Buffered(1) rejected by this JAX/Mosaic
        # build; fall back to default double-buffered weight blocks.
        return run(False)


# ------------------------- deterministic parameter init -----------------------

def init_params(key, obj_dim, sem_dim, im_sem_embed_dim, sem_sem_embed_dim,
                vs_proj_dim, is_proj_dim):
    # Effective (weight-normed) Linear weights as (in, out); bias (1, out).
    # NOTE: MultiModalGNN builds ValueGraphAggregator(is_proj_dim) and
    # VisualGraphAggregator(vs_proj_dim) (names swapped in the original code).
    # TODO(synk): value_embed_is and the `eps` buffer exist in __init__ but are
    # never used in forward; they are intentionally not materialized.
    specs = {
        "im_is": (obj_dim, im_sem_embed_dim),
        "sem_is": (sem_dim, im_sem_embed_dim),
        "is_comb": (2 * im_sem_embed_dim, sem_dim),
        "ss1": (sem_dim, sem_sem_embed_dim),
        "ss2": (sem_dim, sem_sem_embed_dim),
        "ss_comb": (2 * sem_dim, sem_dim),
        "vg_s": (sem_dim, is_proj_dim),
        "vg_out": (2 * is_proj_dim, sem_dim),
        "vi_im": (obj_dim, vs_proj_dim),
        "vi_sem": (sem_dim, vs_proj_dim),
        "vi_comb": (2 * vs_proj_dim, obj_dim),
    }
    params = {}
    keys = jax.random.split(key, len(specs))
    for k, (name, (fi, fo)) in zip(keys, specs.items()):
        kw, kb = jax.random.split(k)
        params["w_" + name] = jax.random.normal(kw, (fi, fo), jnp.float32) * 0.05
        params["b_" + name] = jax.random.normal(kb, (1, fo), jnp.float32) * 0.05
    return params


# ------------------------------ pure-JAX reference ----------------------------

def ref_forward(i, s, v, pi, ps, mask_s, p):
    def lin(x, w, b):
        return jnp.maximum(x @ w + b, 0.0)

    def softmax(x):
        m = x.max(-1, keepdims=True)
        e = jnp.exp(x - m)
        return e / e.sum(-1, keepdims=True)

    def msoftmax(x, nv):
        col = jnp.arange(x.shape[-1])[None, None, :]
        xm = jnp.where(col < nv[:, None, None], x, -jnp.inf)
        return softmax(xm)

    # SemanticGraphAggregator
    i_proj = lin(i, p["w_im_is"], p["b_im_is"])
    s_proj = lin(s, p["w_sem_is"], p["b_sem_is"])
    att = softmax(s_proj @ jnp.swapaxes(i_proj, 1, 2))
    i_att = att @ i_proj
    h_is = lin(jnp.concatenate([s_proj, i_att], -1), p["w_is_comb"], p["b_is_comb"])
    sp1 = lin(s, p["w_ss1"], p["b_ss1"])
    sp2 = lin(s, p["w_ss2"], p["b_ss2"])
    att2 = msoftmax(sp1 @ jnp.swapaxes(sp2, 1, 2), mask_s)
    s_att = att2 @ s
    h_ss = lin(jnp.concatenate([s, s_att], -1), p["w_ss_comb"], p["b_ss_comb"])
    s_new = s + h_is + h_ss
    # ValueGraphAggregator (sem_embed_is used on both s and v, as in torch)
    sg = lin(s_new, p["w_vg_s"], p["b_vg_s"])
    vg = lin(v, p["w_vg_s"], p["b_vg_s"])
    attv = msoftmax(sg @ jnp.swapaxes(sg, 1, 2), mask_s)
    v_att = attv @ vg
    v_new = v + lin(jnp.concatenate([vg, v_att], -1), p["w_vg_out"], p["b_vg_out"])
    # VisualGraphAggregator
    xi = pi[:, :, 0:1]
    xs = jnp.swapaxes(ps[:, :, 0:1], 1, 2)
    yi = pi[:, :, 1:2]
    ys = jnp.swapaxes(ps[:, :, 1:2], 1, 2)
    dist = jnp.sqrt((xi - xs) ** 2 + (yi - ys) ** 2)
    atti = msoftmax(dist, mask_s)
    ip = lin(i, p["w_vi_im"], p["b_vi_im"])
    sp = lin(s_new, p["w_vi_sem"], p["b_vi_sem"])
    ia = atti @ sp
    i_new = i + lin(jnp.concatenate([ip, ia], -1), p["w_vi_comb"], p["b_vi_comb"])
    return i_new, s_new, v_new


# ----------------------------------- main --------------------------------------

if __name__ == "__main__":
    # Small, lane-aligned test shapes (real module: [B,100,2048] / [B,50,300]).
    B, Ni, Ns = 4, 16, 8
    OBJ_DIM, SEM_DIM = 128, 128
    IM_SEM = SEM_SEM = VS_PROJ = IS_PROJ = 64   # padded to 128 inside the wrapper

    key = jax.random.PRNGKey(0)
    kp, ki, ks, kv, kpi, kps = jax.random.split(key, 6)
    params = init_params(kp, OBJ_DIM, SEM_DIM, IM_SEM, SEM_SEM, VS_PROJ, IS_PROJ)

    i = jax.random.normal(ki, (B, Ni, OBJ_DIM), jnp.float32)
    s = jax.random.normal(ks, (B, Ns, SEM_DIM), jnp.float32)
    v = jax.random.normal(kv, (B, Ns, SEM_DIM), jnp.float32)
    pi = jax.random.uniform(kpi, (B, Ni, 2), jnp.float32)
    ps = jax.random.uniform(kps, (B, Ns, 2), jnp.float32)
    mask_s = jnp.array([5, Ns, 3, 1], dtype=jnp.int32)   # num valid tokens (>= 1)

    # default tb = B//2 -> grid=(2,) so both v7x TensorCores get a batch tile.
    i_new, s_new, v_new = multimodal_gnn_forward(i, s, v, pi, ps, mask_s, params)
    jax.block_until_ready((i_new, s_new, v_new))

    ri, rs, rv = ref_forward(i, s, v, pi, ps, mask_s, params)
    for got, want in ((i_new, ri), (s_new, rs), (v_new, rv)):
        assert bool(jnp.isfinite(got).all())
        err = float(jnp.abs(got - want).max())
        # MXU matmuls use bf16 operands with f32 accumulation; everything else f32.
        assert err < 3e-2, f"max abs error {err}"

    print("KERNEL_OK")
</pallas_src>

<mosaic_0001>
module attributes {stable_mosaic.version = 11 : i64} {
  func.func @mmgnn_kernel(%arg0: i32, %arg1: memref<2x16x128xf32, #tpu.memory_space<vmem>>, %arg2: memref<2x8x128xf32, #tpu.memory_space<vmem>>, %arg3: memref<2x8x128xf32, #tpu.memory_space<vmem>>, %arg4: memref<2x16x2xf32, #tpu.memory_space<vmem>>, %arg5: memref<2x2x8xf32, #tpu.memory_space<vmem>>, %arg6: memref<2x1x8xf32, #tpu.memory_space<vmem>>, %arg7: memref<128x256xbf16, #tpu.memory_space<vmem>>, %arg8: memref<1x256xf32, #tpu.memory_space<vmem>>, %arg9: memref<128x384xbf16, #tpu.memory_space<vmem>>, %arg10: memref<1x384xf32, #tpu.memory_space<vmem>>, %arg11: memref<128x128xbf16, #tpu.memory_space<vmem>>, %arg12: memref<128x128xbf16, #tpu.memory_space<vmem>>, %arg13: memref<1x128xf32, #tpu.memory_space<vmem>>, %arg14: memref<128x128xbf16, #tpu.memory_space<vmem>>, %arg15: memref<128x128xbf16, #tpu.memory_space<vmem>>, %arg16: memref<1x128xf32, #tpu.memory_space<vmem>>, %arg17: memref<128x256xbf16, #tpu.memory_space<vmem>>, %arg18: memref<1x256xf32, #tpu.memory_space<vmem>>, %arg19: memref<128x128xbf16, #tpu.memory_space<vmem>>, %arg20: memref<1x128xf32, #tpu.memory_space<vmem>>, %arg21: memref<128x128xbf16, #tpu.memory_space<vmem>>, %arg22: memref<128x128xbf16, #tpu.memory_space<vmem>>, %arg23: memref<1x128xf32, #tpu.memory_space<vmem>>, %arg24: memref<128x128xbf16, #tpu.memory_space<vmem>>, %arg25: memref<128x128xbf16, #tpu.memory_space<vmem>>, %arg26: memref<1x128xf32, #tpu.memory_space<vmem>>, %arg27: memref<2x16x128xf32, #tpu.memory_space<vmem>>, %arg28: memref<2x8x128xf32, #tpu.memory_space<vmem>>, %arg29: memref<2x8x128xf32, #tpu.memory_space<vmem>>) attributes {dimension_semantics = [#tpu.dimension_semantics<parallel>], iteration_bounds = array<i64: 2>, scalar_prefetch = 0 : i64, scratch_operands = 0 : i64, tpu.core_type = #tpu.core_type<tc>, window_params = [{transform_indices = @transform_0, window_bounds = array<i64: 2, 16, 128>}, {transform_indices = @transform_1, window_bounds = array<i64: 2, 8, 128>}, {transform_indices = @transform_2, window_bounds = array<i64: 2, 8, 128>}, {transform_indices = @transform_3, window_bounds = array<i64: 2, 16, 2>}, {transform_indices = @transform_4, window_bounds = array<i64: 2, 2, 8>}, {transform_indices = @transform_5, window_bounds = array<i64: 2, 1, 8>}, {pipeline_mode = #tpu.pipeline_mode<synchronous>, transform_indices = @transform_6, window_bounds = array<i64: 128, 256>}, {pipeline_mode = #tpu.pipeline_mode<synchronous>, transform_indices = @transform_7, window_bounds = array<i64: 1, 256>}, {pipeline_mode = #tpu.pipeline_mode<synchronous>, transform_indices = @transform_8, window_bounds = array<i64: 128, 384>}, {pipeline_mode = #tpu.pipeline_mode<synchronous>, transform_indices = @transform_9, window_bounds = array<i64: 1, 384>}, {pipeline_mode = #tpu.pipeline_mode<synchronous>, transform_indices = @transform_10, window_bounds = array<i64: 128, 128>}, {pipeline_mode = #tpu.pipeline_mode<synchronous>, transform_indices = @transform_11, window_bounds = array<i64: 128, 128>}, {pipeline_mode = #tpu.pipeline_mode<synchronous>, transform_indices = @transform_12, window_bounds = array<i64: 1, 128>}, {pipeline_mode = #tpu.pipeline_mode<synchronous>, transform_indices = @transform_13, window_bounds = array<i64: 128, 128>}, {pipeline_mode = #tpu.pipeline_mode<synchronous>, transform_indices = @transform_14, window_bounds = array<i64: 128, 128>}, {pipeline_mode = #tpu.pipeline_mode<synchronous>, transform_indices = @transform_15, window_bounds = array<i64: 1, 128>}, {pipeline_mode = #tpu.pipeline_mode<synchronous>, transform_indices = @transform_16, window_bounds = array<i64: 128, 256>}, {pipeline_mode = #tpu.pipeline_mode<synchronous>, transform_indices = @transform_17, window_bounds = array<i64: 1, 256>}, {pipeline_mode = #tpu.pipeline_mode<synchronous>, transform_indices = @transform_18, window_bounds = array<i64: 128, 128>}, {pipeline_mode = #tpu.pipeline_mode<synchronous>, transform_indices = @transform_19, window_bounds = array<i64: 1, 128>}, {pipeline_mode = #tpu.pipeline_mode<synchronous>, transform_indices = @transform_20, window_bounds = array<i64: 128, 128>}, {pipeline_mode = #tpu.pipeline_mode<synchronous>, transform_indices = @transform_21, window_bounds = array<i64: 128, 128>}, {pipeline_mode = #tpu.pipeline_mode<synchronous>, transform_indices = @transform_22, window_bounds = array<i64: 1, 128>}, {pipeline_mode = #tpu.pipeline_mode<synchronous>, transform_indices = @transform_23, window_bounds = array<i64: 128, 128>}, {pipeline_mode = #tpu.pipeline_mode<synchronous>, transform_indices = @transform_24, window_bounds = array<i64: 128, 128>}, {pipeline_mode = #tpu.pipeline_mode<synchronous>, transform_indices = @transform_25, window_bounds = array<i64: 1, 128>}, {transform_indices = @transform_26, window_bounds = array<i64: 2, 16, 128>}, {transform_indices = @transform_27, window_bounds = array<i64: 2, 8, 128>}, {transform_indices = @transform_28, window_bounds = array<i64: 2, 8, 128>}]} {
    %c0 = arith.constant 0 : index
    %c0_0 = arith.constant 0 : index
    %c0_1 = arith.constant 0 : index
    %0 = vector.load %arg1[%c0, %c0_0, %c0_1] : memref<2x16x128xf32, #tpu.memory_space<vmem>>, vector<2x16x128xf32>
    %c0_2 = arith.constant 0 : index
    %c0_3 = arith.constant 0 : index
    %c0_4 = arith.constant 0 : index
    %1 = vector.load %arg2[%c0_2, %c0_3, %c0_4] : memref<2x8x128xf32, #tpu.memory_space<vmem>>, vector<2x8x128xf32>
    %c0_5 = arith.constant 0 : index
    %c0_6 = arith.constant 0 : index
    %c0_7 = arith.constant 0 : index
    %2 = vector.load %arg3[%c0_5, %c0_6, %c0_7] : memref<2x8x128xf32, #tpu.memory_space<vmem>>, vector<2x8x128xf32>
    %3 = vector.shape_cast %0 : vector<2x16x128xf32> to vector<32x128xf32>
    %4 = vector.shape_cast %1 : vector<2x8x128xf32> to vector<16x128xf32>
    %5 = vector.shape_cast %2 : vector<2x8x128xf32> to vector<16x128xf32>
    %6 = arith.truncf %3 : vector<32x128xf32> to vector<32x128xbf16>
    %7 = arith.truncf %4 : vector<16x128xf32> to vector<16x128xbf16>
    %8 = arith.truncf %5 : vector<16x128xf32> to vector<16x128xbf16>
    %c0_8 = arith.constant 0 : index
    %c0_9 = arith.constant 0 : index
    %c0_10 = arith.constant 0 : index
    %9 = vector.load %arg6[%c0_8, %c0_9, %c0_10] : memref<2x1x8xf32, #tpu.memory_space<vmem>>, vector<2x1x8xf32>
    %c0_11 = arith.constant 0 : index
    %c0_12 = arith.constant 0 : index
    %10 = vector.load %arg7[%c0_11, %c0_12] : memref<128x256xbf16, #tpu.memory_space<vmem>>, vector<128x256xbf16>
    %cst = arith.constant dense<0.000000e+00> : vector<32x256xf32>
    %11 = tpu.matmul %6, %10, %cst {dimension_numbers = #tpu.dot_dimension_numbers<[1], [0], [0], [1], [0, 0, 1, 1], [], []>} : vector<32x128xbf16>, vector<128x256xbf16>, vector<32x256xf32> -> vector<32x256xf32>
    %c0_13 = arith.constant 0 : index
    %c0_14 = arith.constant 0 : index
    %12 = vector.load %arg8[%c0_13, %c0_14] : memref<1x256xf32, #tpu.memory_space<vmem>>, vector<1x256xf32>
    %13 = vector.broadcast %12 : vector<1x256xf32> to vector<32x256xf32>
    %14 = arith.addf %11, %13 : vector<32x256xf32>
    %cst_15 = arith.constant 0.000000e+00 : f32
    %15 = vector.broadcast %cst_15 : f32 to vector<32x256xf32>
    %16 = arith.maximumf %14, %15 : vector<32x256xf32>
    %c0_16 = arith.constant 0 : index
    %c0_17 = arith.constant 0 : index
    %17 = vector.load %arg9[%c0_16, %c0_17] : memref<128x384xbf16, #tpu.memory_space<vmem>>, vector<128x384xbf16>
    %cst_18 = arith.constant dense<0.000000e+00> : vector<16x384xf32>
    %18 = tpu.matmul %7, %17, %cst_18 {dimension_numbers = #tpu.dot_dimension_numbers<[1], [0], [0], [1], [0, 0, 1, 1], [], []>} : vector<16x128xbf16>, vector<128x384xbf16>, vector<16x384xf32> -> vector<16x384xf32>
    %c0_19 = arith.constant 0 : index
    %c0_20 = arith.constant 0 : index
    %19 = vector.load %arg10[%c0_19, %c0_20] : memref<1x384xf32, #tpu.memory_space<vmem>>, vector<1x384xf32>
    %20 = vector.broadcast %19 : vector<1x384xf32> to vector<16x384xf32>
    %21 = arith.addf %18, %20 : vector<16x384xf32>
    %cst_21 = arith.constant 0.000000e+00 : f32
    %22 = vector.broadcast %cst_21 : f32 to vector<16x384xf32>
    %23 = arith.maximumf %21, %22 : vector<16x384xf32>
    %24 = vector.extract_strided_slice %16 {offsets = [0, 0], sizes = [32, 128], strides = [1, 1]} : vector<32x256xf32> to vector<32x128xf32>
    %25 = arith.truncf %24 : vector<32x128xf32> to vector<32x128xbf16>
    %26 = vector.extract_strided_slice %16 {offsets = [0, 128], sizes = [32, 128], strides = [1, 1]} : vector<32x256xf32> to vector<32x128xf32>
    %27 = arith.truncf %26 : vector<32x128xf32> to vector<32x128xbf16>
    %28 = vector.extract_strided_slice %23 {offsets = [0, 0], sizes = [16, 128], strides = [1, 1]} : vector<16x384xf32> to vector<16x128xf32>
    %29 = arith.truncf %28 : vector<16x128xf32> to vector<16x128xbf16>
    %30 = vector.extract_strided_slice %23 {offsets = [0, 128], sizes = [16, 128], strides = [1, 1]} : vector<16x384xf32> to vector<16x128xf32>
    %31 = arith.truncf %30 : vector<16x128xf32> to vector<16x128xbf16>
    %32 = vector.extract_strided_slice %23 {offsets = [0, 256], sizes = [16, 128], strides = [1, 1]} : vector<16x384xf32> to vector<16x128xf32>
    %33 = arith.truncf %32 : vector<16x128xf32> to vector<16x128xbf16>
    %34 = vector.shape_cast %25 : vector<32x128xbf16> to vector<2x16x128xbf16>
    %35 = vector.shape_cast %29 : vector<16x128xbf16> to vector<2x8x128xbf16>
    "tpu.trace_start"() <{level = 10 : i32, message = "bqd,bkd->bqk"}> : () -> ()
    %cst_22 = arith.constant dense<0.000000e+00> : vector<2x8x16xf32>
    %36 = tpu.matmul %35, %34, %cst_22 {dimension_numbers = #tpu.dot_dimension_numbers<[2], [2], [1], [1], [0, 0, 0, 1, 1, 1], [0], [0]>} : vector<2x8x128xbf16>, vector<2x16x128xbf16>, vector<2x8x16xf32> -> vector<2x8x16xf32>
    "tpu.trace_stop"() : () -> ()
    %cst_23 = arith.constant dense<0xFF800000> : vector<2x8xf32>
    %37 = vector.multi_reduction <maximumf>, %36, %cst_23 [2] : vector<2x8x16xf32> to vector<2x8xf32>
    %38 = vector.shape_cast %37 : vector<2x8xf32> to vector<2x8x1xf32>
    %39 = vector.broadcast %38 : vector<2x8x1xf32> to vector<2x8x16xf32>
    %40 = arith.subf %36, %39 : vector<2x8x16xf32>
    %41 = math.exp %40 : vector<2x8x16xf32>
    %cst_24 = arith.constant dense<0.000000e+00> : vector<2x8xf32>
    %42 = vector.multi_reduction <add>, %41, %cst_24 [2] : vector<2x8x16xf32> to vector<2x8xf32>
    %43 = vector.shape_cast %42 : vector<2x8xf32> to vector<2x8x1xf32>
    %44 = tpu.reciprocal %43 {approx = true} : vector<2x8x1xf32> -> vector<2x8x1xf32>
    %45 = vector.broadcast %44 : vector<2x8x1xf32> to vector<2x8x16xf32>
    %46 = arith.mulf %41, %45 : vector<2x8x16xf32>
    %47 = arith.truncf %46 : vector<2x8x16xf32> to vector<2x8x16xbf16>
    "tpu.trace_start"() <{level = 10 : i32, message = "bqk,bkd->bqd"}> : () -> ()
    %cst_25 = arith.constant dense<0.000000e+00> : vector<2x8x128xf32>
    %48 = tpu.matmul %47, %34, %cst_25 {dimension_numbers = #tpu.dot_dimension_numbers<[2], [1], [1], [2], [0, 0, 0, 1, 1, 2], [0], [0]>} : vector<2x8x16xbf16>, vector<2x16x128xbf16>, vector<2x8x128xf32> -> vector<2x8x128xf32>
    "tpu.trace_stop"() : () -> ()
    %49 = vector.shape_cast %48 : vector<2x8x128xf32> to vector<16x128xf32>
    %50 = arith.truncf %49 : vector<16x128xf32> to vector<16x128xbf16>
    %c0_26 = arith.constant 0 : index
    %c0_27 = arith.constant 0 : index
    %51 = vector.load %arg11[%c0_26, %c0_27] : memref<128x128xbf16, #tpu.memory_space<vmem>>, vector<128x128xbf16>
    %cst_28 = arith.constant dense<0.000000e+00> : vector<16x128xf32>
    %52 = tpu.matmul %29, %51, %cst_28 {dimension_numbers = #tpu.dot_dimension_numbers<[1], [0], [0], [1], [0, 0, 1, 1], [], []>} : vector<16x128xbf16>, vector<128x128xbf16>, vector<16x128xf32> -> vector<16x128xf32>
    %c0_29 = arith.constant 0 : index
    %c0_30 = arith.constant 0 : index
    %53 = vector.load %arg12[%c0_29, %c0_30] : memref<128x128xbf16, #tpu.memory_space<vmem>>, vector<128x128xbf16>
    %cst_31 = arith.constant dense<0.000000e+00> : vector<16x128xf32>
    %54 = tpu.matmul %50, %53, %cst_31 {dimension_numbers = #tpu.dot_dimension_numbers<[1], [0], [0], [1], [0, 0, 1, 1], [], []>} : vector<16x128xbf16>, vector<128x128xbf16>, vector<16x128xf32> -> vector<16x128xf32>
    %55 = arith.addf %52, %54 : vector<16x128xf32>
    %c0_32 = arith.constant 0 : index
    %c0_33 = arith.constant 0 : index
    %56 = vector.load %arg13[%c0_32, %c0_33] : memref<1x128xf32, #tpu.memory_space<vmem>>, vector<1x128xf32>
    %57 = vector.broadcast %56 : vector<1x128xf32> to vector<16x128xf32>
    %58 = arith.addf %55, %57 : vector<16x128xf32>
    %cst_34 = arith.constant 0.000000e+00 : f32
    %59 = vector.broadcast %cst_34 : f32 to vector<16x128xf32>
    %60 = arith.maximumf %58, %59 : vector<16x128xf32>
    %61 = vector.shape_cast %31 : vector<16x128xbf16> to vector<2x8x128xbf16>
    %62 = vector.shape_cast %33 : vector<16x128xbf16> to vector<2x8x128xbf16>
    "tpu.trace_start"() <{level = 10 : i32, message = "bqd,bkd->bqk"}> : () -> ()
    %cst_35 = arith.constant dense<0.000000e+00> : vector<2x8x8xf32>
    %63 = tpu.matmul %61, %62, %cst_35 {dimension_numbers = #tpu.dot_dimension_numbers<[2], [2], [1], [1], [0, 0, 0, 1, 1, 1], [0], [0]>} : vector<2x8x128xbf16>, vector<2x8x128xbf16>, vector<2x8x8xf32> -> vector<2x8x8xf32>
    "tpu.trace_stop"() : () -> ()
    %64 = vector.broadcast %9 : vector<2x1x8xf32> to vector<2x8x8xf32>
    %65 = arith.addf %63, %64 : vector<2x8x8xf32>
    %cst_36 = arith.constant dense<0xFF800000> : vector<2x8xf32>
    %66 = vector.multi_reduction <maximumf>, %65, %cst_36 [2] : vector<2x8x8xf32> to vector<2x8xf32>
    %67 = vector.shape_cast %66 : vector<2x8xf32> to vector<2x8x1xf32>
    %68 = vector.broadcast %67 : vector<2x8x1xf32> to vector<2x8x8xf32>
    %69 = arith.subf %65, %68 : vector<2x8x8xf32>
    %70 = math.exp %69 : vector<2x8x8xf32>
    %cst_37 = arith.constant dense<0.000000e+00> : vector<2x8xf32>
    %71 = vector.multi_reduction <add>, %70, %cst_37 [2] : vector<2x8x8xf32> to vector<2x8xf32>
    %72 = vector.shape_cast %71 : vector<2x8xf32> to vector<2x8x1xf32>
    %73 = tpu.reciprocal %72 {approx = true} : vector<2x8x1xf32> -> vector<2x8x1xf32>
    %74 = vector.broadcast %73 : vector<2x8x1xf32> to vector<2x8x8xf32>
    %75 = arith.mulf %70, %74 : vector<2x8x8xf32>
    %76 = arith.truncf %75 : vector<2x8x8xf32> to vector<2x8x8xbf16>
    %77 = vector.shape_cast %7 : vector<16x128xbf16> to vector<2x8x128xbf16>
    "tpu.trace_start"() <{level = 10 : i32, message = "bqk,bkd->bqd"}> : () -> ()
    %cst_38 = arith.constant dense<0.000000e+00> : vector<2x8x128xf32>
    %78 = tpu.matmul %76, %77, %cst_38 {dimension_numbers = #tpu.dot_dimension_numbers<[2], [1], [1], [2], [0, 0, 0, 1, 1, 2], [0], [0]>} : vector<2x8x8xbf16>, vector<2x8x128xbf16>, vector<2x8x128xf32> -> vector<2x8x128xf32>
    "tpu.trace_stop"() : () -> ()
    %79 = vector.shape_cast %78 : vector<2x8x128xf32> to vector<16x128xf32>
    %80 = arith.truncf %79 : vector<16x128xf32> to vector<16x128xbf16>
    %c0_39 = arith.constant 0 : index
    %c0_40 = arith.constant 0 : index
    %81 = vector.load %arg14[%c0_39, %c0_40] : memref<128x128xbf16, #tpu.memory_space<vmem>>, vector<128x128xbf16>
    %cst_41 = arith.constant dense<0.000000e+00> : vector<16x128xf32>
    %82 = tpu.matmul %7, %81, %cst_41 {dimension_numbers = #tpu.dot_dimension_numbers<[1], [0], [0], [1], [0, 0, 1, 1], [], []>} : vector<16x128xbf16>, vector<128x128xbf16>, vector<16x128xf32> -> vector<16x128xf32>
    %c0_42 = arith.constant 0 : index
    %c0_43 = arith.constant 0 : index
    %83 = vector.load %arg15[%c0_42, %c0_43] : memref<128x128xbf16, #tpu.memory_space<vmem>>, vector<128x128xbf16>
    %cst_44 = arith.constant dense<0.000000e+00> : vector<16x128xf32>
    %84 = tpu.matmul %80, %83, %cst_44 {dimension_numbers = #tpu.dot_dimension_numbers<[1], [0], [0], [1], [0, 0, 1, 1], [], []>} : vector<16x128xbf16>, vector<128x128xbf16>, vector<16x128xf32> -> vector<16x128xf32>
    %85 = arith.addf %82, %84 : vector<16x128xf32>
    %c0_45 = arith.constant 0 : index
    %c0_46 = arith.constant 0 : index
    %86 = vector.load %arg16[%c0_45, %c0_46] : memref<1x128xf32, #tpu.memory_space<vmem>>, vector<1x128xf32>
    %87 = vector.broadcast %86 : vector<1x128xf32> to vector<16x128xf32>
    %88 = arith.addf %85, %87 : vector<16x128xf32>
    %cst_47 = arith.constant 0.000000e+00 : f32
    %89 = vector.broadcast %cst_47 : f32 to vector<16x128xf32>
    %90 = arith.maximumf %88, %89 : vector<16x128xf32>
    %91 = arith.addf %4, %60 : vector<16x128xf32>
    %92 = arith.addf %91, %90 : vector<16x128xf32>
    %93 = arith.truncf %92 : vector<16x128xf32> to vector<16x128xbf16>
    %c0_48 = arith.constant 0 : index
    %c0_49 = arith.constant 0 : index
    %94 = vector.load %arg17[%c0_48, %c0_49] : memref<128x256xbf16, #tpu.memory_space<vmem>>, vector<128x256xbf16>
    %cst_50 = arith.constant dense<0.000000e+00> : vector<16x256xf32>
    %95 = tpu.matmul %93, %94, %cst_50 {dimension_numbers = #tpu.dot_dimension_numbers<[1], [0], [0], [1], [0, 0, 1, 1], [], []>} : vector<16x128xbf16>, vector<128x256xbf16>, vector<16x256xf32> -> vector<16x256xf32>
    %c0_51 = arith.constant 0 : index
    %c0_52 = arith.constant 0 : index
    %96 = vector.load %arg18[%c0_51, %c0_52] : memref<1x256xf32, #tpu.memory_space<vmem>>, vector<1x256xf32>
    %97 = vector.broadcast %96 : vector<1x256xf32> to vector<16x256xf32>
    %98 = arith.addf %95, %97 : vector<16x256xf32>
    %cst_53 = arith.constant 0.000000e+00 : f32
    %99 = vector.broadcast %cst_53 : f32 to vector<16x256xf32>
    %100 = arith.maximumf %98, %99 : vector<16x256xf32>
    %101 = vector.extract_strided_slice %100 {offsets = [0, 0], sizes = [16, 128], strides = [1, 1]} : vector<16x256xf32> to vector<16x128xf32>
    %102 = arith.truncf %101 : vector<16x128xf32> to vector<16x128xbf16>
    %103 = vector.extract_strided_slice %100 {offsets = [0, 128], sizes = [16, 128], strides = [1, 1]} : vector<16x256xf32> to vector<16x128xf32>
    %104 = arith.truncf %103 : vector<16x128xf32> to vector<16x128xbf16>
    %c0_54 = arith.constant 0 : index
    %c0_55 = arith.constant 0 : index
    %105 = vector.load %arg19[%c0_54, %c0_55] : memref<128x128xbf16, #tpu.memory_space<vmem>>, vector<128x128xbf16>
    %cst_56 = arith.constant dense<0.000000e+00> : vector<16x128xf32>
    %106 = tpu.matmul %8, %105, %cst_56 {dimension_numbers = #tpu.dot_dimension_numbers<[1], [0], [0], [1], [0, 0, 1, 1], [], []>} : vector<16x128xbf16>, vector<128x128xbf16>, vector<16x128xf32> -> vector<16x128xf32>
    %c0_57 = arith.constant 0 : index
    %c0_58 = arith.constant 0 : index
    %107 = vector.load %arg20[%c0_57, %c0_58] : memref<1x128xf32, #tpu.memory_space<vmem>>, vector<1x128xf32>
    %108 = vector.broadcast %107 : vector<1x128xf32> to vector<16x128xf32>
    %109 = arith.addf %106, %108 : vector<16x128xf32>
    %cst_59 = arith.constant 0.000000e+00 : f32
    %110 = vector.broadcast %cst_59 : f32 to vector<16x128xf32>
    %111 = arith.maximumf %109, %110 : vector<16x128xf32>
    %112 = arith.truncf %111 : vector<16x128xf32> to vector<16x128xbf16>
    %113 = vector.shape_cast %102 : vector<16x128xbf16> to vector<2x8x128xbf16>
    "tpu.trace_start"() <{level = 10 : i32, message = "bqd,bkd->bqk"}> : () -> ()
    %cst_60 = arith.constant dense<0.000000e+00> : vector<2x8x8xf32>
    %114 = tpu.matmul %113, %113, %cst_60 {dimension_numbers = #tpu.dot_dimension_numbers<[2], [2], [1], [1], [0, 0, 0, 1, 1, 1], [0], [0]>} : vector<2x8x128xbf16>, vector<2x8x128xbf16>, vector<2x8x8xf32> -> vector<2x8x8xf32>
    "tpu.trace_stop"() : () -> ()
    %115 = vector.broadcast %9 : vector<2x1x8xf32> to vector<2x8x8xf32>
    %116 = arith.addf %114, %115 : vector<2x8x8xf32>
    %cst_61 = arith.constant dense<0xFF800000> : vector<2x8xf32>
    %117 = vector.multi_reduction <maximumf>, %116, %cst_61 [2] : vector<2x8x8xf32> to vector<2x8xf32>
    %118 = vector.shape_cast %117 : vector<2x8xf32> to vector<2x8x1xf32>
    %119 = vector.broadcast %118 : vector<2x8x1xf32> to vector<2x8x8xf32>
    %120 = arith.subf %116, %119 : vector<2x8x8xf32>
    %121 = math.exp %120 : vector<2x8x8xf32>
    %cst_62 = arith.constant dense<0.000000e+00> : vector<2x8xf32>
    %122 = vector.multi_reduction <add>, %121, %cst_62 [2] : vector<2x8x8xf32> to vector<2x8xf32>
    %123 = vector.shape_cast %122 : vector<2x8xf32> to vector<2x8x1xf32>
    %124 = tpu.reciprocal %123 {approx = true} : vector<2x8x1xf32> -> vector<2x8x1xf32>
    %125 = vector.broadcast %124 : vector<2x8x1xf32> to vector<2x8x8xf32>
    %126 = arith.mulf %121, %125 : vector<2x8x8xf32>
    %127 = arith.truncf %126 : vector<2x8x8xf32> to vector<2x8x8xbf16>
    %128 = vector.shape_cast %112 : vector<16x128xbf16> to vector<2x8x128xbf16>
    "tpu.trace_start"() <{level = 10 : i32, message = "bqk,bkd->bqd"}> : () -> ()
    %cst_63 = arith.constant dense<0.000000e+00> : vector<2x8x128xf32>
    %129 = tpu.matmul %127, %128, %cst_63 {dimension_numbers = #tpu.dot_dimension_numbers<[2], [1], [1], [2], [0, 0, 0, 1, 1, 2], [0], [0]>} : vector<2x8x8xbf16>, vector<2x8x128xbf16>, vector<2x8x128xf32> -> vector<2x8x128xf32>
    "tpu.trace_stop"() : () -> ()
    %130 = vector.shape_cast %129 : vector<2x8x128xf32> to vector<16x128xf32>
    %131 = arith.truncf %130 : vector<16x128xf32> to vector<16x128xbf16>
    %c0_64 = arith.constant 0 : index
    %c0_65 = arith.constant 0 : index
    %132 = vector.load %arg21[%c0_64, %c0_65] : memref<128x128xbf16, #tpu.memory_space<vmem>>, vector<128x128xbf16>
    %cst_66 = arith.constant dense<0.000000e+00> : vector<16x128xf32>
    %133 = tpu.matmul %112, %132, %cst_66 {dimension_numbers = #tpu.dot_dimension_numbers<[1], [0], [0], [1], [0, 0, 1, 1], [], []>} : vector<16x128xbf16>, vector<128x128xbf16>, vector<16x128xf32> -> vector<16x128xf32>
    %c0_67 = arith.constant 0 : index
    %c0_68 = arith.constant 0 : index
    %134 = vector.load %arg22[%c0_67, %c0_68] : memref<128x128xbf16, #tpu.memory_space<vmem>>, vector<128x128xbf16>
    %cst_69 = arith.constant dense<0.000000e+00> : vector<16x128xf32>
    %135 = tpu.matmul %131, %134, %cst_69 {dimension_numbers = #tpu.dot_dimension_numbers<[1], [0], [0], [1], [0, 0, 1, 1], [], []>} : vector<16x128xbf16>, vector<128x128xbf16>, vector<16x128xf32> -> vector<16x128xf32>
    %136 = arith.addf %133, %135 : vector<16x128xf32>
    %c0_70 = arith.constant 0 : index
    %c0_71 = arith.constant 0 : index
    %137 = vector.load %arg23[%c0_70, %c0_71] : memref<1x128xf32, #tpu.memory_space<vmem>>, vector<1x128xf32>
    %138 = vector.broadcast %137 : vector<1x128xf32> to vector<16x128xf32>
    %139 = arith.addf %136, %138 : vector<16x128xf32>
    %cst_72 = arith.constant 0.000000e+00 : f32
    %140 = vector.broadcast %cst_72 : f32 to vector<16x128xf32>
    %141 = arith.maximumf %139, %140 : vector<16x128xf32>
    %142 = arith.addf %5, %141 : vector<16x128xf32>
    %c0_73 = arith.constant 0 : index
    %c0_74 = arith.constant 0 : index
    %c0_75 = arith.constant 0 : index
    %143 = vector.load %arg4[%c0_73, %c0_74, %c0_75] : memref<2x16x2xf32, #tpu.memory_space<vmem>>, vector<2x16x2xf32>
    %c0_76 = arith.constant 0 : index
    %c0_77 = arith.constant 0 : index
    %c0_78 = arith.constant 0 : index
    %144 = vector.load %arg5[%c0_76, %c0_77, %c0_78] : memref<2x2x8xf32, #tpu.memory_space<vmem>>, vector<2x2x8xf32>
    %145 = vector.extract_strided_slice %143 {offsets = [0, 0, 0], sizes = [2, 16, 1], strides = [1, 1, 1]} : vector<2x16x2xf32> to vector<2x16x1xf32>
    %146 = vector.extract_strided_slice %143 {offsets = [0, 0, 1], sizes = [2, 16, 1], strides = [1, 1, 1]} : vector<2x16x2xf32> to vector<2x16x1xf32>
    %147 = vector.extract_strided_slice %144 {offsets = [0, 0, 0], sizes = [2, 1, 8], strides = [1, 1, 1]} : vector<2x2x8xf32> to vector<2x1x8xf32>
    %148 = vector.extract_strided_slice %144 {offsets = [0, 1, 0], sizes = [2, 1, 8], strides = [1, 1, 1]} : vector<2x2x8xf32> to vector<2x1x8xf32>
    %149 = vector.broadcast %145 : vector<2x16x1xf32> to vector<2x16x8xf32>
    %150 = vector.broadcast %147 : vector<2x1x8xf32> to vector<2x16x8xf32>
    %151 = arith.subf %149, %150 : vector<2x16x8xf32>
    %152 = arith.mulf %151, %151 : vector<2x16x8xf32>
    %153 = vector.broadcast %146 : vector<2x16x1xf32> to vector<2x16x8xf32>
    %154 = vector.broadcast %148 : vector<2x1x8xf32> to vector<2x16x8xf32>
    %155 = arith.subf %153, %154 : vector<2x16x8xf32>
    %156 = arith.mulf %155, %155 : vector<2x16x8xf32>
    %157 = arith.addf %152, %156 : vector<2x16x8xf32>
    %158 = math.sqrt %157 : vector<2x16x8xf32>
    %159 = vector.broadcast %9 : vector<2x1x8xf32> to vector<2x16x8xf32>
    %160 = arith.addf %158, %159 : vector<2x16x8xf32>
    %cst_79 = arith.constant dense<0xFF800000> : vector<2x16xf32>
    %161 = vector.multi_reduction <maximumf>, %160, %cst_79 [2] : vector<2x16x8xf32> to vector<2x16xf32>
    %162 = vector.shape_cast %161 : vector<2x16xf32> to vector<2x16x1xf32>
    %163 = vector.broadcast %162 : vector<2x16x1xf32> to vector<2x16x8xf32>
    %164 = arith.subf %160, %163 : vector<2x16x8xf32>
    %165 = math.exp %164 : vector<2x16x8xf32>
    %cst_80 = arith.constant dense<0.000000e+00> : vector<2x16xf32>
    %166 = vector.multi_reduction <add>, %165, %cst_80 [2] : vector<2x16x8xf32> to vector<2x16xf32>
    %167 = vector.shape_cast %166 : vector<2x16xf32> to vector<2x16x1xf32>
    %168 = tpu.reciprocal %167 {approx = true} : vector<2x16x1xf32> -> vector<2x16x1xf32>
    %169 = vector.broadcast %168 : vector<2x16x1xf32> to vector<2x16x8xf32>
    %170 = arith.mulf %165, %169 : vector<2x16x8xf32>
    %171 = arith.truncf %170 : vector<2x16x8xf32> to vector<2x16x8xbf16>
    %172 = vector.shape_cast %104 : vector<16x128xbf16> to vector<2x8x128xbf16>
    "tpu.trace_start"() <{level = 10 : i32, message = "bqk,bkd->bqd"}> : () -> ()
    %cst_81 = arith.constant dense<0.000000e+00> : vector<2x16x128xf32>
    %173 = tpu.matmul %171, %172, %cst_81 {dimension_numbers = #tpu.dot_dimension_numbers<[2], [1], [1], [2], [0, 0, 0, 1, 1, 2], [0], [0]>} : vector<2x16x8xbf16>, vector<2x8x128xbf16>, vector<2x16x128xf32> -> vector<2x16x128xf32>
    "tpu.trace_stop"() : () -> ()
    %174 = vector.shape_cast %173 : vector<2x16x128xf32> to vector<32x128xf32>
    %175 = arith.truncf %174 : vector<32x128xf32> to vector<32x128xbf16>
    %c0_82 = arith.constant 0 : index
    %c0_83 = arith.constant 0 : index
    %176 = vector.load %arg24[%c0_82, %c0_83] : memref<128x128xbf16, #tpu.memory_space<vmem>>, vector<128x128xbf16>
    %cst_84 = arith.constant dense<0.000000e+00> : vector<32x128xf32>
    %177 = tpu.matmul %27, %176, %cst_84 {dimension_numbers = #tpu.dot_dimension_numbers<[1], [0], [0], [1], [0, 0, 1, 1], [], []>} : vector<32x128xbf16>, vector<128x128xbf16>, vector<32x128xf32> -> vector<32x128xf32>
    %c0_85 = arith.constant 0 : index
    %c0_86 = arith.constant 0 : index
    %178 = vector.load %arg25[%c0_85, %c0_86] : memref<128x128xbf16, #tpu.memory_space<vmem>>, vector<128x128xbf16>
    %cst_87 = arith.constant dense<0.000000e+00> : vector<32x128xf32>
    %179 = tpu.matmul %175, %178, %cst_87 {dimension_numbers = #tpu.dot_dimension_numbers<[1], [0], [0], [1], [0, 0, 1, 1], [], []>} : vector<32x128xbf16>, vector<128x128xbf16>, vector<32x128xf32> -> vector<32x128xf32>
    %180 = arith.addf %177, %179 : vector<32x128xf32>
    %c0_88 = arith.constant 0 : index
    %c0_89 = arith.constant 0 : index
    %181 = vector.load %arg26[%c0_88, %c0_89] : memref<1x128xf32, #tpu.memory_space<vmem>>, vector<1x128xf32>
    %182 = vector.broadcast %181 : vector<1x128xf32> to vector<32x128xf32>
    %183 = arith.addf %180, %182 : vector<32x128xf32>
    %cst_90 = arith.constant 0.000000e+00 : f32
    %184 = vector.broadcast %cst_90 : f32 to vector<32x128xf32>
    %185 = arith.maximumf %183, %184 : vector<32x128xf32>
    %186 = arith.addf %3, %185 : vector<32x128xf32>
    %187 = vector.shape_cast %186 : vector<32x128xf32> to vector<2x16x128xf32>
    %c0_91 = arith.constant 0 : index
    %c0_92 = arith.constant 0 : index
    %c0_93 = arith.constant 0 : index
    %188 = vector.load %arg27[%c0_91, %c0_92, %c0_93] : memref<2x16x128xf32, #tpu.memory_space<vmem>>, vector<2x16x128xf32>
    tpu.vector_store %arg27[%c0_91, %c0_92, %c0_93], %187 {strides = array<i32>} : memref<2x16x128xf32, #tpu.memory_space<vmem>>, vector<2x16x128xf32>,
    %189 = vector.shape_cast %92 : vector<16x128xf32> to vector<2x8x128xf32>
    %c0_94 = arith.constant 0 : index
    %c0_95 = arith.constant 0 : index
    %c0_96 = arith.constant 0 : index
    %190 = vector.load %arg28[%c0_94, %c0_95, %c0_96] : memref<2x8x128xf32, #tpu.memory_space<vmem>>, vector<2x8x128xf32>
    tpu.vector_store %arg28[%c0_94, %c0_95, %c0_96], %189 {strides = array<i32>} : memref<2x8x128xf32, #tpu.memory_space<vmem>>, vector<2x8x128xf32>,
    %191 = vector.shape_cast %142 : vector<16x128xf32> to vector<2x8x128xf32>
    %c0_97 = arith.constant 0 : index
    %c0_98 = arith.constant 0 : index
    %c0_99 = arith.constant 0 : index
    %192 = vector.load %arg29[%c0_97, %c0_98, %c0_99] : memref<2x8x128xf32, #tpu.memory_space<vmem>>, vector<2x8x128xf32>
    tpu.vector_store %arg29[%c0_97, %c0_98, %c0_99], %191 {strides = array<i32>} : memref<2x8x128xf32, #tpu.memory_space<vmem>>, vector<2x8x128xf32>,
    return
  }
  func.func @transform_0(%arg0: i32) -> (i32, i32, i32) {
    %c0_i32 = arith.constant 0 : i32
    %c0_i32_0 = arith.constant 0 : i32
    %c0_i32_1 = arith.constant 0 : i32
    return %arg0, %c0_i32, %c0_i32_0 : i32, i32, i32
  }
  func.func @transform_1(%arg0: i32) -> (i32, i32, i32) {
    %c0_i32 = arith.constant 0 : i32
    %c0_i32_0 = arith.constant 0 : i32
    %c0_i32_1 = arith.constant 0 : i32
    return %arg0, %c0_i32, %c0_i32_0 : i32, i32, i32
  }
  func.func @transform_2(%arg0: i32) -> (i32, i32, i32) {
    %c0_i32 = arith.constant 0 : i32
    %c0_i32_0 = arith.constant 0 : i32
    %c0_i32_1 = arith.constant 0 : i32
    return %arg0, %c0_i32, %c0_i32_0 : i32, i32, i32
  }
  func.func @transform_3(%arg0: i32) -> (i32, i32, i32) {
    %c0_i32 = arith.constant 0 : i32
    %c0_i32_0 = arith.constant 0 : i32
    %c0_i32_1 = arith.constant 0 : i32
    return %arg0, %c0_i32, %c0_i32_0 : i32, i32, i32
  }
  func.func @transform_4(%arg0: i32) -> (i32, i32, i32) {
    %c0_i32 = arith.constant 0 : i32
    %c0_i32_0 = arith.constant 0 : i32
    %c0_i32_1 = arith.constant 0 : i32
    return %arg0, %c0_i32, %c0_i32_0 : i32, i32, i32
  }
  func.func @transform_5(%arg0: i32) -> (i32, i32, i32) {
    %c0_i32 = arith.constant 0 : i32
    %c0_i32_0 = arith.constant 0 : i32
    %c0_i32_1 = arith.constant 0 : i32
    return %arg0, %c0_i32, %c0_i32_0 : i32, i32, i32
  }
  func.func @transform_6(%arg0: i32) -> (i32, i32) {
    %c0_i32 = arith.constant 0 : i32
    %c0_i32_0 = arith.constant 0 : i32
    %c0_i32_1 = arith.constant 0 : i32
    return %c0_i32, %c0_i32_0 : i32, i32
  }
  func.func @transform_7(%arg0: i32) -> (i32, i32) {
    %c0_i32 = arith.constant 0 : i32
    %c0_i32_0 = arith.constant 0 : i32
    %c0_i32_1 = arith.constant 0 : i32
    return %c0_i32, %c0_i32_0 : i32, i32
  }
  func.func @transform_8(%arg0: i32) -> (i32, i32) {
    %c0_i32 = arith.constant 0 : i32
    %c0_i32_0 = arith.constant 0 : i32
    %c0_i32_1 = arith.constant 0 : i32
    return %c0_i32, %c0_i32_0 : i32, i32
  }
  func.func @transform_9(%arg0: i32) -> (i32, i32) {
    %c0_i32 = arith.constant 0 : i32
    %c0_i32_0 = arith.constant 0 : i32
    %c0_i32_1 = arith.constant 0 : i32
    return %c0_i32, %c0_i32_0 : i32, i32
  }
  func.func @transform_10(%arg0: i32) -> (i32, i32) {
    %c0_i32 = arith.constant 0 : i32
    %c0_i32_0 = arith.constant 0 : i32
    %c0_i32_1 = arith.constant 0 : i32
    return %c0_i32, %c0_i32_0 : i32, i32
  }
  func.func @transform_11(%arg0: i32) -> (i32, i32) {
    %c0_i32 = arith.constant 0 : i32
    %c0_i32_0 = arith.constant 0 : i32
    %c0_i32_1 = arith.constant 0 : i32
    return %c0_i32, %c0_i32_0 : i32, i32
  }
  func.func @transform_12(%arg0: i32) -> (i32, i32) {
    %c0_i32 = arith.constant 0 : i32
    %c0_i32_0 = arith.constant 0 : i32
    %c0_i32_1 = arith.constant 0 : i32
    return %c0_i32, %c0_i32_0 : i32, i32
  }
  func.func @transform_13(%arg0: i32) -> (i32, i32) {
    %c0_i32 = arith.constant 0 : i32
    %c0_i32_0 = arith.constant 0 : i32
    %c0_i32_1 = arith.constant 0 : i32
    return %c0_i32, %c0_i32_0 : i32, i32
  }
  func.func @transform_14(%arg0: i32) -> (i32, i32) {
    %c0_i32 = arith.constant 0 : i32
    %c0_i32_0 = arith.constant 0 : i32
    %c0_i32_1 = arith.constant 0 : i32
    return %c0_i32, %c0_i32_0 : i32, i32
  }
  func.func @transform_15(%arg0: i32) -> (i32, i32) {
    %c0_i32 = arith.constant 0 : i32
    %c0_i32_0 = arith.constant 0 : i32
    %c0_i32_1 = arith.constant 0 : i32
    return %c0_i32, %c0_i32_0 : i32, i32
  }
  func.func @transform_16(%arg0: i32) -> (i32, i32) {
    %c0_i32 = arith.constant 0 : i32
    %c0_i32_0 = arith.constant 0 : i32
    %c0_i32_1 = arith.constant 0 : i32
    return %c0_i32, %c0_i32_0 : i32, i32
  }
  func.func @transform_17(%arg0: i32) -> (i32, i32) {
    %c0_i32 = arith.constant 0 : i32
    %c0_i32_0 = arith.constant 0 : i32
    %c0_i32_1 = arith.constant 0 : i32
    return %c0_i32, %c0_i32_0 : i32, i32
  }
  func.func @transform_18(%arg0: i32) -> (i32, i32) {
    %c0_i32 = arith.constant 0 : i32
    %c0_i32_0 = arith.constant 0 : i32
    %c0_i32_1 = arith.constant 0 : i32
    return %c0_i32, %c0_i32_0 : i32, i32
  }
  func.func @transform_19(%arg0: i32) -> (i32, i32) {
    %c0_i32 = arith.constant 0 : i32
    %c0_i32_0 = arith.constant 0 : i32
    %c0_i32_1 = arith.constant 0 : i32
    return %c0_i32, %c0_i32_0 : i32, i32
  }
  func.func @transform_20(%arg0: i32) -> (i32, i32) {
    %c0_i32 = arith.constant 0 : i32
    %c0_i32_0 = arith.constant 0 : i32
    %c0_i32_1 = arith.constant 0 : i32
    return %c0_i32, %c0_i32_0 : i32, i32
  }
  func.func @transform_21(%arg0: i32) -> (i32, i32) {
    %c0_i32 = arith.constant 0 : i32
    %c0_i32_0 = arith.constant 0 : i32
    %c0_i32_1 = arith.constant 0 : i32
    return %c0_i32, %c0_i32_0 : i32, i32
  }
  func.func @transform_22(%arg0: i32) -> (i32, i32) {
    %c0_i32 = arith.constant 0 : i32
    %c0_i32_0 = arith.constant 0 : i32
    %c0_i32_1 = arith.constant 0 : i32
    return %c0_i32, %c0_i32_0 : i32, i32
  }
  func.func @transform_23(%arg0: i32) -> (i32, i32) {
    %c0_i32 = arith.constant 0 : i32
    %c0_i32_0 = arith.constant 0 : i32
    %c0_i32_1 = arith.constant 0 : i32
    return %c0_i32, %c0_i32_0 : i32, i32
  }
  func.func @transform_24(%arg0: i32) -> (i32, i32) {
    %c0_i32 = arith.constant 0 : i32
    %c0_i32_0 = arith.constant 0 : i32
    %c0_i32_1 = arith.constant 0 : i32
    return %c0_i32, %c0_i32_0 : i32, i32
  }
  func.func @transform_25(%arg0: i32) -> (i32, i32) {
    %c0_i32 = arith.constant 0 : i32
    %c0_i32_0 = arith.constant 0 : i32
    %c0_i32_1 = arith.constant 0 : i32
    return %c0_i32, %c0_i32_0 : i32, i32
  }
  func.func @transform_26(%arg0: i32) -> (i32, i32, i32) {
    %c0_i32 = arith.constant 0 : i32
    %c0_i32_0 = arith.constant 0 : i32
    %c0_i32_1 = arith.constant 0 : i32
    return %arg0, %c0_i32, %c0_i32_0 : i32, i32, i32
  }
  func.func @transform_27(%arg0: i32) -> (i32, i32, i32) {
    %c0_i32 = arith.constant 0 : i32
    %c0_i32_0 = arith.constant 0 : i32
    %c0_i32_1 = arith.constant 0 : i32
    return %arg0, %c0_i32, %c0_i32_0 : i32, i32, i32
  }
  func.func @transform_28(%arg0: i32) -> (i32, i32, i32) {
    %c0_i32 = arith.constant 0 : i32
    %c0_i32_0 = arith.constant 0 : i32
    %c0_i32_1 = arith.constant 0 : i32
    return %arg0, %c0_i32, %c0_i32_0 : i32, i32, i32
  }
}

module attributes {stable_mosaic.version = 11 : i64} {
  func.func @mmgnn_kernel(%arg0: i32, %arg1: memref<2x16x128xf32, #tpu.memory_space<vmem>>, %arg2: memref<2x8x128xf32, #tpu.memory_space<vmem>>, %arg3: memref<2x8x128xf32, #tpu.memory_space<vmem>>, %arg4: memref<2x16x2xf32, #tpu.memory_space<vmem>>, %arg5: memref<2x2x8xf32, #tpu.memory_space<vmem>>, %arg6: memref<2x1x8xf32, #tpu.memory_space<vmem>>, %arg7: memref<128x256xbf16, #tpu.memory_space<vmem>>, %arg8: memref<1x256xf32, #tpu.memory_space<vmem>>, %arg9: memref<128x384xbf16, #tpu.memory_space<vmem>>, %arg10: memref<1x384xf32, #tpu.memory_space<vmem>>, %arg11: memref<128x128xbf16, #tpu.memory_space<vmem>>, %arg12: memref<128x128xbf16, #tpu.memory_space<vmem>>, %arg13: memref<1x128xf32, #tpu.memory_space<vmem>>, %arg14: memref<128x128xbf16, #tpu.memory_space<vmem>>, %arg15: memref<128x128xbf16, #tpu.memory_space<vmem>>, %arg16: memref<1x128xf32, #tpu.memory_space<vmem>>, %arg17: memref<128x256xbf16, #tpu.memory_space<vmem>>, %arg18: memref<1x256xf32, #tpu.memory_space<vmem>>, %arg19: memref<128x128xbf16, #tpu.memory_space<vmem>>, %arg20: memref<1x128xf32, #tpu.memory_space<vmem>>, %arg21: memref<128x128xbf16, #tpu.memory_space<vmem>>, %arg22: memref<128x128xbf16, #tpu.memory_space<vmem>>, %arg23: memref<1x128xf32, #tpu.memory_space<vmem>>, %arg24: memref<128x128xbf16, #tpu.memory_space<vmem>>, %arg25: memref<128x128xbf16, #tpu.memory_space<vmem>>, %arg26: memref<1x128xf32, #tpu.memory_space<vmem>>, %arg27: memref<2x16x128xf32, #tpu.memory_space<vmem>>, %arg28: memref<2x8x128xf32, #tpu.memory_space<vmem>>, %arg29: memref<2x8x128xf32, #tpu.memory_space<vmem>>) attributes {dimension_semantics = [#tpu.dimension_semantics<parallel>], iteration_bounds = array<i64: 2>, scalar_prefetch = 0 : i64, scratch_operands = 0 : i64, tpu.core_type = #tpu.core_type<tc>, window_params = [{transform_indices = @transform_0, window_bounds = array<i64: 2, 16, 128>}, {transform_indices = @transform_1, window_bounds = array<i64: 2, 8, 128>}, {transform_indices = @transform_2, window_bounds = array<i64: 2, 8, 128>}, {transform_indices = @transform_3, window_bounds = array<i64: 2, 16, 2>}, {transform_indices = @transform_4, window_bounds = array<i64: 2, 2, 8>}, {transform_indices = @transform_5, window_bounds = array<i64: 2, 1, 8>}, {pipeline_mode = #tpu.pipeline_mode<synchronous>, transform_indices = @transform_6, window_bounds = array<i64: 128, 256>}, {pipeline_mode = #tpu.pipeline_mode<synchronous>, transform_indices = @transform_7, window_bounds = array<i64: 1, 256>}, {pipeline_mode = #tpu.pipeline_mode<synchronous>, transform_indices = @transform_8, window_bounds = array<i64: 128, 384>}, {pipeline_mode = #tpu.pipeline_mode<synchronous>, transform_indices = @transform_9, window_bounds = array<i64: 1, 384>}, {pipeline_mode = #tpu.pipeline_mode<synchronous>, transform_indices = @transform_10, window_bounds = array<i64: 128, 128>}, {pipeline_mode = #tpu.pipeline_mode<synchronous>, transform_indices = @transform_11, window_bounds = array<i64: 128, 128>}, {pipeline_mode = #tpu.pipeline_mode<synchronous>, transform_indices = @transform_12, window_bounds = array<i64: 1, 128>}, {pipeline_mode = #tpu.pipeline_mode<synchronous>, transform_indices = @transform_13, window_bounds = array<i64: 128, 128>}, {pipeline_mode = #tpu.pipeline_mode<synchronous>, transform_indices = @transform_14, window_bounds = array<i64: 128, 128>}, {pipeline_mode = #tpu.pipeline_mode<synchronous>, transform_indices = @transform_15, window_bounds = array<i64: 1, 128>}, {pipeline_mode = #tpu.pipeline_mode<synchronous>, transform_indices = @transform_16, window_bounds = array<i64: 128, 256>}, {pipeline_mode = #tpu.pipeline_mode<synchronous>, transform_indices = @transform_17, window_bounds = array<i64: 1, 256>}, {pipeline_mode = #tpu.pipeline_mode<synchronous>, transform_indices = @transform_18, window_bounds = array<i64: 128, 128>}, {pipeline_mode = #tpu.pipeline_mode<synchronous>, transform_indices = @transform_19, window_bounds = array<i64: 1, 128>}, {pipeline_mode = #tpu.pipeline_mode<synchronous>, transform_indices = @transform_20, window_bounds = array<i64: 128, 128>}, {pipeline_mode = #tpu.pipeline_mode<synchronous>, transform_indices = @transform_21, window_bounds = array<i64: 128, 128>}, {pipeline_mode = #tpu.pipeline_mode<synchronous>, transform_indices = @transform_22, window_bounds = array<i64: 1, 128>}, {pipeline_mode = #tpu.pipeline_mode<synchronous>, transform_indices = @transform_23, window_bounds = array<i64: 128, 128>}, {pipeline_mode = #tpu.pipeline_mode<synchronous>, transform_indices = @transform_24, window_bounds = array<i64: 128, 128>}, {pipeline_mode = #tpu.pipeline_mode<synchronous>, transform_indices = @transform_25, window_bounds = array<i64: 1, 128>}, {transform_indices = @transform_26, window_bounds = array<i64: 2, 16, 128>}, {transform_indices = @transform_27, window_bounds = array<i64: 2, 8, 128>}, {transform_indices = @transform_28, window_bounds = array<i64: 2, 8, 128>}]} {
    %c0 = arith.constant 0 : index
    %c0_0 = arith.constant 0 : index
    %c0_1 = arith.constant 0 : index
    %0 = vector.load %arg1[%c0, %c0_0, %c0_1] : memref<2x16x128xf32, #tpu.memory_space<vmem>>, vector<2x16x128xf32>
    %c0_2 = arith.constant 0 : index
    %c0_3 = arith.constant 0 : index
    %c0_4 = arith.constant 0 : index
    %1 = vector.load %arg2[%c0_2, %c0_3, %c0_4] : memref<2x8x128xf32, #tpu.memory_space<vmem>>, vector<2x8x128xf32>
    %c0_5 = arith.constant 0 : index
    %c0_6 = arith.constant 0 : index
    %c0_7 = arith.constant 0 : index
    %2 = vector.load %arg3[%c0_5, %c0_6, %c0_7] : memref<2x8x128xf32, #tpu.memory_space<vmem>>, vector<2x8x128xf32>
    %3 = vector.shape_cast %0 : vector<2x16x128xf32> to vector<32x128xf32>
    %4 = vector.shape_cast %1 : vector<2x8x128xf32> to vector<16x128xf32>
    %5 = vector.shape_cast %2 : vector<2x8x128xf32> to vector<16x128xf32>
    %6 = arith.truncf %3 : vector<32x128xf32> to vector<32x128xbf16>
    %7 = arith.truncf %4 : vector<16x128xf32> to vector<16x128xbf16>
    %8 = arith.truncf %5 : vector<16x128xf32> to vector<16x128xbf16>
    %c0_8 = arith.constant 0 : index
    %c0_9 = arith.constant 0 : index
    %c0_10 = arith.constant 0 : index
    %9 = vector.load %arg6[%c0_8, %c0_9, %c0_10] : memref<2x1x8xf32, #tpu.memory_space<vmem>>, vector<2x1x8xf32>
    %c0_11 = arith.constant 0 : index
    %c0_12 = arith.constant 0 : index
    %10 = vector.load %arg7[%c0_11, %c0_12] : memref<128x256xbf16, #tpu.memory_space<vmem>>, vector<128x256xbf16>
    %cst = arith.constant dense<0.000000e+00> : vector<32x256xf32>
    %11 = tpu.matmul %6, %10, %cst {dimension_numbers = #tpu.dot_dimension_numbers<[1], [0], [0], [1], [0, 0, 1, 1], [], []>} : vector<32x128xbf16>, vector<128x256xbf16>, vector<32x256xf32> -> vector<32x256xf32>
    %c0_13 = arith.constant 0 : index
    %c0_14 = arith.constant 0 : index
    %12 = vector.load %arg8[%c0_13, %c0_14] : memref<1x256xf32, #tpu.memory_space<vmem>>, vector<1x256xf32>
    %13 = vector.broadcast %12 : vector<1x256xf32> to vector<32x256xf32>
    %14 = arith.addf %11, %13 : vector<32x256xf32>
    %cst_15 = arith.constant 0.000000e+00 : f32
    %15 = vector.broadcast %cst_15 : f32 to vector<32x256xf32>
    %16 = arith.maximumf %14, %15 : vector<32x256xf32>
    %c0_16 = arith.constant 0 : index
    %c0_17 = arith.constant 0 : index
    %17 = vector.load %arg9[%c0_16, %c0_17] : memref<128x384xbf16, #tpu.memory_space<vmem>>, vector<128x384xbf16>
    %cst_18 = arith.constant dense<0.000000e+00> : vector<16x384xf32>
    %18 = tpu.matmul %7, %17, %cst_18 {dimension_numbers = #tpu.dot_dimension_numbers<[1], [0], [0], [1], [0, 0, 1, 1], [], []>} : vector<16x128xbf16>, vector<128x384xbf16>, vector<16x384xf32> -> vector<16x384xf32>
    %c0_19 = arith.constant 0 : index
    %c0_20 = arith.constant 0 : index
    %19 = vector.load %arg10[%c0_19, %c0_20] : memref<1x384xf32, #tpu.memory_space<vmem>>, vector<1x384xf32>
    %20 = vector.broadcast %19 : vector<1x384xf32> to vector<16x384xf32>
    %21 = arith.addf %18, %20 : vector<16x384xf32>
    %cst_21 = arith.constant 0.000000e+00 : f32
    %22 = vector.broadcast %cst_21 : f32 to vector<16x384xf32>
    %23 = arith.maximumf %21, %22 : vector<16x384xf32>
    %24 = vector.extract_strided_slice %16 {offsets = [0, 0], sizes = [32, 128], strides = [1, 1]} : vector<32x256xf32> to vector<32x128xf32>
    %25 = arith.truncf %24 : vector<32x128xf32> to vector<32x128xbf16>
    %26 = vector.extract_strided_slice %16 {offsets = [0, 128], sizes = [32, 128], strides = [1, 1]} : vector<32x256xf32> to vector<32x128xf32>
    %27 = arith.truncf %26 : vector<32x128xf32> to vector<32x128xbf16>
    %28 = vector.extract_strided_slice %23 {offsets = [0, 0], sizes = [16, 128], strides = [1, 1]} : vector<16x384xf32> to vector<16x128xf32>
    %29 = arith.truncf %28 : vector<16x128xf32> to vector<16x128xbf16>
    %30 = vector.extract_strided_slice %23 {offsets = [0, 128], sizes = [16, 128], strides = [1, 1]} : vector<16x384xf32> to vector<16x128xf32>
    %31 = arith.truncf %30 : vector<16x128xf32> to vector<16x128xbf16>
    %32 = vector.extract_strided_slice %23 {offsets = [0, 256], sizes = [16, 128], strides = [1, 1]} : vector<16x384xf32> to vector<16x128xf32>
    %33 = arith.truncf %32 : vector<16x128xf32> to vector<16x128xbf16>
    %34 = vector.shape_cast %25 : vector<32x128xbf16> to vector<2x16x128xbf16>
    %35 = vector.shape_cast %29 : vector<16x128xbf16> to vector<2x8x128xbf16>
    "tpu.trace_start"() <{level = 10 : i32, message = "bqd,bkd->bqk"}> : () -> ()
    %cst_22 = arith.constant dense<0.000000e+00> : vector<2x8x16xf32>
    %36 = tpu.matmul %35, %34, %cst_22 {dimension_numbers = #tpu.dot_dimension_numbers<[2], [2], [1], [1], [0, 0, 0, 1, 1, 1], [0], [0]>} : vector<2x8x128xbf16>, vector<2x16x128xbf16>, vector<2x8x16xf32> -> vector<2x8x16xf32>
    "tpu.trace_stop"() : () -> ()
    %cst_23 = arith.constant dense<0xFF800000> : vector<2x8xf32>
    %37 = vector.multi_reduction <maximumf>, %36, %cst_23 [2] : vector<2x8x16xf32> to vector<2x8xf32>
    %38 = vector.shape_cast %37 : vector<2x8xf32> to vector<2x8x1xf32>
    %39 = vector.broadcast %38 : vector<2x8x1xf32> to vector<2x8x16xf32>
    %40 = arith.subf %36, %39 : vector<2x8x16xf32>
    %41 = math.exp %40 : vector<2x8x16xf32>
    %cst_24 = arith.constant dense<0.000000e+00> : vector<2x8xf32>
    %42 = vector.multi_reduction <add>, %41, %cst_24 [2] : vector<2x8x16xf32> to vector<2x8xf32>
    %43 = vector.shape_cast %42 : vector<2x8xf32> to vector<2x8x1xf32>
    %44 = tpu.reciprocal %43 {approx = true} : vector<2x8x1xf32> -> vector<2x8x1xf32>
    %45 = vector.broadcast %44 : vector<2x8x1xf32> to vector<2x8x16xf32>
    %46 = arith.mulf %41, %45 : vector<2x8x16xf32>
    %47 = arith.truncf %46 : vector<2x8x16xf32> to vector<2x8x16xbf16>
    "tpu.trace_start"() <{level = 10 : i32, message = "bqk,bkd->bqd"}> : () -> ()
    %cst_25 = arith.constant dense<0.000000e+00> : vector<2x8x128xf32>
    %48 = tpu.matmul %47, %34, %cst_25 {dimension_numbers = #tpu.dot_dimension_numbers<[2], [1], [1], [2], [0, 0, 0, 1, 1, 2], [0], [0]>} : vector<2x8x16xbf16>, vector<2x16x128xbf16>, vector<2x8x128xf32> -> vector<2x8x128xf32>
    "tpu.trace_stop"() : () -> ()
    %49 = vector.shape_cast %48 : vector<2x8x128xf32> to vector<16x128xf32>
    %50 = arith.truncf %49 : vector<16x128xf32> to vector<16x128xbf16>
    %c0_26 = arith.constant 0 : index
    %c0_27 = arith.constant 0 : index
    %51 = vector.load %arg11[%c0_26, %c0_27] : memref<128x128xbf16, #tpu.memory_space<vmem>>, vector<128x128xbf16>
    %cst_28 = arith.constant dense<0.000000e+00> : vector<16x128xf32>
    %52 = tpu.matmul %29, %51, %cst_28 {dimension_numbers = #tpu.dot_dimension_numbers<[1], [0], [0], [1], [0, 0, 1, 1], [], []>} : vector<16x128xbf16>, vector<128x128xbf16>, vector<16x128xf32> -> vector<16x128xf32>
    %c0_29 = arith.constant 0 : index
    %c0_30 = arith.constant 0 : index
    %53 = vector.load %arg12[%c0_29, %c0_30] : memref<128x128xbf16, #tpu.memory_space<vmem>>, vector<128x128xbf16>
    %cst_31 = arith.constant dense<0.000000e+00> : vector<16x128xf32>
    %54 = tpu.matmul %50, %53, %cst_31 {dimension_numbers = #tpu.dot_dimension_numbers<[1], [0], [0], [1], [0, 0, 1, 1], [], []>} : vector<16x128xbf16>, vector<128x128xbf16>, vector<16x128xf32> -> vector<16x128xf32>
    %55 = arith.addf %52, %54 : vector<16x128xf32>
    %c0_32 = arith.constant 0 : index
    %c0_33 = arith.constant 0 : index
    %56 = vector.load %arg13[%c0_32, %c0_33] : memref<1x128xf32, #tpu.memory_space<vmem>>, vector<1x128xf32>
    %57 = vector.broadcast %56 : vector<1x128xf32> to vector<16x128xf32>
    %58 = arith.addf %55, %57 : vector<16x128xf32>
    %cst_34 = arith.constant 0.000000e+00 : f32
    %59 = vector.broadcast %cst_34 : f32 to vector<16x128xf32>
    %60 = arith.maximumf %58, %59 : vector<16x128xf32>
    %61 = vector.shape_cast %31 : vector<16x128xbf16> to vector<2x8x128xbf16>
    %62 = vector.shape_cast %33 : vector<16x128xbf16> to vector<2x8x128xbf16>
    "tpu.trace_start"() <{level = 10 : i32, message = "bqd,bkd->bqk"}> : () -> ()
    %cst_35 = arith.constant dense<0.000000e+00> : vector<2x8x8xf32>
    %63 = tpu.matmul %61, %62, %cst_35 {dimension_numbers = #tpu.dot_dimension_numbers<[2], [2], [1], [1], [0, 0, 0, 1, 1, 1], [0], [0]>} : vector<2x8x128xbf16>, vector<2x8x128xbf16>, vector<2x8x8xf32> -> vector<2x8x8xf32>
    "tpu.trace_stop"() : () -> ()
    %64 = vector.broadcast %9 : vector<2x1x8xf32> to vector<2x8x8xf32>
    %65 = arith.addf %63, %64 : vector<2x8x8xf32>
    %cst_36 = arith.constant dense<0xFF800000> : vector<2x8xf32>
    %66 = vector.multi_reduction <maximumf>, %65, %cst_36 [2] : vector<2x8x8xf32> to vector<2x8xf32>
    %67 = vector.shape_cast %66 : vector<2x8xf32> to vector<2x8x1xf32>
    %68 = vector.broadcast %67 : vector<2x8x1xf32> to vector<2x8x8xf32>
    %69 = arith.subf %65, %68 : vector<2x8x8xf32>
    %70 = math.exp %69 : vector<2x8x8xf32>
    %cst_37 = arith.constant dense<0.000000e+00> : vector<2x8xf32>
    %71 = vector.multi_reduction <add>, %70, %cst_37 [2] : vector<2x8x8xf32> to vector<2x8xf32>
    %72 = vector.shape_cast %71 : vector<2x8xf32> to vector<2x8x1xf32>
    %73 = tpu.reciprocal %72 {approx = true} : vector<2x8x1xf32> -> vector<2x8x1xf32>
    %74 = vector.broadcast %73 : vector<2x8x1xf32> to vector<2x8x8xf32>
    %75 = arith.mulf %70, %74 : vector<2x8x8xf32>
    %76 = arith.truncf %75 : vector<2x8x8xf32> to vector<2x8x8xbf16>
    %77 = vector.shape_cast %7 : vector<16x128xbf16> to vector<2x8x128xbf16>
    "tpu.trace_start"() <{level = 10 : i32, message = "bqk,bkd->bqd"}> : () -> ()
    %cst_38 = arith.constant dense<0.000000e+00> : vector<2x8x128xf32>
    %78 = tpu.matmul %76, %77, %cst_38 {dimension_numbers = #tpu.dot_dimension_numbers<[2], [1], [1], [2], [0, 0, 0, 1, 1, 2], [0], [0]>} : vector<2x8x8xbf16>, vector<2x8x128xbf16>, vector<2x8x128xf32> -> vector<2x8x128xf32>
    "tpu.trace_stop"() : () -> ()
    %79 = vector.shape_cast %78 : vector<2x8x128xf32> to vector<16x128xf32>
    %80 = arith.truncf %79 : vector<16x128xf32> to vector<16x128xbf16>
    %c0_39 = arith.constant 0 : index
    %c0_40 = arith.constant 0 : index
    %81 = vector.load %arg14[%c0_39, %c0_40] : memref<128x128xbf16, #tpu.memory_space<vmem>>, vector<128x128xbf16>
    %cst_41 = arith.constant dense<0.000000e+00> : vector<16x128xf32>
    %82 = tpu.matmul %7, %81, %cst_41 {dimension_numbers = #tpu.dot_dimension_numbers<[1], [0], [0], [1], [0, 0, 1, 1], [], []>} : vector<16x128xbf16>, vector<128x128xbf16>, vector<16x128xf32> -> vector<16x128xf32>
    %c0_42 = arith.constant 0 : index
    %c0_43 = arith.constant 0 : index
    %83 = vector.load %arg15[%c0_42, %c0_43] : memref<128x128xbf16, #tpu.memory_space<vmem>>, vector<128x128xbf16>
    %cst_44 = arith.constant dense<0.000000e+00> : vector<16x128xf32>
    %84 = tpu.matmul %80, %83, %cst_44 {dimension_numbers = #tpu.dot_dimension_numbers<[1], [0], [0], [1], [0, 0, 1, 1], [], []>} : vector<16x128xbf16>, vector<128x128xbf16>, vector<16x128xf32> -> vector<16x128xf32>
    %85 = arith.addf %82, %84 : vector<16x128xf32>
    %c0_45 = arith.constant 0 : index
    %c0_46 = arith.constant 0 : index
    %86 = vector.load %arg16[%c0_45, %c0_46] : memref<1x128xf32, #tpu.memory_space<vmem>>, vector<1x128xf32>
    %87 = vector.broadcast %86 : vector<1x128xf32> to vector<16x128xf32>
    %88 = arith.addf %85, %87 : vector<16x128xf32>
    %cst_47 = arith.constant 0.000000e+00 : f32
    %89 = vector.broadcast %cst_47 : f32 to vector<16x128xf32>
    %90 = arith.maximumf %88, %89 : vector<16x128xf32>
    %91 = arith.addf %4, %60 : vector<16x128xf32>
    %92 = arith.addf %91, %90 : vector<16x128xf32>
    %93 = arith.truncf %92 : vector<16x128xf32> to vector<16x128xbf16>
    %c0_48 = arith.constant 0 : index
    %c0_49 = arith.constant 0 : index
    %94 = vector.load %arg17[%c0_48, %c0_49] : memref<128x256xbf16, #tpu.memory_space<vmem>>, vector<128x256xbf16>
    %cst_50 = arith.constant dense<0.000000e+00> : vector<16x256xf32>
    %95 = tpu.matmul %93, %94, %cst_50 {dimension_numbers = #tpu.dot_dimension_numbers<[1], [0], [0], [1], [0, 0, 1, 1], [], []>} : vector<16x128xbf16>, vector<128x256xbf16>, vector<16x256xf32> -> vector<16x256xf32>
    %c0_51 = arith.constant 0 : index
    %c0_52 = arith.constant 0 : index
    %96 = vector.load %arg18[%c0_51, %c0_52] : memref<1x256xf32, #tpu.memory_space<vmem>>, vector<1x256xf32>
    %97 = vector.broadcast %96 : vector<1x256xf32> to vector<16x256xf32>
    %98 = arith.addf %95, %97 : vector<16x256xf32>
    %cst_53 = arith.constant 0.000000e+00 : f32
    %99 = vector.broadcast %cst_53 : f32 to vector<16x256xf32>
    %100 = arith.maximumf %98, %99 : vector<16x256xf32>
    %101 = vector.extract_strided_slice %100 {offsets = [0, 0], sizes = [16, 128], strides = [1, 1]} : vector<16x256xf32> to vector<16x128xf32>
    %102 = arith.truncf %101 : vector<16x128xf32> to vector<16x128xbf16>
    %103 = vector.extract_strided_slice %100 {offsets = [0, 128], sizes = [16, 128], strides = [1, 1]} : vector<16x256xf32> to vector<16x128xf32>
    %104 = arith.truncf %103 : vector<16x128xf32> to vector<16x128xbf16>
    %c0_54 = arith.constant 0 : index
    %c0_55 = arith.constant 0 : index
    %105 = vector.load %arg19[%c0_54, %c0_55] : memref<128x128xbf16, #tpu.memory_space<vmem>>, vector<128x128xbf16>
    %cst_56 = arith.constant dense<0.000000e+00> : vector<16x128xf32>
    %106 = tpu.matmul %8, %105, %cst_56 {dimension_numbers = #tpu.dot_dimension_numbers<[1], [0], [0], [1], [0, 0, 1, 1], [], []>} : vector<16x128xbf16>, vector<128x128xbf16>, vector<16x128xf32> -> vector<16x128xf32>
    %c0_57 = arith.constant 0 : index
    %c0_58 = arith.constant 0 : index
    %107 = vector.load %arg20[%c0_57, %c0_58] : memref<1x128xf32, #tpu.memory_space<vmem>>, vector<1x128xf32>
    %108 = vector.broadcast %107 : vector<1x128xf32> to vector<16x128xf32>
    %109 = arith.addf %106, %108 : vector<16x128xf32>
    %cst_59 = arith.constant 0.000000e+00 : f32
    %110 = vector.broadcast %cst_59 : f32 to vector<16x128xf32>
    %111 = arith.maximumf %109, %110 : vector<16x128xf32>
    %112 = arith.truncf %111 : vector<16x128xf32> to vector<16x128xbf16>
    %113 = vector.shape_cast %102 : vector<16x128xbf16> to vector<2x8x128xbf16>
    "tpu.trace_start"() <{level = 10 : i32, message = "bqd,bkd->bqk"}> : () -> ()
    %cst_60 = arith.constant dense<0.000000e+00> : vector<2x8x8xf32>
    %114 = tpu.matmul %113, %113, %cst_60 {dimension_numbers = #tpu.dot_dimension_numbers<[2], [2], [1], [1], [0, 0, 0, 1, 1, 1], [0], [0]>} : vector<2x8x128xbf16>, vector<2x8x128xbf16>, vector<2x8x8xf32> -> vector<2x8x8xf32>
    "tpu.trace_stop"() : () -> ()
    %115 = vector.broadcast %9 : vector<2x1x8xf32> to vector<2x8x8xf32>
    %116 = arith.addf %114, %115 : vector<2x8x8xf32>
    %cst_61 = arith.constant dense<0xFF800000> : vector<2x8xf32>
    %117 = vector.multi_reduction <maximumf>, %116, %cst_61 [2] : vector<2x8x8xf32> to vector<2x8xf32>
    %118 = vector.shape_cast %117 : vector<2x8xf32> to vector<2x8x1xf32>
    %119 = vector.broadcast %118 : vector<2x8x1xf32> to vector<2x8x8xf32>
    %120 = arith.subf %116, %119 : vector<2x8x8xf32>
    %121 = math.exp %120 : vector<2x8x8xf32>
    %cst_62 = arith.constant dense<0.000000e+00> : vector<2x8xf32>
    %122 = vector.multi_reduction <add>, %121, %cst_62 [2] : vector<2x8x8xf32> to vector<2x8xf32>
    %123 = vector.shape_cast %122 : vector<2x8xf32> to vector<2x8x1xf32>
    %124 = tpu.reciprocal %123 {approx = true} : vector<2x8x1xf32> -> vector<2x8x1xf32>
    %125 = vector.broadcast %124 : vector<2x8x1xf32> to vector<2x8x8xf32>
    %126 = arith.mulf %121, %125 : vector<2x8x8xf32>
    %127 = arith.truncf %126 : vector<2x8x8xf32> to vector<2x8x8xbf16>
    %128 = vector.shape_cast %112 : vector<16x128xbf16> to vector<2x8x128xbf16>
    "tpu.trace_start"() <{level = 10 : i32, message = "bqk,bkd->bqd"}> : () -> ()
    %cst_63 = arith.constant dense<0.000000e+00> : vector<2x8x128xf32>
    %129 = tpu.matmul %127, %128, %cst_63 {dimension_numbers = #tpu.dot_dimension_numbers<[2], [1], [1], [2], [0, 0, 0, 1, 1, 2], [0], [0]>} : vector<2x8x8xbf16>, vector<2x8x128xbf16>, vector<2x8x128xf32> -> vector<2x8x128xf32>
    "tpu.trace_stop"() : () -> ()
    %130 = vector.shape_cast %129 : vector<2x8x128xf32> to vector<16x128xf32>
    %131 = arith.truncf %130 : vector<16x128xf32> to vector<16x128xbf16>
    %c0_64 = arith.constant 0 : index
    %c0_65 = arith.constant 0 : index
    %132 = vector.load %arg21[%c0_64, %c0_65] : memref<128x128xbf16, #tpu.memory_space<vmem>>, vector<128x128xbf16>
    %cst_66 = arith.constant dense<0.000000e+00> : vector<16x128xf32>
    %133 = tpu.matmul %112, %132, %cst_66 {dimension_numbers = #tpu.dot_dimension_numbers<[1], [0], [0], [1], [0, 0, 1, 1], [], []>} : vector<16x128xbf16>, vector<128x128xbf16>, vector<16x128xf32> -> vector<16x128xf32>
    %c0_67 = arith.constant 0 : index
    %c0_68 = arith.constant 0 : index
    %134 = vector.load %arg22[%c0_67, %c0_68] : memref<128x128xbf16, #tpu.memory_space<vmem>>, vector<128x128xbf16>
    %cst_69 = arith.constant dense<0.000000e+00> : vector<16x128xf32>
    %135 = tpu.matmul %131, %134, %cst_69 {dimension_numbers = #tpu.dot_dimension_numbers<[1], [0], [0], [1], [0, 0, 1, 1], [], []>} : vector<16x128xbf16>, vector<128x128xbf16>, vector<16x128xf32> -> vector<16x128xf32>
    %136 = arith.addf %133, %135 : vector<16x128xf32>
    %c0_70 = arith.constant 0 : index
    %c0_71 = arith.constant 0 : index
    %137 = vector.load %arg23[%c0_70, %c0_71] : memref<1x128xf32, #tpu.memory_space<vmem>>, vector<1x128xf32>
    %138 = vector.broadcast %137 : vector<1x128xf32> to vector<16x128xf32>
    %139 = arith.addf %136, %138 : vector<16x128xf32>
    %cst_72 = arith.constant 0.000000e+00 : f32
    %140 = vector.broadcast %cst_72 : f32 to vector<16x128xf32>
    %141 = arith.maximumf %139, %140 : vector<16x128xf32>
    %142 = arith.addf %5, %141 : vector<16x128xf32>
    %c0_73 = arith.constant 0 : index
    %c0_74 = arith.constant 0 : index
    %c0_75 = arith.constant 0 : index
    %143 = vector.load %arg4[%c0_73, %c0_74, %c0_75] : memref<2x16x2xf32, #tpu.memory_space<vmem>>, vector<2x16x2xf32>
    %c0_76 = arith.constant 0 : index
    %c0_77 = arith.constant 0 : index
    %c0_78 = arith.constant 0 : index
    %144 = vector.load %arg5[%c0_76, %c0_77, %c0_78] : memref<2x2x8xf32, #tpu.memory_space<vmem>>, vector<2x2x8xf32>
    %145 = vector.extract_strided_slice %143 {offsets = [0, 0, 0], sizes = [2, 16, 1], strides = [1, 1, 1]} : vector<2x16x2xf32> to vector<2x16x1xf32>
    %146 = vector.extract_strided_slice %143 {offsets = [0, 0, 1], sizes = [2, 16, 1], strides = [1, 1, 1]} : vector<2x16x2xf32> to vector<2x16x1xf32>
    %147 = vector.extract_strided_slice %144 {offsets = [0, 0, 0], sizes = [2, 1, 8], strides = [1, 1, 1]} : vector<2x2x8xf32> to vector<2x1x8xf32>
    %148 = vector.extract_strided_slice %144 {offsets = [0, 1, 0], sizes = [2, 1, 8], strides = [1, 1, 1]} : vector<2x2x8xf32> to vector<2x1x8xf32>
    %149 = vector.broadcast %145 : vector<2x16x1xf32> to vector<2x16x8xf32>
    %150 = vector.broadcast %147 : vector<2x1x8xf32> to vector<2x16x8xf32>
    %151 = arith.subf %149, %150 : vector<2x16x8xf32>
    %152 = arith.mulf %151, %151 : vector<2x16x8xf32>
    %153 = vector.broadcast %146 : vector<2x16x1xf32> to vector<2x16x8xf32>
    %154 = vector.broadcast %148 : vector<2x1x8xf32> to vector<2x16x8xf32>
    %155 = arith.subf %153, %154 : vector<2x16x8xf32>
    %156 = arith.mulf %155, %155 : vector<2x16x8xf32>
    %157 = arith.addf %152, %156 : vector<2x16x8xf32>
    %158 = math.sqrt %157 : vector<2x16x8xf32>
    %159 = vector.broadcast %9 : vector<2x1x8xf32> to vector<2x16x8xf32>
    %160 = arith.addf %158, %159 : vector<2x16x8xf32>
    %cst_79 = arith.constant dense<0xFF800000> : vector<2x16xf32>
    %161 = vector.multi_reduction <maximumf>, %160, %cst_79 [2] : vector<2x16x8xf32> to vector<2x16xf32>
    %162 = vector.shape_cast %161 : vector<2x16xf32> to vector<2x16x1xf32>
    %163 = vector.broadcast %162 : vector<2x16x1xf32> to vector<2x16x8xf32>
    %164 = arith.subf %160, %163 : vector<2x16x8xf32>
    %165 = math.exp %164 : vector<2x16x8xf32>
    %cst_80 = arith.constant dense<0.000000e+00> : vector<2x16xf32>
    %166 = vector.multi_reduction <add>, %165, %cst_80 [2] : vector<2x16x8xf32> to vector<2x16xf32>
    %167 = vector.shape_cast %166 : vector<2x16xf32> to vector<2x16x1xf32>
    %168 = tpu.reciprocal %167 {approx = true} : vector<2x16x1xf32> -> vector<2x16x1xf32>
    %169 = vector.broadcast %168 : vector<2x16x1xf32> to vector<2x16x8xf32>
    %170 = arith.mulf %165, %169 : vector<2x16x8xf32>
    %171 = arith.truncf %170 : vector<2x16x8xf32> to vector<2x16x8xbf16>
    %172 = vector.shape_cast %104 : vector<16x128xbf16> to vector<2x8x128xbf16>
    "tpu.trace_start"() <{level = 10 : i32, message = "bqk,bkd->bqd"}> : () -> ()
    %cst_81 = arith.constant dense<0.000000e+00> : vector<2x16x128xf32>
    %173 = tpu.matmul %171, %172, %cst_81 {dimension_numbers = #tpu.dot_dimension_numbers<[2], [1], [1], [2], [0, 0, 0, 1, 1, 2], [0], [0]>} : vector<2x16x8xbf16>, vector<2x8x128xbf16>, vector<2x16x128xf32> -> vector<2x16x128xf32>
    "tpu.trace_stop"() : () -> ()
    %174 = vector.shape_cast %173 : vector<2x16x128xf32> to vector<32x128xf32>
    %175 = arith.truncf %174 : vector<32x128xf32> to vector<32x128xbf16>
    %c0_82 = arith.constant 0 : index
    %c0_83 = arith.constant 0 : index
    %176 = vector.load %arg24[%c0_82, %c0_83] : memref<128x128xbf16, #tpu.memory_space<vmem>>, vector<128x128xbf16>
    %cst_84 = arith.constant dense<0.000000e+00> : vector<32x128xf32>
    %177 = tpu.matmul %27, %176, %cst_84 {dimension_numbers = #tpu.dot_dimension_numbers<[1], [0], [0], [1], [0, 0, 1, 1], [], []>} : vector<32x128xbf16>, vector<128x128xbf16>, vector<32x128xf32> -> vector<32x128xf32>
    %c0_85 = arith.constant 0 : index
    %c0_86 = arith.constant 0 : index
    %178 = vector.load %arg25[%c0_85, %c0_86] : memref<128x128xbf16, #tpu.memory_space<vmem>>, vector<128x128xbf16>
    %cst_87 = arith.constant dense<0.000000e+00> : vector<32x128xf32>
    %179 = tpu.matmul %175, %178, %cst_87 {dimension_numbers = #tpu.dot_dimension_numbers<[1], [0], [0], [1], [0, 0, 1, 1], [], []>} : vector<32x128xbf16>, vector<128x128xbf16>, vector<32x128xf32> -> vector<32x128xf32>
    %180 = arith.addf %177, %179 : vector<32x128xf32>
    %c0_88 = arith.constant 0 : index
    %c0_89 = arith.constant 0 : index
    %181 = vector.load %arg26[%c0_88, %c0_89] : memref<1x128xf32, #tpu.memory_space<vmem>>, vector<1x128xf32>
    %182 = vector.broadcast %181 : vector<1x128xf32> to vector<32x128xf32>
    %183 = arith.addf %180, %182 : vector<32x128xf32>
    %cst_90 = arith.constant 0.000000e+00 : f32
    %184 = vector.broadcast %cst_90 : f32 to vector<32x128xf32>
    %185 = arith.maximumf %183, %184 : vector<32x128xf32>
    %186 = arith.addf %3, %185 : vector<32x128xf32>
    %187 = vector.shape_cast %186 : vector<32x128xf32> to vector<2x16x128xf32>
    %c0_91 = arith.constant 0 : index
    %c0_92 = arith.constant 0 : index
    %c0_93 = arith.constant 0 : index
    %188 = vector.load %arg27[%c0_91, %c0_92, %c0_93] : memref<2x16x128xf32, #tpu.memory_space<vmem>>, vector<2x16x128xf32>
    tpu.vector_store %arg27[%c0_91, %c0_92, %c0_93], %187 {strides = array<i32>} : memref<2x16x128xf32, #tpu.memory_space<vmem>>, vector<2x16x128xf32>,
    %189 = vector.shape_cast %92 : vector<16x128xf32> to vector<2x8x128xf32>
    %c0_94 = arith.constant 0 : index
    %c0_95 = arith.constant 0 : index
    %c0_96 = arith.constant 0 : index
    %190 = vector.load %arg28[%c0_94, %c0_95, %c0_96] : memref<2x8x128xf32, #tpu.memory_space<vmem>>, vector<2x8x128xf32>
    tpu.vector_store %arg28[%c0_94, %c0_95, %c0_96], %189 {strides = array<i32>} : memref<2x8x128xf32, #tpu.memory_space<vmem>>, vector<2x8x128xf32>,
    %191 = vector.shape_cast %142 : vector<16x128xf32> to vector<2x8x128xf32>
    %c0_97 = arith.constant 0 : index
    %c0_98 = arith.constant 0 : index
    %c0_99 = arith.constant 0 : index
    %192 = vector.load %arg29[%c0_97, %c0_98, %c0_99] : memref<2x8x128xf32, #tpu.memory_space<vmem>>, vector<2x8x128xf32>
    tpu.vector_store %arg29[%c0_97, %c0_98, %c0_99], %191 {strides = array<i32>} : memref<2x8x128xf32, #tpu.memory_space<vmem>>, vector<2x8x128xf32>,
    return
  }
  func.func @transform_0(%arg0: i32) -> (i32, i32, i32) {
    %c0_i32 = arith.constant 0 : i32
    %c0_i32_0 = arith.constant 0 : i32
    %c0_i32_1 = arith.constant 0 : i32
    return %arg0, %c0_i32, %c0_i32_0 : i32, i32, i32
  }
  func.func @transform_1(%arg0: i32) -> (i32, i32, i32) {
    %c0_i32 = arith.constant 0 : i32
    %c0_i32_0 = arith.constant 0 : i32
    %c0_i32_1 = arith.constant 0 : i32
    return %arg0, %c0_i32, %c0_i32_0 : i32, i32, i32
  }
  func.func @transform_2(%arg0: i32) -> (i32, i32, i32) {
    %c0_i32 = arith.constant 0 : i32
    %c0_i32_0 = arith.constant 0 : i32
    %c0_i32_1 = arith.constant 0 : i32
    return %arg0, %c0_i32, %c0_i32_0 : i32, i32, i32
  }
  func.func @transform_3(%arg0: i32) -> (i32, i32, i32) {
    %c0_i32 = arith.constant 0 : i32
    %c0_i32_0 = arith.constant 0 : i32
    %c0_i32_1 = arith.constant 0 : i32
    return %arg0, %c0_i32, %c0_i32_0 : i32, i32, i32
  }
  func.func @transform_4(%arg0: i32) -> (i32, i32, i32) {
    %c0_i32 = arith.constant 0 : i32
    %c0_i32_0 = arith.constant 0 : i32
    %c0_i32_1 = arith.constant 0 : i32
    return %arg0, %c0_i32, %c0_i32_0 : i32, i32, i32
  }
  func.func @transform_5(%arg0: i32) -> (i32, i32, i32) {
    %c0_i32 = arith.constant 0 : i32
    %c0_i32_0 = arith.constant 0 : i32
    %c0_i32_1 = arith.constant 0 : i32
    return %arg0, %c0_i32, %c0_i32_0 : i32, i32, i32
  }
  func.func @transform_6(%arg0: i32) -> (i32, i32) {
    %c0_i32 = arith.constant 0 : i32
    %c0_i32_0 = arith.constant 0 : i32
    %c0_i32_1 = arith.constant 0 : i32
    return %c0_i32, %c0_i32_0 : i32, i32
  }
  func.func @transform_7(%arg0: i32) -> (i32, i32) {
    %c0_i32 = arith.constant 0 : i32
    %c0_i32_0 = arith.constant 0 : i32
    %c0_i32_1 = arith.constant 0 : i32
    return %c0_i32, %c0_i32_0 : i32, i32
  }
  func.func @transform_8(%arg0: i32) -> (i32, i32) {
    %c0_i32 = arith.constant 0 : i32
    %c0_i32_0 = arith.constant 0 : i32
    %c0_i32_1 = arith.constant 0 : i32
    return %c0_i32, %c0_i32_0 : i32, i32
  }
  func.func @transform_9(%arg0: i32) -> (i32, i32) {
    %c0_i32 = arith.constant 0 : i32
    %c0_i32_0 = arith.constant 0 : i32
    %c0_i32_1 = arith.constant 0 : i32
    return %c0_i32, %c0_i32_0 : i32, i32
  }
  func.func @transform_10(%arg0: i32) -> (i32, i32) {
    %c0_i32 = arith.constant 0 : i32
    %c0_i32_0 = arith.constant 0 : i32
    %c0_i32_1 = arith.constant 0 : i32
    return %c0_i32, %c0_i32_0 : i32, i32
  }
  func.func @transform_11(%arg0: i32) -> (i32, i32) {
    %c0_i32 = arith.constant 0 : i32
    %c0_i32_0 = arith.constant 0 : i32
    %c0_i32_1 = arith.constant 0 : i32
    return %c0_i32, %c0_i32_0 : i32, i32
  }
  func.func @transform_12(%arg0: i32) -> (i32, i32) {
    %c0_i32 = arith.constant 0 : i32
    %c0_i32_0 = arith.constant 0 : i32
    %c0_i32_1 = arith.constant 0 : i32
    return %c0_i32, %c0_i32_0 : i32, i32
  }
  func.func @transform_13(%arg0: i32) -> (i32, i32) {
    %c0_i32 = arith.constant 0 : i32
    %c0_i32_0 = arith.constant 0 : i32
    %c0_i32_1 = arith.constant 0 : i32
    return %c0_i32, %c0_i32_0 : i32, i32
  }
  func.func @transform_14(%arg0: i32) -> (i32, i32) {
    %c0_i32 = arith.constant 0 : i32
    %c0_i32_0 = arith.constant 0 : i32
    %c0_i32_1 = arith.constant 0 : i32
    return %c0_i32, %c0_i32_0 : i32, i32
  }
  func.func @transform_15(%arg0: i32) -> (i32, i32) {
    %c0_i32 = arith.constant 0 : i32
    %c0_i32_0 = arith.constant 0 : i32
    %c0_i32_1 = arith.constant 0 : i32
    return %c0_i32, %c0_i32_0 : i32, i32
  }
  func.func @transform_16(%arg0: i32) -> (i32, i32) {
    %c0_i32 = arith.constant 0 : i32
    %c0_i32_0 = arith.constant 0 : i32
    %c0_i32_1 = arith.constant 0 : i32
    return %c0_i32, %c0_i32_0 : i32, i32
  }
  func.func @transform_17(%arg0: i32) -> (i32, i32) {
    %c0_i32 = arith.constant 0 : i32
    %c0_i32_0 = arith.constant 0 : i32
    %c0_i32_1 = arith.constant 0 : i32
    return %c0_i32, %c0_i32_0 : i32, i32
  }
  func.func @transform_18(%arg0: i32) -> (i32, i32) {
    %c0_i32 = arith.constant 0 : i32
    %c0_i32_0 = arith.constant 0 : i32
    %c0_i32_1 = arith.constant 0 : i32
    return %c0_i32, %c0_i32_0 : i32, i32
  }
  func.func @transform_19(%arg0: i32) -> (i32, i32) {
    %c0_i32 = arith.constant 0 : i32
    %c0_i32_0 = arith.constant 0 : i32
    %c0_i32_1 = arith.constant 0 : i32
    return %c0_i32, %c0_i32_0 : i32, i32
  }
  func.func @transform_20(%arg0: i32) -> (i32, i32) {
    %c0_i32 = arith.constant 0 : i32
    %c0_i32_0 = arith.constant 0 : i32
    %c0_i32_1 = arith.constant 0 : i32
    return %c0_i32, %c0_i32_0 : i32, i32
  }
  func.func @transform_21(%arg0: i32) -> (i32, i32) {
    %c0_i32 = arith.constant 0 : i32
    %c0_i32_0 = arith.constant 0 : i32
    %c0_i32_1 = arith.constant 0 : i32
    return %c0_i32, %c0_i32_0 : i32, i32
  }
  func.func @transform_22(%arg0: i32) -> (i32, i32) {
    %c0_i32 = arith.constant 0 : i32
    %c0_i32_0 = arith.constant 0 : i32
    %c0_i32_1 = arith.constant 0 : i32
    return %c0_i32, %c0_i32_0 : i32, i32
  }
  func.func @transform_23(%arg0: i32) -> (i32, i32) {
    %c0_i32 = arith.constant 0 : i32
    %c0_i32_0 = arith.constant 0 : i32
    %c0_i32_1 = arith.constant 0 : i32
    return %c0_i32, %c0_i32_0 : i32, i32
  }
  func.func @transform_24(%arg0: i32) -> (i32, i32) {
    %c0_i32 = arith.constant 0 : i32
    %c0_i32_0 = arith.constant 0 : i32
    %c0_i32_1 = arith.constant 0 : i32
    return %c0_i32, %c0_i32_0 : i32, i32
  }
  func.func @transform_25(%arg0: i32) -> (i32, i32) {
    %c0_i32 = arith.constant 0 : i32
    %c0_i32_0 = arith.constant 0 : i32
    %c0_i32_1 = arith.constant 0 : i32
    return %c0_i32, %c0_i32_0 : i32, i32
  }
  func.func @transform_26(%arg0: i32) -> (i32, i32, i32) {
    %c0_i32 = arith.constant 0 : i32
    %c0_i32_0 = arith.constant 0 : i32
    %c0_i32_1 = arith.constant 0 : i32
    return %arg0, %c0_i32, %c0_i32_0 : i32, i32, i32
  }
  func.func @transform_27(%arg0: i32) -> (i32, i32, i32) {
    %c0_i32 = arith.constant 0 : i32
    %c0_i32_0 = arith.constant 0 : i32
    %c0_i32_1 = arith.constant 0 : i32
    return %arg0, %c0_i32, %c0_i32_0 : i32, i32, i32
  }
  func.func @transform_28(%arg0: i32) -> (i32, i32, i32) {
    %c0_i32 = arith.constant 0 : i32
    %c0_i32_0 = arith.constant 0 : i32
    %c0_i32_1 = arith.constant 0 : i32
    return %arg0, %c0_i32, %c0_i32_0 : i32, i32, i32
  }
}

</mosaic_0001>

<bundles_post_ra>
// kernel: tpu_custom_call.1
= control target key start
LH: loop header
LB: loop body
LE: loop exit
PB: predicated region body
PF: predicated region fallthrough
CT: control target
= control target key end

     0   :  { %s7430_s0 = inlined_call_operand.hbm [shape: f32[4,16,128], index: 0, kind: input, shape index: {}]   ;;  %s7431_s1 = inlined_call_operand.hbm [shape: f32[4,8,128], index: 1, kind: input, shape index: {}]   ;;  %s7432_s2 = inlined_call_operand.hbm [shape: f32[4,8,128], index: 2, kind: input, shape index: {}]   ;;  %s7433_s3 = inlined_call_operand.vmem [shape: f32[4,16,2], index: 3, kind: input, shape index: {}]   ;;  %s7434_s4 = inlined_call_operand.hbm [shape: f32[4,2,8], index: 4, kind: input, shape index: {}]   ;;  %s7435_s5 = inlined_call_operand.vmem [shape: f32[4,1,8], index: 5, kind: input, shape index: {}]   ;;  %s7436_s6 = inlined_call_operand.hbm [shape: bf16[128,256], index: 6, kind: input, shape index: {}]   ;;  %s7437_s7 = inlined_call_operand.hbm [shape: f32[1,256], index: 7, kind: input, shape index: {}]   ;;  %s7438_s8 = inlined_call_operand.hbm [shape: bf16[128,384], index: 8, kind: input, shape index: {}]   ;;  %s7439_s9 = inlined_call_operand.hbm [shape: f32[1,384], index: 9, kind: input, shape index: {}]   ;;  %s7440_s10 = inlined_call_operand.hbm [shape: bf16[128,128], index: 10, kind: input, shape index: {}]   ;;  %s7441_s11 = inlined_call_operand.hbm [shape: bf16[128,128], index: 11, kind: input, shape index: {}]   ;;  %s7442_s12 = inlined_call_operand.hbm [shape: f32[1,128], index: 12, kind: input, shape index: {}]   ;;  %s7443_s13 = inlined_call_operand.hbm [shape: bf16[128,128], index: 13, kind: input, shape index: {}]   ;;  %s7444_s14 = inlined_call_operand.hbm [shape: bf16[128,128], index: 14, kind: input, shape index: {}]   ;;  %s7445_s15 = inlined_call_operand.hbm [shape: f32[1,128], index: 15, kind: input, shape index: {}]   ;;  %s7446_s16 = inlined_call_operand.vmem [shape: bf16[128,256], index: 16, kind: input, shape index: {}]   ;;  %s7447_s17 = inlined_call_operand.vmem [shape: f32[1,256], index: 17, kind: input, shape index: {}]   ;;  %s7448_s18 = inlined_call_operand.hbm [shape: bf16[128,128], index: 18, kind: input, shape index: {}]   ;;  %s7449_s19 = inlined_call_operand.vmem [shape: f32[1,128], index: 19, kind: input, shape index: {}]   ;;  %s7450_s20 = inlined_call_operand.hbm [shape: bf16[128,128], index: 20, kind: input, shape index: {}]   ;;  %s7451_s21 = inlined_call_operand.hbm [shape: bf16[128,128], index: 21, kind: input, shape index: {}]   ;;  %s7452_s22 = inlined_call_operand.vmem [shape: f32[1,128], index: 22, kind: input, shape index: {}]   ;;  %s7453_s23 = inlined_call_operand.hbm [shape: bf16[128,128], index: 23, kind: input, shape index: {}]   ;;  %s7454_s24 = inlined_call_operand.hbm [shape: bf16[128,128], index: 24, kind: input, shape index: {}]   ;;  %s7455_s25 = inlined_call_operand.vmem [shape: f32[1,128], index: 25, kind: input, shape index: {}]   ;;  %s7456_s26 = inlined_call_operand.hbm [shape: f32[4,16,128], index: 26, kind: output, shape index: {0}]   ;;  %s7457_s27 = inlined_call_operand.hbm [shape: f32[4,8,128], index: 27, kind: output, shape index: {1}]   ;;  %s7458_s28 = inlined_call_operand.hbm [shape: f32[4,8,128], index: 28, kind: output, shape index: {2}]  }
   0x1   :  { %7520 = sst [smem:[#allocation60_spill]] %s7430_s0 }
   0x2   :  { %7521 = sst [smem:[#allocation61_spill]] %s7431_s1 }
   0x3   :  { %7522 = sst [smem:[#allocation62_spill]] %s7432_s2 }
   0x4   :  { %7523 = sst [smem:[#allocation63_spill]] %s7433_s3 }
   0x5   :  { %7524 = sst [smem:[#allocation64_spill]] %s7434_s4 }
   0x6   :  { %7525 = sst [smem:[#allocation65_spill]] %s7435_s5 }
   0x7   :  { %7526 = sst [smem:[#allocation66_spill]] %s7436_s6 }
   0x8   :  { %7527 = sst [smem:[#allocation67_spill]] %s7437_s7 }
   0x9   :  { %7528 = sst [smem:[#allocation68_spill]] %s7438_s8 }
   0xa   :  { %7529 = sst [smem:[#allocation69_spill]] %s7439_s9 }
   0xb   :  { %7530 = sst [smem:[#allocation70_spill]] %s7440_s10 }
   0xc   :  { %7531 = sst [smem:[#allocation71_spill]] %s7441_s11 }
   0xd   :  { %7532 = sst [smem:[#allocation72_spill]] %s7442_s12 }
   0xe   :  { %7533 = sst [smem:[#allocation73_spill]] %s7443_s13 }
   0xf   :  { %7534 = sst [smem:[#allocation74_spill]] %s7445_s15 }
  0x10   :  { %7535 = sst [smem:[#allocation75_spill]] %s7446_s16 }
  0x11   :  { %7536 = sst [smem:[#allocation76_spill]] %s7447_s17 }
  0x12   :  { %7537 = sst [smem:[#allocation77_spill]] %s7449_s19 }
  0x13   :  { %7538 = sst [smem:[#allocation78_spill]] %s7450_s20 }
  0x14   :  { %7539 = sst [smem:[#allocation79_spill]] %s7452_s22 }
  0x15   :  { %7540 = sst [smem:[#allocation80_spill]] %s7453_s23 }
  0x16   :  { %7541 = sst [smem:[#allocation81_spill]] %s7455_s25 }
  0x17   :  { %7542 = sst [smem:[#allocation82_spill]] %s7456_s26 }
  0x18   :  { %7543 = sst [smem:[#allocation83_spill]] %s7457_s27 }
  0x19   :  { %7544 = sst [smem:[#allocation84_spill]] %s7458_s28 }
  0x1a   :  { %34 = vsyncpa [#allocation3], 0 }
  0x1b   :  { %36 = vsyncpa [#allocation3 + $0x1], 0 }
  0x1c   :  { %37 = vsyncpa [#allocation6], 0 }
  0x1d   :  { %39 = vsyncpa [#allocation6 + $0x1], 0 }
  0x1e   :  { %40 = vsyncpa [#allocation9], 0 }
  0x1f   :  { %42 = vsyncpa [#allocation9 + $0x1], 0 }
  0x20   :  { %43 = vsyncpa [#allocation12], 0 }
  0x21   :  { %44 = vsyncpa [#allocation15], 0 }
  0x22   :  { %45 = vsyncpa [#allocation18], 0 }
  0x23   :  { %46 = vsyncpa [#allocation21], 0 }
  0x24   :  { %47 = vsyncpa [#allocation24], 0 }
  0x25   :  { %48 = vsyncpa [#allocation27], 0 }
  0x26   :  { %49 = vsyncpa [#allocation30], 0 }
  0x27   :  { %50 = vsyncpa [#allocation4], 0 }
  0x28   :  { %52 = vsyncpa [#allocation4 + $0x1], 0 }
  0x29   :  { %53 = vsyncpa [#allocation34], 0 }
  0x2a   :  { %55 = vsyncpa [#allocation34 + $0x1], 0  ;;  %s6222_s8 = smov 0   ;;  %s6224_s5 = smov 0  }
  0x2b   :  { %s6226_s9 = smov 0   ;;  %s6228_s30 = smov 0  }
  0x2c LB: > { %7545 = sst [smem:[#allocation49_spill]] %s6027_s8  ;;  %s6041_s3 = smov [#allocation10]   ;;  %s6039_s30 = sphi %s6228_s30, %s7633_s30   ;;  %s6035_s9 = sphi %s6226_s9, %s7636_s9   ;;  %s6031_s5 = sphi %s6224_s5, %s7635_s5   ;;  %s6027_s8 = sphi %s6222_s8, %s7634_s8  }
  0x2d   : > { %7546 = sst [smem:[#allocation50_spill]] %s6031_s5  ;;  %s732_s6 = sshll.u32 %s6041_s3, 4  ;;  %s6248_s6 = int_to_ptr.vmem [resolvable:$true] %s732_s6 }
  0x2e   : > { %7547 = sst [smem:[#allocation51_spill]] %s6035_s9  ;;  %s6243_s10 = sadd.s32 4294967295, %s6039_s30  }
  0x2f   : > { %7548 = sst [smem:[#allocation52_spill]] %s6243_s10  ;;  %p4229_p0 = scmp.ge.s32.totalorder %s6039_s30, 1 }
  0x30   : > { %p7480_p1 = scmp.eq.s32.totalorder %s6243_s10, 0  ;;  %p720_p2 = scmp.lt.s32.totalorder %s6039_s30, 3 }
  0x31   : > { %s6042_s11 = smov [#allocation11]   ;;  %s6043_s7 = smov [#allocation14]  }
  0x32   : > { %p6250_p3 = pnand %p4229_p0, %p720_p2  ;;  %s746_s29 = sshll.u32 %s6042_s11, 4  ;;  %s6263_s29 = int_to_ptr.vmem [resolvable:$true] %s746_s29 }
  0x33   : > { %s770_s12 = sshll.u32 %s6043_s7, 4  ;;  %s7552_s3 = sld [smem:[#allocation66_spill]]  ;;  %s6265_s12 = int_to_ptr.vmem [resolvable:$true] %s770_s12 }
  0x34   : > { %s7549_s0 = scalar_select %p6250_p3, 1, 0 }
  0x35   : > { %p4961_p5 = pneg %p6250_p3 }
  0x36   : > { %7550 = sst [smem:[#allocation53_spill]] %s7549_s0 }
  0x37   : > { %p6259_p6 = pnand %p4961_p5, %p7480_p1 }
  0x39   : > { %s7551_s2 = scalar_select %p6259_p6, 1, 0 }
  0x3a   : > { %s5333_s26 = scalar_lea.hbm %s7552_s3, 2048  ;;  %p6275_p8 = pneg %p6259_p6 }
  0x3b   : > { %p5334_p7 = scmp.ne.s32.totalorder %s7552_s3, %s5333_s26  ;;  %p5340_p11 = scmp.lt.u32.totalorder %s5333_s26, %s7552_s3 }
  0x3c   : > { %s7553_s11 = scalar_select %p6275_p8, 1, 0 }
  0x3d   : > { %p5336_p9 = pnand %p6275_p8, %p5334_p7 }
  0x3f   : > { %p5337_p10 = pneg %p5336_p9 }
  0x41   : > { %p5342_p12 = pnand %p5340_p11, %p5337_p10 }
  0x43   : > { %5345 = shalt.err (!%p5342_p12)
}
  0x44   : > { %s5346_s25 = scalar_lea.vmem %s6248_s6, 2048  ;;  %p5354_p5 = scmp.lt.s32.totalorder %s6248_s6, %s6248_s6 }
  0x45   : > { %p5347_p13 = scmp.ne.s32.totalorder %s6248_s6, %s5346_s25  ;;  %p5355_p4 = scmp.lt.s32.totalorder %s5346_s25, %s5346_s25 }
  0x47   : > { %p5349_p0 = pnand %p5347_p13, %p6275_p8  ;;  %p5356_p7 = por %p5355_p4, %p5354_p5 }
  0x49   : > { %p5350_p2 = pneg %p5349_p0 }
  0x4b   : > { %p5357_p9 = pnand %p5356_p7, %p5350_p2 }
  0x4d   : > { %5360 = shalt.err (!%p5357_p9)
}
  0x4e   : > { %s7475_s28 = smov 128   ;;  %s7477_s26 = smov 8  }
  0x4f   : > { %4964 = dma.hbm_to_vmem [thread:$0]  (!%p6259_p6), %s7552_s3, 2048, %s6248_s6, [#allocation9], %s7475_s28, %s7475_s28, %s7477_s26  }
  0x50   : > { %s7554_s22 = sld [smem:[#allocation67_spill]] }
  0x56   : > { %s5361_s25 = scalar_lea.hbm %s7554_s22, 32 }
  0x57   : > { %p5362_p4 = scmp.ne.s32.totalorder %s7554_s22, %s5361_s25  ;;  %p5368_p12 = scmp.lt.u32.totalorder %s5361_s25, %s7554_s22 }
  0x59   : > { %p5364_p10 = pnand %p5362_p4, %p6275_p8 }
  0x5b   : > { %p5365_p11 = pneg %p5364_p10 }
  0x5d   : > { %p5370_p13 = pnand %p5368_p12, %p5365_p11 }
  0x5f   : > { %5373 = shalt.err (!%p5370_p13)
}
  0x60   : > { %s5374_s6 = scalar_lea.vmem %s6263_s29, 32  ;;  %p5382_p7 = scmp.lt.s32.totalorder %s6263_s29, %s6263_s29 }
  0x61   : > { %p5375_p0 = scmp.ne.s32.totalorder %s6263_s29, %s5374_s6  ;;  %p5383_p9 = scmp.lt.s32.totalorder %s5374_s6, %s5374_s6 }
  0x63   : > { %p5377_p2 = pnand %p5375_p0, %p6275_p8  ;;  %p5384_p4 = por %p5383_p9, %p5382_p7 }
  0x65   : > { %p5378_p5 = pneg %p5377_p2 }
  0x67   : > { %p5385_p10 = pnand %p5384_p4, %p5378_p5 }
  0x69   : > { %5388 = shalt.err (!%p5385_p10)
}
  0x6a   : > { %4967 = dma.hbm_to_vmem [thread:$0]  (!%p6259_p6), %s7554_s22, 32, %s6263_s29, [#allocation12]  }
  0x6b   : > { %s7555_s27 = sld [smem:[#allocation69_spill]] }
  0x71   : > { %s5389_s1 = scalar_lea.hbm %s7555_s27, 48 }
  0x72   : > { %p5390_p11 = scmp.ne.s32.totalorder %s7555_s27, %s5389_s1  ;;  %p5396_p0 = scmp.lt.u32.totalorder %s5389_s1, %s7555_s27 }
  0x74   : > { %p5392_p12 = pnand %p5390_p11, %p6275_p8 }
  0x76   : > { %p5393_p13 = pneg %p5392_p12 }
  0x78   : > { %p5398_p2 = pnand %p5396_p0, %p5393_p13 }
  0x7a   : > { %5401 = shalt.err (!%p5398_p2)
}
  0x7b   : > { %s5402_s29 = scalar_lea.vmem %s6265_s12, 48  ;;  %s5409_s16 = scalar_lea.vmem %s6265_s12, 64 }
  0x7c   : > { %p5403_p5 = scmp.ne.s32.totalorder %s6265_s12, %s5402_s29  ;;  %p5410_p4 = scmp.lt.s32.totalorder %s6265_s12, %s6265_s12 }
  0x7d   : > { %p5411_p10 = scmp.lt.s32.totalorder %s5409_s16, %s5402_s29 }
  0x7e   : > { %p5405_p7 = pnand %p5403_p5, %p6275_p8 }
  0x7f   : > { %p5412_p11 = por %p5411_p10, %p5410_p4 }
  0x80   : > { %p5406_p9 = pneg %p5405_p7 }
  0x82   : > { %p5413_p12 = pnand %p5412_p11, %p5406_p9 }
  0x84   : > { %5416 = shalt.err (!%p5413_p12)
}
  0x85   : > { %4973 = dma.hbm_to_vmem [thread:$0]  (!%p6259_p6), %s7555_s27, 48, %s6265_s12, [#allocation15]  }
  0x86   : > { %s6046_s0 = smov [#allocation17]   ;;  %s6047_s4 = smov [#allocation20]  }
  0x87   : > { %s793_s1 = sshll.u32 %s6046_s0, 4  ;;  %s817_s7 = sshll.u32 %s6047_s4, 4  ;;  %s794_s1 = int_to_ptr.vmem [resolvable:$true] %s793_s1  ;;  %s818_s7 = int_to_ptr.vmem [resolvable:$true] %s817_s7 }
  0x88   : > { %s7556_s28 = sld [smem:[#allocation71_spill]] }
  0x8e   : > { %s5417_s29 = scalar_lea.hbm %s7556_s28, 1024 }
  0x8f   : > { %p5418_p13 = scmp.ne.s32.totalorder %s7556_s28, %s5417_s29  ;;  %p5424_p5 = scmp.lt.u32.totalorder %s5417_s29, %s7556_s28 }
  0x91   : > { %p5420_p0 = pnand %p5418_p13, %p6275_p8 }
  0x93   : > { %p5421_p2 = pneg %p5420_p0 }
  0x95   : > { %p5426_p7 = pnand %p5424_p5, %p5421_p2 }
  0x97   : > { %5429 = shalt.err (!%p5426_p7)
}
  0x98   : > { %s5430_s12 = scalar_lea.vmem %s794_s1, 1024  ;;  %p5438_p11 = scmp.lt.s32.totalorder %s794_s1, %s794_s1 }
  0x99   : > { %p5431_p9 = scmp.ne.s32.totalorder %s794_s1, %s5430_s12  ;;  %p5439_p12 = scmp.lt.s32.totalorder %s5430_s12, %s5430_s12 }
  0x9b   : > { %p5433_p4 = pnand %p5431_p9, %p6275_p8  ;;  %p5440_p1 = por %p5439_p12, %p5438_p11 }
  0x9d   : > { %p5434_p10 = pneg %p5433_p4 }
  0x9f   : > { %p5441_p3 = pnand %p5440_p1, %p5434_p10 }
  0xa1   : > { %5444 = shalt.err (!%p5441_p3)
}
  0xa2   : > { %s7485_s26 = smov 64   ;;  %s7487_s19 = smov 4  }
  0xa3   : > { %4979 = dma.hbm_to_vmem [thread:$0]  (!%p6259_p6), %s7556_s28, 1024, %s794_s1, [#allocation18], %s7485_s26, %s7485_s26, %s7487_s19  }
  0xa4   : > { %s7557_s13 = sld [smem:[#allocation73_spill]] }
  0xaa   : > { %s5445_s6 = scalar_lea.hbm %s7557_s13, 1024 }
  0xab   : > { %p5446_p1 = scmp.ne.s32.totalorder %s7557_s13, %s5445_s6  ;;  %p5452_p0 = scmp.lt.u32.totalorder %s5445_s6, %s7557_s13 }
  0xad   : > { %p5448_p3 = pnand %p5446_p1, %p6275_p8 }
  0xaf   : > { %p5449_p13 = pneg %p5448_p3 }
  0xb1   : > { %p5454_p2 = pnand %p5452_p0, %p5449_p13 }
  0xb3   : > { %5457 = shalt.err (!%p5454_p2)
}
  0xb4   : > { %s5458_s3 = scalar_lea.vmem %s818_s7, 1024  ;;  %p5466_p4 = scmp.lt.s32.totalorder %s818_s7, %s818_s7 }
  0xb5   : > { %p5459_p5 = scmp.ne.s32.totalorder %s818_s7, %s5458_s3  ;;  %p5467_p10 = scmp.lt.s32.totalorder %s5458_s3, %s5458_s3 }
  0xb7   : > { %p5461_p7 = pnand %p5459_p5, %p6275_p8  ;;  %p5468_p11 = por %p5467_p10, %p5466_p4 }
  0xb9   : > { %p5462_p9 = pneg %p5461_p7 }
  0xbb   : > { %p5469_p12 = pnand %p5468_p11, %p5462_p9 }
  0xbd   : > { %5472 = shalt.err (!%p5469_p12)
}
  0xbe   : > { %4985 = dma.hbm_to_vmem [thread:$0]  (!%p6259_p6), %s7557_s13, 1024, %s818_s7, [#allocation21], %s7485_s26, %s7485_s26, %s7487_s19  }
  0xbf   : > { %s6050_s4 = smov [#allocation23]   ;;  %s6051_s6 = smov [#allocation26]  }
  0xc0   : > { %s844_s25 = sshll.u32 %s6050_s4, 4  ;;  %s876_s29 = sshll.u32 %s6051_s6, 4  ;;  %s845_s25 = int_to_ptr.vmem [resolvable:$true] %s844_s25  ;;  %s877_s29 = int_to_ptr.vmem [resolvable:$true] %s876_s29 }
  0xc1   : > { %s7558_s15 = sld [smem:[#allocation74_spill]] }
  0xc7   : > { %s5473_s12 = scalar_lea.hbm %s7558_s15, 16 }
  0xc8   : > { %p5474_p1 = scmp.ne.s32.totalorder %s7558_s15, %s5473_s12  ;;  %p5480_p0 = scmp.lt.u32.totalorder %s5473_s12, %s7558_s15 }
  0xca   : > { %p5476_p3 = pnand %p5474_p1, %p6275_p8 }
  0xcc   : > { %p5477_p13 = pneg %p5476_p3 }
  0xce   : > { %p5482_p2 = pnand %p5480_p0, %p5477_p13 }
  0xd0   : > { %5485 = shalt.err (!%p5482_p2)
}
  0xd1   : > { %s5486_s7 = scalar_lea.vmem %s845_s25, 16  ;;  %s5493_s0 = scalar_lea.vmem %s845_s25, 32 }
  0xd2   : > { %p5487_p5 = scmp.ne.s32.totalorder %s845_s25, %s5486_s7  ;;  %p5494_p4 = scmp.lt.s32.totalorder %s845_s25, %s845_s25 }
  0xd3   : > { %p5495_p10 = scmp.lt.s32.totalorder %s5493_s0, %s5486_s7 }
  0xd4   : > { %p5489_p7 = pnand %p5487_p5, %p6275_p8 }
  0xd5   : > { %p5496_p11 = por %p5495_p10, %p5494_p4 }
  0xd6   : > { %p5490_p9 = pneg %p5489_p7 }
  0xd8   : > { %p5497_p12 = pnand %p5496_p11, %p5490_p9 }
  0xda   : > { %5500 = shalt.err (!%p5497_p12)
}
  0xdb   : > { %4991 = dma.hbm_to_vmem [thread:$0]  (!%p6259_p6), %s7558_s15, 16, %s845_s25, [#allocation24]  }
  0xdc   : > { %s7559_s20 = sld [smem:[#allocation78_spill]] }
  0xe2   : > { %s5501_s16 = scalar_lea.hbm %s7559_s20, 1024 }
  0xe3   : > { %p5502_p1 = scmp.ne.s32.totalorder %s7559_s20, %s5501_s16  ;;  %p5508_p0 = scmp.lt.u32.totalorder %s5501_s16, %s7559_s20 }
  0xe5   : > { %p5504_p3 = pnand %p5502_p1, %p6275_p8 }
  0xe7   : > { %p5505_p13 = pneg %p5504_p3 }
  0xe9   : > { %p5510_p2 = pnand %p5508_p0, %p5505_p13 }
  0xeb   : > { %5513 = shalt.err (!%p5510_p2)
}
  0xec   : > { %s5514_s7 = scalar_lea.vmem %s877_s29, 1024  ;;  %p5522_p4 = scmp.lt.s32.totalorder %s877_s29, %s877_s29 }
  0xed   : > { %p5515_p5 = scmp.ne.s32.totalorder %s877_s29, %s5514_s7  ;;  %p5523_p10 = scmp.lt.s32.totalorder %s5514_s7, %s5514_s7 }
  0xef   : > { %p5517_p7 = pnand %p5515_p5, %p6275_p8  ;;  %p5524_p11 = por %p5523_p10, %p5522_p4 }
  0xf1   : > { %p5518_p9 = pneg %p5517_p7 }
  0xf3   : > { %p5525_p12 = pnand %p5524_p11, %p5518_p9 }
  0xf5   : > { %5528 = shalt.err (!%p5525_p12)
}
  0xf6   : > { %4997 = dma.hbm_to_vmem [thread:$0]  (!%p6259_p6), %s7559_s20, 1024, %s877_s29, [#allocation27], %s7485_s26, %s7485_s26, %s7487_s19  }
  0xf7   : > { %s6052_s22 = smov [#allocation29]   ;;  %s7560_s23 = sld [smem:[#allocation80_spill]] }
  0xf8   : > { %s905_s4 = sshll.u32 %s6052_s22, 4  ;;  %s906_s4 = int_to_ptr.vmem [resolvable:$true] %s905_s4 }
  0xfd   : > { %s5529_s16 = scalar_lea.hbm %s7560_s23, 1024 }
  0xfe   : > { %p5530_p1 = scmp.ne.s32.totalorder %s7560_s23, %s5529_s16  ;;  %p5536_p0 = scmp.lt.u32.totalorder %s5529_s16, %s7560_s23 }
 0x100   : > { %p5532_p3 = pnand %p5530_p1, %p6275_p8 }
 0x102   : > { %p5533_p13 = pneg %p5532_p3 }
 0x104   : > { %p5538_p2 = pnand %p5536_p0, %p5533_p13 }
 0x106   : > { %5541 = shalt.err (!%p5538_p2)
}
 0x107   : > { %s5542_s29 = scalar_lea.vmem %s906_s4, 1024  ;;  %p5550_p4 = scmp.lt.s32.totalorder %s906_s4, %s906_s4 }
 0x108   : > { %p5543_p5 = scmp.ne.s32.totalorder %s906_s4, %s5542_s29  ;;  %p5551_p10 = scmp.lt.s32.totalorder %s5542_s29, %s5542_s29 }
 0x10a   : > { %p5545_p7 = pnand %p5543_p5, %p6275_p8  ;;  %p5552_p11 = por %p5551_p10, %p5550_p4 }
 0x10c   : > { %p5546_p9 = pneg %p5545_p7 }
 0x10e   : > { %p5553_p12 = pnand %p5552_p11, %p5546_p9 }
 0x110   : > { %5556 = shalt.err (!%p5553_p12)
}
 0x111   : > { %5003 = dma.hbm_to_vmem [thread:$0]  (!%p6259_p6), %s7560_s23, 1024, %s906_s4, [#allocation30], %s7485_s26, %s7485_s26, %s7487_s19  }
 0x112   : > { %s7484_s0 = sadd.s32 4294967294, %s6039_s30   ;;  %s6450_s22 = sadd.s32 1, %s6039_s30  }
 0x113   : > { %7561 = sst [smem:[#allocation54_spill]] %s6450_s22  ;;  %s65_s27 = ssub.s32 %s6039_s30, %s6450_s22 }
 0x114   : > { %s68_s6 = sadd.s32 1, %s6035_s9  ;;  %p66_p1 = scmp.eq.s32.totalorder %s65_s27, 0 }
 0x115   : > { %p75_p3 = scmp.ne.s32.totalorder %s6035_s9, %s6031_s5  ;;  %p76_p13 = scmp.eq.s32.totalorder %s6039_s30, 0 }
 0x116   : > { %p81_p0 = scmp.ne.s32.totalorder %s6031_s5, %s6027_s8  ;;  %p7563_p5 = scmp.eq.s32.totalorder %s6243_s10, 0 }
 0x117   : > { %s6461_s16 = scalar_select %p66_p1, %s6035_s9, %s68_s6  }
 0x118   : > { %p77_p2 = por %p76_p13, %p75_p3  ;;  %p6465_p7 = por %p7563_p5, %p81_p0 }
 0x119   : > { %7562 = sst [smem:[#allocation55_spill]] %s6461_s16  ;;  %p655_p9 = scmp.eq.s32.totalorder %s6243_s10, 1 }
 0x11a   : > { %s7564_s4 = scalar_select %p6465_p7, 1, 0 }
 0x11b   : > { %p661_p4 = scmp.eq.s32.totalorder %s7484_s0, 1  ;;  %p5045_p10 = scmp.lt.s32.totalorder %s6039_s30, 2 }
 0x11c   : > { %7565 = sst [smem:[#allocation56_spill]] %s7564_s4  ;;  %s6474_s17 = sand.u32 1, %s6035_s9  }
 0x11d   : > { %p6476_p11 = por %p655_p9, %p75_p3  ;;  %p6480_p12 = por %p661_p4, %p81_p0 }
 0x11e   : > { %p6484_p1 = pnand %p5045_p10, %p77_p2  ;;  %s7492_s29 = sand.u32 1, %s6039_s30  }
 0x11f   : > { %s7566_s12 = scalar_select %p6476_p11, 1, 0 }
 0x120   : > { %s7568_s3 = scalar_select %p6480_p12, 1, 0 }
 0x121   : > { %7567 = sst [smem:[#allocation57_spill]] %s7566_s12  ;;  %s7489_s7 = sshll.u32 %s6474_s17, 4 }
 0x122   : > { %7569 = sst [smem:[#allocation58_spill]] %s7568_s3  ;;  %s7490_s25 = sshll.u32 %s6039_s30, 8 }
 0x123   : > { %s7570_s1 = scalar_select %p6484_p1, 1, 0 }
 0x124   : > { %s961_s27 = scalar_lea.vmem [#allocation5], %s7489_s7  ;;  %s7571_s19 = sld [smem:[#allocation61_spill]] }
 0x125   : > { %s968_s6 = sshll.u32 %s961_s27, 4  ;;  %s6504_s15 = scalar_lea.sflag [#allocation6], %s7492_s29  ;;  %s6500_s6 = int_to_ptr.vmem [resolvable:$true] %s968_s6 }
 0x126   : > { %7572 = sst [smem:[#allocation59_spill]] %s6504_s15  ;;  %p6510_p13 = pneg %p6484_p1 }
 0x128   : > { %s7573_s27 = scalar_select %p6510_p13, 1, 0 }
 0x12a   : > { %s6498_s13 = scalar_lea.hbm %s7571_s19, %s7490_s25  ;;  %s5562_s7 = scalar_lea.hbm %s7571_s19, 512 }
 0x12b   : > { %s5557_s20 = scalar_lea.hbm %s6498_s13, 256  ;;  %p5563_p5 = scmp.lt.u32.totalorder %s6498_s13, %s7571_s19 }
 0x12c   : > { %p5558_p3 = scmp.ne.s32.totalorder %s6498_s13, %s5557_s20  ;;  %p5564_p9 = scmp.lt.u32.totalorder %s5562_s7, %s5557_s20 }
 0x12d   : > { %p5566_p10 = scmp.lt.u32.totalorder %s5557_s20, %s6498_s13 }
 0x12e   : > { %p5560_p0 = pnand %p6510_p13, %p5558_p3  ;;  %p5565_p4 = por %p5564_p9, %p5563_p5 }
 0x130   : > { %p5561_p2 = pneg %p5560_p0  ;;  %p5567_p12 = por %p5566_p10, %p5565_p4 }
 0x132   : > { %p5568_p11 = pnand %p5567_p12, %p5561_p2 }
 0x134   : > { %5571 = shalt.err (!%p5568_p11)
}
 0x135   : > { %s5572_s29 = scalar_lea.vmem %s6500_s6, 256  ;;  %s6053_s26 = smov [#allocation5]  }
 0x136   : > { %p5573_p3 = scmp.ne.s32.totalorder %s6500_s6, %s5572_s29  ;;  %s5577_s0 = sshll.u32 %s6053_s26, 4  ;;  %s5578_s0 = int_to_ptr.vmem [resolvable:$false] %s5577_s0 }
 0x137   : > { %s5579_s23 = scalar_lea.vmem %s5578_s0, 512  ;;  %p5580_p6 = scmp.lt.s32.totalorder %s6500_s6, %s5578_s0 }
 0x138   : > { %p5575_p0 = pnand %p5573_p3, %p6510_p13  ;;  %p5581_p8 = scmp.lt.s32.totalorder %s5579_s23, %s5572_s29 }
 0x13a   : > { %p5576_p7 = pneg %p5575_p0  ;;  %p5582_p5 = por %p5581_p8, %p5580_p6 }
 0x13c   : > { %p5583_p9 = pnand %p5582_p5, %p5576_p7 }
 0x13e   : > { %5586 = shalt.err (!%p5583_p9)
}
 0x13f   : > { %s7574_s20 = smov 8   ;;  %s7575_s7 = smov 128  }
 0x140   : > { %5013 = dma.hbm_to_vmem [thread:$0]  (!%p6484_p1), %s6498_s13, 256, %s6500_s6, %s6504_s15, %s7575_s7, %s7575_s7, %s7574_s20  }
 0x141   : > { %s7576_s25 = sshll.u32 %s6039_s30, 8  ;;  %s7577_s0 = sld [smem:[#allocation62_spill]] }
 0x142   : > { %s7578_s23 = sshll.u32 %s6474_s17, 4  ;;  %s6054_s9 = smov [#allocation13]  }
 0x143   : > { %s982_s28 = scalar_lea.vmem [#allocation7], %s7578_s23  ;;  %s756_s22 = sshll.u32 %s6054_s9, 4  ;;  %s757_s22 = int_to_ptr.vmem [resolvable:$true] %s756_s22 }
 0x144   : > { %s989_s16 = sshll.u32 %s982_s28, 4  ;;  %s7579_s12 = sld [smem:[#allocation68_spill]]  ;;  %s6546_s16 = int_to_ptr.vmem [resolvable:$true] %s989_s16 }
 0x145   : > { %p7580_p8 = scmp.ne.s32.totalorder %s7553_s11, 0 }
 0x147   : > { %s6542_s29 = scalar_lea.hbm %s7577_s0, %s7576_s25 }
 0x14a   : > { %s5587_s10 = scalar_lea.hbm %s7579_s12, 3072 }
 0x14b   : > { %p5588_p6 = scmp.ne.s32.totalorder %s7579_s12, %s5587_s10  ;;  %p5594_p12 = scmp.lt.u32.totalorder %s5587_s10, %s7579_s12 }
 0x14d   : > { %p5590_p7 = pnand %p5588_p6, %p7580_p8 }
 0x14f   : > { %p5591_p11 = pneg %p5590_p7 }
 0x151   : > { %p5596_p2 = pnand %p5594_p12, %p5591_p11 }
 0x153   : > { %5599 = shalt.err (!%p5596_p2)
}
 0x154   : > { %s5600_s28 = scalar_lea.vmem %s757_s22, 3072  ;;  %p5608_p0 = scmp.lt.s32.totalorder %s757_s22, %s757_s22 }
 0x155   : > { %p5601_p4 = scmp.ne.s32.totalorder %s757_s22, %s5600_s28  ;;  %p5609_p5 = scmp.lt.s32.totalorder %s5600_s28, %s5600_s28 }
 0x157   : > { %p5603_p10 = pnand %p5601_p4, %p7580_p8  ;;  %p5610_p9 = por %p5609_p5, %p5608_p0 }
 0x159   : > { %p5604_p3 = pneg %p5603_p10 }
 0x15b   : > { %p5611_p1 = pnand %p5610_p9, %p5604_p3 }
 0x15d   : > { %5614 = shalt.err (!%p5611_p1)
}
 0x15e   : > { %s6055_s8 = smov 192   ;;  %s6056_s9 = smov 12  }
 0x15f   : > { %p7581_p6 = scmp.ne.s32.totalorder %s7551_s2, 0  ;;  %s6057_s3 = smov [#allocation16]  }
 0x160   : > { %s780_s25 = sshll.u32 %s6057_s3, 4  ;;  %s6058_s26 = smov [#allocation19]   ;;  %s781_s25 = int_to_ptr.vmem [resolvable:$true] %s780_s25 }
 0x161   : > { %4970 = dma.hbm_to_vmem [thread:$0]  (!%p7581_p6), %s7579_s12, 3072, %s757_s22, [#allocation12], %s6055_s8, %s6055_s8, %s6056_s9  }
 0x162   : > { %s807_s23 = sshll.u32 %s6058_s26, 4  ;;  %s7582_s6 = sld [smem:[#allocation70_spill]]  ;;  %s6566_s23 = int_to_ptr.vmem [resolvable:$true] %s807_s23 }
 0x168   : > { %s5615_s28 = scalar_lea.hbm %s7582_s6, 1024 }
 0x169   : > { %p5616_p1 = scmp.ne.s32.totalorder %s7582_s6, %s5615_s28  ;;  %p5622_p12 = scmp.lt.u32.totalorder %s5615_s28, %s7582_s6 }
 0x16b   : > { %p5618_p7 = pnand %p5616_p1, %p7580_p8 }
 0x16d   : > { %p5619_p11 = pneg %p5618_p7 }
 0x16f   : > { %p5624_p2 = pnand %p5622_p12, %p5619_p11 }
 0x171   : > { %5627 = shalt.err (!%p5624_p2)
}
 0x172   : > { %s5628_s8 = scalar_lea.vmem %s781_s25, 1024  ;;  %p5636_p0 = scmp.lt.s32.totalorder %s781_s25, %s781_s25 }
 0x173   : > { %p5629_p4 = scmp.ne.s32.totalorder %s781_s25, %s5628_s8  ;;  %p5637_p5 = scmp.lt.s32.totalorder %s5628_s8, %s5628_s8 }
 0x175   : > { %p5631_p10 = pnand %p5629_p4, %p7580_p8  ;;  %p5638_p9 = por %p5637_p5, %p5636_p0 }
 0x177   : > { %p5632_p3 = pneg %p5631_p10 }
 0x179   : > { %p5639_p13 = pnand %p5638_p9, %p5632_p3 }
 0x17b   : > { %5642 = shalt.err (!%p5639_p13)
}
 0x17c   : > { %s7583_s15 = smov 4   ;;  %s7584_s5 = smov 64  }
 0x17d   : > { %4976 = dma.hbm_to_vmem [thread:$0]  (!%p7581_p6), %s7582_s6, 1024, %s781_s25, [#allocation15], %s7584_s5, %s7584_s5, %s7583_s15  }
 0x17e   : > { %s7585_s13 = sld [smem:[#allocation72_spill]] }
 0x184   : > { %s5643_s19 = scalar_lea.hbm %s7585_s13, 16 }
 0x185   : > { %p5644_p1 = scmp.ne.s32.totalorder %s7585_s13, %s5643_s19  ;;  %p5650_p11 = scmp.lt.u32.totalorder %s5643_s19, %s7585_s13 }
 0x187   : > { %p5646_p13 = pnand %p5644_p1, %p7580_p8 }
 0x189   : > { %p5647_p7 = pneg %p5646_p13 }
 0x18b   : > { %p5652_p12 = pnand %p5650_p11, %p5647_p7 }
 0x18d   : > { %5655 = shalt.err (!%p5652_p12)
}
 0x18e   : > { %s5656_s25 = scalar_lea.vmem %s6566_s23, 16  ;;  %s5663_s9 = scalar_lea.vmem %s6566_s23, 32 }
 0x18f   : > { %p5657_p2 = scmp.ne.s32.totalorder %s6566_s23, %s5656_s25  ;;  %p5664_p3 = scmp.lt.s32.totalorder %s6566_s23, %s6566_s23 }
 0x190   : > { %p5665_p0 = scmp.lt.s32.totalorder %s5663_s9, %s5656_s25 }
 0x191   : > { %p5659_p4 = pnand %p5657_p2, %p7580_p8 }
 0x192   : > { %p5666_p5 = por %p5665_p0, %p5664_p3 }
 0x193   : > { %p5660_p10 = pneg %p5659_p4 }
 0x195   : > { %p5667_p9 = pnand %p5666_p5, %p5660_p10 }
 0x197   : > { %5670 = shalt.err (!%p5667_p9)
}
 0x198   : > { %4982 = dma.hbm_to_vmem [thread:$0]  (!%p7581_p6), %s7585_s13, 16, %s6566_s23, [#allocation18]  }
 0x199   : > { %s6059_s26 = smov [#allocation22]   ;;  %s6060_s28 = smov [#allocation25]  }
 0x19a   : > { %s830_s19 = sshll.u32 %s6059_s26, 4  ;;  %s860_s4 = sshll.u32 %s6060_s28, 4  ;;  %s831_s19 = int_to_ptr.vmem [resolvable:$true] %s830_s19  ;;  %s6613_s4 = int_to_ptr.vmem [resolvable:$true] %s860_s4 }
 0x19b   : > { %s5671_s25 = scalar_lea.hbm %s7444_s14, 1024 }
 0x19c   : > { %p5672_p1 = scmp.ne.s32.totalorder %s7444_s14, %s5671_s25  ;;  %p5678_p11 = scmp.lt.u32.totalorder %s5671_s25, %s7444_s14 }
 0x19e   : > { %p5674_p13 = pnand %p5672_p1, %p7580_p8 }
 0x1a0   : > { %p5675_p7 = pneg %p5674_p13 }
 0x1a2   : > { %p5680_p12 = pnand %p5678_p11, %p5675_p7 }
 0x1a4   : > { %5683 = shalt.err (!%p5680_p12)
}
 0x1a5   : > { %s5684_s3 = scalar_lea.vmem %s831_s19, 1024  ;;  %p5692_p3 = scmp.lt.s32.totalorder %s831_s19, %s831_s19 }
 0x1a6   : > { %p5685_p2 = scmp.ne.s32.totalorder %s831_s19, %s5684_s3  ;;  %p5693_p0 = scmp.lt.s32.totalorder %s5684_s3, %s5684_s3 }
 0x1a8   : > { %p5687_p4 = pnand %p5685_p2, %p7580_p8  ;;  %p5694_p5 = por %p5693_p0, %p5692_p3 }
 0x1aa   : > { %p5688_p10 = pneg %p5687_p4 }
 0x1ac   : > { %p5695_p9 = pnand %p5694_p5, %p5688_p10 }
 0x1ae   : > { %5698 = shalt.err (!%p5695_p9)
}
 0x1af   : > { %4988 = dma.hbm_to_vmem [thread:$0]  (!%p7581_p6), %s7444_s14, 1024, %s831_s19, [#allocation21], %s7584_s5, %s7584_s5, %s7583_s15  }
 0x1b0   : > { %s5699_s8 = scalar_lea.hbm %s7448_s18, 1024 }
 0x1b1   : > { %p5700_p1 = scmp.ne.s32.totalorder %s7448_s18, %s5699_s8  ;;  %p5706_p11 = scmp.lt.u32.totalorder %s5699_s8, %s7448_s18 }
 0x1b3   : > { %p5702_p13 = pnand %p5700_p1, %p7580_p8 }
 0x1b5   : > { %p5703_p7 = pneg %p5702_p13 }
 0x1b7   : > { %p5708_p12 = pnand %p5706_p11, %p5703_p7 }
 0x1b9   : > { %5711 = shalt.err (!%p5708_p12)
}
 0x1ba   : > { %s5712_s19 = scalar_lea.vmem %s6613_s4, 1024  ;;  %p5720_p3 = scmp.lt.s32.totalorder %s6613_s4, %s6613_s4 }
 0x1bb   : > { %p5713_p2 = scmp.ne.s32.totalorder %s6613_s4, %s5712_s19  ;;  %p5721_p0 = scmp.lt.s32.totalorder %s5712_s19, %s5712_s19 }
 0x1bd   : > { %p5715_p4 = pnand %p5713_p2, %p7580_p8  ;;  %p5722_p5 = por %p5721_p0, %p5720_p3 }
 0x1bf   : > { %p5716_p10 = pneg %p5715_p4 }
 0x1c1   : > { %p5723_p9 = pnand %p5722_p5, %p5716_p10 }
 0x1c3   : > { %5726 = shalt.err (!%p5723_p9)
}
 0x1c4   : > { %4994 = dma.hbm_to_vmem [thread:$0]  (!%p7581_p6), %s7448_s18, 1024, %s6613_s4, [#allocation24], %s7584_s5, %s7584_s5, %s7583_s15  }
 0x1c5   : > { %s6061_s26 = smov [#allocation28]   ;;  %s6062_s22 = smov [#allocation31]  }
 0x1c6   : > { %s889_s28 = sshll.u32 %s6061_s26, 4  ;;  %s918_s8 = sshll.u32 %s6062_s22, 4  ;;  %s890_s28 = int_to_ptr.vmem [resolvable:$true] %s889_s28  ;;  %s6662_s8 = int_to_ptr.vmem [resolvable:$true] %s918_s8 }
 0x1c7   : > { %s5727_s10 = scalar_lea.hbm %s7451_s21, 1024 }
 0x1c8   : > { %p5728_p1 = scmp.ne.s32.totalorder %s7451_s21, %s5727_s10  ;;  %p5734_p11 = scmp.lt.u32.totalorder %s5727_s10, %s7451_s21 }
 0x1ca   : > { %p5730_p13 = pnand %p5728_p1, %p7580_p8 }
 0x1cc   : > { %p5731_p7 = pneg %p5730_p13 }
 0x1ce   : > { %p5736_p12 = pnand %p5734_p11, %p5731_p7 }
 0x1d0   : > { %5739 = shalt.err (!%p5736_p12)
}
 0x1d1   : > { %s5740_s6 = scalar_lea.vmem %s890_s28, 1024  ;;  %p5748_p3 = scmp.lt.s32.totalorder %s890_s28, %s890_s28 }
 0x1d2   : > { %p5741_p2 = scmp.ne.s32.totalorder %s890_s28, %s5740_s6  ;;  %p5749_p0 = scmp.lt.s32.totalorder %s5740_s6, %s5740_s6 }
 0x1d4   : > { %p5743_p4 = pnand %p5741_p2, %p7580_p8  ;;  %p5750_p5 = por %p5749_p0, %p5748_p3 }
 0x1d6   : > { %p5744_p10 = pneg %p5743_p4 }
 0x1d8   : > { %p5751_p9 = pnand %p5750_p5, %p5744_p10 }
 0x1da   : > { %5754 = shalt.err (!%p5751_p9)
}
 0x1db   : > { %5000 = dma.hbm_to_vmem [thread:$0]  (!%p7581_p6), %s7451_s21, 1024, %s890_s28, [#allocation27], %s7584_s5, %s7584_s5, %s7583_s15  }
 0x1dc   : > { %s5755_s10 = scalar_lea.hbm %s7454_s24, 1024 }
 0x1dd   : > { %p5756_p1 = scmp.ne.s32.totalorder %s7454_s24, %s5755_s10  ;;  %p5762_p11 = scmp.lt.u32.totalorder %s5755_s10, %s7454_s24 }
 0x1df   : > { %p5758_p13 = pnand %p5756_p1, %p7580_p8 }
 0x1e1   : > { %p5759_p7 = pneg %p5758_p13 }
 0x1e3   : > { %p5764_p12 = pnand %p5762_p11, %p5759_p7 }
 0x1e5   : > { %5767 = shalt.err (!%p5764_p12)
}
 0x1e6   : > { %s5768_s28 = scalar_lea.vmem %s6662_s8, 1024  ;;  %p5776_p3 = scmp.lt.s32.totalorder %s6662_s8, %s6662_s8 }
 0x1e7   : > { %p5769_p2 = scmp.ne.s32.totalorder %s6662_s8, %s5768_s28  ;;  %p5777_p0 = scmp.lt.s32.totalorder %s5768_s28, %s5768_s28 }
 0x1e9   : > { %p5771_p4 = pnand %p5769_p2, %p7580_p8  ;;  %p5778_p5 = por %p5777_p0, %p5776_p3 }
 0x1eb   : > { %p5772_p10 = pneg %p5771_p4 }
 0x1ed   : > { %p5779_p9 = pnand %p5778_p5, %p5772_p10 }
 0x1ef   : > { %5782 = shalt.err (!%p5779_p9)
}
 0x1f0   : > { %5006 = dma.hbm_to_vmem [thread:$0]  (!%p7581_p6), %s7454_s24, 1024, %s6662_s8, [#allocation30], %s7584_s5, %s7584_s5, %s7583_s15  }
 0x1f1   : > { %s4246_s11 = sshll.u32 %s6474_s17, 5  ;;  %s4456_s22 = sshll.u32 %s6039_s30, 9 }
 0x1f2   : > { %s7586_s10 = sld [smem:[#allocation60_spill]]  ;;  %s939_s2 = scalar_lea.vmem [#allocation2], %s4246_s11 }
 0x1f3   : > { %s947_s19 = sshll.u32 %s939_s2, 4  ;;  %s4256_s3 = sshll.u32 %s6474_s17, 2  ;;  %s6718_s19 = int_to_ptr.vmem [resolvable:$true] %s947_s19 }
 0x1f4   : > { %s936_s4 = scalar_lea.sflag [#allocation3], %s6474_s17  ;;  %p7587_p6 = scmp.ne.s32.totalorder %s7573_s27, 0 }
 0x1f8   : > { %s6716_s23 = scalar_lea.hbm %s7586_s10, %s4456_s22  ;;  %s5788_s8 = scalar_lea.hbm %s7586_s10, 1024 }
 0x1f9   : > { %s5783_s28 = scalar_lea.hbm %s6716_s23, 512  ;;  %p5789_p7 = scmp.lt.u32.totalorder %s6716_s23, %s7586_s10 }
 0x1fa   : > { %p5784_p8 = scmp.ne.s32.totalorder %s6716_s23, %s5783_s28  ;;  %p5790_p11 = scmp.lt.u32.totalorder %s5788_s8, %s5783_s28 }
 0x1fb   : > { %p5792_p2 = scmp.lt.u32.totalorder %s5783_s28, %s6716_s23 }
 0x1fc   : > { %p5786_p1 = pnand %p5784_p8, %p7587_p6  ;;  %p5791_p12 = por %p5790_p11, %p5789_p7 }
 0x1fe   : > { %p5787_p13 = pneg %p5786_p1  ;;  %p5793_p4 = por %p5792_p2, %p5791_p12 }
 0x200   : > { %p5794_p10 = pnand %p5793_p4, %p5787_p13 }
 0x202   : > { %5797 = shalt.err (!%p5794_p10)
}
 0x203   : > { %s5798_s11 = scalar_lea.vmem %s6718_s19, 512  ;;  %s6063_s22 = smov [#allocation2]  }
 0x204   : > { %p5799_p3 = scmp.ne.s32.totalorder %s6718_s19, %s5798_s11  ;;  %s5803_s25 = sshll.u32 %s6063_s22, 4  ;;  %s5804_s25 = int_to_ptr.vmem [resolvable:$false] %s5803_s25 }
 0x205   : > { %s5805_s9 = scalar_lea.vmem %s5804_s25, 1024  ;;  %p5806_p9 = scmp.lt.s32.totalorder %s6718_s19, %s5804_s25 }
 0x206   : > { %p5801_p0 = pnand %p5799_p3, %p7587_p6  ;;  %p5807_p8 = scmp.lt.s32.totalorder %s5805_s9, %s5798_s11 }
 0x208   : > { %p5802_p5 = pneg %p5801_p0  ;;  %p5808_p1 = por %p5807_p8, %p5806_p9 }
 0x20a   : > { %p5809_p7 = pnand %p5808_p1, %p5802_p5 }
 0x20c   : > { %5812 = shalt.err (!%p5809_p7)
}
 0x20d   : > { %p7588_p13 = scmp.ne.s32.totalorder %s7570_s1, 0  ;;  %s5813_s2 = scalar_lea.hbm %s6542_s29, 256 }
 0x20e   : > { %p5814_p11 = scmp.ne.s32.totalorder %s6542_s29, %s5813_s2  ;;  %s5818_s5 = scalar_lea.hbm %s7577_s0, 512 }
 0x20f   : > { %5010 = dma.hbm_to_vmem [thread:$0]  (!%p7588_p13), %s6716_s23, 512, %s6718_s19, %s936_s4, %s7575_s7, %s7575_s7, %s7574_s20  }
 0x210   : > { %p5816_p12 = pnand %p5814_p11, %p7587_p6  ;;  %p5819_p4 = scmp.lt.u32.totalorder %s6542_s29, %s7577_s0 }
 0x211   : > { %p5820_p10 = scmp.lt.u32.totalorder %s5818_s5, %s5813_s2  ;;  %p5822_p0 = scmp.lt.u32.totalorder %s5813_s2, %s6542_s29 }
 0x212   : > { %p5817_p2 = pneg %p5816_p12 }
 0x213   : > { %p5821_p3 = por %p5820_p10, %p5819_p4 }
 0x215   : > { %p5823_p5 = por %p5822_p0, %p5821_p3 }
 0x217   : > { %p5824_p9 = pnand %p5823_p5, %p5817_p2 }
 0x219   : > { %5827 = shalt.err (!%p5824_p9)
}
 0x21a   : > { %s5828_s23 = scalar_lea.vmem %s6546_s16, 256  ;;  %s6064_s19 = smov [#allocation7]  }
 0x21b   : > { %p5829_p8 = scmp.ne.s32.totalorder %s6546_s16, %s5828_s23  ;;  %s5833_s4 = sshll.u32 %s6064_s19, 4  ;;  %s5834_s4 = int_to_ptr.vmem [resolvable:$false] %s5833_s4 }
 0x21c   : > { %s5835_s26 = scalar_lea.vmem %s5834_s4, 512  ;;  %p5836_p11 = scmp.lt.s32.totalorder %s6546_s16, %s5834_s4 }
 0x21d   : > { %p5831_p1 = pnand %p5829_p8, %p7587_p6  ;;  %p5837_p12 = scmp.lt.s32.totalorder %s5835_s26, %s5828_s23 }
 0x21f   : > { %p5832_p7 = pneg %p5831_p1  ;;  %p5838_p4 = por %p5837_p12, %p5836_p11 }
 0x221   : > { %p5839_p10 = pnand %p5838_p4, %p5832_p7 }
 0x223   : > { %5842 = shalt.err (!%p5839_p10)
}
 0x224   : > { %s7589_s11 = sld [smem:[#allocation59_spill]]  ;;  %s4459_s22 = sshll.u32 %s6039_s30, 6 }
 0x225   : > { %s7590_s2 = sld [smem:[#allocation64_spill]]  ;;  %s1013_s15 = scalar_lea.vmem [#allocation8], %s4256_s3 }
 0x226   : > { %s1020_s5 = sshll.u32 %s1013_s15, 4  ;;  %s7591_s8 = sand.u32 1, %s6039_s30   ;;  %s6781_s5 = int_to_ptr.vmem [resolvable:$true] %s1020_s5 }
 0x227   : > { %s6785_s6 = scalar_lea.sflag [#allocation9], %s7591_s8 }
 0x22a   : > { %5016 = dma.hbm_to_vmem [thread:$0]  (!%p7588_p13), %s6542_s29, 256, %s6546_s16, %s7589_s11, %s7575_s7, %s7575_s7, %s7574_s20  }
 0x22b   : > { %s6777_s28 = scalar_lea.hbm %s7590_s2, %s4459_s22  ;;  %s5848_s17 = scalar_lea.hbm %s7590_s2, 128 }
 0x22c   : > { %s5843_s23 = scalar_lea.hbm %s6777_s28, 64  ;;  %p5849_p5 = scmp.lt.u32.totalorder %s6777_s28, %s7590_s2 }
 0x22d   : > { %p5844_p2 = scmp.ne.s32.totalorder %s6777_s28, %s5843_s23  ;;  %p5850_p9 = scmp.lt.u32.totalorder %s5848_s17, %s5843_s23 }
 0x22e   : > { %p5852_p1 = scmp.lt.u32.totalorder %s5843_s23, %s6777_s28 }
 0x22f   : > { %p5846_p3 = pnand %p5844_p2, %p7587_p6  ;;  %p5851_p8 = por %p5850_p9, %p5849_p5 }
 0x231   : > { %p5847_p0 = pneg %p5846_p3  ;;  %p5853_p7 = por %p5852_p1, %p5851_p8 }
 0x233   : > { %p5854_p11 = pnand %p5853_p7, %p5847_p0 }
 0x235   : > { %5857 = shalt.err (!%p5854_p11)
}
 0x236   : > { %s5858_s3 = scalar_lea.vmem %s6781_s5, 64  ;;  %s6065_s19 = smov [#allocation8]  }
 0x237   : > { %p5859_p12 = scmp.ne.s32.totalorder %s6781_s5, %s5858_s3  ;;  %s5863_s4 = sshll.u32 %s6065_s19, 4  ;;  %s5864_s4 = int_to_ptr.vmem [resolvable:$false] %s5863_s4 }
 0x238   : > { %s5865_s26 = scalar_lea.vmem %s5864_s4, 128  ;;  %p5866_p2 = scmp.lt.s32.totalorder %s6781_s5, %s5864_s4 }
 0x239   : > { %p5861_p4 = pnand %p5859_p12, %p7587_p6  ;;  %p5867_p3 = scmp.lt.s32.totalorder %s5865_s26, %s5858_s3 }
 0x23b   : > { %p5862_p10 = pneg %p5861_p4  ;;  %p5868_p5 = por %p5867_p3, %p5866_p2 }
 0x23d   : > { %p5869_p9 = pnand %p5868_p5, %p5862_p10 }
 0x23f   : > { %5872 = shalt.err (!%p5869_p9)
}
 0x240   : > { %s6066_s11 = smov 32   ;;  %s6067_s22 = smov 2  }
 0x241   : > { %5019 = dma.hbm_to_vmem [thread:$0]  (!%p7588_p13), %s6777_s28, 64, %s6781_s5, %s6785_s6, %s6066_s11, %s6066_s11, %s6067_s22  }
 0x242   : > { %s7592_s27 = sld [smem:[#allocation53_spill]] }
 0x248   : > { %p7593_p6 = scmp.ne.s32.totalorder %s7592_s27, 0 }
 0x249   : > { %s7594_s25 = sld [smem:[#allocation50_spill]] (!%p7593_p6)  ;;  %s7595_s9 = sld [smem:[#allocation56_spill]] (!%p7593_p6) }
 0x24a   : > { %1040 = sbr.rel (%p7593_p6) target bundleno = 4223 (0x107f), region = 124 }
 0x24f   : > { %s6812_s15 = sand.u32 (!%p7593_p6), 1, %s7594_s25   ;;  %p7596_p0 = scmp.ne.s32.totalorder (!%p7593_p6), %s7595_s9, 0 }
 0x250   : > { %s7518_s8 = sshll.u32 (!%p7593_p6), %s6812_s15, 5  ;;  %s1043_s23 = scalar_lea.sflag (!%p7593_p6), [#allocation3], %s6812_s15 }
 0x251   : > { %s6818_s16 = scalar_lea.vmem [#allocation2], %s7518_s8 }
 0x252   : > { %5974 = dma.done.wait (%p7596_p0), %s1043_s23, 512  }
 0x253   : > { %5976 = vsyncadd (%p7596_p0), %s1043_s23, 4294966784  ;;  %s7597_s1 = sld [smem:[#allocation52_spill]]  ;;  %s6828_s5 = sshll.u32 %s6812_s15, 4 }
 0x254   : > { %s1055_s20 = scalar_lea.vmem [#allocation5], %s6828_s5 }
 0x259   : > { %s6825_s28 = sand.u32 1, %s7597_s1  }
 0x25a   : > { %s1052_s6 = scalar_lea.sflag [#allocation6], %s6825_s28 }
 0x25b   : > { %5978 = dma.done.wait (%p7596_p0), %s1052_s6, 512  }
 0x25c   : > { %5980 = vsyncadd (%p7596_p0), %s1052_s6, 4294966784  ;;  %s4263_s17 = sshll.u32 %s6812_s15, 2  ;;  %s1064_s7 = scalar_lea.vmem [#allocation7], %s6828_s5 }
 0x25d   : > { %s1070_s29 = scalar_lea.sflag [#allocation9], %s6825_s28  ;;  %s6839_s3 = scalar_lea.vmem [#allocation8], %s4263_s17 }
 0x25e   : > { %5982 = dma.done.wait (%p7596_p0), %s1070_s29, 64  }
 0x25f   : > { %5984 = vsyncadd (%p7596_p0), %s1070_s29, 4294967232  ;;  %p7598_p13 = scmp.eq.s32.totalorder %s7597_s1, 0 }
 0x261   : > { %5986 = dma.done.wait (%p7598_p13), [#allocation9], 2048   ;;  %p7599_p8 = pmov %p7598_p13 }
 0x263   : > { %5988 = vsyncadd (%p7599_p8), [#allocation9], 4294965248  ;;  %p7600_p1 = pmov %p7599_p8 }
 0x265   : > { %5990 = dma.done.wait (%p7600_p1), [#allocation12], 3104   ;;  %p7601_p7 = pmov %p7600_p1 }
 0x266   : > { %p7602_p11 = pmov %p7600_p1 }
 0x267   : > { %5992 = vsyncadd (%p7601_p7), [#allocation12], 4294964192 }
 0x268   : > { %5994 = dma.done.wait (%p7602_p11), [#allocation15], 1072   ;;  %p7603_p12 = pmov %p7600_p1 }
 0x269   : > { %p7604_p4 = pmov %p7600_p1 }
 0x26a   : > { %5996 = vsyncadd (%p7603_p12), [#allocation15], 4294966224 }
 0x26b   : > { %5998 = dma.done.wait (%p7604_p4), [#allocation18], 1040   ;;  %p7605_p10 = pmov %p7600_p1 }
 0x26c   : > { %p7606_p2 = pmov %p7600_p1 }
 0x26d   : > { %6000 = vsyncadd (%p7605_p10), [#allocation18], 4294966256 }
 0x26e   : > { %6002 = dma.done.wait (%p7606_p2), [#allocation21], 2048   ;;  %p7607_p3 = pmov %p7600_p1 }
 0x26f   : > { %p7608_p5 = pmov %p7600_p1 }
 0x270   : > { %6004 = vsyncadd (%p7607_p3), [#allocation21], 4294965248 }
 0x271   : > { %6006 = dma.done.wait (%p7608_p5), [#allocation24], 1040   ;;  %p7609_p9 = pmov %p7600_p1 }
 0x272   : > { %p7610_p6 = pmov %p7600_p1 }
 0x273   : > { %6008 = vsyncadd (%p7609_p9), [#allocation24], 4294966256 }
 0x274   : > { %6010 = dma.done.wait (%p7610_p6), [#allocation27], 2048   ;;  %p7611_p0 = pmov %p7600_p1 }
 0x276   : > { %6012 = vsyncadd (%p7611_p0), [#allocation27], 4294965248  ;;  %p7612_p13 = pmov %p7611_p0 }
 0x277   : > { %p7613_p8 = pmov %p7611_p0 }
 0x278   : > { %6014 = dma.done.wait (%p7612_p13), [#allocation30], 2048  }
 0x279   : > { %6016 = vsyncadd (%p7613_p8), [#allocation30], 4294965248  ;;  %v6068_v0 = vmov 0   ;;  %v5129_v1 = vld [vmem:[#allocation10 + $0x4] ss:$8 sps:$4 sm:$0xff]   ;;  %v1261_v17 = vld [vmem:[%s6818_s16] sm:$0xff]  ;;  %v1293_v43 = vlaneseq }
 0x27a   : > { %1415 = vmatprep.mubr.bf16.mxu1 %v6068_v0  ;;  %5124 = vset.pattern.permute.xlu1 %v6068_v0  ;;  %v5131_v2 = vld [vmem:[#allocation10] ss:$8 sps:$4 sm:$0xff]   ;;  %v5132_v3 = vld [vmem:[#allocation10 + $0x14] ss:$8 sps:$4 sm:$0xff]   ;;  %v5134_v4 = vld [vmem:[#allocation10 + $0x10] ss:$8 sps:$4 sm:$0xff]  }
 0x27b   : > { %5123 = vset.pattern.permute.xlu0 %v6068_v0  ;;  %1383 = vmatprep.subr.bf16.mxu1 %v5129_v1  ;;  %v5135_v5 = vld [vmem:[#allocation10 + $0x24] ss:$8 sps:$4 sm:$0xff]   ;;  %v5137_v6 = vld [vmem:[#allocation10 + $0x20] ss:$8 sps:$4 sm:$0xff]   ;;  %v5138_v7 = vld [vmem:[#allocation10 + $0x34] ss:$8 sps:$4 sm:$0xff]  }
 0x27c   : > { %1384 = vmatpush1.bf16.msra.mxu1 %v5131_v2  ;;  %v5140_v8 = vld [vmem:[#allocation10 + $0x30] ss:$8 sps:$4 sm:$0xff]   ;;  %v5141_v9 = vld [vmem:[#allocation10 + $0x44] ss:$8 sps:$4 sm:$0xff]   ;;  %v5143_v10 = vld [vmem:[#allocation10 + $0x40] ss:$8 sps:$4 sm:$0xff]  }
 0x27d   : > { %1385 = vmatprep.subr.bf16.mxu1 %v5132_v3  ;;  %v5144_v11 = vld [vmem:[#allocation10 + $0x54] ss:$8 sps:$4 sm:$0xff]   ;;  %v5146_v12 = vld [vmem:[#allocation10 + $0x50] ss:$8 sps:$4 sm:$0xff]   ;;  %v5147_v13 = vld [vmem:[#allocation10 + $0x64] ss:$8 sps:$4 sm:$0xff]  }
 0x27e   : > { %v5149_v14 = vld [vmem:[#allocation10 + $0x60] ss:$8 sps:$4 sm:$0xff]   ;;  %v5150_v15 = vld [vmem:[#allocation10 + $0x74] ss:$8 sps:$4 sm:$0xff]   ;;  %v5152_v16 = vld [vmem:[#allocation10 + $0x70] ss:$8 sps:$4 sm:$0xff]  }
 0x27f   : > { %v1262_v18 = vld [vmem:[%s6818_s16 + $0x8] sm:$0xff]  ;;  %v1263_v24 = vld [vmem:[%s6818_s16 + $0x10] sm:$0xff]  ;;  %v1264_v25 = vld [vmem:[%s6818_s16 + $0x18] sm:$0xff]  ;;  %v6069_v42 = vmov 0.0   ;;  %vm6070_vm0 = vmmov 0   ;;  %v6905_v44 = vshrl.u32 %v1293_v43, 7 }
 0x280   : > { %1386 = vmatpush1.bf16.msra.mxu1 %v5134_v4  ;;  %v5155_v19 = vld [vmem:[#allocation13 + $0x4] ss:$12 sps:$4 sm:$0xff]   ;;  %v5153_v20 = vld [vmem:[#allocation13] ss:$12 sps:$4 sm:$0xff]   ;;  %v1269_v21 = vpack.c.bf16 %v1262_v18, %v1261_v17  ;;  %v5158_v22 = vld [vmem:[#allocation13 + $0x1c] ss:$12 sps:$4 sm:$0xff]   ;;  %v1270_v29 = vpack.c.bf16 %v1264_v25, %v1263_v24  ;;  %4599 = vmatprep.subr.bf16.mxu0 %v6069_v42 }
 0x281   : > { %1387 = vmatprep.subr.bf16.mxu1 %v5135_v5  ;;  %v5156_v23 = vld [vmem:[#allocation13 + $0x18] ss:$12 sps:$4 sm:$0xff]   ;;  %v5161_v26 = vld [vmem:[#allocation13 + $0x34] ss:$12 sps:$4 sm:$0xff]   ;;  %v5159_v27 = vld [vmem:[#allocation13 + $0x30] ss:$12 sps:$4 sm:$0xff]   ;;  %4615 = vmatprep.mubr.msk.bf16.mxu0 %vm6070_vm0, %v6069_v42 }
 0x282   : > { %v5164_v28 = vld [vmem:[#allocation13 + $0x4c] ss:$12 sps:$4 sm:$0xff]   ;;  %v5162_v30 = vld [vmem:[#allocation13 + $0x48] ss:$12 sps:$4 sm:$0xff]   ;;  %v5167_v31 = vld [vmem:[#allocation13 + $0x64] ss:$12 sps:$4 sm:$0xff]  }
 0x283   : > { %v5165_v32 = vld [vmem:[#allocation13 + $0x60] ss:$12 sps:$4 sm:$0xff]   ;;  %v5170_v33 = vld [vmem:[#allocation13 + $0x7c] ss:$12 sps:$4 sm:$0xff]   ;;  %v5168_v34 = vld [vmem:[#allocation13 + $0x78] ss:$12 sps:$4 sm:$0xff]  }
 0x284   : > { %1388 = vmatpush1.bf16.msra.mxu1 %v5137_v6  ;;  %v5173_v35 = vld [vmem:[#allocation13 + $0x94] ss:$12 sps:$4 sm:$0xff]   ;;  %v5171_v36 = vld [vmem:[#allocation13 + $0x90] ss:$12 sps:$4 sm:$0xff]   ;;  %v5176_v37 = vld [vmem:[#allocation13 + $0xac] ss:$12 sps:$4 sm:$0xff]  }
 0x285   : > { %1389 = vmatprep.subr.bf16.mxu1 %v5138_v7  ;;  %v5174_v38 = vld [vmem:[#allocation13 + $0xa8] ss:$12 sps:$4 sm:$0xff]   ;;  %v6908_v45 = vsub.s32 0, %v6905_v44  ;;  %v1291_v46 = vld [vmem:[#allocation11] sm:$0x3]  ;;  %v6911_v47 = vsub.s32 1, %v6905_v44 }
 0x286   : > { %v6888_v39 = vld [vmem:[%s1055_s20] sm:$0xff]  ;;  %v6892_v40 = vld [vmem:[%s1055_s20 + $0x8] sm:$0xff]  ;;  %vm1805_vm1 = vcmask 130048   ;;  %s4282_s19 = sshll.u32 %s7597_s1, 1  ;;  %s7614_s11 = sld [smem:[#allocation65_spill]]  ;;  %vm2244_vm2 = vcmask 64512  }
 0x287   : > { %v6896_v41 = vpack.c.bf16 %v6892_v40, %v6888_v39  ;;  %v1296_v48 = vrot.slane %v1291_v46, %v6908_v45  ;;  %v1300_v49 = vrot.slane %v1291_v46, %v6911_v47  ;;  %p1245_p1 = scmp.lt.s32.totalorder %s4282_s19, 3  ;;  %vm2277_vm3 = vcmask 1043456   ;;  %s7615_s9 = sld [smem:[#allocation75_spill]] }
 0x288   : > { %1390 = vmatpush1.bf16.msra.mxu1 %v5140_v8  ;;  %s7137_s27 = scalar_lea.vmem [#allocation33], %s6828_s5  ;;  %s7617_s6 = sld [smem:[#allocation76_spill]] }
 0x289   : > { %1391 = vmatprep.subr.bf16.mxu1 %v5141_v9  ;;  %s7638_s19 = smov (!%p1245_p1, %s4282_s19), 3  ;;  %s7618_s17 = sld [smem:[#allocation77_spill]] }
 0x28a   : > { %s4460_s29 = sshll.u32 %s7638_s19, 4  ;;  %s7620_s25 = sld [smem:[#allocation79_spill]] }
 0x28b   : > { %s4477_s20 = sshll.u32 %s7597_s1, 8  ;;  %s7622_s4 = sld [smem:[#allocation83_spill]] }
 0x28c   : > { %1392 = vmatpush1.bf16.msra.mxu1 %v5143_v10  ;;  %s1255_s22 = scalar_lea.vmem %s7614_s11, %s7638_s19  ;;  %s7619_s11 = sld [smem:[#allocation63_spill]] }
 0x28d   : > { %1393 = vmatprep.subr.bf16.mxu1 %v5144_v11  ;;  %s7616_s23 = smov %s7615_s9 }
 0x290   : > { %1394 = vmatpush1.bf16.msra.mxu1 %v5146_v12 }
 0x291   : > { %1395 = vmatprep.subr.bf16.mxu1 %v5147_v13  ;;  %s7300_s26 = scalar_lea.hbm %s7622_s4, %s4477_s20 }
 0x294   : > { %1396 = vmatpush1.bf16.msra.mxu1 %v5149_v14 }
 0x295   : > { %1397 = vmatprep.subr.bf16.mxu1 %v5150_v15  ;;  %v6922_v15 = vld [vmem:[#allocation14] sm:$0x7] }
 0x296   : > { %v6928_v17 = vrot.slane %v6922_v15, %v6911_v47 }
 0x298   : > { %1398 = vmatpush1.bf16.msra.mxu1 %v5152_v16  ;;  %v1481_v16 = vrot.slane %v6922_v15, %v6908_v45 }
 0x299   : > { %1621 = vmatprep.subr.bf16.mxu1 %v5155_v19 }
 0x29b   : > { %1416 = vmatmul.mubr.bf16.vlgmr.msra.gmra.mrb[0].mxu1 %v1269_v21 }
 0x29c   : > { %1622 = vmatpush1.bf16.msra.mxu1 %v5153_v20  ;;  %1425 = vmatprep.mubr.bf16.mxu1 %v6068_v0 }
 0x29d   : > { %1623 = vmatprep.subr.bf16.mxu1 %v5158_v22 }
 0x2a0   : > { %1624 = vmatpush1.bf16.msra.mxu1 %v5156_v23 }
 0x2a1   : > { %1625 = vmatprep.subr.bf16.mxu1 %v5161_v26 }
 0x2a3   : > { %1426 = vmatmul.mubr.bf16.gmra.mrb[4].mxu1 %v1270_v29 }
 0x2a4   : > { %1626 = vmatpush1.bf16.msra.mxu1 %v5159_v27  ;;  %1653 = vmatprep.mubr.bf16.mxu1 %v6068_v0 }
 0x2a5   : > { %1627 = vmatprep.subr.bf16.mxu1 %v5164_v28 }
 0x2a8   : > { %1628 = vmatpush1.bf16.msra.mxu1 %v5162_v30  ;;  %v5177_v30 = vld [vmem:[#allocation13 + $0x8] ss:$12 sps:$4 sm:$0xff]  }
 0x2a9   : > { %1629 = vmatprep.subr.bf16.mxu1 %v5167_v31  ;;  %4600 = vmatpush3.bf16.msra.mxu0 %v5177_v30  ;;  %v5178_v31 = vld [vmem:[#allocation13 + $0x20] ss:$12 sps:$4 sm:$0xff]  }
 0x2aa   : > { %4601 = vmatprep.subr.bf16.mxu0 %v6069_v42 }
 0x2ac   : > { %1630 = vmatpush1.bf16.msra.mxu1 %v5165_v32  ;;  %v5179_v32 = vld [vmem:[#allocation13 + $0x38] ss:$12 sps:$4 sm:$0xff]  }
 0x2ad   : > { %1631 = vmatprep.subr.bf16.mxu1 %v5170_v33  ;;  %4602 = vmatpush3.bf16.msra.mxu0 %v5178_v31  ;;  %v5180_v33 = vld [vmem:[#allocation13 + $0x50] ss:$12 sps:$4 sm:$0xff]   ;;  %v5185_v31 = vld [vmem:[#allocation16] sm:$0xff]  }
 0x2ae   : > { %4603 = vmatprep.subr.bf16.mxu0 %v6069_v42 }
 0x2b0   : > { %1632 = vmatpush1.bf16.msra.mxu1 %v5168_v34  ;;  %v5181_v34 = vld [vmem:[#allocation13 + $0x68] ss:$12 sps:$4 sm:$0xff]  }
 0x2b1   : > { %1633 = vmatprep.subr.bf16.mxu1 %v5173_v35  ;;  %4604 = vmatpush3.bf16.msra.mxu0 %v5179_v32  ;;  %v5182_v35 = vld [vmem:[#allocation13 + $0x80] ss:$12 sps:$4 sm:$0xff]  }
 0x2b2   : > { %4605 = vmatprep.subr.bf16.mxu0 %v6069_v42 }
 0x2b4   : > { %1634 = vmatpush1.bf16.msra.mxu1 %v5171_v36  ;;  %v5183_v36 = vld [vmem:[#allocation13 + $0x98] ss:$12 sps:$4 sm:$0xff]  }
 0x2b5   : > { %1635 = vmatprep.subr.bf16.mxu1 %v5176_v37  ;;  %4606 = vmatpush3.bf16.msra.mxu0 %v5180_v33  ;;  %v5184_v37 = vld [vmem:[#allocation13 + $0xb0] ss:$12 sps:$4 sm:$0xff]  }
 0x2b6   : > { %4607 = vmatprep.subr.bf16.mxu0 %v6069_v42  ;;  %v5186_v33 = vld [vmem:[#allocation16 + $0x8] sm:$0xff]  }
 0x2b8   : > { %1636 = vmatpush1.bf16.msra.mxu1 %v5174_v38 }
 0x2b9   : > { %4619 = vmatprep.subr.bf16.mxu1 %v6069_v42  ;;  %4608 = vmatpush3.bf16.msra.mxu0 %v5181_v34  ;;  %v5188_v34 = vld [vmem:[#allocation16 + $0x18] sm:$0xff]  }
 0x2ba   : > { %4609 = vmatprep.subr.bf16.mxu0 %v6069_v42 }
 0x2bb   : > { %1654 = vmatmul.mubr.bf16.vlgmr.msra.gmra.mrb[8].mxu1 %v6896_v41 }
 0x2bc   : > { %4621 = vmatprep.mubr.msk.bf16.mxu1 %vm6070_vm0, %v6069_v42 }
 0x2bd   : > { %4610 = vmatpush3.bf16.msra.mxu0 %v5182_v35  ;;  %v5189_v35 = vld [vmem:[#allocation16 + $0x20] sm:$0xff]  }
 0x2be   : > { %4611 = vmatprep.subr.bf16.mxu0 %v6069_v42 }
 0x2c1   : > { %4612 = vmatpush3.bf16.msra.mxu0 %v5183_v36  ;;  %v5190_v36 = vld [vmem:[#allocation16 + $0x28] sm:$0xff]  }
 0x2c2   : > { %4613 = vmatprep.subr.bf16.mxu0 %v6069_v42 }
 0x2c5   : > { %4614 = vmatpush3.bf16.msra.mxu0 %v5184_v37  ;;  %v5191_v37 = vld [vmem:[#allocation16 + $0x30] sm:$0xff]  }
 0x2c6   : > { %4643 = vmatprep.subr.bf16.mxu0 %v6069_v42 }
 0x2c8   : > { %4616 = vmatmul.mubr.bf16.vlgmr.msra.gmra.mrb[0].mxu0 %v6896_v41 }
 0x2c9   : > { %4659 = vmatprep.mubr.msk.bf16.mxu0 %vm6070_vm0, %v6069_v42 }
 0x36e   : > { %v1417_v50 = vpop.f32.mrb[0].mxu1 }
 0x36f   : > { %v1418_v51 = vadd.f32 %v1417_v50, %v1296_v48  ;;  %v1419_v52 = vpop.f32.mrb[1].mxu1 }
 0x370   : > { %v1420_v53 = vadd.f32 %v1419_v52, %v1300_v49  ;;  %v1421_v54 = vpop.f32.mrb[2].mxu1 }
 0x371   : > { %v1436_v55 = vmax.f32 %v1418_v51, 0.0  ;;  %v1422_v56 = vadd.f32 %v1421_v54, %v1296_v48  ;;  %v1423_v57 = vpop.f32.mrb[3].mxu1 }
 0x372   : > { %v1424_v58 = vadd.f32 %v1423_v57, %v1300_v49  ;;  %v1437_v60 = vmax.f32 %v1420_v53, 0.0 }
 0x373   : > { %v1438_v59 = vmax.f32 %v1422_v56, 0.0 }
 0x374   : > { %v1439_v61 = vmax.f32 %v1424_v58, 0.0 }
 0x375   : > { %v1711_v62 = vpack.c.bf16 %v1438_v59, %v1436_v55 }
 0x376   : > { %v6915_v63 = vpack.c.bf16 %v1439_v61, %v1437_v60  ;;  %v1427_v1 = vpop.f32.mrb[4].mxu1 }
 0x377   : > { %4620 = vmatpush3.bf16.xpose.msra.mxu1 %v1711_v62  ;;  %v1428_v2 = vadd.f32 %v1427_v1, %v1296_v48  ;;  %v1429_v3 = vpop.f32.mrb[5].mxu1 }
 0x378   : > { %v1430_v4 = vadd.f32 %v1429_v3, %v1300_v49  ;;  %v1431_v5 = vpop.f32.mrb[6].mxu1  ;;  %4625 = vmatprep.subr.bf16.mxu1 %v6069_v42  ;;  %v1488_v3 = vsub.s32 2, %v6905_v44  ;;  %v5196_v44 = vld [vmem:[#allocation17 + $0x18] sm:$0xff]  }
 0x379   : > { %v1440_v6 = vmax.f32 %v1428_v2, 0.0  ;;  %v1432_v7 = vadd.f32 %v1431_v5, %v1296_v48  ;;  %v1433_v8 = vpop.f32.mrb[7].mxu1 }
 0x37a   : > { %v1441_v9 = vmax.f32 %v1430_v4, 0.0  ;;  %v1434_v10 = vadd.f32 %v1433_v8, %v1300_v49 }
 0x37b   : > { %v1442_v11 = vmax.f32 %v1432_v7, 0.0 }
 0x37c   : > { %v1443_v12 = vmax.f32 %v1434_v10, 0.0  ;;  %v5193_v10 = vld [vmem:[#allocation17] sm:$0xff]  }
 0x37d   : > { %v6918_v13 = vpack.c.bf16 %v1442_v11, %v1440_v6  ;;  %v6969_v6 = vrot.slane %v6922_v15, %v1488_v3  ;;  %4644 = vmatpush3.bf16.msra.mxu0 %v5193_v10  ;;  %v5194_v11 = vld [vmem:[#allocation17 + $0x8] sm:$0xff]   ;;  %v5197_v15 = vld [vmem:[#allocation17 + $0x20] sm:$0xff]  }
 0x37e   : > { %v6920_v14 = vpack.c.bf16 %v1443_v12, %v1441_v9  ;;  %4645 = vmatprep.subr.bf16.mxu0 %v6069_v42  ;;  %v5195_v12 = vld [vmem:[#allocation17 + $0x10] sm:$0xff]  }
 0x381   : > { %4646 = vmatpush3.bf16.msra.mxu0 %v5194_v11 }
 0x382   : > { %4647 = vmatprep.subr.bf16.mxu0 %v6069_v42 }
 0x385   : > { %4648 = vmatpush3.bf16.msra.mxu0 %v5195_v12 }
 0x386   : > { %4649 = vmatprep.subr.bf16.mxu0 %v6069_v42 }
 0x389   : > { %4650 = vmatpush3.bf16.msra.mxu0 %v5196_v44 }
 0x38a   : > { %4651 = vmatprep.subr.bf16.mxu0 %v6069_v42 }
 0x38d   : > { %4652 = vmatpush3.bf16.msra.mxu0 %v5197_v15 }
 0x38e   : > { %v1655_v18 = vpop.f32.mrb[8].mxu1  ;;  %4653 = vmatprep.subr.bf16.mxu0 %v6069_v42 }
 0x38f   : > { %v1656_v19 = vadd.f32 %v1655_v18, %v1481_v16  ;;  %v1657_v20 = vpop.f32.mrb[9].mxu1  ;;  %v5199_v18 = vld [vmem:[#allocation17 + $0x30] sm:$0xff]  }
 0x390   : > { %v6931_v21 = vadd.f32 %v1657_v20, %v6928_v17  ;;  %v1659_v22 = vpop.f32.mrb[10].mxu1 }
 0x391   : > { %v6933_v23 = vmax.f32 %v1656_v19, 0.0  ;;  %v1660_v24 = vadd.f32 %v1659_v22, %v1481_v16  ;;  %v6935_v25 = vpop.f32.mrb[11].mxu1  ;;  %v5198_v16 = vld [vmem:[#allocation17 + $0x28] sm:$0xff]  }
 0x392   : > { %4654 = vmatpush3.bf16.msra.mxu0 %v5198_v16 }
 0x393   : > { %v4461_v26 = vpack.c.bf16 %v6933_v23, %v6933_v23  ;;  %v6939_v27 = vmax.f32 %v1660_v24, 0.0  ;;  %4655 = vmatprep.subr.bf16.mxu0 %v6069_v42 }
 0x395   : > { %v1715_v28 = vpack.c.bf16 %v6939_v27, %v6933_v23  ;;  %4622 = vmatmul.mubr.bf16.vlgmr.msra.gmra.mrb[12].mxu1 %v4461_v26  ;;  %v4462_v29 = vpack.c.bf16 %v6939_v27, %v6939_v27 }
 0x396   : > { %4626 = vmatpush3.bf16.xpose.msra.mxu1 %v6918_v13  ;;  %4627 = vmatprep.mubr.msk.bf16.mxu1 %vm6070_vm0, %v6069_v42 }
 0x397   : > { %4631 = vmatprep.subr.bf16.mxu1 %v6069_v42  ;;  %4656 = vmatpush3.bf16.msra.mxu0 %v5199_v18 }
 0x398   : > { %4657 = vmatprep.subr.bf16.mxu0 %v6069_v42 }
 0x39b   : > { %v1698_v4 = vpop.f32.mrb[0].mxu0 }
 0x39c   : > { %v4617_v5 = vpop.f32.mrb[1].mxu0  ;;  %v6972_v8 = vadd.f32 %v1698_v4, %v6969_v6 }
 0x39d   : > { %4628 = vmatmul.mubr.bf16.vlgmr.msra.gmra.mrb[16].mxu1 %v4462_v29  ;;  %v1701_v7 = vpop.f32.mrb[2].mxu0 }
 0x39e   : > { %4632 = vmatpush3.bf16.msra.mxu1 %v1711_v62  ;;  %4633 = vmatprep.mubr.msk.bf16.mxu1 %vm6070_vm0, %v6069_v42  ;;  %v4618_v9 = vpop.f32.mrb[3].mxu0 }
 0x39f   : > { %4637 = vmatprep.subr.bf16.mxu1 %v6069_v42 }
 0x468   : > { %v1759_v38 = vpop.f32.mrb[12].mxu1 }
 0x469   : > { %v4623_v43 = vpop.f32.mrb[13].mxu1  ;;  %v1806_v46 = vsel %vm1805_vm1, %v1759_v38, -inf }
 0x46a   : > { %1807 = vmax.xlane.f32.xlu0 %v1806_v46  ;;  %v1762_v48 = vpop.f32.mrb[14].mxu1  ;;  %v1702_v43 = vadd.f32 %v1701_v7, %v6969_v6 }
 0x46b   : > { %v4624_v49 = vpop.f32.mrb[15].mxu1 }
 0x46c   : > { %v1710_v46 = vmax.f32 %v1702_v43, 0.0  ;;  %v1662_v49 = vadd.f32 %v6935_v25, %v6928_v17  ;;  %v1707_v17 = vmax.f32 %v6972_v8, 0.0 }
 0x46e   : > { %v4466_v48 = vpack.c.bf16 %v1710_v46, %v1710_v46  ;;  %v4465_v25 = vpack.c.bf16 %v1707_v17, %v1707_v17  ;;  %v5209_v17 = vld [vmem:[#allocation20 + $0x20] sm:$0xff]  }
 0x470   : > { %v1799_v50 = vpop.f32.mrb[16].mxu1 }
 0x471   : > { %v4629_v51 = vpop.f32.mrb[17].mxu1  ;;  %v1809_v52 = vsel %vm1805_vm1, %v1799_v50, -inf }
 0x472   : > { %1810 = vmax.xlane.f32.xlu0 %v1809_v52  ;;  %v1802_v53 = vpop.f32.mrb[18].mxu1  ;;  %v5200_v52 = vld [vmem:[#allocation17 + $0x38] sm:$0xff]  }
 0x473   : > { %v4630_v54 = vpop.f32.mrb[19].mxu1  ;;  %4658 = vmatpush3.bf16.msra.mxu0 %v5200_v52 }
 0x474   : > { %4683 = vmatprep.subr.bf16.mxu0 %v6069_v42 }
 0x4f7   : > { %v1808_v55 = vpop.xlane.xlu0 %1807 }
 0x4f8   : > { %v1812_v56 = vsub.f32 %v1759_v38, %v1808_v55  ;;  %v5192_v38 = vld [vmem:[#allocation16 + $0x38] sm:$0xff]  }
 0x4fa   : > { %v1814_v57 = vmul.f32 1.442695, %v1812_v56 }
 0x4fc   : > { %5281 = vpow2.f32 %v1814_v57 }
 0x4ff   : > { %v1811_v58 = vpop.xlane.xlu0 %1810 }
 0x500   : > { %v1813_v59 = vsub.f32 %v1799_v50, %v1811_v58  ;;  %v1709_v50 = vmax.f32 %v1662_v49, 0.0 }
 0x502   : > { %v1816_v60 = vmul.f32 1.442695, %v1813_v59  ;;  %v4464_v51 = vpack.c.bf16 %v1709_v50, %v1709_v50  ;;  %v1706_v59 = vmax.f32 %v6931_v21, 0.0  ;;  %v7023_v21 = vld [vmem:[%s1255_s22 + $0x1] ss:$0 sm:$0xff] }
 0x504   : > { %5283 = vpow2.f32 %v1816_v60  ;;  %v4463_v60 = vpack.c.bf16 %v1706_v59, %v1706_v59  ;;  %v5202_v59 = vld [vmem:[#allocation22] sm:$0xff]  }
 0x506   : > { %v5282_v61 = vpop.eup %5281 }
 0x507   : > { %v1818_v62 = vsel %vm1805_vm1, %v5282_v61, 0.0 }
 0x508   : > { %1819 = vadd.xlane.f32.xlu1 %v1818_v62 }
 0x50e   : > { %v5284_v1 = vpop.eup %5283 }
 0x50f   : > { %v1821_v2 = vsel %vm1805_vm1, %v5284_v1, 0.0 }
 0x510   : > { %1822 = vadd.xlane.f32.xlu1 %v1821_v2 }
 0x595   : > { %v1820_v19 = vpop.xlane.xlu1 %1819 }
 0x596   : > { %5285 = vrcp.f32 %v1820_v19 }
 0x59d   : > { %v1823_v20 = vpop.xlane.xlu1 %1822 }
 0x59e   : > { %5287 = vrcp.f32 %v1823_v20 }
 0x5a0   : > { %v5286_v22 = vpop.eup %5285 }
 0x5a1   : > { %v1826_v24 = vmul.f32 %v5286_v22, %v5282_v61 }
 0x5a3   : > { %v1828_v26 = vpack.c.bf16 %v1826_v24, %v1826_v24  ;;  %v7032_v24 = vld [vmem:[%s1255_s22] ss:$0 sm:$0xff]  ;;  %s7199_s22 = scalar_lea.vmem %s7619_s11, %s4460_s29  ;;  %s3814_s11 = scalar_lea.sflag [#allocation34], %s6825_s28 }
 0x5a5   : > { %4634 = vmatmul.mubr.msk.bf16.vlgmr.msra.gmra.mrb[20].mxu1 %vm1805_vm1, %v1828_v26 }
 0x5a6   : > { %4638 = vmatpush3.bf16.msra.mxu1 %v6918_v13  ;;  %4639 = vmatprep.mubr.msk.bf16.mxu1 %vm6070_vm0, %v6069_v42  ;;  %v5187_v13 = vld [vmem:[#allocation16 + $0x10] sm:$0xff]  }
 0x5a7   : > { %4663 = vmatprep.subr.bf16.mxu1 %v6069_v42 }
 0x5a8   : > { %v5288_v29 = vpop.eup %5287 }
 0x5a9   : > { %v1827_v30 = vmul.f32 %v5288_v29, %v5284_v1 }
 0x5ab   : > { %v1829_v32 = vpack.c.bf16 %v1827_v30, %v1827_v30 }
 0x5ad   : > { %4640 = vmatmul.mubr.msk.bf16.vlgmr.msra.gmra.mrb[24].mxu1 %vm1805_vm1, %v1829_v32 }
 0x5ae   : > { %4664 = vmatpush3.bf16.msra.mxu1 %v5185_v31  ;;  %4679 = vmatprep.mubr.msk.bf16.mxu1 %vm6070_vm0, %v6069_v42 }
 0x5af   : > { %4665 = vmatprep.subr.bf16.mxu1 %v6069_v42 }
 0x5b2   : > { %4666 = vmatpush3.bf16.msra.mxu1 %v5186_v33 }
 0x5b3   : > { %4667 = vmatprep.subr.bf16.mxu1 %v6069_v42 }
 0x5b6   : > { %4668 = vmatpush3.bf16.msra.mxu1 %v5187_v13  ;;  %v4468_v13 = vpack.c.bf16 %v6892_v40, %v6892_v40 }
 0x5b7   : > { %4669 = vmatprep.subr.bf16.mxu1 %v6069_v42 }
 0x5ba   : > { %4670 = vmatpush3.bf16.msra.mxu1 %v5188_v34  ;;  %v2325_v34 = vsel %vm2277_vm3, %v4468_v13, 0  ;;  %v5228_v13 = vld [vmem:[%s7616_s23 + $0x34] ss:$8 sps:$4 sm:$0xff]  }
 0x5bb   : > { %4671 = vmatprep.subr.bf16.mxu1 %v6069_v42 }
 0x5be   : > { %4672 = vmatpush3.bf16.msra.mxu1 %v5189_v35 }
 0x5bf   : > { %4673 = vmatprep.subr.bf16.mxu1 %v6069_v42 }
 0x5c2   : > { %4674 = vmatpush3.bf16.msra.mxu1 %v5190_v36 }
 0x5c3   : > { %4675 = vmatprep.subr.bf16.mxu1 %v6069_v42 }
 0x5c6   : > { %4676 = vmatpush3.bf16.msra.mxu1 %v5191_v37 }
 0x5c7   : > { %4677 = vmatprep.subr.bf16.mxu1 %v6069_v42 }
 0x5ca   : > { %4678 = vmatpush3.bf16.msra.mxu1 %v5192_v38 }
 0x5cb   : > { %4689 = vmatprep.subr.bf16.mxu1 %v6069_v42 }
 0x5cd   : > { %4680 = vmatmul.mubr.bf16.vlgmr.msra.gmra.mrb[28].mxu1 %v1715_v28 }
 0x5ce   : > { %4691 = vmatprep.mubr.msk.bf16.mxu1 %vm6070_vm0, %v6069_v42 }
 0x5d3   : > { %4690 = vmatpush3.bf16.xpose.msra.mxu1 %v4466_v48 }
 0x5d4   : > { %4701 = vmatprep.subr.bf16.mxu1 %v6069_v42 }
 0x5da   : > { %4692 = vmatmul.mubr.bf16.vlgmr.msra.gmra.mrb[32].mxu1 %v4464_v51  ;;  %v4467_v51 = vpack.c.bf16 %v6888_v39, %v6888_v39 }
 0x5db   : > { %4703 = vmatprep.mubr.msk.bf16.mxu1 %vm6070_vm0, %v6069_v42  ;;  %4702 = vmatpush3.bf16.msra.mxu1 %v2325_v34  ;;  %v5226_v34 = vld [vmem:[%s7616_s23 + $0x30] ss:$8 sps:$4 sm:$0xff]  }
 0x5dc   : > { %4727 = vmatprep.subr.bf16.mxu1 %v6069_v42  ;;  %v2279_v52 = vsel %vm2277_vm3, %v4467_v51, 0  ;;  %v5242_v51 = vld [vmem:[#allocation25 + $0x8] sm:$0xff]  }
 0x678   : > { %v1867_v23 = vpop.f32.mrb[20].mxu1 }
 0x679   : > { %v4635_v27 = vpop.f32.mrb[21].mxu1 }
 0x67a   : > { %v1870_v28 = vpop.f32.mrb[22].mxu1  ;;  %v5203_v27 = vld [vmem:[#allocation20 + $0x8] sm:$0xff]  }
 0x67b   : > { %v4636_v53 = vpop.f32.mrb[23].mxu1  ;;  %v5205_v28 = vld [vmem:[#allocation20 + $0x10] sm:$0xff]  }
 0x67c   : > { %v5207_v53 = vld [vmem:[#allocation20 + $0x18] sm:$0xff]  }
 0x680   : > { %v1910_v54 = vpop.f32.mrb[24].mxu1 }
 0x681   : > { %v1916_v55 = vpack.c.bf16 %v1910_v54, %v1867_v23  ;;  %v4641_v56 = vpop.f32.mrb[25].mxu1  ;;  %v5201_v23 = vld [vmem:[#allocation20] sm:$0xff]   ;;  %v5213_v54 = vld [vmem:[#allocation20 + $0x30] sm:$0xff]  }
 0x682   : > { %v1913_v57 = vpop.f32.mrb[26].mxu1 }
 0x683   : > { %v4642_v58 = vpop.f32.mrb[27].mxu1  ;;  %4660 = vmatmul.mubr.bf16.vlgmr.msra.gmra.mrb[4].mxu0 %v1916_v55  ;;  %v5215_v55 = vld [vmem:[#allocation20 + $0x38] sm:$0xff]  }
 0x684   : > { %4684 = vmatpush3.bf16.xpose.msra.mxu0 %v4465_v25  ;;  %4685 = vmatprep.mubr.msk.bf16.mxu0 %vm6070_vm0, %v6069_v42  ;;  %v5211_v25 = vld [vmem:[#allocation20 + $0x28] sm:$0xff]  }
 0x685   : > { %4695 = vmatprep.subr.bf16.mxu0 %v6069_v42 }
 0x68b   : > { %4686 = vmatmul.mubr.bf16.vlgmr.msra.gmra.mrb[8].mxu0 %v4463_v60 }
 0x68c   : > { %4697 = vmatprep.mubr.msk.bf16.mxu0 %vm6070_vm0, %v6069_v42  ;;  %4696 = vmatpush3.bf16.msra.mxu0 %v2279_v52  ;;  %v5243_v52 = vld [vmem:[#allocation25 + $0x10] sm:$0xff]  }
 0x68d   : > { %4707 = vmatprep.subr.bf16.mxu0 %v6069_v42 }
 0x6a0   : > { %v2120_v61 = vpop.f32.mrb[28].mxu1 }
 0x6a1   : > { %v4681_v62 = vpop.f32.mrb[29].mxu1 }
 0x6a2   : > { %v2123_v1 = vpop.f32.mrb[30].mxu1  ;;  %v5208_v62 = vld [vmem:[#allocation22 + $0x18] sm:$0xff]  }
 0x6a3   : > { %v4682_v2 = vpop.f32.mrb[31].mxu1 }
 0x6a4   : > { %v5212_v2 = vld [vmem:[#allocation22 + $0x28] sm:$0xff]  }
 0x6ad   : > { %v2238_v3 = vpop.f32.mrb[32].mxu1 }
 0x6ae   : > { %v2239_v4 = vadd.f32 %v7023_v21, %v2238_v3  ;;  %v4693_v5 = vpop.f32.mrb[33].mxu1  ;;  %v5214_v3 = vld [vmem:[#allocation22 + $0x30] sm:$0xff]  }
 0x6af   : > { %v2241_v6 = vpop.f32.mrb[34].mxu1 }
 0x6b0   : > { %v4694_v7 = vpop.f32.mrb[35].mxu1  ;;  %v2248_v8 = vsel %vm2244_vm2, %v2239_v4, -inf }
 0x6b1   : > { %2249 = vmax.xlane.f32.xlu1 %v2248_v8  ;;  %v5216_v8 = vld [vmem:[#allocation22 + $0x38] sm:$0xff]  }
 0x73e   : > { %v2250_v9 = vpop.xlane.xlu1 %2249 }
 0x73f   : > { %v2252_v10 = vsub.f32 %v2239_v4, %v2250_v9  ;;  %v5219_v9 = vld [vmem:[%s7615_s9 + $0x4] ss:$8 sps:$4 sm:$0xff]   ;;  %s7283_s9 = scalar_lea.vmem [#allocation35], %s6828_s5  ;;  %s7621_s5 = sld [smem:[#allocation57_spill]] }
 0x741   : > { %v2255_v11 = vmul.f32 1.442695, %v2252_v10 }
 0x743   : > { %5289 = vpow2.f32 %v2255_v11 }
 0x745   : > { %p7623_p11 = scmp.ne.s32.totalorder %s7621_s5, 0 }
 0x74d   : > { %v5290_v12 = vpop.eup %5289 }
 0x74e   : > { %v2260_v44 = vsel %vm2244_vm2, %v5290_v12, 0.0 }
 0x74f   : > { %2261 = vadd.xlane.f32.xlu1 %v2260_v44 }
 0x756   : > { %v2031_v15 = vpop.f32.mrb[4].mxu0 }
 0x757   : > { %v7028_v16 = vadd.f32 %v2120_v61, %v2031_v15  ;;  %v4661_v18 = vpop.f32.mrb[5].mxu0  ;;  %v5204_v61 = vld [vmem:[#allocation22 + $0x8] sm:$0xff]  }
 0x758   : > { %v2034_v19 = vpop.f32.mrb[6].mxu0  ;;  %v5217_v18 = vld [vmem:[%s7616_s23] ss:$8 sps:$4 sm:$0xff]  }
 0x759   : > { %v7030_v20 = vadd.f32 %v2123_v1, %v2034_v19  ;;  %v4662_v22 = vpop.f32.mrb[7].mxu0  ;;  %v5210_v1 = vld [vmem:[#allocation22 + $0x20] sm:$0xff]  }
 0x75e   : > { %v2198_v26 = vpop.f32.mrb[8].mxu0 }
 0x75f   : > { %v2199_v29 = vadd.f32 %v7032_v24, %v2198_v26  ;;  %v4687_v30 = vpop.f32.mrb[9].mxu0  ;;  %v5222_v26 = vld [vmem:[%s7616_s23 + $0x14] ss:$8 sps:$4 sm:$0xff]  }
 0x760   : > { %v2201_v31 = vpop.f32.mrb[10].mxu0 }
 0x761   : > { %v4688_v32 = vpop.f32.mrb[11].mxu0  ;;  %v2245_v33 = vsel %vm2244_vm2, %v2199_v29, -inf  ;;  %v5220_v31 = vld [vmem:[%s7616_s23 + $0x10] ss:$8 sps:$4 sm:$0xff]  }
 0x762   : > { %2246 = vmax.xlane.f32.xlu0 %v2245_v33  ;;  %v5225_v32 = vld [vmem:[%s7616_s23 + $0x24] ss:$8 sps:$4 sm:$0xff]   ;;  %v5223_v33 = vld [vmem:[%s7616_s23 + $0x20] ss:$8 sps:$4 sm:$0xff]  }
 0x7dc   : > { %v2262_v35 = vpop.xlane.xlu1 %2261 }
 0x7dd   : > { %5291 = vrcp.f32 %v2262_v35  ;;  %v5231_v35 = vld [vmem:[%s7616_s23 + $0x44] ss:$8 sps:$4 sm:$0xff]  }
 0x7e7   : > { %v5292_v36 = vpop.eup %5291 }
 0x7e8   : > { %v2266_v37 = vmul.f32 %v5292_v36, %v5290_v12  ;;  %v5229_v36 = vld [vmem:[%s7616_s23 + $0x40] ss:$8 sps:$4 sm:$0xff]  }
 0x7ea   : > { %v2268_v38 = vpack.c.bf16 %v2266_v37, %v2266_v37  ;;  %v5234_v37 = vld [vmem:[%s7616_s23 + $0x54] ss:$8 sps:$4 sm:$0xff]  }
 0x7ec   : > { %4704 = vmatmul.mubr.msk.bf16.vlgmr.msra.gmra.mrb[36].mxu1 %vm2244_vm2, %v2268_v38  ;;  %v5232_v38 = vld [vmem:[%s7616_s23 + $0x50] ss:$8 sps:$4 sm:$0xff]  }
 0x7ed   : > { %4743 = vmatprep.mubr.msk.bf16.mxu1 %vm6070_vm0, %v6069_v42  ;;  %4728 = vmatpush3.bf16.msra.mxu1 %v5201_v23  ;;  %v5244_v23 = vld [vmem:[#allocation25 + $0x18] sm:$0xff]  }
 0x7ee   : > { %4729 = vmatprep.subr.bf16.mxu1 %v6069_v42 }
 0x7ef   : > { %v2247_v43 = vpop.xlane.xlu0 %2246 }
 0x7f0   : > { %v2251_v46 = vsub.f32 %v2199_v29, %v2247_v43  ;;  %v5237_v43 = vld [vmem:[%s7616_s23 + $0x64] ss:$8 sps:$4 sm:$0xff]  }
 0x7f1   : > { %4730 = vmatpush3.bf16.msra.mxu1 %v5203_v27  ;;  %v5245_v27 = vld [vmem:[#allocation25 + $0x20] sm:$0xff]  }
 0x7f2   : > { %v2253_v48 = vmul.f32 1.442695, %v2251_v46  ;;  %4731 = vmatprep.subr.bf16.mxu1 %v6069_v42  ;;  %v5235_v46 = vld [vmem:[%s7616_s23 + $0x60] ss:$8 sps:$4 sm:$0xff]  }
 0x7f4   : > { %5293 = vpow2.f32 %v2253_v48  ;;  %v5240_v48 = vld [vmem:[%s7616_s23 + $0x74] ss:$8 sps:$4 sm:$0xff]  }
 0x7f5   : > { %4732 = vmatpush3.bf16.msra.mxu1 %v5205_v28  ;;  %v5246_v28 = vld [vmem:[#allocation25 + $0x28] sm:$0xff]  }
 0x7f6   : > { %4733 = vmatprep.subr.bf16.mxu1 %v6069_v42 }
 0x7f9   : > { %4734 = vmatpush3.bf16.msra.mxu1 %v5207_v53  ;;  %v5247_v53 = vld [vmem:[#allocation25 + $0x30] sm:$0xff]  }
 0x7fa   : > { %4735 = vmatprep.subr.bf16.mxu1 %v6069_v42 }
 0x7fd   : > { %4736 = vmatpush3.bf16.msra.mxu1 %v5209_v17  ;;  %v4346_v17 = vld [vmem:[#allocation19] ss:$0 sm:$0xff] }
 0x7fe   : > { %v5294_v49 = vpop.eup %5293  ;;  %4737 = vmatprep.subr.bf16.mxu1 %v6069_v42 }
 0x7ff   : > { %v2257_v50 = vsel %vm2244_vm2, %v5294_v49, 0.0 }
 0x800   : > { %2258 = vadd.xlane.f32.xlu0 %v2257_v50  ;;  %v5241_v50 = vld [vmem:[#allocation25] sm:$0xff]  }
 0x801   : > { %4738 = vmatpush3.bf16.msra.mxu1 %v5211_v25  ;;  %v2134_v25 = vadd.f32 %v4346_v17, %v7028_v16 }
 0x802   : > { %4739 = vmatprep.subr.bf16.mxu1 %v6069_v42 }
 0x805   : > { %4740 = vmatpush3.bf16.msra.mxu1 %v5213_v54  ;;  %v2135_v54 = vadd.f32 %v4346_v17, %v7030_v20 }
 0x806   : > { %4741 = vmatprep.subr.bf16.mxu1 %v6069_v42 }
 0x809   : > { %4742 = vmatpush3.bf16.msra.mxu1 %v5215_v55 }
 0x80a   : > { %4747 = vmatprep.subr.bf16.mxu1 %v6069_v42 }
 0x80c   : > { %4744 = vmatmul.mubr.bf16.vlgmr.msra.gmra.mrb[40].mxu1 %v6896_v41  ;;  %v5206_v41 = vld [vmem:[#allocation22 + $0x10] sm:$0xff]  }
 0x80d   : > { %4763 = vmatprep.mubr.msk.bf16.mxu1 %vm6070_vm0, %v6069_v42  ;;  %4748 = vmatpush3.bf16.msra.mxu1 %v5241_v50 }
 0x80e   : > { %4749 = vmatprep.subr.bf16.mxu1 %v6069_v42 }
 0x811   : > { %4750 = vmatpush3.bf16.msra.mxu1 %v5242_v51 }
 0x812   : > { %4751 = vmatprep.subr.bf16.mxu1 %v6069_v42 }
 0x815   : > { %4752 = vmatpush3.bf16.msra.mxu1 %v5243_v52 }
 0x816   : > { %4753 = vmatprep.subr.bf16.mxu1 %v6069_v42 }
 0x819   : > { %4754 = vmatpush3.bf16.msra.mxu1 %v5244_v23 }
 0x81a   : > { %4755 = vmatprep.subr.bf16.mxu1 %v6069_v42 }
 0x81d   : > { %4756 = vmatpush3.bf16.msra.mxu1 %v5245_v27 }
 0x81e   : > { %4757 = vmatprep.subr.bf16.mxu1 %v6069_v42 }
 0x821   : > { %4758 = vmatpush3.bf16.msra.mxu1 %v5246_v28 }
 0x822   : > { %4759 = vmatprep.subr.bf16.mxu1 %v6069_v42 }
 0x825   : > { %4760 = vmatpush3.bf16.msra.mxu1 %v5247_v53 }
 0x826   : > { %4761 = vmatprep.subr.bf16.mxu1 %v6069_v42 }
 0x88d   : > { %v2259_v56 = vpop.xlane.xlu0 %2258 }
 0x88e   : > { %5295 = vrcp.f32 %v2259_v56  ;;  %v4373_v56 = vld [vmem:[#allocation23] ss:$0 sm:$0xff] }
 0x898   : > { %v5296_v57 = vpop.eup %5295 }
 0x899   : > { %v2265_v58 = vmul.f32 %v5296_v57, %v5294_v49  ;;  %v5238_v49 = vld [vmem:[%s7616_s23 + $0x70] ss:$8 sps:$4 sm:$0xff]   ;;  %v2136_v57 = vmax.f32 %v2134_v25, 0.0 }
 0x89b   : > { %v2267_v60 = vpack.c.bf16 %v2265_v58, %v2265_v58 }
 0x89d   : > { %4698 = vmatmul.mubr.msk.bf16.vlgmr.msra.gmra.mrb[12].mxu0 %vm2244_vm2, %v2267_v60 }
 0x89e   : > { %4708 = vmatpush3.bf16.msra.mxu0 %v5202_v59  ;;  %4723 = vmatprep.mubr.msk.bf16.mxu0 %vm6070_vm0, %v6069_v42 }
 0x89f   : > { %4709 = vmatprep.subr.bf16.mxu0 %v6069_v42 }
 0x8a2   : > { %4710 = vmatpush3.bf16.msra.mxu0 %v5204_v61  ;;  %v2137_v61 = vmax.f32 %v2135_v54, 0.0 }
 0x8a3   : > { %4711 = vmatprep.subr.bf16.mxu0 %v6069_v42 }
 0x8a4   : > { %v2590_v20 = vadd.f32 %v2137_v61, %v6892_v40  ;;  %v7146_v40 = vld [vmem:[%s1064_s7] sm:$0xff]  ;;  %v3299_v61 = vld [vmem:[%s7199_s22 + $0x8] sm:$0xff] }
 0x8a6   : > { %4712 = vmatpush3.bf16.msra.mxu0 %v5206_v41 }
 0x8a7   : > { %4713 = vmatprep.subr.bf16.mxu0 %v6069_v42 }
 0x8aa   : > { %4714 = vmatpush3.bf16.msra.mxu0 %v5208_v62 }
 0x8ab   : > { %4715 = vmatprep.subr.bf16.mxu0 %v6069_v42 }
 0x8ae   : > { %4716 = vmatpush3.bf16.msra.mxu0 %v5210_v1 }
 0x8af   : > { %4717 = vmatprep.subr.bf16.mxu0 %v6069_v42 }
 0x8b2   : > { %4718 = vmatpush3.bf16.msra.mxu0 %v5212_v2  ;;  %v2589_v2 = vadd.f32 %v2136_v57, %v6888_v39  ;;  %v5248_v39 = vld [vmem:[#allocation25 + $0x38] sm:$0xff]  }
 0x8b3   : > { %4719 = vmatprep.subr.bf16.mxu0 %v6069_v42  ;;  %4762 = vmatpush3.bf16.msra.mxu1 %v5248_v39 }
 0x8b4   : > { %4773 = vmatprep.subr.bf16.mxu1 %v6069_v42 }
 0x8b6   : > { %4720 = vmatpush3.bf16.msra.mxu0 %v5214_v3 }
 0x8b7   : > { %4721 = vmatprep.subr.bf16.mxu0 %v6069_v42 }
 0x8ba   : > { %4722 = vmatpush3.bf16.msra.mxu0 %v5216_v8  ;;  %v7150_v8 = vld [vmem:[%s1064_s7 + $0x8] sm:$0xff]  ;;  %s3865_s7 = sshll.u32 %s7283_s9, 4  ;;  %s7331_s7 = int_to_ptr.vmem [resolvable:$true] %s3865_s7 }
 0x8bb   : > { %2702 = vmatprep.subr.bf16.mxu0 %v5219_v9  ;;  %v1272_v9 = vpack.c.bf16 %v7150_v8, %v7146_v40 }
 0x8bd   : > { %4764 = vmatmul.mubr.bf16.vlgmr.msra.gmra.mrb[44].mxu1 %v1272_v9 }
 0x8be   : > { %4775 = vmatprep.mubr.msk.bf16.mxu1 %vm6070_vm0, %v6069_v42 }
 0x8bf   : > { %v2361_v4 = vpop.f32.mrb[36].mxu1 }
 0x8c0   : > { %v4705_v5 = vpop.f32.mrb[37].mxu1 }
 0x8c1   : > { %v2364_v6 = vpop.f32.mrb[38].mxu1 }
 0x8c2   : > { %v4706_v7 = vpop.f32.mrb[39].mxu1 }
 0x8df   : > { %v7072_v10 = vpop.f32.mrb[40].mxu1 }
 0x8e0   : > { %v4745_v11 = vpop.f32.mrb[41].mxu1 }
 0x8e1   : > { %v7074_v12 = vpop.f32.mrb[42].mxu1 }
 0x8e2   : > { %v4746_v44 = vpop.f32.mrb[43].mxu1 }
 0x970   : > { %v2315_v15 = vpop.f32.mrb[12].mxu0 }
 0x971   : > { %v2367_v19 = vpack.c.bf16 %v2361_v4, %v2315_v15  ;;  %v4699_v22 = vpop.f32.mrb[13].mxu0 }
 0x972   : > { %v2318_v29 = vpop.f32.mrb[14].mxu0 }
 0x973   : > { %v4700_v30 = vpop.f32.mrb[15].mxu0  ;;  %4724 = vmatmul.mubr.bf16.vlgmr.msra.gmra.mrb[16].mxu0 %v2367_v19 }
 0x974   : > { %2703 = vmatpush1.bf16.msra.mxu0 %v5217_v18  ;;  %2734 = vmatprep.mubr.bf16.mxu0 %v6068_v0 }
 0x975   : > { %2704 = vmatprep.subr.bf16.mxu0 %v5222_v26 }
 0x978   : > { %2705 = vmatpush1.bf16.msra.mxu0 %v5220_v31 }
 0x979   : > { %2706 = vmatprep.subr.bf16.mxu0 %v5225_v32 }
 0x97c   : > { %2707 = vmatpush1.bf16.msra.mxu0 %v5223_v33 }
 0x97d   : > { %2708 = vmatprep.subr.bf16.mxu0 %v5228_v13  ;;  %v4390_v13 = vld [vmem:[%s7618_s17] ss:$0 sm:$0xff] }
 0x980   : > { %2709 = vmatpush1.bf16.msra.mxu0 %v5226_v34 }
 0x981   : > { %2710 = vmatprep.subr.bf16.mxu0 %v5231_v35 }
 0x984   : > { %2711 = vmatpush1.bf16.msra.mxu0 %v5229_v36 }
 0x985   : > { %2712 = vmatprep.subr.bf16.mxu0 %v5234_v37 }
 0x988   : > { %2713 = vmatpush1.bf16.msra.mxu0 %v5232_v38 }
 0x989   : > { %2714 = vmatprep.subr.bf16.mxu0 %v5237_v43 }
 0x98c   : > { %2715 = vmatpush1.bf16.msra.mxu0 %v5235_v46 }
 0x98d   : > { %2716 = vmatprep.subr.bf16.mxu0 %v5240_v48 }
 0x990   : > { %2717 = vmatpush1.bf16.msra.mxu0 %v5238_v49  ;;  %v2856_v34 = vpop.f32.mrb[44].mxu1 }
 0x991   : > { %4767 = vmatprep.subr.bf16.mxu0 %v6069_v42  ;;  %v2857_v35 = vadd.f32 %v4390_v13, %v2856_v34  ;;  %v4765_v36 = vpop.f32.mrb[45].mxu1 }
 0x992   : > { %v2859_v37 = vpop.f32.mrb[46].mxu1 }
 0x993   : > { %v7177_v38 = vmax.f32 %v2857_v35, 0.0  ;;  %v2860_v43 = vadd.f32 %v4390_v13, %v2859_v37  ;;  %v4766_v46 = vpop.f32.mrb[47].mxu1  ;;  %v3301_v13 = vld [vmem:[%s7199_s22 + $0x18] sm:$0xff] }
 0x995   : > { %v7179_v48 = vmax.f32 %v2860_v43, 0.0  ;;  %v4471_v49 = vpack.c.bf16 %v7177_v38, %v7177_v38 }
 0x997   : > { %v2865_v50 = vpack.c.bf16 %v7179_v48, %v7177_v38  ;;  %v4472_v51 = vpack.c.bf16 %v7179_v48, %v7179_v48  ;;  %v2986_v52 = vsel %vm2277_vm3, %v4471_v49, 0  ;;  %v5258_v38 = vld [vmem:[#allocation28 + $0x8] sm:$0xff]   ;;  %v5259_v48 = vld [vmem:[#allocation28 + $0x10] sm:$0xff]  }
 0x999   : > { %v3032_v23 = vsel %vm2277_vm3, %v4472_v51, 0 }
 0xa46   : > { %v2482_v55 = vpop.f32.mrb[16].mxu0 }
 0xa47   : > { %v2572_v58 = vadd.f32 %v7072_v10, %v2482_v55  ;;  %v4725_v59 = vpop.f32.mrb[17].mxu0  ;;  %v2610_v10 = vld [vmem:[%s7617_s6] sm:$0x3]  ;;  %s3849_s6 = sshll.u32 %s7137_s27, 4  ;;  %s7291_s6 = int_to_ptr.vmem [resolvable:$true] %s3849_s6 }
 0xa48   : > { %v2485_v60 = vpop.f32.mrb[18].mxu0  ;;  %v2615_v11 = vrot.slane %v2610_v10, %v6908_v45 }
 0xa49   : > { %v2585_v41 = vadd.f32 %v4373_v56, %v2572_v58  ;;  %v2575_v62 = vadd.f32 %v7074_v12, %v2485_v60  ;;  %v4726_v1 = vpop.f32.mrb[19].mxu0  ;;  %v7161_v12 = vrot.slane %v2610_v10, %v6911_v47 }
 0xa4b   : > { %v2587_v3 = vmax.f32 %v2585_v41, 0.0  ;;  %v2586_v16 = vadd.f32 %v4373_v56, %v2575_v62  ;;  %v3298_v41 = vld [vmem:[%s7199_s22] sm:$0xff]  ;;  %v6071_v62 = vmov 1  }
 0xa4d   : > { %v2591_v4 = vadd.f32 %v2589_v2, %v2587_v3  ;;  %v2588_v5 = vmax.f32 %v2586_v16, 0.0 }
 0xa4f   : > { %3804 = vst [vmem:[%s7137_s27] sm:$0xff] %v2591_v4  ;;  %v2592_v6 = vadd.f32 %v2590_v20, %v2588_v5  ;;  %v3302_v5 = vld [vmem:[%s6839_s3] sm:$0x3] }
 0xa51   : > { %v2593_v7 = vpack.c.bf16 %v2592_v6, %v2591_v4  ;;  %3805 = vst [vmem:[%s7137_s27 + $0x8] sm:$0xff] %v2592_v6  ;;  %s6072_s27 = smov [#allocation33]  }
 0xa53   : > { %2735 = vmatmul.mubr.bf16.vlgmr.msra.gmra.mrb[20].mxu0 %v2593_v7  ;;  %v3359_v7 = vrot.slane %v3302_v5, %v6911_v47 }
 0xa54   : > { %4769 = vmatprep.mubr.msk.bf16.mxu0 %vm6070_vm0, %v6069_v42 }
 0xb26   : > { %v2736_v44 = vpop.f32.mrb[20].mxu0 }
 0xb27   : > { %v2737_v15 = vadd.f32 %v2736_v44, %v2615_v11  ;;  %v2738_v18 = vpop.f32.mrb[21].mxu0 }
 0xb28   : > { %v7164_v19 = vadd.f32 %v2738_v18, %v7161_v12  ;;  %v2740_v22 = vpop.f32.mrb[22].mxu0 }
 0xb29   : > { %v2745_v26 = vmax.f32 %v2737_v15, 0.0  ;;  %v2741_v29 = vadd.f32 %v2740_v22, %v2615_v11  ;;  %v7166_v30 = vpop.f32.mrb[23].mxu0  ;;  %v3327_v15 = vrot.slane %v3302_v5, %v6908_v45 }
 0xb2b   : > { %v4469_v31 = vpack.c.bf16 %v2745_v26, %v2745_v26  ;;  %v2747_v32 = vmax.f32 %v2741_v29, 0.0 }
 0xb2d   : > { %v4470_v33 = vpack.c.bf16 %v2747_v32, %v2747_v32  ;;  %4768 = vmatpush3.bf16.xpose.msra.mxu0 %v4469_v31  ;;  %v3300_v32 = vld [vmem:[%s7199_s22 + $0x10] sm:$0xff]  ;;  %s5873_s22 = scalar_lea.vmem %s7291_s6, 256 }
 0xb2e   : > { %4779 = vmatprep.subr.bf16.mxu0 %v6069_v42  ;;  %p5874_p7 = scmp.ne.s32.totalorder %s7291_s6, %s5873_s22 }
 0xb2f   : > { %4774 = vmatpush3.bf16.xpose.msra.mxu1 %v4470_v33 }
 0xb30   : > { %4785 = vmatprep.subr.bf16.mxu1 %v6069_v42  ;;  %p5875_p12 = pnand %p5874_p7, %p7623_p11 }
 0xb32   : > { %p5876_p4 = pneg %p5875_p12 }
 0xb34   : > { %4770 = vmatmul.mubr.bf16.vlgmr.msra.gmra.mrb[24].mxu0 %v4469_v31 }
 0xb35   : > { %4781 = vmatprep.mubr.msk.bf16.mxu0 %vm6070_vm0, %v6069_v42  ;;  %4780 = vmatpush3.bf16.msra.mxu0 %v2986_v52 }
 0xb36   : > { %4776 = vmatmul.mubr.bf16.vlgmr.msra.gmra.mrb[48].mxu1 %v4470_v33  ;;  %4791 = vmatprep.subr.bf16.mxu0 %v6069_v42 }
 0xb37   : > { %4787 = vmatprep.mubr.msk.bf16.mxu1 %vm6070_vm0, %v6069_v42  ;;  %4786 = vmatpush3.bf16.msra.mxu1 %v3032_v23  ;;  %v3303_v23 = vld [vmem:[%s6839_s3 + $0x2] sm:$0x3]  ;;  %s5877_s3 = sshll.u32 %s6072_s27, 4  ;;  %s5878_s3 = int_to_ptr.vmem [resolvable:$false] %s5877_s3 }
 0xb38   : > { %4811 = vmatprep.subr.bf16.mxu1 %v6069_v42  ;;  %s5879_s19 = scalar_lea.vmem %s5878_s3, 512  ;;  %p5880_p10 = scmp.lt.s32.totalorder %s7291_s6, %s5878_s3 }
 0xb39   : > { %p5881_p2 = scmp.lt.s32.totalorder %s5879_s19, %s5873_s22 }
 0xb3b   : > { %p5882_p3 = por %p5881_p2, %p5880_p10 }
 0xb3d   : > { %p5883_p5 = pnand %p5882_p3, %p5876_p4 }
 0xc07   : > { %v2907_v27 = vpop.f32.mrb[24].mxu0 }
 0xc08   : > { %v2908_v28 = vadd.f32 %v7032_v24, %v2907_v27  ;;  %v4771_v53 = vpop.f32.mrb[25].mxu0 }
 0xc09   : > { %v2910_v17 = vpop.f32.mrb[26].mxu0  ;;  %v2947_v25 = vpop.f32.mrb[48].mxu1  ;;  %v3331_v53 = vrot.slane %v3303_v23, %v6908_v45 }
 0xc0a   : > { %v2948_v54 = vadd.f32 %v7023_v21, %v2947_v25  ;;  %v4772_v55 = vpop.f32.mrb[27].mxu0  ;;  %v4777_v56 = vpop.f32.mrb[49].mxu1  ;;  %v2953_v57 = vsel %vm2244_vm2, %v2908_v28, -inf }
 0xc0b   : > { %2954 = vmax.xlane.f32.xlu0 %v2953_v57  ;;  %v2950_v58 = vpop.f32.mrb[50].mxu1  ;;  %v3363_v57 = vrot.slane %v3303_v23, %v6911_v47 }
 0xc0c   : > { %v4778_v59 = vpop.f32.mrb[51].mxu1  ;;  %v2956_v60 = vsel %vm2244_vm2, %v2948_v54, -inf }
 0xc0d   : > { %2957 = vmax.xlane.f32.xlu1 %v2956_v60 }
 0xc1e   : > { %3311 = vperm.xlu1 %5124, %v3299_v61  }
 0xc22   : > { %5125 = vset.pattern.permute.xlu1 %v6071_v62 }
 0xc23   : > { %3341 = vperm.xlu1 %5125, %v3298_v41  }
 0xc27   : > { %3345 = vperm.xlu1 %5125, %v3299_v61  }
 0xc2b   : > { %5126 = vset.pattern.permute.xlu1 %v6068_v0 }
 0xc98   : > { %v2955_v1 = vpop.xlane.xlu0 %2954 }
 0xc99   : > { %v2959_v2 = vsub.f32 %v2908_v28, %v2955_v1 }
 0xc9a   : > { %v2958_v3 = vpop.xlane.xlu1 %2957 }
 0xc9b   : > { %v2961_v16 = vmul.f32 1.442695, %v2959_v2  ;;  %v2960_v20 = vsub.f32 %v2948_v54, %v2958_v3  ;;  %v5249_v3 = vld [vmem:[#allocation26] sm:$0xff]  }
 0xc9d   : > { %5297 = vpow2.f32 %v2961_v16  ;;  %v2963_v4 = vmul.f32 1.442695, %v2960_v20 }
 0xc9e   : > { %v3312_v6 = vpop.permute.xlu1 %3311 }
 0xc9f   : > { %5299 = vpow2.f32 %v2963_v4  ;;  %v3333_v22 = vsub.f32 %v3312_v6, %v3327_v15 }
 0xca1   : > { %v3337_v29 = vmul.f32 %v3333_v22, %v3333_v22 }
 0xca2   : > { %v3342_v39 = vpop.permute.xlu1 %3341 }
 0xca3   : > { %v3364_v9 = vsub.f32 %v3342_v39, %v3359_v7 }
 0xca5   : > { %v3368_v55 = vmul.f32 %v3364_v9, %v3364_v9 }
 0xca6   : > { %v3346_v18 = vpop.permute.xlu1 %3345 }
 0xca7   : > { %v5298_v10 = vpop.eup %5297  ;;  %v3365_v26 = vsub.f32 %v3346_v18, %v3359_v7  ;;  %v5250_v7 = vld [vmem:[#allocation26 + $0x8] sm:$0xff]  }
 0xca8   : > { %v2965_v11 = vsel %vm2244_vm2, %v5298_v10, 0.0 }
 0xca9   : > { %v5300_v0 = vpop.eup %5299  ;;  %2966 = vadd.xlane.f32.xlu0 %v2965_v11  ;;  %v3369_v31 = vmul.f32 %v3365_v26, %v3365_v26  ;;  %v5251_v11 = vld [vmem:[#allocation26 + $0x10] sm:$0xff]  }
 0xcaa   : > { %v2968_v44 = vsel %vm2244_vm2, %v5300_v0, 0.0 }
 0xcab   : > { %2969 = vadd.xlane.f32.xlu1 %v2968_v44  ;;  %v3373_v33 = vadd.f32 %v3369_v31, %v3337_v29 }
 0xcad   : > { %5301 = vrsqrt.f32 %v3373_v33  ;;  %vm3385_vm4 = vcmp.eq.f32.partialorder %v3373_v33, inf  ;;  %v3388_v36 = vand.u32 2147483648, %v3373_v33  ;;  %vm3387_vm5 = vcmp.eq.f32.partialorder %v3373_v33, 0.0 }
 0xcb7   : > { %v5302_v34 = vpop.eup %5301 }
 0xcb8   : > { %v3384_v35 = vmul.f32 %v5302_v34, %v3373_v33 }
 0xcba   : > { %v3386_v37 = vsel %vm3385_vm4, %v3373_v33, %v3384_v35 }
 0xcbb   : > { %v3389_v43 = vsel %vm3387_vm5, %v3388_v36, %v3386_v37  ;;  %v5254_v37 = vld [vmem:[#allocation26 + $0x28] sm:$0xff]  }
 0xcbc   : > { %3316 = vperm.xlu1 %5126, %v3300_v32   ;;  %v7212_v46 = vadd.f32 %v7032_v24, %v3389_v43 }
 0xcbe   : > { %v3411_v49 = vsel %vm2244_vm2, %v7212_v46, -inf }
 0xcbf   : > { %3306 = vperm.xlu0 %5123, %v3298_v41  }
 0xcc0   : > { %3321 = vperm.xlu1 %5126, %v3301_v13  }
 0xcc3   : > { %5128 = vset.pattern.permute.xlu0 %v6071_v62 }
 0xcc4   : > { %5127 = vset.pattern.permute.xlu1 %v6071_v62 }
 0xcc5   : > { %3349 = vperm.xlu1 %5127, %v3300_v32   ;;  %v5253_v32 = vld [vmem:[#allocation26 + $0x20] sm:$0xff]  }
 0xcc9   : > { %3353 = vperm.xlu1 %5127, %v3301_v13  }
 0xcde   : > { %3412 = vmax.xlane.f32.xlu0 %v3411_v49 }
 0xd36   : > { %v2967_v51 = vpop.xlane.xlu0 %2966 }
 0xd37   : > { %5303 = vrcp.f32 %v2967_v51 }
 0xd38   : > { %v2970_v52 = vpop.xlane.xlu1 %2969 }
 0xd39   : > { %5305 = vrcp.f32 %v2970_v52  ;;  %v2743_v52 = vadd.f32 %v7166_v30, %v7161_v12 }
 0xd3c   : > { %v3317_v27 = vpop.permute.xlu1 %3316 }
 0xd3d   : > { %v3334_v60 = vsub.f32 %v3317_v27, %v3331_v53 }
 0xd3e   : > { %v3307_v28 = vpop.permute.xlu0 %3306 }
 0xd3f   : > { %v3332_v17 = vsub.f32 %v3307_v28, %v3327_v15  ;;  %v3338_v16 = vmul.f32 %v3334_v60, %v3334_v60  ;;  %v5252_v15 = vld [vmem:[#allocation26 + $0x18] sm:$0xff]   ;;  %v5255_v28 = vld [vmem:[#allocation26 + $0x30] sm:$0xff]   ;;  %v5257_v60 = vld [vmem:[#allocation28] sm:$0xff]  }
 0xd40   : > { %v3322_v25 = vpop.permute.xlu1 %3321 }
 0xd41   : > { %v5304_v54 = vpop.eup %5303  ;;  %v3336_v56 = vmul.f32 %v3332_v17, %v3332_v17  ;;  %v3335_v20 = vsub.f32 %v3322_v25, %v3331_v53  ;;  %v2748_v25 = vmax.f32 %v2743_v52, 0.0 }
 0xd42   : > { %v2973_v58 = vmul.f32 %v5304_v54, %v5298_v10 }
 0xd43   : > { %v5306_v59 = vpop.eup %5305  ;;  %v3372_v61 = vadd.f32 %v3368_v55, %v3336_v56  ;;  %v3339_v39 = vmul.f32 %v3335_v20, %v3335_v20  ;;  %v5256_v55 = vld [vmem:[#allocation26 + $0x38] sm:$0xff]   ;;  %v4474_v12 = vpack.c.bf16 %v2748_v25, %v2748_v25  ;;  %v5267_v25 = vld [vmem:[#allocation31 + $0x10] sm:$0xff]  }
 0xd44   : > { %v2974_v41 = vmul.f32 %v5306_v59, %v5300_v0  ;;  %v3350_v62 = vpop.permute.xlu1 %3349  ;;  %v2975_v1 = vpack.c.bf16 %v2973_v58, %v2973_v58 }
 0xd45   : > { %5307 = vrsqrt.f32 %v3372_v61  ;;  %v3366_v2 = vsub.f32 %v3350_v62, %v3363_v57  ;;  %vm3378_vm6 = vcmp.eq.f32.partialorder %v3372_v61, inf  ;;  %v3381_v18 = vand.u32 2147483648, %v3372_v61  ;;  %v5264_v62 = vld [vmem:[#allocation28 + $0x38] sm:$0xff]  }
 0xd46   : > { %4782 = vmatmul.mubr.msk.bf16.vlgmr.msra.gmra.mrb[28].mxu0 %vm2244_vm2, %v2975_v1  ;;  %v2976_v45 = vpack.c.bf16 %v2974_v41, %v2974_v41  ;;  %vm3380_vm7 = vcmp.eq.f32.partialorder %v3372_v61, 0.0  ;;  %v3510_v30 = vsel %vm2277_vm3, %v4474_v12, 0  ;;  %v5263_v41 = vld [vmem:[#allocation28 + $0x30] sm:$0xff]  }
 0xd47   : > { %v3370_v4 = vmul.f32 %v3366_v2, %v3366_v2  ;;  %4807 = vmatprep.mubr.msk.bf16.mxu0 %vm6070_vm0, %v6069_v42  ;;  %4792 = vmatpush3.bf16.msra.mxu0 %v5257_v60  ;;  %v5272_v60 = vld [vmem:[#allocation31 + $0x38] sm:$0xff]  }
 0xd48   : > { %4788 = vmatmul.mubr.msk.bf16.vlgmr.msra.gmra.mrb[52].mxu1 %vm2244_vm2, %v2976_v45  ;;  %v3354_v47 = vpop.permute.xlu1 %3353  ;;  %4793 = vmatprep.subr.bf16.mxu0 %v6069_v42 }
 0xd49   : > { %v3374_v5 = vadd.f32 %v3370_v4, %v3338_v16  ;;  %4812 = vmatpush3.bf16.msra.mxu1 %v5249_v3  ;;  %v3367_v6 = vsub.f32 %v3354_v47, %v3363_v57  ;;  %4827 = vmatprep.mubr.msk.bf16.mxu1 %vm6070_vm0, %v6069_v42 }
 0xd4a   : > { %4813 = vmatprep.subr.bf16.mxu1 %v6069_v42 }
 0xd4b   : > { %5309 = vrsqrt.f32 %v3374_v5  ;;  %v3371_v9 = vmul.f32 %v3367_v6, %v3367_v6  ;;  %vm3392_vm8 = vcmp.eq.f32.partialorder %v3374_v5, inf  ;;  %v3395_v34 = vand.u32 2147483648, %v3374_v5  ;;  %4794 = vmatpush3.bf16.msra.mxu0 %v5258_v38 }
 0xd4c   : > { %vm3394_vm9 = vcmp.eq.f32.partialorder %v3374_v5, 0.0  ;;  %4795 = vmatprep.subr.bf16.mxu0 %v6069_v42 }
 0xd4d   : > { %v3375_v10 = vadd.f32 %v3371_v9, %v3339_v39  ;;  %4814 = vmatpush3.bf16.msra.mxu1 %v5250_v7 }
 0xd4e   : > { %4815 = vmatprep.subr.bf16.mxu1 %v6069_v42 }
 0xd4f   : > { %v5308_v0 = vpop.eup %5307  ;;  %5311 = vrsqrt.f32 %v3375_v10  ;;  %vm3399_vm10 = vcmp.eq.f32.partialorder %v3375_v10, inf  ;;  %v3402_v51 = vand.u32 2147483648, %v3375_v10  ;;  %vm3401_vm11 = vcmp.eq.f32.partialorder %v3375_v10, 0.0  ;;  %4796 = vmatpush3.bf16.msra.mxu0 %v5259_v48  ;;  %v4421_v48 = vld [vmem:[%s7620_s25] ss:$0 sm:$0xff] }
 0xd50   : > { %v3377_v44 = vmul.f32 %v5308_v0, %v3372_v61  ;;  %4797 = vmatprep.subr.bf16.mxu0 %v6069_v42  ;;  %v2746_v0 = vmax.f32 %v7164_v19, 0.0 }
 0xd51   : > { %4816 = vmatpush3.bf16.msra.mxu1 %v5251_v11 }
 0xd52   : > { %4817 = vmatprep.subr.bf16.mxu1 %v6069_v42  ;;  %v3379_v22 = vsel %vm3378_vm6, %v3372_v61, %v3377_v44  ;;  %v5262_v61 = vld [vmem:[#allocation28 + $0x28] sm:$0xff]  }
 0xd53   : > { %v3382_v26 = vsel %vm3380_vm7, %v3381_v18, %v3379_v22 }
 0xd54   : > { %v7229_v29 = vadd.f32 %v7032_v24, %v3382_v26 }
 0xd55   : > { %v5310_v31 = vpop.eup %5309  ;;  %4818 = vmatpush3.bf16.msra.mxu1 %v5252_v15  ;;  %v4473_v15 = vpack.c.bf16 %v2746_v0, %v2746_v0 }
 0xd56   : > { %v3408_v33 = vsel %vm2244_vm2, %v7229_v29, -inf  ;;  %4819 = vmatprep.subr.bf16.mxu1 %v6069_v42  ;;  %v3391_v13 = vmul.f32 %v5310_v31, %v3374_v5 }
 0xd57   : > { %3409 = vmax.xlane.f32.xlu1 %v3408_v33 }
 0xd58   : > { %v3393_v35 = vsel %vm3392_vm8, %v3374_v5, %v3391_v13 }
 0xd59   : > { %v5312_v36 = vpop.eup %5311  ;;  %4820 = vmatpush3.bf16.msra.mxu1 %v5253_v32  ;;  %v3396_v43 = vsel %vm3394_vm9, %v3395_v34, %v3393_v35  ;;  %v3463_v34 = vsel %vm2277_vm3, %v4473_v15, 0  ;;  %v5275_v15 = vld [vmem:[#allocation29 + $0x10] sm:$0xff]  }
 0xd5a   : > { %4821 = vmatprep.subr.bf16.mxu1 %v6069_v42  ;;  %v7236_v24 = vadd.f32 %v7023_v21, %v3396_v43  ;;  %v3398_v49 = vmul.f32 %v5312_v36, %v3375_v10  ;;  %v5265_v43 = vld [vmem:[#allocation31] sm:$0xff]  }
 0xd5c   : > { %v3414_v23 = vsel %vm2244_vm2, %v7236_v24, -inf  ;;  %v3400_v27 = vsel %vm3399_vm10, %v3375_v10, %v3398_v49 }
 0xd5d   : > { %4822 = vmatpush3.bf16.msra.mxu1 %v5254_v37  ;;  %3415 = vmax.xlane.f32.xlu0 %v3414_v23  ;;  %v3403_v53 = vsel %vm3401_vm11, %v3402_v51, %v3400_v27 }
 0xd5e   : > { %4823 = vmatprep.subr.bf16.mxu1 %v6069_v42  ;;  %v3407_v17 = vadd.f32 %v7023_v21, %v3403_v53 }
 0xd60   : > { %v3417_v54 = vsel %vm2244_vm2, %v3407_v17, -inf }
 0xd61   : > { %4824 = vmatpush3.bf16.msra.mxu1 %v5255_v28  ;;  %3418 = vmax.xlane.f32.xlu1 %v3417_v54 }
 0xd62   : > { %4825 = vmatprep.subr.bf16.mxu1 %v6069_v42 }
 0xd65   : > { %4826 = vmatpush3.bf16.msra.mxu1 %v5256_v55 }
 0xd66   : > { %4837 = vmatprep.subr.bf16.mxu1 %v6069_v42 }
 0xd68   : > { %4828 = vmatmul.mubr.bf16.vlgmr.msra.gmra.mrb[56].mxu1 %v2865_v50  ;;  %v5260_v50 = vld [vmem:[#allocation28 + $0x18] sm:$0xff]  }
 0xd69   : > { %4838 = vmatpush3.bf16.msra.mxu1 %v3510_v30  ;;  %4839 = vmatprep.mubr.msk.bf16.mxu1 %vm6070_vm0, %v6069_v42 }
 0xd6a   : > { %4798 = vmatpush3.bf16.msra.mxu0 %v5260_v50 }
 0xd6b   : > { %v3413_v21 = vpop.xlane.xlu0 %3412  ;;  %4799 = vmatprep.subr.bf16.mxu0 %v6069_v42 }
 0xd6c   : > { %v3421_v56 = vsub.f32 %v7212_v46, %v3413_v21  ;;  %v5261_v46 = vld [vmem:[#allocation28 + $0x20] sm:$0xff]   ;;  %v5268_v21 = vld [vmem:[#allocation31 + $0x18] sm:$0xff]  }
 0xd6e   : > { %v3426_v57 = vmul.f32 1.442695, %v3421_v56  ;;  %4800 = vmatpush3.bf16.msra.mxu0 %v5261_v46 }
 0xd6f   : > { %4801 = vmatprep.subr.bf16.mxu0 %v6069_v42 }
 0xd70   : > { %5313 = vpow2.f32 %v3426_v57  ;;  %v5269_v57 = vld [vmem:[#allocation31 + $0x20] sm:$0xff]  }
 0xd72   : > { %4802 = vmatpush3.bf16.msra.mxu0 %v5262_v61  ;;  %v5273_v61 = vld [vmem:[#allocation29] sm:$0xff]  }
 0xd73   : > { %4803 = vmatprep.subr.bf16.mxu0 %v6069_v42 }
 0xd76   : > { %4804 = vmatpush3.bf16.msra.mxu0 %v5263_v41 }
 0xd77   : > { %4805 = vmatprep.subr.bf16.mxu0 %v6069_v42 }
 0xd7a   : > { %v7254_v58 = vpop.eup %5313  ;;  %4806 = vmatpush3.bf16.msra.mxu0 %v5264_v62 }
 0xd7b   : > { %v3435_v59 = vsel %vm2244_vm2, %v7254_v58, 0.0  ;;  %4831 = vmatprep.subr.bf16.mxu0 %v6069_v42 }
 0xd7c   : > { %3436 = vadd.xlane.f32.xlu1 %v3435_v59  ;;  %v5271_v59 = vld [vmem:[#allocation31 + $0x30] sm:$0xff]  }
 0xde4   : > { %v3410_v1 = vpop.xlane.xlu1 %3409 }
 0xde5   : > { %v3420_v2 = vsub.f32 %v7229_v29, %v3410_v1 }
 0xde7   : > { %v3424_v3 = vmul.f32 1.442695, %v3420_v2 }
 0xde9   : > { %5315 = vpow2.f32 %v3424_v3 }
 0xdea   : > { %v3416_v45 = vpop.xlane.xlu0 %3415 }
 0xdeb   : > { %v3422_v16 = vsub.f32 %v7236_v24, %v3416_v45 }
 0xded   : > { %v3428_v20 = vmul.f32 1.442695, %v3422_v16 }
 0xdee   : > { %v3419_v4 = vpop.xlane.xlu1 %3418 }
 0xdef   : > { %5317 = vpow2.f32 %v3428_v20  ;;  %v3423_v47 = vsub.f32 %v3407_v17, %v3419_v4  ;;  %v5266_v17 = vld [vmem:[#allocation31 + $0x8] sm:$0xff]  }
 0xdf1   : > { %v3430_v5 = vmul.f32 1.442695, %v3423_v47 }
 0xdf3   : > { %v5316_v6 = vpop.eup %5315  ;;  %5319 = vpow2.f32 %v3430_v5 }
 0xdf4   : > { %v3432_v7 = vsel %vm2244_vm2, %v5316_v6, 0.0 }
 0xdf5   : > { %3433 = vadd.xlane.f32.xlu0 %v3432_v7 }
 0xdf9   : > { %v5318_v39 = vpop.eup %5317 }
 0xdfa   : > { %v3438_v9 = vsel %vm2244_vm2, %v5318_v39, 0.0 }
 0xdfb   : > { %3439 = vadd.xlane.f32.xlu0 %v3438_v9 }
 0xdfd   : > { %v5320_v10 = vpop.eup %5319 }
 0xdfe   : > { %v3441_v11 = vsel %vm2244_vm2, %v5320_v10, 0.0 }
 0xdff   : > { %3442 = vadd.xlane.f32.xlu1 %v3441_v11 }
 0xe09   : > { %v3437_v24 = vpop.xlane.xlu1 %3436 }
 0xe0a   : > { %5321 = vrcp.f32 %v3437_v24 }
 0xe14   : > { %v5322_v52 = vpop.eup %5321 }
 0xe15   : > { %v3449_v28 = vmul.f32 %v5322_v52, %v7254_v58  ;;  %v5270_v58 = vld [vmem:[#allocation31 + $0x28] sm:$0xff]  }
 0xe19   : > { %v3022_v44 = vpop.f32.mrb[28].mxu0 }
 0xe1a   : > { %v4783_v18 = vpop.f32.mrb[29].mxu0 }
 0xe1b   : > { %v3025_v22 = vpop.f32.mrb[30].mxu0  ;;  %v3068_v26 = vpop.f32.mrb[52].mxu1  ;;  %v5277_v18 = vld [vmem:[#allocation29 + $0x20] sm:$0xff]  }
 0xe1c   : > { %v3074_v29 = vpack.c.bf16 %v3068_v26, %v3022_v44  ;;  %v4784_v31 = vpop.f32.mrb[31].mxu0  ;;  %v4789_v32 = vpop.f32.mrb[53].mxu1  ;;  %v5274_v44 = vld [vmem:[#allocation29 + $0x8] sm:$0xff]   ;;  %v5279_v26 = vld [vmem:[#allocation29 + $0x30] sm:$0xff]  }
 0xe1d   : > { %v3071_v33 = vpop.f32.mrb[54].mxu1  ;;  %v5278_v22 = vld [vmem:[#allocation29 + $0x28] sm:$0xff]  }
 0xe1e   : > { %v4790_v13 = vpop.f32.mrb[55].mxu1  ;;  %4808 = vmatmul.mubr.bf16.vlgmr.msra.gmra.mrb[32].mxu0 %v3074_v29 }
 0xe1f   : > { %4832 = vmatpush3.bf16.msra.mxu0 %v3463_v34  ;;  %4833 = vmatprep.mubr.msk.bf16.mxu0 %vm6070_vm0, %v6069_v42 }
 0xe20   : > { %4843 = vmatprep.subr.bf16.mxu0 %v5265_v43 }
 0xe3b   : > { %v3278_v35 = vpop.f32.mrb[56].mxu1 }
 0xe3c   : > { %v4829_v36 = vpop.f32.mrb[57].mxu1 }
 0xe3d   : > { %v3281_v19 = vpop.f32.mrb[58].mxu1 }
 0xe3e   : > { %v4830_v37 = vpop.f32.mrb[59].mxu1 }
 0xe82   : > { %v3434_v49 = vpop.xlane.xlu0 %3433 }
 0xe83   : > { %5323 = vrcp.f32 %v3434_v49 }
 0xe88   : > { %v3440_v51 = vpop.xlane.xlu0 %3439 }
 0xe89   : > { %5325 = vrcp.f32 %v3440_v51 }
 0xe8c   : > { %v3443_v23 = vpop.xlane.xlu1 %3442 }
 0xe8d   : > { %v5324_v27 = vpop.eup %5323  ;;  %5327 = vrcp.f32 %v3443_v23 }
 0xe8e   : > { %v3448_v53 = vmul.f32 %v5324_v27, %v5316_v6 }
 0xe90   : > { %v3452_v42 = vpack.c.bf16 %v3449_v28, %v3448_v53 }
 0xe92   : > { %4834 = vmatmul.mubr.msk.bf16.vlgmr.msra.gmra.mrb[36].mxu0 %vm2244_vm2, %v3452_v42 }
 0xe93   : > { %4844 = vmatpush3.bf16.msra.mxu0 %v5265_v43  ;;  %v5326_v54 = vpop.eup %5325 }
 0xe94   : > { %4845 = vmatprep.subr.bf16.mxu0 %v5266_v17  ;;  %v3450_v12 = vmul.f32 %v5326_v54, %v5318_v39 }
 0xe97   : > { %v5328_v55 = vpop.eup %5327  ;;  %4846 = vmatpush3.bf16.msra.mxu0 %v5266_v17 }
 0xe98   : > { %v3451_v30 = vmul.f32 %v5328_v55, %v5320_v10  ;;  %4847 = vmatprep.subr.bf16.mxu0 %v5267_v25 }
 0xe9a   : > { %v3453_v56 = vpack.c.bf16 %v3451_v30, %v3450_v12 }
 0xe9b   : > { %4848 = vmatpush3.bf16.msra.mxu0 %v5267_v25 }
 0xe9c   : > { %4840 = vmatmul.mubr.msk.bf16.vlgmr.msra.gmra.mrb[60].mxu1 %vm2244_vm2, %v3453_v56  ;;  %4849 = vmatprep.subr.bf16.mxu0 %v5268_v21 }
 0xe9f   : > { %4850 = vmatpush3.bf16.msra.mxu0 %v5268_v21 }
 0xea0   : > { %4851 = vmatprep.subr.bf16.mxu0 %v5269_v57 }
 0xea3   : > { %4852 = vmatpush3.bf16.msra.mxu0 %v5269_v57 }
 0xea4   : > { %4853 = vmatprep.subr.bf16.mxu0 %v5270_v58 }
 0xea7   : > { %4854 = vmatpush3.bf16.msra.mxu0 %v5270_v58 }
 0xea8   : > { %4855 = vmatprep.subr.bf16.mxu0 %v5271_v59 }
 0xeab   : > { %4856 = vmatpush3.bf16.msra.mxu0 %v5271_v59 }
 0xeac   : > { %4857 = vmatprep.subr.bf16.mxu0 %v5272_v60 }
 0xeaf   : > { %4858 = vmatpush3.bf16.msra.mxu0 %v5272_v60 }
 0xeb0   : > { %4863 = vmatprep.subr.bf16.mxu0 %v5273_v61 }
 0xef1   : > { %v3189_v38 = vpop.f32.mrb[32].mxu0 }
 0xef2   : > { %v3279_v50 = vadd.f32 %v3278_v35, %v3189_v38  ;;  %v4809_v46 = vpop.f32.mrb[33].mxu0 }
 0xef3   : > { %v3192_v41 = vpop.f32.mrb[34].mxu0 }
 0xef4   : > { %v3292_v62 = vadd.f32 %v4421_v48, %v3279_v50  ;;  %v3282_v1 = vadd.f32 %v3281_v19, %v3192_v41  ;;  %v4810_v2 = vpop.f32.mrb[35].mxu0 }
 0xef6   : > { %v3294_v3 = vmax.f32 %v3292_v62, 0.0  ;;  %v3293_v45 = vadd.f32 %v4421_v48, %v3282_v1 }
 0xef8   : > { %v3296_v16 = vadd.f32 %v3294_v3, %v7146_v40  ;;  %v3295_v20 = vmax.f32 %v3293_v45, 0.0 }
 0xefa   : > { %3806 = vst [vmem:[%s7283_s9] sm:$0xff] %v3296_v16  ;;  %v3297_v4 = vadd.f32 %v3295_v20, %v7150_v8  ;;  %v5276_v8 = vld [vmem:[#allocation29 + $0x18] sm:$0xff]  }
 0xefc   : > { %3807 = vst [vmem:[%s7283_s9 + $0x8] sm:$0xff] %v3297_v4 }
 0xf65   : > { %v3499_v47 = vpop.f32.mrb[36].mxu0 }
 0xf66   : > { %v4835_v5 = vpop.f32.mrb[37].mxu0 }
 0xf67   : > { %v3502_v6 = vpop.f32.mrb[38].mxu0 }
 0xf68   : > { %v3553_v7 = vpack.c.bf16 %v3502_v6, %v3499_v47  ;;  %v4836_v39 = vpop.f32.mrb[39].mxu0 }
 0xf6a   : > { %4859 = vmatprep.mubr.bf16.mxu0 %v3553_v7 }
 0xf6f   : > { %v3546_v9 = vpop.f32.mrb[60].mxu1 }
 0xf70   : > { %v4841_v10 = vpop.f32.mrb[61].mxu1 }
 0xf71   : > { %v3549_v11 = vpop.f32.mrb[62].mxu1 }
 0xf72   : > { %v3554_v0 = vpack.c.bf16 %v3549_v11, %v3546_v9  ;;  %v4842_v40 = vpop.f32.mrb[63].mxu1 }
 0xf74   : > { %4860 = vmatmul.mubr.bf16.vlgmr.msra.gmra.mrb[40].mxu0 %v3554_v0 }
 0xf75   : > { %4864 = vmatpush3.bf16.msra.mxu0 %v5273_v61  ;;  %4879 = vmatprep.mubr.bf16.mxu0 %v6915_v63  ;;  %v5280_v63 = vld [vmem:[#allocation29 + $0x38] sm:$0xff]  }
 0xf76   : > { %4865 = vmatprep.subr.bf16.mxu0 %v5274_v44 }
 0xf79   : > { %4866 = vmatpush3.bf16.msra.mxu0 %v5274_v44 }
 0xf7a   : > { %4867 = vmatprep.subr.bf16.mxu0 %v5275_v15 }
 0xf7d   : > { %4868 = vmatpush3.bf16.msra.mxu0 %v5275_v15 }
 0xf7e   : > { %4869 = vmatprep.subr.bf16.mxu0 %v5276_v8 }
 0xf81   : > { %4870 = vmatpush3.bf16.msra.mxu0 %v5276_v8 }
 0xf82   : > { %4871 = vmatprep.subr.bf16.mxu0 %v5277_v18 }
 0xf85   : > { %4872 = vmatpush3.bf16.msra.mxu0 %v5277_v18 }
 0xf86   : > { %4873 = vmatprep.subr.bf16.mxu0 %v5278_v22 }
 0xf89   : > { %4874 = vmatpush3.bf16.msra.mxu0 %v5278_v22 }
 0xf8a   : > { %4875 = vmatprep.subr.bf16.mxu0 %v5279_v26 }
 0xf8d   : > { %4876 = vmatpush3.bf16.msra.mxu0 %v5279_v26 }
 0xf8e   : > { %4877 = vmatprep.subr.bf16.mxu0 %v5280_v63 }
 0xf91   : > { %4878 = vmatpush3.bf16.msra.mxu0 %v5280_v63 }
 0xf94   : > { %4880 = vmatmul.mubr.bf16.vlgmr.msra.gmra.mrb[40].mxu0 %v6920_v14 }
 0xf95   : > { %5886 = shalt.err (!%p5883_p5)
}
 0xf96   : > { %s5887_s25 = scalar_lea.hbm %s7300_s26, 256  ;;  %s5891_s27 = scalar_lea.hbm %s7622_s4, 512 }
 0xf97   : > { %p5888_p9 = scmp.ne.s32.totalorder %s7300_s26, %s5887_s25  ;;  %p5892_p13 = scmp.lt.u32.totalorder %s7300_s26, %s7622_s4 }
 0xf98   : > { %p5893_p8 = scmp.lt.u32.totalorder %s5891_s27, %s5887_s25  ;;  %p5895_p7 = scmp.lt.u32.totalorder %s5887_s25, %s7300_s26 }
 0xf99   : > { %p5889_p6 = pnand %p5888_p9, %p7623_p11 }
 0xf9a   : > { %p5894_p1 = por %p5893_p8, %p5892_p13 }
 0xf9b   : > { %p5890_p0 = pneg %p5889_p6 }
 0xf9c   : > { %p5896_p12 = por %p5895_p7, %p5894_p1 }
 0xf9e   : > { %p5897_p4 = pnand %p5896_p12, %p5890_p0 }
 0xfa0   : > { %5900 = shalt.err (!%p5897_p4)
}
 0xfa1   : > { %s6073_s22 = smov 128   ;;  %s6074_s19 = smov 8  }
 0xfa2   : > { %4956 = dma.vmem_to_hbm [thread:$0]  (%p7623_p11), %s7291_s6, 256, %s7300_s26, %s3814_s11, %s6073_s22, %s6073_s22, %s6074_s19  }
 0xfa3   : > { %s7624_s17 = sld [smem:[#allocation84_spill]]  ;;  %s5901_s27 = scalar_lea.vmem %s7331_s7, 256 }
 0xfa4   : > { %p5902_p10 = scmp.ne.s32.totalorder %s7331_s7, %s5901_s27  ;;  %s6075_s3 = smov [#allocation35]  }
 0xfa5   : > { %s5905_s0 = sshll.u32 %s6075_s3, 4  ;;  %s5906_s0 = int_to_ptr.vmem [resolvable:$false] %s5905_s0 }
 0xfa6   : > { %p5903_p2 = pnand %p5902_p10, %p7623_p11  ;;  %s5907_s9 = scalar_lea.vmem %s5906_s0, 512 }
 0xfa7   : > { %p5908_p5 = scmp.lt.s32.totalorder %s7331_s7, %s5906_s0  ;;  %p5909_p9 = scmp.lt.s32.totalorder %s5907_s9, %s5901_s27 }
 0xfa8   : > { %p5904_p3 = pneg %p5903_p2 }
 0xfa9   : > { %s7338_s29 = scalar_lea.hbm %s7624_s17, %s4477_s20  ;;  %p5910_p6 = por %p5909_p9, %p5908_p5 }
 0xfab   : > { %p5911_p0 = pnand %p5910_p6, %p5904_p3 }
 0xfad   : > { %5914 = shalt.err (!%p5911_p0)
}
 0xfae   : > { %s5915_s6 = scalar_lea.hbm %s7338_s29, 256  ;;  %s5919_s8 = scalar_lea.hbm %s7624_s17, 512 }
 0xfaf   : > { %p5916_p13 = scmp.ne.s32.totalorder %s7338_s29, %s5915_s6  ;;  %p5920_p7 = scmp.lt.u32.totalorder %s7338_s29, %s7624_s17 }
 0xfb0   : > { %p5921_p12 = scmp.lt.u32.totalorder %s5919_s8, %s5915_s6  ;;  %p5923_p10 = scmp.lt.u32.totalorder %s5915_s6, %s7338_s29 }
 0xfb1   : > { %p5917_p8 = pnand %p5916_p13, %p7623_p11 }
 0xfb2   : > { %p5922_p4 = por %p5921_p12, %p5920_p7 }
 0xfb3   : > { %p5918_p1 = pneg %p5917_p8 }
 0xfb4   : > { %p5924_p2 = por %p5923_p10, %p5922_p4 }
 0xfb6   : > { %p5925_p3 = pnand %p5924_p2, %p5918_p1 }
 0xfb8   : > { %5928 = shalt.err (!%p5925_p3)
}
 0xfb9   : > { %4957 = dma.vmem_to_hbm [thread:$0]  (%p7623_p11), %s7331_s7, 256, %s7338_s29, %s3814_s11, %s6073_s22, %s6073_s22, %s6074_s19  }
 0xfba   : > { %s7625_s9 = sld [smem:[#allocation81_spill]]  ;;  %s7626_s28 = sshll.u32 %s6812_s15, 5  ;;  %v5329_v43 = vld [vmem:[%s6818_s16 + $0x10] sm:$0xff]  ;;  %v5330_v51 = vld [vmem:[%s6818_s16] sm:$0xff]  ;;  %v5331_v27 = vld [vmem:[%s6818_s16 + $0x18] sm:$0xff] }
 0xfbb   : > { %s1226_s6 = scalar_lea.vmem [#allocation32], %s7626_s28  ;;  %s4476_s7 = sshll.u32 %s7597_s1, 9  ;;  %v5332_v53 = vld [vmem:[%s6818_s16 + $0x8] sm:$0xff] }
 0xfbc   : > { %s3833_s20 = sshll.u32 %s1226_s6, 4  ;;  %s7627_s26 = sld [smem:[#allocation82_spill]]  ;;  %s7374_s20 = int_to_ptr.vmem [resolvable:$true] %s3833_s20 }
 0xfbd   : > { %s3809_s1 = scalar_lea.sflag [#allocation4], %s6812_s15  ;;  %s5929_s25 = scalar_lea.vmem %s7374_s20, 512 }
 0xfbe   : > { %p5930_p5 = scmp.ne.s32.totalorder %s7374_s20, %s5929_s25  ;;  %s6076_s0 = smov [#allocation32]  }
 0xfbf   : > { %s5933_s27 = sshll.u32 %s6076_s0, 4  ;;  %s5934_s27 = int_to_ptr.vmem [resolvable:$false] %s5933_s27 }
 0xfc0   : > { %v4442_v14 = vld [vmem:[%s7625_s9] ss:$0 sm:$0xff]  ;;  %p5931_p9 = pnand %p5930_p5, %p7623_p11  ;;  %s5935_s3 = scalar_lea.vmem %s5934_s27, 1024 }
 0xfc1   : > { %p5936_p0 = scmp.lt.s32.totalorder %s7374_s20, %s5934_s27  ;;  %p5937_p13 = scmp.lt.s32.totalorder %s5935_s3, %s5929_s25 }
 0xfc2   : > { %s7381_s8 = scalar_lea.hbm %s7627_s26, %s4476_s7  ;;  %p5932_p6 = pneg %p5931_p9 }
 0xfc3   : > { %p5938_p8 = por %p5937_p13, %p5936_p0 }
 0xfc5   : > { %p5939_p1 = pnand %p5938_p8, %p5932_p6 }
0x1067   : > { %v4881_v29 = vpop.f32.mrb[40].mxu0 }
0x1068   : > { %v3790_v31 = vadd.f32 %v4881_v29, %v4442_v14  ;;  %v3766_v32 = vpop.f32.mrb[41].mxu0 }
0x1069   : > { %v3788_v33 = vadd.f32 %v4442_v14, %v3766_v32  ;;  %v4882_v13 = vpop.f32.mrb[42].mxu0 }
0x106a   : > { %v3794_v34 = vmax.f32 %v3790_v31, 0.0  ;;  %v3791_v35 = vadd.f32 %v4882_v13, %v4442_v14  ;;  %v3769_v36 = vpop.f32.mrb[43].mxu0 }
0x106b   : > { %v3792_v19 = vmax.f32 %v3788_v33, 0.0  ;;  %v3789_v37 = vadd.f32 %v4442_v14, %v3769_v36 }
0x106c   : > { %v3798_v24 = vadd.f32 %v5329_v43, %v3794_v34  ;;  %v3795_v49 = vmax.f32 %v3791_v35, 0.0 }
0x106d   : > { %v3796_v52 = vadd.f32 %v5330_v51, %v3792_v19  ;;  %v3793_v23 = vmax.f32 %v3789_v37, 0.0 }
0x106e   : > { %3802 = vst [vmem:[%s1226_s6 + $0x10] sm:$0xff] %v3798_v24  ;;  %v3799_v28 = vadd.f32 %v5331_v27, %v3795_v49 }
0x106f   : > { %3800 = vst [vmem:[%s1226_s6] sm:$0xff] %v3796_v52  ;;  %v3797_v42 = vadd.f32 %v5332_v53, %v3793_v23 }
0x1070   : > { %3803 = vst [vmem:[%s1226_s6 + $0x18] sm:$0xff] %v3799_v28 }
0x1071   : > { %3801 = vst [vmem:[%s1226_s6 + $0x8] sm:$0xff] %v3797_v42 }
0x1072   : > { %5942 = shalt.err (!%p5939_p1)
}
0x1073   : > { %s5943_s16 = scalar_lea.hbm %s7381_s8, 512  ;;  %s5947_s6 = scalar_lea.hbm %s7627_s26, 1024 }
0x1074   : > { %p5944_p7 = scmp.ne.s32.totalorder %s7381_s8, %s5943_s16  ;;  %p5948_p10 = scmp.lt.u32.totalorder %s7381_s8, %s7627_s26 }
0x1075   : > { %p5949_p2 = scmp.lt.u32.totalorder %s5947_s6, %s5943_s16  ;;  %p5951_p5 = scmp.lt.u32.totalorder %s5943_s16, %s7381_s8 }
0x1076   : > { %p5945_p12 = pnand %p5944_p7, %p7623_p11 }
0x1077   : > { %p5950_p3 = por %p5949_p2, %p5948_p10 }
0x1078   : > { %p5946_p4 = pneg %p5945_p12 }
0x1079   : > { %p5952_p9 = por %p5951_p5, %p5950_p3 }
0x107b   : > { %p5953_p6 = pnand %p5952_p9, %p5946_p4 }
0x107d   : > { %5956 = shalt.err (!%p5953_p6)
}
0x107e   : > { %4955 = dma.vmem_to_hbm [thread:$0]  (%p7623_p11), %s7374_s20, 512, %s7381_s8, %s3809_s1, %s6073_s22, %s6073_s22, %s6074_s19  }
0x107f PF: > { %s7628_s29 = sld [smem:[#allocation49_spill]]  ;;  %s7629_s25 = sld [smem:[#allocation58_spill]] }
0x1080   : > { %p7631_p13 = scmp.ge.s32.totalorder %s6039_s30, 2 }
0x1085   : > { %s3880_s0 = sand.u32 1, %s7628_s29   ;;  %p7630_p0 = scmp.ne.s32.totalorder %s7629_s25, 0 }
0x1086   : > { %s3881_s27 = scalar_lea.sflag [#allocation4], %s3880_s0 }
0x1087   : > { %p5021_p8 = pnand %p7631_p13, %p7630_p0 }
0x1089   : > { %6018 = dma.done.wait (!%p5021_p8), %s3881_s27, 512  }
0x108a   : > { %6020 = vsyncadd (!%p5021_p8), %s3881_s27, 4294966784  ;;  %s7632_s5 = sadd.s32 4294967294, %s6039_s30  }
0x108b   : > { %s3889_s3 = sand.u32 1, %s7632_s5  }
0x108c   : > { %s3890_s16 = scalar_lea.sflag [#allocation34], %s3889_s3 }
0x108d   : > { %6022 = dma.done.wait (!%p5021_p8), %s3890_s16, 512  }
0x108e   : > { %6024 = vsyncadd (!%p5021_p8), %s3890_s16, 4294966784  ;;  %s7633_s30 = sld [smem:[#allocation54_spill]]  ;;  %s7634_s8 = sld [smem:[#allocation50_spill]] }
0x108f   : > { %s7635_s5 = sld [smem:[#allocation51_spill]]  ;;  %s7636_s9 = sld [smem:[#allocation55_spill]] }
0x1094   : > { %p58_p11 = scmp.ge.s32.totalorder %s7633_s30, 4  }
0x1096   :  { %60 = sbr.rel (!%p58_p11) target bundleno = 44 (0x2c), region = 304 }
0x109d   :  { %3904 = vsyncpa [#allocation3], 1 }
0x109e   :  { %3906 = vsyncpa [#allocation3 + $0x1], 1 }
0x109f   :  { %3907 = vsyncpa [#allocation6], 1 }
0x10a0   :  { %3909 = vsyncpa [#allocation6 + $0x1], 1 }
0x10a1   :  { %3910 = vsyncpa [#allocation9], 1 }
0x10a2   :  { %3912 = vsyncpa [#allocation9 + $0x1], 1 }
0x10a3   :  { %3913 = vsyncpa [#allocation12], 1 }
0x10a4   :  { %3914 = vsyncpa [#allocation15], 1 }
0x10a5   :  { %3915 = vsyncpa [#allocation18], 1 }
0x10a6   :  { %3916 = vsyncpa [#allocation21], 1 }
0x10a7   :  { %3917 = vsyncpa [#allocation24], 1 }
0x10a8   :  { %3918 = vsyncpa [#allocation27], 1 }
0x10a9   :  { %3919 = vsyncpa [#allocation30], 1 }
0x10aa   :  { %3920 = vsyncpa [#allocation4], 1 }
0x10ab   :  { %3922 = vsyncpa [#allocation4 + $0x1], 1 }
0x10ac   :  { %3923 = vsyncpa [#allocation34], 1 }
0x10ad   :  { %3925 = vsyncpa [#allocation34 + $0x1], 1 }

// kernel: tpu_custom_call.1
= control target key start
LH: loop header
LB: loop body
LE: loop exit
PB: predicated region body
PF: predicated region fallthrough
CT: control target
= control target key end

     0   :  { %s7430_s0 = inlined_call_operand.hbm [shape: f32[4,16,128], index: 0, kind: input, shape index: {}]   ;;  %s7431_s1 = inlined_call_operand.hbm [shape: f32[4,8,128], index: 1, kind: input, shape index: {}]   ;;  %s7432_s2 = inlined_call_operand.hbm [shape: f32[4,8,128], index: 2, kind: input, shape index: {}]   ;;  %s7433_s3 = inlined_call_operand.vmem [shape: f32[4,16,2], index: 3, kind: input, shape index: {}]   ;;  %s7434_s4 = inlined_call_operand.hbm [shape: f32[4,2,8], index: 4, kind: input, shape index: {}]   ;;  %s7435_s5 = inlined_call_operand.vmem [shape: f32[4,1,8], index: 5, kind: input, shape index: {}]   ;;  %s7436_s6 = inlined_call_operand.hbm [shape: bf16[128,256], index: 6, kind: input, shape index: {}]   ;;  %s7437_s7 = inlined_call_operand.hbm [shape: f32[1,256], index: 7, kind: input, shape index: {}]   ;;  %s7438_s8 = inlined_call_operand.hbm [shape: bf16[128,384], index: 8, kind: input, shape index: {}]   ;;  %s7439_s9 = inlined_call_operand.hbm [shape: f32[1,384], index: 9, kind: input, shape index: {}]   ;;  %s7440_s10 = inlined_call_operand.hbm [shape: bf16[128,128], index: 10, kind: input, shape index: {}]   ;;  %s7441_s11 = inlined_call_operand.hbm [shape: bf16[128,128], index: 11, kind: input, shape index: {}]   ;;  %s7442_s12 = inlined_call_operand.hbm [shape: f32[1,128], index: 12, kind: input, shape index: {}]   ;;  %s7443_s13 = inlined_call_operand.hbm [shape: bf16[128,128], index: 13, kind: input, shape index: {}]   ;;  %s7444_s14 = inlined_call_operand.hbm [shape: bf16[128,128], index: 14, kind: input, shape index: {}]   ;;  %s7445_s15 = inlined_call_operand.hbm [shape: f32[1,128], index: 15, kind: input, shape index: {}]   ;;  %s7446_s16 = inlined_call_operand.vmem [shape: bf16[128,256], index: 16, kind: input, shape index: {}]   ;;  %s7447_s17 = inlined_call_operand.vmem [shape: f32[1,256], index: 17, kind: input, shape index: {}]   ;;  %s7448_s18 = inlined_call_operand.hbm [shape: bf16[128,128], index: 18, kind: input, shape index: {}]   ;;  %s7449_s19 = inlined_call_operand.vmem [shape: f32[1,128], index: 19, kind: input, shape index: {}]   ;;  %s7450_s20 = inlined_call_operand.hbm [shape: bf16[128,128], index: 20, kind: input, shape index: {}]   ;;  %s7451_s21 = inlined_call_operand.hbm [shape: bf16[128,128], index: 21, kind: input, shape index: {}]   ;;  %s7452_s22 = inlined_call_operand.vmem [shape: f32[1,128], index: 22, kind: input, shape index: {}]   ;;  %s7453_s23 = inlined_call_operand.hbm [shape: bf16[128,128], index: 23, kind: input, shape index: {}]   ;;  %s7454_s24 = inlined_call_operand.hbm [shape: bf16[128,128], index: 24, kind: input, shape index: {}]   ;;  %s7455_s25 = inlined_call_operand.vmem [shape: f32[1,128], index: 25, kind: input, shape index: {}]   ;;  %s7456_s26 = inlined_call_operand.hbm [shape: f32[4,16,128], index: 26, kind: output, shape index: {0}]   ;;  %s7457_s27 = inlined_call_operand.hbm [shape: f32[4,8,128], index: 27, kind: output, shape index: {1}]   ;;  %s7458_s28 = inlined_call_operand.hbm [shape: f32[4,8,128], index: 28, kind: output, shape index: {2}]  }
   0x1   :  { %7520 = sst [smem:[#allocation60_spill]] %s7430_s0 }
   0x2   :  { %7521 = sst [smem:[#allocation61_spill]] %s7431_s1 }
   0x3   :  { %7522 = sst [smem:[#allocation62_spill]] %s7432_s2 }
   0x4   :  { %7523 = sst [smem:[#allocation63_spill]] %s7433_s3 }
   0x5   :  { %7524 = sst [smem:[#allocation64_spill]] %s7434_s4 }
   0x6   :  { %7525 = sst [smem:[#allocation65_spill]] %s7435_s5 }
   0x7   :  { %7526 = sst [smem:[#allocation66_spill]] %s7436_s6 }
   0x8   :  { %7527 = sst [smem:[#allocation67_spill]] %s7437_s7 }
   0x9   :  { %7528 = sst [smem:[#allocation68_spill]] %s7438_s8 }
   0xa   :  { %7529 = sst [smem:[#allocation69_spill]] %s7439_s9 }
   0xb   :  { %7530 = sst [smem:[#allocation70_spill]] %s7440_s10 }
   0xc   :  { %7531 = sst [smem:[#allocation71_spill]] %s7441_s11 }
   0xd   :  { %7532 = sst [smem:[#allocation72_spill]] %s7442_s12 }
   0xe   :  { %7533 = sst [smem:[#allocation73_spill]] %s7443_s13 }
   0xf   :  { %7534 = sst [smem:[#allocation74_spill]] %s7445_s15 }
  0x10   :  { %7535 = sst [smem:[#allocation75_spill]] %s7446_s16 }
  0x11   :  { %7536 = sst [smem:[#allocation76_spill]] %s7447_s17 }
  0x12   :  { %7537 = sst [smem:[#allocation77_spill]] %s7449_s19 }
  0x13   :  { %7538 = sst [smem:[#allocation78_spill]] %s7450_s20 }
  0x14   :  { %7539 = sst [smem:[#allocation79_spill]] %s7452_s22 }
  0x15   :  { %7540 = sst [smem:[#allocation80_spill]] %s7453_s23 }
  0x16   :  { %7541 = sst [smem:[#allocation81_spill]] %s7455_s25 }
  0x17   :  { %7542 = sst [smem:[#allocation82_spill]] %s7456_s26 }
  0x18   :  { %7543 = sst [smem:[#allocation83_spill]] %s7457_s27 }
  0x19   :  { %7544 = sst [smem:[#allocation84_spill]] %s7458_s28 }
  0x1a   :  { %34 = vsyncpa [#allocation3], 0 }
  0x1b   :  { %36 = vsyncpa [#allocation3 + $0x1], 0 }
  0x1c   :  { %37 = vsyncpa [#allocation6], 0 }
  0x1d   :  { %39 = vsyncpa [#allocation6 + $0x1], 0 }
  0x1e   :  { %40 = vsyncpa [#allocation9], 0 }
  0x1f   :  { %42 = vsyncpa [#allocation9 + $0x1], 0 }
  0x20   :  { %43 = vsyncpa [#allocation12], 0 }
  0x21   :  { %44 = vsyncpa [#allocation15], 0 }
  0x22   :  { %45 = vsyncpa [#allocation18], 0 }
  0x23   :  { %46 = vsyncpa [#allocation21], 0 }
  0x24   :  { %47 = vsyncpa [#allocation24], 0 }
  0x25   :  { %48 = vsyncpa [#allocation27], 0 }
  0x26   :  { %49 = vsyncpa [#allocation30], 0 }
  0x27   :  { %50 = vsyncpa [#allocation4], 0 }
  0x28   :  { %52 = vsyncpa [#allocation4 + $0x1], 0 }
  0x29   :  { %53 = vsyncpa [#allocation34], 0 }
  0x2a   :  { %55 = vsyncpa [#allocation34 + $0x1], 0  ;;  %s6222_s8 = smov 0   ;;  %s6224_s5 = smov 0  }
  0x2b   :  { %s6226_s9 = smov 0   ;;  %s6228_s30 = smov 0  }
  0x2c LB: > { %7545 = sst [smem:[#allocation49_spill]] %s6027_s8  ;;  %s6041_s3 = smov [#allocation10]   ;;  %s6039_s30 = sphi %s6228_s30, %s7633_s30   ;;  %s6035_s9 = sphi %s6226_s9, %s7636_s9   ;;  %s6031_s5 = sphi %s6224_s5, %s7635_s5   ;;  %s6027_s8 = sphi %s6222_s8, %s7634_s8  }
  0x2d   : > { %7546 = sst [smem:[#allocation50_spill]] %s6031_s5  ;;  %s732_s6 = sshll.u32 %s6041_s3, 4  ;;  %s6248_s6 = int_to_ptr.vmem [resolvable:$true] %s732_s6 }
  0x2e   : > { %7547 = sst [smem:[#allocation51_spill]] %s6035_s9  ;;  %s6243_s10 = sadd.s32 4294967295, %s6039_s30  }
  0x2f   : > { %7548 = sst [smem:[#allocation52_spill]] %s6243_s10  ;;  %p4229_p0 = scmp.ge.s32.totalorder %s6039_s30, 1 }
  0x30   : > { %p7480_p1 = scmp.eq.s32.totalorder %s6243_s10, 0  ;;  %p720_p2 = scmp.lt.s32.totalorder %s6039_s30, 3 }
  0x31   : > { %s6042_s11 = smov [#allocation11]   ;;  %s6043_s7 = smov [#allocation14]  }
  0x32   : > { %p6250_p3 = pnand %p4229_p0, %p720_p2  ;;  %s746_s29 = sshll.u32 %s6042_s11, 4  ;;  %s6263_s29 = int_to_ptr.vmem [resolvable:$true] %s746_s29 }
  0x33   : > { %s770_s12 = sshll.u32 %s6043_s7, 4  ;;  %s7552_s3 = sld [smem:[#allocation66_spill]]  ;;  %s6265_s12 = int_to_ptr.vmem [resolvable:$true] %s770_s12 }
  0x34   : > { %s7549_s0 = scalar_select %p6250_p3, 1, 0 }
  0x35   : > { %p4961_p5 = pneg %p6250_p3 }
  0x36   : > { %7550 = sst [smem:[#allocation53_spill]] %s7549_s0 }
  0x37   : > { %p6259_p6 = pnand %p4961_p5, %p7480_p1 }
  0x39   : > { %s7551_s2 = scalar_select %p6259_p6, 1, 0 }
  0x3a   : > { %s5333_s26 = scalar_lea.hbm %s7552_s3, 2048  ;;  %p6275_p8 = pneg %p6259_p6 }
  0x3b   : > { %p5334_p7 = scmp.ne.s32.totalorder %s7552_s3, %s5333_s26  ;;  %p5340_p11 = scmp.lt.u32.totalorder %s5333_s26, %s7552_s3 }
  0x3c   : > { %s7553_s11 = scalar_select %p6275_p8, 1, 0 }
  0x3d   : > { %p5336_p9 = pnand %p6275_p8, %p5334_p7 }
  0x3f   : > { %p5337_p10 = pneg %p5336_p9 }
  0x41   : > { %p5342_p12 = pnand %p5340_p11, %p5337_p10 }
  0x43   : > { %5345 = shalt.err (!%p5342_p12)
}
  0x44   : > { %s5346_s25 = scalar_lea.vmem %s6248_s6, 2048  ;;  %p5354_p5 = scmp.lt.s32.totalorder %s6248_s6, %s6248_s6 }
  0x45   : > { %p5347_p13 = scmp.ne.s32.totalorder %s6248_s6, %s5346_s25  ;;  %p5355_p4 = scmp.lt.s32.totalorder %s5346_s25, %s5346_s25 }
  0x47   : > { %p5349_p0 = pnand %p5347_p13, %p6275_p8  ;;  %p5356_p7 = por %p5355_p4, %p5354_p5 }
  0x49   : > { %p5350_p2 = pneg %p5349_p0 }
  0x4b   : > { %p5357_p9 = pnand %p5356_p7, %p5350_p2 }
  0x4d   : > { %5360 = shalt.err (!%p5357_p9)
}
  0x4e   : > { %s7475_s28 = smov 128   ;;  %s7477_s26 = smov 8  }
  0x4f   : > { %4964 = dma.hbm_to_vmem [thread:$0]  (!%p6259_p6), %s7552_s3, 2048, %s6248_s6, [#allocation9], %s7475_s28, %s7475_s28, %s7477_s26  }
  0x50   : > { %s7554_s22 = sld [smem:[#allocation67_spill]] }
  0x56   : > { %s5361_s25 = scalar_lea.hbm %s7554_s22, 32 }
  0x57   : > { %p5362_p4 = scmp.ne.s32.totalorder %s7554_s22, %s5361_s25  ;;  %p5368_p12 = scmp.lt.u32.totalorder %s5361_s25, %s7554_s22 }
  0x59   : > { %p5364_p10 = pnand %p5362_p4, %p6275_p8 }
  0x5b   : > { %p5365_p11 = pneg %p5364_p10 }
  0x5d   : > { %p5370_p13 = pnand %p5368_p12, %p5365_p11 }
  0x5f   : > { %5373 = shalt.err (!%p5370_p13)
}
  0x60   : > { %s5374_s6 = scalar_lea.vmem %s6263_s29, 32  ;;  %p5382_p7 = scmp.lt.s32.totalorder %s6263_s29, %s6263_s29 }
  0x61   : > { %p5375_p0 = scmp.ne.s32.totalorder %s6263_s29, %s5374_s6  ;;  %p5383_p9 = scmp.lt.s32.totalorder %s5374_s6, %s5374_s6 }
  0x63   : > { %p5377_p2 = pnand %p5375_p0, %p6275_p8  ;;  %p5384_p4 = por %p5383_p9, %p5382_p7 }
  0x65   : > { %p5378_p5 = pneg %p5377_p2 }
  0x67   : > { %p5385_p10 = pnand %p5384_p4, %p5378_p5 }
  0x69   : > { %5388 = shalt.err (!%p5385_p10)
}
  0x6a   : > { %4967 = dma.hbm_to_vmem [thread:$0]  (!%p6259_p6), %s7554_s22, 32, %s6263_s29, [#allocation12]  }
  0x6b   : > { %s7555_s27 = sld [smem:[#allocation69_spill]] }
  0x71   : > { %s5389_s1 = scalar_lea.hbm %s7555_s27, 48 }
  0x72   : > { %p5390_p11 = scmp.ne.s32.totalorder %s7555_s27, %s5389_s1  ;;  %p5396_p0 = scmp.lt.u32.totalorder %s5389_s1, %s7555_s27 }
  0x74   : > { %p5392_p12 = pnand %p5390_p11, %p6275_p8 }
  0x76   : > { %p5393_p13 = pneg %p5392_p12 }
  0x78   : > { %p5398_p2 = pnand %p5396_p0, %p5393_p13 }
  0x7a   : > { %5401 = shalt.err (!%p5398_p2)
}
  0x7b   : > { %s5402_s29 = scalar_lea.vmem %s6265_s12, 48  ;;  %s5409_s16 = scalar_lea.vmem %s6265_s12, 64 }
  0x7c   : > { %p5403_p5 = scmp.ne.s32.totalorder %s6265_s12, %s5402_s29  ;;  %p5410_p4 = scmp.lt.s32.totalorder %s6265_s12, %s6265_s12 }
  0x7d   : > { %p5411_p10 = scmp.lt.s32.totalorder %s5409_s16, %s5402_s29 }
  0x7e   : > { %p5405_p7 = pnand %p5403_p5, %p6275_p8 }
  0x7f   : > { %p5412_p11 = por %p5411_p10, %p5410_p4 }
  0x80   : > { %p5406_p9 = pneg %p5405_p7 }
  0x82   : > { %p5413_p12 = pnand %p5412_p11, %p5406_p9 }
  0x84   : > { %5416 = shalt.err (!%p5413_p12)
}
  0x85   : > { %4973 = dma.hbm_to_vmem [thread:$0]  (!%p6259_p6), %s7555_s27, 48, %s6265_s12, [#allocation15]  }
  0x86   : > { %s6046_s0 = smov [#allocation17]   ;;  %s6047_s4 = smov [#allocation20]  }
  0x87   : > { %s793_s1 = sshll.u32 %s6046_s0, 4  ;;  %s817_s7 = sshll.u32 %s6047_s4, 4  ;;  %s794_s1 = int_to_ptr.vmem [resolvable:$true] %s793_s1  ;;  %s818_s7 = int_to_ptr.vmem [resolvable:$true] %s817_s7 }
  0x88   : > { %s7556_s28 = sld [smem:[#allocation71_spill]] }
  0x8e   : > { %s5417_s29 = scalar_lea.hbm %s7556_s28, 1024 }
  0x8f   : > { %p5418_p13 = scmp.ne.s32.totalorder %s7556_s28, %s5417_s29  ;;  %p5424_p5 = scmp.lt.u32.totalorder %s5417_s29, %s7556_s28 }
  0x91   : > { %p5420_p0 = pnand %p5418_p13, %p6275_p8 }
  0x93   : > { %p5421_p2 = pneg %p5420_p0 }
  0x95   : > { %p5426_p7 = pnand %p5424_p5, %p5421_p2 }
  0x97   : > { %5429 = shalt.err (!%p5426_p7)
}
  0x98   : > { %s5430_s12 = scalar_lea.vmem %s794_s1, 1024  ;;  %p5438_p11 = scmp.lt.s32.totalorder %s794_s1, %s794_s1 }
  0x99   : > { %p5431_p9 = scmp.ne.s32.totalorder %s794_s1, %s5430_s12  ;;  %p5439_p12 = scmp.lt.s32.totalorder %s5430_s12, %s5430_s12 }
  0x9b   : > { %p5433_p4 = pnand %p5431_p9, %p6275_p8  ;;  %p5440_p1 = por %p5439_p12, %p5438_p11 }
  0x9d   : > { %p5434_p10 = pneg %p5433_p4 }
  0x9f   : > { %p5441_p3 = pnand %p5440_p1, %p5434_p10 }
  0xa1   : > { %5444 = shalt.err (!%p5441_p3)
}
  0xa2   : > { %s7485_s26 = smov 64   ;;  %s7487_s19 = smov 4  }
  0xa3   : > { %4979 = dma.hbm_to_vmem [thread:$0]  (!%p6259_p6), %s7556_s28, 1024, %s794_s1, [#allocation18], %s7485_s26, %s7485_s26, %s7487_s19  }
  0xa4   : > { %s7557_s13 = sld [smem:[#allocation73_spill]] }
  0xaa   : > { %s5445_s6 = scalar_lea.hbm %s7557_s13, 1024 }
  0xab   : > { %p5446_p1 = scmp.ne.s32.totalorder %s7557_s13, %s5445_s6  ;;  %p5452_p0 = scmp.lt.u32.totalorder %s5445_s6, %s7557_s13 }
  0xad   : > { %p5448_p3 = pnand %p5446_p1, %p6275_p8 }
  0xaf   : > { %p5449_p13 = pneg %p5448_p3 }
  0xb1   : > { %p5454_p2 = pnand %p5452_p0, %p5449_p13 }
  0xb3   : > { %5457 = shalt.err (!%p5454_p2)
}
  0xb4   : > { %s5458_s3 = scalar_lea.vmem %s818_s7, 1024  ;;  %p5466_p4 = scmp.lt.s32.totalorder %s818_s7, %s818_s7 }
  0xb5   : > { %p5459_p5 = scmp.ne.s32.totalorder %s818_s7, %s5458_s3  ;;  %p5467_p10 = scmp.lt.s32.totalorder %s5458_s3, %s5458_s3 }
  0xb7   : > { %p5461_p7 = pnand %p5459_p5, %p6275_p8  ;;  %p5468_p11 = por %p5467_p10, %p5466_p4 }
  0xb9   : > { %p5462_p9 = pneg %p5461_p7 }
  0xbb   : > { %p5469_p12 = pnand %p5468_p11, %p5462_p9 }
  0xbd   : > { %5472 = shalt.err (!%p5469_p12)
}
  0xbe   : > { %4985 = dma.hbm_to_vmem [thread:$0]  (!%p6259_p6), %s7557_s13, 1024, %s818_s7, [#allocation21], %s7485_s26, %s7485_s26, %s7487_s19  }
  0xbf   : > { %s6050_s4 = smov [#allocation23]   ;;  %s6051_s6 = smov [#allocation26]  }
  0xc0   : > { %s844_s25 = sshll.u32 %s6050_s4, 4  ;;  %s876_s29 = sshll.u32 %s6051_s6, 4  ;;  %s845_s25 = int_to_ptr.vmem [resolvable:$true] %s844_s25  ;;  %s877_s29 = int_to_ptr.vmem [resolvable:$true] %s876_s29 }
  0xc1   : > { %s7558_s15 = sld [smem:[#allocation74_spill]] }
  0xc7   : > { %s5473_s12 = scalar_lea.hbm %s7558_s15, 16 }
  0xc8   : > { %p5474_p1 = scmp.ne.s32.totalorder %s7558_s15, %s5473_s12  ;;  %p5480_p0 = scmp.lt.u32.totalorder %s5473_s12, %s7558_s15 }
  0xca   : > { %p5476_p3 = pnand %p5474_p1, %p6275_p8 }
  0xcc   : > { %p5477_p13 = pneg %p5476_p3 }
  0xce   : > { %p5482_p2 = pnand %p5480_p0, %p5477_p13 }
  0xd0   : > { %5485 = shalt.err (!%p5482_p2)
}
  0xd1   : > { %s5486_s7 = scalar_lea.vmem %s845_s25, 16  ;;  %s5493_s0 = scalar_lea.vmem %s845_s25, 32 }
  0xd2   : > { %p5487_p5 = scmp.ne.s32.totalorder %s845_s25, %s5486_s7  ;;  %p5494_p4 = scmp.lt.s32.totalorder %s845_s25, %s845_s25 }
  0xd3   : > { %p5495_p10 = scmp.lt.s32.totalorder %s5493_s0, %s5486_s7 }
  0xd4   : > { %p5489_p7 = pnand %p5487_p5, %p6275_p8 }
  0xd5   : > { %p5496_p11 = por %p5495_p10, %p5494_p4 }
  0xd6   : > { %p5490_p9 = pneg %p5489_p7 }
  0xd8   : > { %p5497_p12 = pnand %p5496_p11, %p5490_p9 }
  0xda   : > { %5500 = shalt.err (!%p5497_p12)
}
  0xdb   : > { %4991 = dma.hbm_to_vmem [thread:$0]  (!%p6259_p6), %s7558_s15, 16, %s845_s25, [#allocation24]  }
  0xdc   : > { %s7559_s20 = sld [smem:[#allocation78_spill]] }
  0xe2   : > { %s5501_s16 = scalar_lea.hbm %s7559_s20, 1024 }
  0xe3   : > { %p5502_p1 = scmp.ne.s32.totalorder %s7559_s20, %s5501_s16  ;;  %p5508_p0 = scmp.lt.u32.totalorder %s5501_s16, %s7559_s20 }
  0xe5   : > { %p5504_p3 = pnand %p5502_p1, %p6275_p8 }
  0xe7   : > { %p5505_p13 = pneg %p5504_p3 }
  0xe9   : > { %p5510_p2 = pnand %p5508_p0, %p5505_p13 }
  0xeb   : > { %5513 = shalt.err (!%p5510_p2)
}
  0xec   : > { %s5514_s7 = scalar_lea.vmem %s877_s29, 1024  ;;  %p5522_p4 = scmp.lt.s32.totalorder %s877_s29, %s877_s29 }
  0xed   : > { %p5515_p5 = scmp.ne.s32.totalorder %s877_s29, %s5514_s7  ;;  %p5523_p10 = scmp.lt.s32.totalorder %s5514_s7, %s5514_s7 }
  0xef   : > { %p5517_p7 = pnand %p5515_p5, %p6275_p8  ;;  %p5524_p11 = por %p5523_p10, %p5522_p4 }
  0xf1   : > { %p5518_p9 = pneg %p5517_p7 }
  0xf3   : > { %p5525_p12 = pnand %p5524_p11, %p5518_p9 }
  0xf5   : > { %5528 = shalt.err (!%p5525_p12)
}
  0xf6   : > { %4997 = dma.hbm_to_vmem [thread:$0]  (!%p6259_p6), %s7559_s20, 1024, %s877_s29, [#allocation27], %s7485_s26, %s7485_s26, %s7487_s19  }
  0xf7   : > { %s6052_s22 = smov [#allocation29]   ;;  %s7560_s23 = sld [smem:[#allocation80_spill]] }
  0xf8   : > { %s905_s4 = sshll.u32 %s6052_s22, 4  ;;  %s906_s4 = int_to_ptr.vmem [resolvable:$true] %s905_s4 }
  0xfd   : > { %s5529_s16 = scalar_lea.hbm %s7560_s23, 1024 }
  0xfe   : > { %p5530_p1 = scmp.ne.s32.totalorder %s7560_s23, %s5529_s16  ;;  %p5536_p0 = scmp.lt.u32.totalorder %s5529_s16, %s7560_s23 }
 0x100   : > { %p5532_p3 = pnand %p5530_p1, %p6275_p8 }
 0x102   : > { %p5533_p13 = pneg %p5532_p3 }
 0x104   : > { %p5538_p2 = pnand %p5536_p0, %p5533_p13 }
 0x106   : > { %5541 = shalt.err (!%p5538_p2)
}
 0x107   : > { %s5542_s29 = scalar_lea.vmem %s906_s4, 1024  ;;  %p5550_p4 = scmp.lt.s32.totalorder %s906_s4, %s906_s4 }
 0x108   : > { %p5543_p5 = scmp.ne.s32.totalorder %s906_s4, %s5542_s29  ;;  %p5551_p10 = scmp.lt.s32.totalorder %s5542_s29, %s5542_s29 }
 0x10a   : > { %p5545_p7 = pnand %p5543_p5, %p6275_p8  ;;  %p5552_p11 = por %p5551_p10, %p5550_p4 }
 0x10c   : > { %p5546_p9 = pneg %p5545_p7 }
 0x10e   : > { %p5553_p12 = pnand %p5552_p11, %p5546_p9 }
 0x110   : > { %5556 = shalt.err (!%p5553_p12)
}
 0x111   : > { %5003 = dma.hbm_to_vmem [thread:$0]  (!%p6259_p6), %s7560_s23, 1024, %s906_s4, [#allocation30], %s7485_s26, %s7485_s26, %s7487_s19  }
 0x112   : > { %s7484_s0 = sadd.s32 4294967294, %s6039_s30   ;;  %s6450_s22 = sadd.s32 1, %s6039_s30  }
 0x113   : > { %7561 = sst [smem:[#allocation54_spill]] %s6450_s22  ;;  %s65_s27 = ssub.s32 %s6039_s30, %s6450_s22 }
 0x114   : > { %s68_s6 = sadd.s32 1, %s6035_s9  ;;  %p66_p1 = scmp.eq.s32.totalorder %s65_s27, 0 }
 0x115   : > { %p75_p3 = scmp.ne.s32.totalorder %s6035_s9, %s6031_s5  ;;  %p76_p13 = scmp.eq.s32.totalorder %s6039_s30, 0 }
 0x116   : > { %p81_p0 = scmp.ne.s32.totalorder %s6031_s5, %s6027_s8  ;;  %p7563_p5 = scmp.eq.s32.totalorder %s6243_s10, 0 }
 0x117   : > { %s6461_s16 = scalar_select %p66_p1, %s6035_s9, %s68_s6  }
 0x118   : > { %p77_p2 = por %p76_p13, %p75_p3  ;;  %p6465_p7 = por %p7563_p5, %p81_p0 }
 0x119   : > { %7562 = sst [smem:[#allocation55_spill]] %s6461_s16  ;;  %p655_p9 = scmp.eq.s32.totalorder %s6243_s10, 1 }
 0x11a   : > { %s7564_s4 = scalar_select %p6465_p7, 1, 0 }
 0x11b   : > { %p661_p4 = scmp.eq.s32.totalorder %s7484_s0, 1  ;;  %p5045_p10 = scmp.lt.s32.totalorder %s6039_s30, 2 }
 0x11c   : > { %7565 = sst [smem:[#allocation56_spill]] %s7564_s4  ;;  %s6474_s17 = sand.u32 1, %s6035_s9  }
 0x11d   : > { %p6476_p11 = por %p655_p9, %p75_p3  ;;  %p6480_p12 = por %p661_p4, %p81_p0 }
 0x11e   : > { %p6484_p1 = pnand %p5045_p10, %p77_p2  ;;  %s7492_s29 = sand.u32 1, %s6039_s30  }
 0x11f   : > { %s7566_s12 = scalar_select %p6476_p11, 1, 0 }
 0x120   : > { %s7568_s3 = scalar_select %p6480_p12, 1, 0 }
 0x121   : > { %7567 = sst [smem:[#allocation57_spill]] %s7566_s12  ;;  %s7489_s7 = sshll.u32 %s6474_s17, 4 }
 0x122   : > { %7569 = sst [smem:[#allocation58_spill]] %s7568_s3  ;;  %s7490_s25 = sshll.u32 %s6039_s30, 8 }
 0x123   : > { %s7570_s1 = scalar_select %p6484_p1, 1, 0 }
 0x124   : > { %s961_s27 = scalar_lea.vmem [#allocation5], %s7489_s7  ;;  %s7571_s19 = sld [smem:[#allocation61_spill]] }
 0x125   : > { %s968_s6 = sshll.u32 %s961_s27, 4  ;;  %s6504_s15 = scalar_lea.sflag [#allocation6], %s7492_s29  ;;  %s6500_s6 = int_to_ptr.vmem [resolvable:$true] %s968_s6 }
 0x126   : > { %7572 = sst [smem:[#allocation59_spill]] %s6504_s15  ;;  %p6510_p13 = pneg %p6484_p1 }
 0x128   : > { %s7573_s27 = scalar_select %p6510_p13, 1, 0 }
 0x12a   : > { %s6498_s13 = scalar_lea.hbm %s7571_s19, %s7490_s25  ;;  %s5562_s7 = scalar_lea.hbm %s7571_s19, 512 }
 0x12b   : > { %s5557_s20 = scalar_lea.hbm %s6498_s13, 256  ;;  %p5563_p5 = scmp.lt.u32.totalorder %s6498_s13, %s7571_s19 }
 0x12c   : > { %p5558_p3 = scmp.ne.s32.totalorder %s6498_s13, %s5557_s20  ;;  %p5564_p9 = scmp.lt.u32.totalorder %s5562_s7, %s5557_s20 }
 0x12d   : > { %p5566_p10 = scmp.lt.u32.totalorder %s5557_s20, %s6498_s13 }
 0x12e   : > { %p5560_p0 = pnand %p6510_p13, %p5558_p3  ;;  %p5565_p4 = por %p5564_p9, %p5563_p5 }
 0x130   : > { %p5561_p2 = pneg %p5560_p0  ;;  %p5567_p12 = por %p5566_p10, %p5565_p4 }
 0x132   : > { %p5568_p11 = pnand %p5567_p12, %p5561_p2 }
 0x134   : > { %5571 = shalt.err (!%p5568_p11)
}
 0x135   : > { %s5572_s29 = scalar_lea.vmem %s6500_s6, 256  ;;  %s6053_s26 = smov [#allocation5]  }
 0x136   : > { %p5573_p3 = scmp.ne.s32.totalorder %s6500_s6, %s5572_s29  ;;  %s5577_s0 = sshll.u32 %s6053_s26, 4  ;;  %s5578_s0 = int_to_ptr.vmem [resolvable:$false] %s5577_s0 }
 0x137   : > { %s5579_s23 = scalar_lea.vmem %s5578_s0, 512  ;;  %p5580_p6 = scmp.lt.s32.totalorder %s6500_s6, %s5578_s0 }
 0x138   : > { %p5575_p0 = pnand %p5573_p3, %p6510_p13  ;;  %p5581_p8 = scmp.lt.s32.totalorder %s5579_s23, %s5572_s29 }
 0x13a   : > { %p5576_p7 = pneg %p5575_p0  ;;  %p5582_p5 = por %p5581_p8, %p5580_p6 }
 0x13c   : > { %p5583_p9 = pnand %p5582_p5, %p5576_p7 }
 0x13e   : > { %5586 = shalt.err (!%p5583_p9)
}
 0x13f   : > { %s7574_s20 = smov 8   ;;  %s7575_s7 = smov 128  }
 0x140   : > { %5013 = dma.hbm_to_vmem [thread:$0]  (!%p6484_p1), %s6498_s13, 256, %s6500_s6, %s6504_s15, %s7575_s7, %s7575_s7, %s7574_s20  }
 0x141   : > { %s7576_s25 = sshll.u32 %s6039_s30, 8  ;;  %s7577_s0 = sld [smem:[#allocation62_spill]] }
 0x142   : > { %s7578_s23 = sshll.u32 %s6474_s17, 4  ;;  %s6054_s9 = smov [#allocation13]  }
 0x143   : > { %s982_s28 = scalar_lea.vmem [#allocation7], %s7578_s23  ;;  %s756_s22 = sshll.u32 %s6054_s9, 4  ;;  %s757_s22 = int_to_ptr.vmem [resolvable:$true] %s756_s22 }
 0x144   : > { %s989_s16 = sshll.u32 %s982_s28, 4  ;;  %s7579_s12 = sld [smem:[#allocation68_spill]]  ;;  %s6546_s16 = int_to_ptr.vmem [resolvable:$true] %s989_s16 }
 0x145   : > { %p7580_p8 = scmp.ne.s32.totalorder %s7553_s11, 0 }
 0x147   : > { %s6542_s29 = scalar_lea.hbm %s7577_s0, %s7576_s25 }
 0x14a   : > { %s5587_s10 = scalar_lea.hbm %s7579_s12, 3072 }
 0x14b   : > { %p5588_p6 = scmp.ne.s32.totalorder %s7579_s12, %s5587_s10  ;;  %p5594_p12 = scmp.lt.u32.totalorder %s5587_s10, %s7579_s12 }
 0x14d   : > { %p5590_p7 = pnand %p5588_p6, %p7580_p8 }
 0x14f   : > { %p5591_p11 = pneg %p5590_p7 }
 0x151   : > { %p5596_p2 = pnand %p5594_p12, %p5591_p11 }
 0x153   : > { %5599 = shalt.err (!%p5596_p2)
}
 0x154   : > { %s5600_s28 = scalar_lea.vmem %s757_s22, 3072  ;;  %p5608_p0 = scmp.lt.s32.totalorder %s757_s22, %s757_s22 }
 0x155   : > { %p5601_p4 = scmp.ne.s32.totalorder %s757_s22, %s5600_s28  ;;  %p5609_p5 = scmp.lt.s32.totalorder %s5600_s28, %s5600_s28 }
 0x157   : > { %p5603_p10 = pnand %p5601_p4, %p7580_p8  ;;  %p5610_p9 = por %p5609_p5, %p5608_p0 }
 0x159   : > { %p5604_p3 = pneg %p5603_p10 }
 0x15b   : > { %p5611_p1 = pnand %p5610_p9, %p5604_p3 }
 0x15d   : > { %5614 = shalt.err (!%p5611_p1)
}
 0x15e   : > { %s6055_s8 = smov 192   ;;  %s6056_s9 = smov 12  }
 0x15f   : > { %p7581_p6 = scmp.ne.s32.totalorder %s7551_s2, 0  ;;  %s6057_s3 = smov [#allocation16]  }
 0x160   : > { %s780_s25 = sshll.u32 %s6057_s3, 4  ;;  %s6058_s26 = smov [#allocation19]   ;;  %s781_s25 = int_to_ptr.vmem [resolvable:$true] %s780_s25 }
 0x161   : > { %4970 = dma.hbm_to_vmem [thread:$0]  (!%p7581_p6), %s7579_s12, 3072, %s757_s22, [#allocation12], %s6055_s8, %s6055_s8, %s6056_s9  }
 0x162   : > { %s807_s23 = sshll.u32 %s6058_s26, 4  ;;  %s7582_s6 = sld [smem:[#allocation70_spill]]  ;;  %s6566_s23 = int_to_ptr.vmem [resolvable:$true] %s807_s23 }
 0x168   : > { %s5615_s28 = scalar_lea.hbm %s7582_s6, 1024 }
 0x169   : > { %p5616_p1 = scmp.ne.s32.totalorder %s7582_s6, %s5615_s28  ;;  %p5622_p12 = scmp.lt.u32.totalorder %s5615_s28, %s7582_s6 }
 0x16b   : > { %p5618_p7 = pnand %p5616_p1, %p7580_p8 }
 0x16d   : > { %p5619_p11 = pneg %p5618_p7 }
 0x16f   : > { %p5624_p2 = pnand %p5622_p12, %p5619_p11 }
 0x171   : > { %5627 = shalt.err (!%p5624_p2)
}
 0x172   : > { %s5628_s8 = scalar_lea.vmem %s781_s25, 1024  ;;  %p5636_p0 = scmp.lt.s32.totalorder %s781_s25, %s781_s25 }
 0x173   : > { %p5629_p4 = scmp.ne.s32.totalorder %s781_s25, %s5628_s8  ;;  %p5637_p5 = scmp.lt.s32.totalorder %s5628_s8, %s5628_s8 }
 0x175   : > { %p5631_p10 = pnand %p5629_p4, %p7580_p8  ;;  %p5638_p9 = por %p5637_p5, %p5636_p0 }
 0x177   : > { %p5632_p3 = pneg %p5631_p10 }
 0x179   : > { %p5639_p13 = pnand %p5638_p9, %p5632_p3 }
 0x17b   : > { %5642 = shalt.err (!%p5639_p13)
}
 0x17c   : > { %s7583_s15 = smov 4   ;;  %s7584_s5 = smov 64  }
 0x17d   : > { %4976 = dma.hbm_to_vmem [thread:$0]  (!%p7581_p6), %s7582_s6, 1024, %s781_s25, [#allocation15], %s7584_s5, %s7584_s5, %s7583_s15  }
 0x17e   : > { %s7585_s13 = sld [smem:[#allocation72_spill]] }
 0x184   : > { %s5643_s19 = scalar_lea.hbm %s7585_s13, 16 }
 0x185   : > { %p5644_p1 = scmp.ne.s32.totalorder %s7585_s13, %s5643_s19  ;;  %p5650_p11 = scmp.lt.u32.totalorder %s5643_s19, %s7585_s13 }
 0x187   : > { %p5646_p13 = pnand %p5644_p1, %p7580_p8 }
 0x189   : > { %p5647_p7 = pneg %p5646_p13 }
 0x18b   : > { %p5652_p12 = pnand %p5650_p11, %p5647_p7 }
 0x18d   : > { %5655 = shalt.err (!%p5652_p12)
}
 0x18e   : > { %s5656_s25 = scalar_lea.vmem %s6566_s23, 16  ;;  %s5663_s9 = scalar_lea.vmem %s6566_s23, 32 }
 0x18f   : > { %p5657_p2 = scmp.ne.s32.totalorder %s6566_s23, %s5656_s25  ;;  %p5664_p3 = scmp.lt.s32.totalorder %s6566_s23, %s6566_s23 }
 0x190   : > { %p5665_p0 = scmp.lt.s32.totalorder %s5663_s9, %s5656_s25 }
 0x191   : > { %p5659_p4 = pnand %p5657_p2, %p7580_p8 }
 0x192   : > { %p5666_p5 = por %p5665_p0, %p5664_p3 }
 0x193   : > { %p5660_p10 = pneg %p5659_p4 }
 0x195   : > { %p5667_p9 = pnand %p5666_p5, %p5660_p10 }
 0x197   : > { %5670 = shalt.err (!%p5667_p9)
}
 0x198   : > { %4982 = dma.hbm_to_vmem [thread:$0]  (!%p7581_p6), %s7585_s13, 16, %s6566_s23, [#allocation18]  }
 0x199   : > { %s6059_s26 = smov [#allocation22]   ;;  %s6060_s28 = smov [#allocation25]  }
 0x19a   : > { %s830_s19 = sshll.u32 %s6059_s26, 4  ;;  %s860_s4 = sshll.u32 %s6060_s28, 4  ;;  %s831_s19 = int_to_ptr.vmem [resolvable:$true] %s830_s19  ;;  %s6613_s4 = int_to_ptr.vmem [resolvable:$true] %s860_s4 }
 0x19b   : > { %s5671_s25 = scalar_lea.hbm %s7444_s14, 1024 }
 0x19c   : > { %p5672_p1 = scmp.ne.s32.totalorder %s7444_s14, %s5671_s25  ;;  %p5678_p11 = scmp.lt.u32.totalorder %s5671_s25, %s7444_s14 }
 0x19e   : > { %p5674_p13 = pnand %p5672_p1, %p7580_p8 }
 0x1a0   : > { %p5675_p7 = pneg %p5674_p13 }
 0x1a2   : > { %p5680_p12 = pnand %p5678_p11, %p5675_p7 }
 0x1a4   : > { %5683 = shalt.err (!%p5680_p12)
}
 0x1a5   : > { %s5684_s3 = scalar_lea.vmem %s831_s19, 1024  ;;  %p5692_p3 = scmp.lt.s32.totalorder %s831_s19, %s831_s19 }
 0x1a6   : > { %p5685_p2 = scmp.ne.s32.totalorder %s831_s19, %s5684_s3  ;;  %p5693_p0 = scmp.lt.s32.totalorder %s5684_s3, %s5684_s3 }
 0x1a8   : > { %p5687_p4 = pnand %p5685_p2, %p7580_p8  ;;  %p5694_p5 = por %p5693_p0, %p5692_p3 }
 0x1aa   : > { %p5688_p10 = pneg %p5687_p4 }
 0x1ac   : > { %p5695_p9 = pnand %p5694_p5, %p5688_p10 }
 0x1ae   : > { %5698 = shalt.err (!%p5695_p9)
}
 0x1af   : > { %4988 = dma.hbm_to_vmem [thread:$0]  (!%p7581_p6), %s7444_s14, 1024, %s831_s19, [#allocation21], %s7584_s5, %s7584_s5, %s7583_s15  }
 0x1b0   : > { %s5699_s8 = scalar_lea.hbm %s7448_s18, 1024 }
 0x1b1   : > { %p5700_p1 = scmp.ne.s32.totalorder %s7448_s18, %s5699_s8  ;;  %p5706_p11 = scmp.lt.u32.totalorder %s5699_s8, %s7448_s18 }
 0x1b3   : > { %p5702_p13 = pnand %p5700_p1, %p7580_p8 }
 0x1b5   : > { %p5703_p7 = pneg %p5702_p13 }
 0x1b7   : > { %p5708_p12 = pnand %p5706_p11, %p5703_p7 }
 0x1b9   : > { %5711 = shalt.err (!%p5708_p12)
}
 0x1ba   : > { %s5712_s19 = scalar_lea.vmem %s6613_s4, 1024  ;;  %p5720_p3 = scmp.lt.s32.totalorder %s6613_s4, %s6613_s4 }
 0x1bb   : > { %p5713_p2 = scmp.ne.s32.totalorder %s6613_s4, %s5712_s19  ;;  %p5721_p0 = scmp.lt.s32.totalorder %s5712_s19, %s5712_s19 }
 0x1bd   : > { %p5715_p4 = pnand %p5713_p2, %p7580_p8  ;;  %p5722_p5 = por %p5721_p0, %p5720_p3 }
 0x1bf   : > { %p5716_p10 = pneg %p5715_p4 }
 0x1c1   : > { %p5723_p9 = pnand %p5722_p5, %p5716_p10 }
 0x1c3   : > { %5726 = shalt.err (!%p5723_p9)
}
 0x1c4   : > { %4994 = dma.hbm_to_vmem [thread:$0]  (!%p7581_p6), %s7448_s18, 1024, %s6613_s4, [#allocation24], %s7584_s5, %s7584_s5, %s7583_s15  }
 0x1c5   : > { %s6061_s26 = smov [#allocation28]   ;;  %s6062_s22 = smov [#allocation31]  }
 0x1c6   : > { %s889_s28 = sshll.u32 %s6061_s26, 4  ;;  %s918_s8 = sshll.u32 %s6062_s22, 4  ;;  %s890_s28 = int_to_ptr.vmem [resolvable:$true] %s889_s28  ;;  %s6662_s8 = int_to_ptr.vmem [resolvable:$true] %s918_s8 }
 0x1c7   : > { %s5727_s10 = scalar_lea.hbm %s7451_s21, 1024 }
 0x1c8   : > { %p5728_p1 = scmp.ne.s32.totalorder %s7451_s21, %s5727_s10  ;;  %p5734_p11 = scmp.lt.u32.totalorder %s5727_s10, %s7451_s21 }
 0x1ca   : > { %p5730_p13 = pnand %p5728_p1, %p7580_p8 }
 0x1cc   : > { %p5731_p7 = pneg %p5730_p13 }
 0x1ce   : > { %p5736_p12 = pnand %p5734_p11, %p5731_p7 }
 0x1d0   : > { %5739 = shalt.err (!%p5736_p12)
}
 0x1d1   : > { %s5740_s6 = scalar_lea.vmem %s890_s28, 1024  ;;  %p5748_p3 = scmp.lt.s32.totalorder %s890_s28, %s890_s28 }
 0x1d2   : > { %p5741_p2 = scmp.ne.s32.totalorder %s890_s28, %s5740_s6  ;;  %p5749_p0 = scmp.lt.s32.totalorder %s5740_s6, %s5740_s6 }
 0x1d4   : > { %p5743_p4 = pnand %p5741_p2, %p7580_p8  ;;  %p5750_p5 = por %p5749_p0, %p5748_p3 }
 0x1d6   : > { %p5744_p10 = pneg %p5743_p4 }
 0x1d8   : > { %p5751_p9 = pnand %p5750_p5, %p5744_p10 }
 0x1da   : > { %5754 = shalt.err (!%p5751_p9)
}
 0x1db   : > { %5000 = dma.hbm_to_vmem [thread:$0]  (!%p7581_p6), %s7451_s21, 1024, %s890_s28, [#allocation27], %s7584_s5, %s7584_s5, %s7583_s15  }
 0x1dc   : > { %s5755_s10 = scalar_lea.hbm %s7454_s24, 1024 }
 0x1dd   : > { %p5756_p1 = scmp.ne.s32.totalorder %s7454_s24, %s5755_s10  ;;  %p5762_p11 = scmp.lt.u32.totalorder %s5755_s10, %s7454_s24 }
 0x1df   : > { %p5758_p13 = pnand %p5756_p1, %p7580_p8 }
 0x1e1   : > { %p5759_p7 = pneg %p5758_p13 }
 0x1e3   : > { %p5764_p12 = pnand %p5762_p11, %p5759_p7 }
 0x1e5   : > { %5767 = shalt.err (!%p5764_p12)
}
 0x1e6   : > { %s5768_s28 = scalar_lea.vmem %s6662_s8, 1024  ;;  %p5776_p3 = scmp.lt.s32.totalorder %s6662_s8, %s6662_s8 }
 0x1e7   : > { %p5769_p2 = scmp.ne.s32.totalorder %s6662_s8, %s5768_s28  ;;  %p5777_p0 = scmp.lt.s32.totalorder %s5768_s28, %s5768_s28 }
 0x1e9   : > { %p5771_p4 = pnand %p5769_p2, %p7580_p8  ;;  %p5778_p5 = por %p5777_p0, %p5776_p3 }
 0x1eb   : > { %p5772_p10 = pneg %p5771_p4 }
 0x1ed   : > { %p5779_p9 = pnand %p5778_p5, %p5772_p10 }
 0x1ef   : > { %5782 = shalt.err (!%p5779_p9)
}
 0x1f0   : > { %5006 = dma.hbm_to_vmem [thread:$0]  (!%p7581_p6), %s7454_s24, 1024, %s6662_s8, [#allocation30], %s7584_s5, %s7584_s5, %s7583_s15  }
 0x1f1   : > { %s4246_s11 = sshll.u32 %s6474_s17, 5  ;;  %s4456_s22 = sshll.u32 %s6039_s30, 9 }
 0x1f2   : > { %s7586_s10 = sld [smem:[#allocation60_spill]]  ;;  %s939_s2 = scalar_lea.vmem [#allocation2], %s4246_s11 }
 0x1f3   : > { %s947_s19 = sshll.u32 %s939_s2, 4  ;;  %s4256_s3 = sshll.u32 %s6474_s17, 2  ;;  %s6718_s19 = int_to_ptr.vmem [resolvable:$true] %s947_s19 }
 0x1f4   : > { %s936_s4 = scalar_lea.sflag [#allocation3], %s6474_s17  ;;  %p7587_p6 = scmp.ne.s32.totalorder %s7573_s27, 0 }
 0x1f8   : > { %s6716_s23 = scalar_lea.hbm %s7586_s10, %s4456_s22  ;;  %s5788_s8 = scalar_lea.hbm %s7586_s10, 1024 }
 0x1f9   : > { %s5783_s28 = scalar_lea.hbm %s6716_s23, 512  ;;  %p5789_p7 = scmp.lt.u32.totalorder %s6716_s23, %s7586_s10 }
 0x1fa   : > { %p5784_p8 = scmp.ne.s32.totalorder %s6716_s23, %s5783_s28  ;;  %p5790_p11 = scmp.lt.u32.totalorder %s5788_s8, %s5783_s28 }
 0x1fb   : > { %p5792_p2 = scmp.lt.u32.totalorder %s5783_s28, %s6716_s23 }
 0x1fc   : > { %p5786_p1 = pnand %p5784_p8, %p7587_p6  ;;  %p5791_p12 = por %p5790_p11, %p5789_p7 }
 0x1fe   : > { %p5787_p13 = pneg %p5786_p1  ;;  %p5793_p4 = por %p5792_p2, %p5791_p12 }
 0x200   : > { %p5794_p10 = pnand %p5793_p4, %p5787_p13 }
 0x202   : > { %5797 = shalt.err (!%p5794_p10)
}
 0x203   : > { %s5798_s11 = scalar_lea.vmem %s6718_s19, 512  ;;  %s6063_s22 = smov [#allocation2]  }
 0x204   : > { %p5799_p3 = scmp.ne.s32.totalorder %s6718_s19, %s5798_s11  ;;  %s5803_s25 = sshll.u32 %s6063_s22, 4  ;;  %s5804_s25 = int_to_ptr.vmem [resolvable:$false] %s5803_s25 }
 0x205   : > { %s5805_s9 = scalar_lea.vmem %s5804_s25, 1024  ;;  %p5806_p9 = scmp.lt.s32.totalorder %s6718_s19, %s5804_s25 }
 0x206   : > { %p5801_p0 = pnand %p5799_p3, %p7587_p6  ;;  %p5807_p8 = scmp.lt.s32.totalorder %s5805_s9, %s5798_s11 }
 0x208   : > { %p5802_p5 = pneg %p5801_p0  ;;  %p5808_p1 = por %p5807_p8, %p5806_p9 }
 0x20a   : > { %p5809_p7 = pnand %p5808_p1, %p5802_p5 }
 0x20c   : > { %5812 = shalt.err (!%p5809_p7)
}
 0x20d   : > { %p7588_p13 = scmp.ne.s32.totalorder %s7570_s1, 0  ;;  %s5813_s2 = scalar_lea.hbm %s6542_s29, 256 }
 0x20e   : > { %p5814_p11 = scmp.ne.s32.totalorder %s6542_s29, %s5813_s2  ;;  %s5818_s5 = scalar_lea.hbm %s7577_s0, 512 }
 0x20f   : > { %5010 = dma.hbm_to_vmem [thread:$0]  (!%p7588_p13), %s6716_s23, 512, %s6718_s19, %s936_s4, %s7575_s7, %s7575_s7, %s7574_s20  }
 0x210   : > { %p5816_p12 = pnand %p5814_p11, %p7587_p6  ;;  %p5819_p4 = scmp.lt.u32.totalorder %s6542_s29, %s7577_s0 }
 0x211   : > { %p5820_p10 = scmp.lt.u32.totalorder %s5818_s5, %s5813_s2  ;;  %p5822_p0 = scmp.lt.u32.totalorder %s5813_s2, %s6542_s29 }
 0x212   : > { %p5817_p2 = pneg %p5816_p12 }
 0x213   : > { %p5821_p3 = por %p5820_p10, %p5819_p4 }
 0x215   : > { %p5823_p5 = por %p5822_p0, %p5821_p3 }
 0x217   : > { %p5824_p9 = pnand %p5823_p5, %p5817_p2 }
 0x219   : > { %5827 = shalt.err (!%p5824_p9)
}
 0x21a   : > { %s5828_s23 = scalar_lea.vmem %s6546_s16, 256  ;;  %s6064_s19 = smov [#allocation7]  }
 0x21b   : > { %p5829_p8 = scmp.ne.s32.totalorder %s6546_s16, %s5828_s23  ;;  %s5833_s4 = sshll.u32 %s6064_s19, 4  ;;  %s5834_s4 = int_to_ptr.vmem [resolvable:$false] %s5833_s4 }
 0x21c   : > { %s5835_s26 = scalar_lea.vmem %s5834_s4, 512  ;;  %p5836_p11 = scmp.lt.s32.totalorder %s6546_s16, %s5834_s4 }
 0x21d   : > { %p5831_p1 = pnand %p5829_p8, %p7587_p6  ;;  %p5837_p12 = scmp.lt.s32.totalorder %s5835_s26, %s5828_s23 }
 0x21f   : > { %p5832_p7 = pneg %p5831_p1  ;;  %p5838_p4 = por %p5837_p12, %p5836_p11 }
 0x221   : > { %p5839_p10 = pnand %p5838_p4, %p5832_p7 }
 0x223   : > { %5842 = shalt.err (!%p5839_p10)
}
 0x224   : > { %s7589_s11 = sld [smem:[#allocation59_spill]]  ;;  %s4459_s22 = sshll.u32 %s6039_s30, 6 }
 0x225   : > { %s7590_s2 = sld [smem:[#allocation64_spill]]  ;;  %s1013_s15 = scalar_lea.vmem [#allocation8], %s4256_s3 }
 0x226   : > { %s1020_s5 = sshll.u32 %s1013_s15, 4  ;;  %s7591_s8 = sand.u32 1, %s6039_s30   ;;  %s6781_s5 = int_to_ptr.vmem [resolvable:$true] %s1020_s5 }
 0x227   : > { %s6785_s6 = scalar_lea.sflag [#allocation9], %s7591_s8 }
 0x22a   : > { %5016 = dma.hbm_to_vmem [thread:$0]  (!%p7588_p13), %s6542_s29, 256, %s6546_s16, %s7589_s11, %s7575_s7, %s7575_s7, %s7574_s20  }
 0x22b   : > { %s6777_s28 = scalar_lea.hbm %s7590_s2, %s4459_s22  ;;  %s5848_s17 = scalar_lea.hbm %s7590_s2, 128 }
 0x22c   : > { %s5843_s23 = scalar_lea.hbm %s6777_s28, 64  ;;  %p5849_p5 = scmp.lt.u32.totalorder %s6777_s28, %s7590_s2 }
 0x22d   : > { %p5844_p2 = scmp.ne.s32.totalorder %s6777_s28, %s5843_s23  ;;  %p5850_p9 = scmp.lt.u32.totalorder %s5848_s17, %s5843_s23 }
 0x22e   : > { %p5852_p1 = scmp.lt.u32.totalorder %s5843_s23, %s6777_s28 }
 0x22f   : > { %p5846_p3 = pnand %p5844_p2, %p7587_p6  ;;  %p5851_p8 = por %p5850_p9, %p5849_p5 }
 0x231   : > { %p5847_p0 = pneg %p5846_p3  ;;  %p5853_p7 = por %p5852_p1, %p5851_p8 }
 0x233   : > { %p5854_p11 = pnand %p5853_p7, %p5847_p0 }
 0x235   : > { %5857 = shalt.err (!%p5854_p11)
}
 0x236   : > { %s5858_s3 = scalar_lea.vmem %s6781_s5, 64  ;;  %s6065_s19 = smov [#allocation8]  }
 0x237   : > { %p5859_p12 = scmp.ne.s32.totalorder %s6781_s5, %s5858_s3  ;;  %s5863_s4 = sshll.u32 %s6065_s19, 4  ;;  %s5864_s4 = int_to_ptr.vmem [resolvable:$false] %s5863_s4 }
 0x238   : > { %s5865_s26 = scalar_lea.vmem %s5864_s4, 128  ;;  %p5866_p2 = scmp.lt.s32.totalorder %s6781_s5, %s5864_s4 }
 0x239   : > { %p5861_p4 = pnand %p5859_p12, %p7587_p6  ;;  %p5867_p3 = scmp.lt.s32.totalorder %s5865_s26, %s5858_s3 }
 0x23b   : > { %p5862_p10 = pneg %p5861_p4  ;;  %p5868_p5 = por %p5867_p3, %p5866_p2 }
 0x23d   : > { %p5869_p9 = pnand %p5868_p5, %p5862_p10 }
 0x23f   : > { %5872 = shalt.err (!%p5869_p9)
}
 0x240   : > { %s6066_s11 = smov 32   ;;  %s6067_s22 = smov 2  }
 0x241   : > { %5019 = dma.hbm_to_vmem [thread:$0]  (!%p7588_p13), %s6777_s28, 64, %s6781_s5, %s6785_s6, %s6066_s11, %s6066_s11, %s6067_s22  }
 0x242   : > { %s7592_s27 = sld [smem:[#allocation53_spill]] }
 0x248   : > { %p7593_p6 = scmp.ne.s32.totalorder %s7592_s27, 0 }
 0x249   : > { %s7594_s25 = sld [smem:[#allocation50_spill]] (!%p7593_p6)  ;;  %s7595_s9 = sld [smem:[#allocation56_spill]] (!%p7593_p6) }
 0x24a   : > { %1040 = sbr.rel (%p7593_p6) target bundleno = 4223 (0x107f), region = 124 }
 0x24f   : > { %s6812_s15 = sand.u32 (!%p7593_p6), 1, %s7594_s25   ;;  %p7596_p0 = scmp.ne.s32.totalorder (!%p7593_p6), %s7595_s9, 0 }
 0x250   : > { %s7518_s8 = sshll.u32 (!%p7593_p6), %s6812_s15, 5  ;;  %s1043_s23 = scalar_lea.sflag (!%p7593_p6), [#allocation3], %s6812_s15 }
 0x251   : > { %s6818_s16 = scalar_lea.vmem [#allocation2], %s7518_s8 }
 0x252   : > { %5974 = dma.done.wait (%p7596_p0), %s1043_s23, 512  }
 0x253   : > { %5976 = vsyncadd (%p7596_p0), %s1043_s23, 4294966784  ;;  %s7597_s1 = sld [smem:[#allocation52_spill]]  ;;  %s6828_s5 = sshll.u32 %s6812_s15, 4 }
 0x254   : > { %s1055_s20 = scalar_lea.vmem [#allocation5], %s6828_s5 }
 0x259   : > { %s6825_s28 = sand.u32 1, %s7597_s1  }
 0x25a   : > { %s1052_s6 = scalar_lea.sflag [#allocation6], %s6825_s28 }
 0x25b   : > { %5978 = dma.done.wait (%p7596_p0), %s1052_s6, 512  }
 0x25c   : > { %5980 = vsyncadd (%p7596_p0), %s1052_s6, 4294966784  ;;  %s4263_s17 = sshll.u32 %s6812_s15, 2  ;;  %s1064_s7 = scalar_lea.vmem [#allocation7], %s6828_s5 }
 0x25d   : > { %s1070_s29 = scalar_lea.sflag [#allocation9], %s6825_s28  ;;  %s6839_s3 = scalar_lea.vmem [#allocation8], %s4263_s17 }
 0x25e   : > { %5982 = dma.done.wait (%p7596_p0), %s1070_s29, 64  }
 0x25f   : > { %5984 = vsyncadd (%p7596_p0), %s1070_s29, 4294967232  ;;  %p7598_p13 = scmp.eq.s32.totalorder %s7597_s1, 0 }
 0x261   : > { %5986 = dma.done.wait (%p7598_p13), [#allocation9], 2048   ;;  %p7599_p8 = pmov %p7598_p13 }
 0x263   : > { %5988 = vsyncadd (%p7599_p8), [#allocation9], 4294965248  ;;  %p7600_p1 = pmov %p7599_p8 }
 0x265   : > { %5990 = dma.done.wait (%p7600_p1), [#allocation12], 3104   ;;  %p7601_p7 = pmov %p7600_p1 }
 0x266   : > { %p7602_p11 = pmov %p7600_p1 }
 0x267   : > { %5992 = vsyncadd (%p7601_p7), [#allocation12], 4294964192 }
 0x268   : > { %5994 = dma.done.wait (%p7602_p11), [#allocation15], 1072   ;;  %p7603_p12 = pmov %p7600_p1 }
 0x269   : > { %p7604_p4 = pmov %p7600_p1 }
 0x26a   : > { %5996 = vsyncadd (%p7603_p12), [#allocation15], 4294966224 }
 0x26b   : > { %5998 = dma.done.wait (%p7604_p4), [#allocation18], 1040   ;;  %p7605_p10 = pmov %p7600_p1 }
 0x26c   : > { %p7606_p2 = pmov %p7600_p1 }
 0x26d   : > { %6000 = vsyncadd (%p7605_p10), [#allocation18], 4294966256 }
 0x26e   : > { %6002 = dma.done.wait (%p7606_p2), [#allocation21], 2048   ;;  %p7607_p3 = pmov %p7600_p1 }
 0x26f   : > { %p7608_p5 = pmov %p7600_p1 }
 0x270   : > { %6004 = vsyncadd (%p7607_p3), [#allocation21], 4294965248 }
 0x271   : > { %6006 = dma.done.wait (%p7608_p5), [#allocation24], 1040   ;;  %p7609_p9 = pmov %p7600_p1 }
 0x272   : > { %p7610_p6 = pmov %p7600_p1 }
 0x273   : > { %6008 = vsyncadd (%p7609_p9), [#allocation24], 4294966256 }
 0x274   : > { %6010 = dma.done.wait (%p7610_p6), [#allocation27], 2048   ;;  %p7611_p0 = pmov %p7600_p1 }
 0x276   : > { %6012 = vsyncadd (%p7611_p0), [#allocation27], 4294965248  ;;  %p7612_p13 = pmov %p7611_p0 }
 0x277   : > { %p7613_p8 = pmov %p7611_p0 }
 0x278   : > { %6014 = dma.done.wait (%p7612_p13), [#allocation30], 2048  }
 0x279   : > { %6016 = vsyncadd (%p7613_p8), [#allocation30], 4294965248  ;;  %v6068_v0 = vmov 0   ;;  %v5129_v1 = vld [vmem:[#allocation10 + $0x4] ss:$8 sps:$4 sm:$0xff]   ;;  %v1261_v17 = vld [vmem:[%s6818_s16] sm:$0xff]  ;;  %v1293_v43 = vlaneseq }
 0x27a   : > { %1415 = vmatprep.mubr.bf16.mxu1 %v6068_v0  ;;  %5124 = vset.pattern.permute.xlu1 %v6068_v0  ;;  %v5131_v2 = vld [vmem:[#allocation10] ss:$8 sps:$4 sm:$0xff]   ;;  %v5132_v3 = vld [vmem:[#allocation10 + $0x14] ss:$8 sps:$4 sm:$0xff]   ;;  %v5134_v4 = vld [vmem:[#allocation10 + $0x10] ss:$8 sps:$4 sm:$0xff]  }
 0x27b   : > { %5123 = vset.pattern.permute.xlu0 %v6068_v0  ;;  %1383 = vmatprep.subr.bf16.mxu1 %v5129_v1  ;;  %v5135_v5 = vld [vmem:[#allocation10 + $0x24] ss:$8 sps:$4 sm:$0xff]   ;;  %v5137_v6 = vld [vmem:[#allocation10 + $0x20] ss:$8 sps:$4 sm:$0xff]   ;;  %v5138_v7 = vld [vmem:[#allocation10 + $0x34] ss:$8 sps:$4 sm:$0xff]  }
 0x27c   : > { %1384 = vmatpush1.bf16.msra.mxu1 %v5131_v2  ;;  %v5140_v8 = vld [vmem:[#allocation10 + $0x30] ss:$8 sps:$4 sm:$0xff]   ;;  %v5141_v9 = vld [vmem:[#allocation10 + $0x44] ss:$8 sps:$4 sm:$0xff]   ;;  %v5143_v10 = vld [vmem:[#allocation10 + $0x40] ss:$8 sps:$4 sm:$0xff]  }
 0x27d   : > { %1385 = vmatprep.subr.bf16.mxu1 %v5132_v3  ;;  %v5144_v11 = vld [vmem:[#allocation10 + $0x54] ss:$8 sps:$4 sm:$0xff]   ;;  %v5146_v12 = vld [vmem:[#allocation10 + $0x50] ss:$8 sps:$4 sm:$0xff]   ;;  %v5147_v13 = vld [vmem:[#allocation10 + $0x64] ss:$8 sps:$4 sm:$0xff]  }
 0x27e   : > { %v5149_v14 = vld [vmem:[#allocation10 + $0x60] ss:$8 sps:$4 sm:$0xff]   ;;  %v5150_v15 = vld [vmem:[#allocation10 + $0x74] ss:$8 sps:$4 sm:$0xff]   ;;  %v5152_v16 = vld [vmem:[#allocation10 + $0x70] ss:$8 sps:$4 sm:$0xff]  }
 0x27f   : > { %v1262_v18 = vld [vmem:[%s6818_s16 + $0x8] sm:$0xff]  ;;  %v1263_v24 = vld [vmem:[%s6818_s16 + $0x10] sm:$0xff]  ;;  %v1264_v25 = vld [vmem:[%s6818_s16 + $0x18] sm:$0xff]  ;;  %v6069_v42 = vmov 0.0   ;;  %vm6070_vm0 = vmmov 0   ;;  %v6905_v44 = vshrl.u32 %v1293_v43, 7 }
 0x280   : > { %1386 = vmatpush1.bf16.msra.mxu1 %v5134_v4  ;;  %v5155_v19 = vld [vmem:[#allocation13 + $0x4] ss:$12 sps:$4 sm:$0xff]   ;;  %v5153_v20 = vld [vmem:[#allocation13] ss:$12 sps:$4 sm:$0xff]   ;;  %v1269_v21 = vpack.c.bf16 %v1262_v18, %v1261_v17  ;;  %v5158_v22 = vld [vmem:[#allocation13 + $0x1c] ss:$12 sps:$4 sm:$0xff]   ;;  %v1270_v29 = vpack.c.bf16 %v1264_v25, %v1263_v24  ;;  %4599 = vmatprep.subr.bf16.mxu0 %v6069_v42 }
 0x281   : > { %1387 = vmatprep.subr.bf16.mxu1 %v5135_v5  ;;  %v5156_v23 = vld [vmem:[#allocation13 + $0x18] ss:$12 sps:$4 sm:$0xff]   ;;  %v5161_v26 = vld [vmem:[#allocation13 + $0x34] ss:$12 sps:$4 sm:$0xff]   ;;  %v5159_v27 = vld [vmem:[#allocation13 + $0x30] ss:$12 sps:$4 sm:$0xff]   ;;  %4615 = vmatprep.mubr.msk.bf16.mxu0 %vm6070_vm0, %v6069_v42 }
 0x282   : > { %v5164_v28 = vld [vmem:[#allocation13 + $0x4c] ss:$12 sps:$4 sm:$0xff]   ;;  %v5162_v30 = vld [vmem:[#allocation13 + $0x48] ss:$12 sps:$4 sm:$0xff]   ;;  %v5167_v31 = vld [vmem:[#allocation13 + $0x64] ss:$12 sps:$4 sm:$0xff]  }
 0x283   : > { %v5165_v32 = vld [vmem:[#allocation13 + $0x60] ss:$12 sps:$4 sm:$0xff]   ;;  %v5170_v33 = vld [vmem:[#allocation13 + $0x7c] ss:$12 sps:$4 sm:$0xff]   ;;  %v5168_v34 = vld [vmem:[#allocation13 + $0x78] ss:$12 sps:$4 sm:$0xff]  }
 0x284   : > { %1388 = vmatpush1.bf16.msra.mxu1 %v5137_v6  ;;  %v5173_v35 = vld [vmem:[#allocation13 + $0x94] ss:$12 sps:$4 sm:$0xff]   ;;  %v5171_v36 = vld [vmem:[#allocation13 + $0x90] ss:$12 sps:$4 sm:$0xff]   ;;  %v5176_v37 = vld [vmem:[#allocation13 + $0xac] ss:$12 sps:$4 sm:$0xff]  }
 0x285   : > { %1389 = vmatprep.subr.bf16.mxu1 %v5138_v7  ;;  %v5174_v38 = vld [vmem:[#allocation13 + $0xa8] ss:$12 sps:$4 sm:$0xff]   ;;  %v6908_v45 = vsub.s32 0, %v6905_v44  ;;  %v1291_v46 = vld [vmem:[#allocation11] sm:$0x3]  ;;  %v6911_v47 = vsub.s32 1, %v6905_v44 }
 0x286   : > { %v6888_v39 = vld [vmem:[%s1055_s20] sm:$0xff]  ;;  %v6892_v40 = vld [vmem:[%s1055_s20 + $0x8] sm:$0xff]  ;;  %vm1805_vm1 = vcmask 130048   ;;  %s4282_s19 = sshll.u32 %s7597_s1, 1  ;;  %s7614_s11 = sld [smem:[#allocation65_spill]]  ;;  %vm2244_vm2 = vcmask 64512  }
 0x287   : > { %v6896_v41 = vpack.c.bf16 %v6892_v40, %v6888_v39  ;;  %v1296_v48 = vrot.slane %v1291_v46, %v6908_v45  ;;  %v1300_v49 = vrot.slane %v1291_v46, %v6911_v47  ;;  %p1245_p1 = scmp.lt.s32.totalorder %s4282_s19, 3  ;;  %vm2277_vm3 = vcmask 1043456   ;;  %s7615_s9 = sld [smem:[#allocation75_spill]] }
 0x288   : > { %1390 = vmatpush1.bf16.msra.mxu1 %v5140_v8  ;;  %s7137_s27 = scalar_lea.vmem [#allocation33], %s6828_s5  ;;  %s7617_s6 = sld [smem:[#allocation76_spill]] }
 0x289   : > { %1391 = vmatprep.subr.bf16.mxu1 %v5141_v9  ;;  %s7638_s19 = smov (!%p1245_p1, %s4282_s19), 3  ;;  %s7618_s17 = sld [smem:[#allocation77_spill]] }
 0x28a   : > { %s4460_s29 = sshll.u32 %s7638_s19, 4  ;;  %s7620_s25 = sld [smem:[#allocation79_spill]] }
 0x28b   : > { %s4477_s20 = sshll.u32 %s7597_s1, 8  ;;  %s7622_s4 = sld [smem:[#allocation83_spill]] }
 0x28c   : > { %1392 = vmatpush1.bf16.msra.mxu1 %v5143_v10  ;;  %s1255_s22 = scalar_lea.vmem %s7614_s11, %s7638_s19  ;;  %s7619_s11 = sld [smem:[#allocation63_spill]] }
 0x28d   : > { %1393 = vmatprep.subr.bf16.mxu1 %v5144_v11  ;;  %s7616_s23 = smov %s7615_s9 }
 0x290   : > { %1394 = vmatpush1.bf16.msra.mxu1 %v5146_v12 }
 0x291   : > { %1395 = vmatprep.subr.bf16.mxu1 %v5147_v13  ;;  %s7300_s26 = scalar_lea.hbm %s7622_s4, %s4477_s20 }
 0x294   : > { %1396 = vmatpush1.bf16.msra.mxu1 %v5149_v14 }
 0x295   : > { %1397 = vmatprep.subr.bf16.mxu1 %v5150_v15  ;;  %v6922_v15 = vld [vmem:[#allocation14] sm:$0x7] }
 0x296   : > { %v6928_v17 = vrot.slane %v6922_v15, %v6911_v47 }
 0x298   : > { %1398 = vmatpush1.bf16.msra.mxu1 %v5152_v16  ;;  %v1481_v16 = vrot.slane %v6922_v15, %v6908_v45 }
 0x299   : > { %1621 = vmatprep.subr.bf16.mxu1 %v5155_v19 }
 0x29b   : > { %1416 = vmatmul.mubr.bf16.vlgmr.msra.gmra.mrb[0].mxu1 %v1269_v21 }
 0x29c   : > { %1622 = vmatpush1.bf16.msra.mxu1 %v5153_v20  ;;  %1425 = vmatprep.mubr.bf16.mxu1 %v6068_v0 }
 0x29d   : > { %1623 = vmatprep.subr.bf16.mxu1 %v5158_v22 }
 0x2a0   : > { %1624 = vmatpush1.bf16.msra.mxu1 %v5156_v23 }
 0x2a1   : > { %1625 = vmatprep.subr.bf16.mxu1 %v5161_v26 }
 0x2a3   : > { %1426 = vmatmul.mubr.bf16.gmra.mrb[4].mxu1 %v1270_v29 }
 0x2a4   : > { %1626 = vmatpush1.bf16.msra.mxu1 %v5159_v27  ;;  %1653 = vmatprep.mubr.bf16.mxu1 %v6068_v0 }
 0x2a5   : > { %1627 = vmatprep.subr.bf16.mxu1 %v5164_v28 }
 0x2a8   : > { %1628 = vmatpush1.bf16.msra.mxu1 %v5162_v30  ;;  %v5177_v30 = vld [vmem:[#allocation13 + $0x8] ss:$12 sps:$4 sm:$0xff]  }
 0x2a9   : > { %1629 = vmatprep.subr.bf16.mxu1 %v5167_v31  ;;  %4600 = vmatpush3.bf16.msra.mxu0 %v5177_v30  ;;  %v5178_v31 = vld [vmem:[#allocation13 + $0x20] ss:$12 sps:$4 sm:$0xff]  }
 0x2aa   : > { %4601 = vmatprep.subr.bf16.mxu0 %v6069_v42 }
 0x2ac   : > { %1630 = vmatpush1.bf16.msra.mxu1 %v5165_v32  ;;  %v5179_v32 = vld [vmem:[#allocation13 + $0x38] ss:$12 sps:$4 sm:$0xff]  }
 0x2ad   : > { %1631 = vmatprep.subr.bf16.mxu1 %v5170_v33  ;;  %4602 = vmatpush3.bf16.msra.mxu0 %v5178_v31  ;;  %v5180_v33 = vld [vmem:[#allocation13 + $0x50] ss:$12 sps:$4 sm:$0xff]   ;;  %v5185_v31 = vld [vmem:[#allocation16] sm:$0xff]  }
 0x2ae   : > { %4603 = vmatprep.subr.bf16.mxu0 %v6069_v42 }
 0x2b0   : > { %1632 = vmatpush1.bf16.msra.mxu1 %v5168_v34  ;;  %v5181_v34 = vld [vmem:[#allocation13 + $0x68] ss:$12 sps:$4 sm:$0xff]  }
 0x2b1   : > { %1633 = vmatprep.subr.bf16.mxu1 %v5173_v35  ;;  %4604 = vmatpush3.bf16.msra.mxu0 %v5179_v32  ;;  %v5182_v35 = vld [vmem:[#allocation13 + $0x80] ss:$12 sps:$4 sm:$0xff]  }
 0x2b2   : > { %4605 = vmatprep.subr.bf16.mxu0 %v6069_v42 }
 0x2b4   : > { %1634 = vmatpush1.bf16.msra.mxu1 %v5171_v36  ;;  %v5183_v36 = vld [vmem:[#allocation13 + $0x98] ss:$12 sps:$4 sm:$0xff]  }
 0x2b5   : > { %1635 = vmatprep.subr.bf16.mxu1 %v5176_v37  ;;  %4606 = vmatpush3.bf16.msra.mxu0 %v5180_v33  ;;  %v5184_v37 = vld [vmem:[#allocation13 + $0xb0] ss:$12 sps:$4 sm:$0xff]  }
 0x2b6   : > { %4607 = vmatprep.subr.bf16.mxu0 %v6069_v42  ;;  %v5186_v33 = vld [vmem:[#allocation16 + $0x8] sm:$0xff]  }
 0x2b8   : > { %1636 = vmatpush1.bf16.msra.mxu1 %v5174_v38 }
 0x2b9   : > { %4619 = vmatprep.subr.bf16.mxu1 %v6069_v42  ;;  %4608 = vmatpush3.bf16.msra.mxu0 %v5181_v34  ;;  %v5188_v34 = vld [vmem:[#allocation16 + $0x18] sm:$0xff]  }
 0x2ba   : > { %4609 = vmatprep.subr.bf16.mxu0 %v6069_v42 }
 0x2bb   : > { %1654 = vmatmul.mubr.bf16.vlgmr.msra.gmra.mrb[8].mxu1 %v6896_v41 }
 0x2bc   : > { %4621 = vmatprep.mubr.msk.bf16.mxu1 %vm6070_vm0, %v6069_v42 }
 0x2bd   : > { %4610 = vmatpush3.bf16.msra.mxu0 %v5182_v35  ;;  %v5189_v35 = vld [vmem:[#allocation16 + $0x20] sm:$0xff]  }
 0x2be   : > { %4611 = vmatprep.subr.bf16.mxu0 %v6069_v42 }
 0x2c1   : > { %4612 = vmatpush3.bf16.msra.mxu0 %v5183_v36  ;;  %v5190_v36 = vld [vmem:[#allocation16 + $0x28] sm:$0xff]  }
 0x2c2   : > { %4613 = vmatprep.subr.bf16.mxu0 %v6069_v42 }
 0x2c5   : > { %4614 = vmatpush3.bf16.msra.mxu0 %v5184_v37  ;;  %v5191_v37 = vld [vmem:[#allocation16 + $0x30] sm:$0xff]  }
 0x2c6   : > { %4643 = vmatprep.subr.bf16.mxu0 %v6069_v42 }
 0x2c8   : > { %4616 = vmatmul.mubr.bf16.vlgmr.msra.gmra.mrb[0].mxu0 %v6896_v41 }
 0x2c9   : > { %4659 = vmatprep.mubr.msk.bf16.mxu0 %vm6070_vm0, %v6069_v42 }
 0x36e   : > { %v1417_v50 = vpop.f32.mrb[0].mxu1 }
 0x36f   : > { %v1418_v51 = vadd.f32 %v1417_v50, %v1296_v48  ;;  %v1419_v52 = vpop.f32.mrb[1].mxu1 }
 0x370   : > { %v1420_v53 = vadd.f32 %v1419_v52, %v1300_v49  ;;  %v1421_v54 = vpop.f32.mrb[2].mxu1 }
 0x371   : > { %v1436_v55 = vmax.f32 %v1418_v51, 0.0  ;;  %v1422_v56 = vadd.f32 %v1421_v54, %v1296_v48  ;;  %v1423_v57 = vpop.f32.mrb[3].mxu1 }
 0x372   : > { %v1424_v58 = vadd.f32 %v1423_v57, %v1300_v49  ;;  %v1437_v60 = vmax.f32 %v1420_v53, 0.0 }
 0x373   : > { %v1438_v59 = vmax.f32 %v1422_v56, 0.0 }
 0x374   : > { %v1439_v61 = vmax.f32 %v1424_v58, 0.0 }
 0x375   : > { %v1711_v62 = vpack.c.bf16 %v1438_v59, %v1436_v55 }
 0x376   : > { %v6915_v63 = vpack.c.bf16 %v1439_v61, %v1437_v60  ;;  %v1427_v1 = vpop.f32.mrb[4].mxu1 }
 0x377   : > { %4620 = vmatpush3.bf16.xpose.msra.mxu1 %v1711_v62  ;;  %v1428_v2 = vadd.f32 %v1427_v1, %v1296_v48  ;;  %v1429_v3 = vpop.f32.mrb[5].mxu1 }
 0x378   : > { %v1430_v4 = vadd.f32 %v1429_v3, %v1300_v49  ;;  %v1431_v5 = vpop.f32.mrb[6].mxu1  ;;  %4625 = vmatprep.subr.bf16.mxu1 %v6069_v42  ;;  %v1488_v3 = vsub.s32 2, %v6905_v44  ;;  %v5196_v44 = vld [vmem:[#allocation17 + $0x18] sm:$0xff]  }
 0x379   : > { %v1440_v6 = vmax.f32 %v1428_v2, 0.0  ;;  %v1432_v7 = vadd.f32 %v1431_v5, %v1296_v48  ;;  %v1433_v8 = vpop.f32.mrb[7].mxu1 }
 0x37a   : > { %v1441_v9 = vmax.f32 %v1430_v4, 0.0  ;;  %v1434_v10 = vadd.f32 %v1433_v8, %v1300_v49 }
 0x37b   : > { %v1442_v11 = vmax.f32 %v1432_v7, 0.0 }
 0x37c   : > { %v1443_v12 = vmax.f32 %v1434_v10, 0.0  ;;  %v5193_v10 = vld [vmem:[#allocation17] sm:$0xff]  }
 0x37d   : > { %v6918_v13 = vpack.c.bf16 %v1442_v11, %v1440_v6  ;;  %v6969_v6 = vrot.slane %v6922_v15, %v1488_v3  ;;  %4644 = vmatpush3.bf16.msra.mxu0 %v5193_v10  ;;  %v5194_v11 = vld [vmem:[#allocation17 + $0x8] sm:$0xff]   ;;  %v5197_v15 = vld [vmem:[#allocation17 + $0x20] sm:$0xff]  }
 0x37e   : > { %v6920_v14 = vpack.c.bf16 %v1443_v12, %v1441_v9  ;;  %4645 = vmatprep.subr.bf16.mxu0 %v6069_v42  ;;  %v5195_v12 = vld [vmem:[#allocation17 + $0x10] sm:$0xff]  }
 0x381   : > { %4646 = vmatpush3.bf16.msra.mxu0 %v5194_v11 }
 0x382   : > { %4647 = vmatprep.subr.bf16.mxu0 %v6069_v42 }
 0x385   : > { %4648 = vmatpush3.bf16.msra.mxu0 %v5195_v12 }
 0x386   : > { %4649 = vmatprep.subr.bf16.mxu0 %v6069_v42 }
 0x389   : > { %4650 = vmatpush3.bf16.msra.mxu0 %v5196_v44 }
 0x38a   : > { %4651 = vmatprep.subr.bf16.mxu0 %v6069_v42 }
 0x38d   : > { %4652 = vmatpush3.bf16.msra.mxu0 %v5197_v15 }
 0x38e   : > { %v1655_v18 = vpop.f32.mrb[8].mxu1  ;;  %4653 = vmatprep.subr.bf16.mxu0 %v6069_v42 }
 0x38f   : > { %v1656_v19 = vadd.f32 %v1655_v18, %v1481_v16  ;;  %v1657_v20 = vpop.f32.mrb[9].mxu1  ;;  %v5199_v18 = vld [vmem:[#allocation17 + $0x30] sm:$0xff]  }
 0x390   : > { %v6931_v21 = vadd.f32 %v1657_v20, %v6928_v17  ;;  %v1659_v22 = vpop.f32.mrb[10].mxu1 }
 0x391   : > { %v6933_v23 = vmax.f32 %v1656_v19, 0.0  ;;  %v1660_v24 = vadd.f32 %v1659_v22, %v1481_v16  ;;  %v6935_v25 = vpop.f32.mrb[11].mxu1  ;;  %v5198_v16 = vld [vmem:[#allocation17 + $0x28] sm:$0xff]  }
 0x392   : > { %4654 = vmatpush3.bf16.msra.mxu0 %v5198_v16 }
 0x393   : > { %v4461_v26 = vpack.c.bf16 %v6933_v23, %v6933_v23  ;;  %v6939_v27 = vmax.f32 %v1660_v24, 0.0  ;;  %4655 = vmatprep.subr.bf16.mxu0 %v6069_v42 }
 0x395   : > { %v1715_v28 = vpack.c.bf16 %v6939_v27, %v6933_v23  ;;  %4622 = vmatmul.mubr.bf16.vlgmr.msra.gmra.mrb[12].mxu1 %v4461_v26  ;;  %v4462_v29 = vpack.c.bf16 %v6939_v27, %v6939_v27 }
 0x396   : > { %4626 = vmatpush3.bf16.xpose.msra.mxu1 %v6918_v13  ;;  %4627 = vmatprep.mubr.msk.bf16.mxu1 %vm6070_vm0, %v6069_v42 }
 0x397   : > { %4631 = vmatprep.subr.bf16.mxu1 %v6069_v42  ;;  %4656 = vmatpush3.bf16.msra.mxu0 %v5199_v18 }
 0x398   : > { %4657 = vmatprep.subr.bf16.mxu0 %v6069_v42 }
 0x39b   : > { %v1698_v4 = vpop.f32.mrb[0].mxu0 }
 0x39c   : > { %v4617_v5 = vpop.f32.mrb[1].mxu0  ;;  %v6972_v8 = vadd.f32 %v1698_v4, %v6969_v6 }
 0x39d   : > { %4628 = vmatmul.mubr.bf16.vlgmr.msra.gmra.mrb[16].mxu1 %v4462_v29  ;;  %v1701_v7 = vpop.f32.mrb[2].mxu0 }
 0x39e   : > { %4632 = vmatpush3.bf16.msra.mxu1 %v1711_v62  ;;  %4633 = vmatprep.mubr.msk.bf16.mxu1 %vm6070_vm0, %v6069_v42  ;;  %v4618_v9 = vpop.f32.mrb[3].mxu0 }
 0x39f   : > { %4637 = vmatprep.subr.bf16.mxu1 %v6069_v42 }
 0x468   : > { %v1759_v38 = vpop.f32.mrb[12].mxu1 }
 0x469   : > { %v4623_v43 = vpop.f32.mrb[13].mxu1  ;;  %v1806_v46 = vsel %vm1805_vm1, %v1759_v38, -inf }
 0x46a   : > { %1807 = vmax.xlane.f32.xlu0 %v1806_v46  ;;  %v1762_v48 = vpop.f32.mrb[14].mxu1  ;;  %v1702_v43 = vadd.f32 %v1701_v7, %v6969_v6 }
 0x46b   : > { %v4624_v49 = vpop.f32.mrb[15].mxu1 }
 0x46c   : > { %v1710_v46 = vmax.f32 %v1702_v43, 0.0  ;;  %v1662_v49 = vadd.f32 %v6935_v25, %v6928_v17  ;;  %v1707_v17 = vmax.f32 %v6972_v8, 0.0 }
 0x46e   : > { %v4466_v48 = vpack.c.bf16 %v1710_v46, %v1710_v46  ;;  %v4465_v25 = vpack.c.bf16 %v1707_v17, %v1707_v17  ;;  %v5209_v17 = vld [vmem:[#allocation20 + $0x20] sm:$0xff]  }
 0x470   : > { %v1799_v50 = vpop.f32.mrb[16].mxu1 }
 0x471   : > { %v4629_v51 = vpop.f32.mrb[17].mxu1  ;;  %v1809_v52 = vsel %vm1805_vm1, %v1799_v50, -inf }
 0x472   : > { %1810 = vmax.xlane.f32.xlu0 %v1809_v52  ;;  %v1802_v53 = vpop.f32.mrb[18].mxu1  ;;  %v5200_v52 = vld [vmem:[#allocation17 + $0x38] sm:$0xff]  }
 0x473   : > { %v4630_v54 = vpop.f32.mrb[19].mxu1  ;;  %4658 = vmatpush3.bf16.msra.mxu0 %v5200_v52 }
 0x474   : > { %4683 = vmatprep.subr.bf16.mxu0 %v6069_v42 }
 0x4f7   : > { %v1808_v55 = vpop.xlane.xlu0 %1807 }
 0x4f8   : > { %v1812_v56 = vsub.f32 %v1759_v38, %v1808_v55  ;;  %v5192_v38 = vld [vmem:[#allocation16 + $0x38] sm:$0xff]  }
 0x4fa   : > { %v1814_v57 = vmul.f32 1.442695, %v1812_v56 }
 0x4fc   : > { %5281 = vpow2.f32 %v1814_v57 }
 0x4ff   : > { %v1811_v58 = vpop.xlane.xlu0 %1810 }
 0x500   : > { %v1813_v59 = vsub.f32 %v1799_v50, %v1811_v58  ;;  %v1709_v50 = vmax.f32 %v1662_v49, 0.0 }
 0x502   : > { %v1816_v60 = vmul.f32 1.442695, %v1813_v59  ;;  %v4464_v51 = vpack.c.bf16 %v1709_v50, %v1709_v50  ;;  %v1706_v59 = vmax.f32 %v6931_v21, 0.0  ;;  %v7023_v21 = vld [vmem:[%s1255_s22 + $0x1] ss:$0 sm:$0xff] }
 0x504   : > { %5283 = vpow2.f32 %v1816_v60  ;;  %v4463_v60 = vpack.c.bf16 %v1706_v59, %v1706_v59  ;;  %v5202_v59 = vld [vmem:[#allocation22] sm:$0xff]  }
 0x506   : > { %v5282_v61 = vpop.eup %5281 }
 0x507   : > { %v1818_v62 = vsel %vm1805_vm1, %v5282_v61, 0.0 }
 0x508   : > { %1819 = vadd.xlane.f32.xlu1 %v1818_v62 }
 0x50e   : > { %v5284_v1 = vpop.eup %5283 }
 0x50f   : > { %v1821_v2 = vsel %vm1805_vm1, %v5284_v1, 0.0 }
 0x510   : > { %1822 = vadd.xlane.f32.xlu1 %v1821_v2 }
 0x595   : > { %v1820_v19 = vpop.xlane.xlu1 %1819 }
 0x596   : > { %5285 = vrcp.f32 %v1820_v19 }
 0x59d   : > { %v1823_v20 = vpop.xlane.xlu1 %1822 }
 0x59e   : > { %5287 = vrcp.f32 %v1823_v20 }
 0x5a0   : > { %v5286_v22 = vpop.eup %5285 }
 0x5a1   : > { %v1826_v24 = vmul.f32 %v5286_v22, %v5282_v61 }
 0x5a3   : > { %v1828_v26 = vpack.c.bf16 %v1826_v24, %v1826_v24  ;;  %v7032_v24 = vld [vmem:[%s1255_s22] ss:$0 sm:$0xff]  ;;  %s7199_s22 = scalar_lea.vmem %s7619_s11, %s4460_s29  ;;  %s3814_s11 = scalar_lea.sflag [#allocation34], %s6825_s28 }
 0x5a5   : > { %4634 = vmatmul.mubr.msk.bf16.vlgmr.msra.gmra.mrb[20].mxu1 %vm1805_vm1, %v1828_v26 }
 0x5a6   : > { %4638 = vmatpush3.bf16.msra.mxu1 %v6918_v13  ;;  %4639 = vmatprep.mubr.msk.bf16.mxu1 %vm6070_vm0, %v6069_v42  ;;  %v5187_v13 = vld [vmem:[#allocation16 + $0x10] sm:$0xff]  }
 0x5a7   : > { %4663 = vmatprep.subr.bf16.mxu1 %v6069_v42 }
 0x5a8   : > { %v5288_v29 = vpop.eup %5287 }
 0x5a9   : > { %v1827_v30 = vmul.f32 %v5288_v29, %v5284_v1 }
 0x5ab   : > { %v1829_v32 = vpack.c.bf16 %v1827_v30, %v1827_v30 }
 0x5ad   : > { %4640 = vmatmul.mubr.msk.bf16.vlgmr.msra.gmra.mrb[24].mxu1 %vm1805_vm1, %v1829_v32 }
 0x5ae   : > { %4664 = vmatpush3.bf16.msra.mxu1 %v5185_v31  ;;  %4679 = vmatprep.mubr.msk.bf16.mxu1 %vm6070_vm0, %v6069_v42 }
 0x5af   : > { %4665 = vmatprep.subr.bf16.mxu1 %v6069_v42 }
 0x5b2   : > { %4666 = vmatpush3.bf16.msra.mxu1 %v5186_v33 }
 0x5b3   : > { %4667 = vmatprep.subr.bf16.mxu1 %v6069_v42 }
 0x5b6   : > { %4668 = vmatpush3.bf16.msra.mxu1 %v5187_v13  ;;  %v4468_v13 = vpack.c.bf16 %v6892_v40, %v6892_v40 }
 0x5b7   : > { %4669 = vmatprep.subr.bf16.mxu1 %v6069_v42 }
 0x5ba   : > { %4670 = vmatpush3.bf16.msra.mxu1 %v5188_v34  ;;  %v2325_v34 = vsel %vm2277_vm3, %v4468_v13, 0  ;;  %v5228_v13 = vld [vmem:[%s7616_s23 + $0x34] ss:$8 sps:$4 sm:$0xff]  }
 0x5bb   : > { %4671 = vmatprep.subr.bf16.mxu1 %v6069_v42 }
 0x5be   : > { %4672 = vmatpush3.bf16.msra.mxu1 %v5189_v35 }
 0x5bf   : > { %4673 = vmatprep.subr.bf16.mxu1 %v6069_v42 }
 0x5c2   : > { %4674 = vmatpush3.bf16.msra.mxu1 %v5190_v36 }
 0x5c3   : > { %4675 = vmatprep.subr.bf16.mxu1 %v6069_v42 }
 0x5c6   : > { %4676 = vmatpush3.bf16.msra.mxu1 %v5191_v37 }
 0x5c7   : > { %4677 = vmatprep.subr.bf16.mxu1 %v6069_v42 }
 0x5ca   : > { %4678 = vmatpush3.bf16.msra.mxu1 %v5192_v38 }
 0x5cb   : > { %4689 = vmatprep.subr.bf16.mxu1 %v6069_v42 }
 0x5cd   : > { %4680 = vmatmul.mubr.bf16.vlgmr.msra.gmra.mrb[28].mxu1 %v1715_v28 }
 0x5ce   : > { %4691 = vmatprep.mubr.msk.bf16.mxu1 %vm6070_vm0, %v6069_v42 }
 0x5d3   : > { %4690 = vmatpush3.bf16.xpose.msra.mxu1 %v4466_v48 }
 0x5d4   : > { %4701 = vmatprep.subr.bf16.mxu1 %v6069_v42 }
 0x5da   : > { %4692 = vmatmul.mubr.bf16.vlgmr.msra.gmra.mrb[32].mxu1 %v4464_v51  ;;  %v4467_v51 = vpack.c.bf16 %v6888_v39, %v6888_v39 }
 0x5db   : > { %4703 = vmatprep.mubr.msk.bf16.mxu1 %vm6070_vm0, %v6069_v42  ;;  %4702 = vmatpush3.bf16.msra.mxu1 %v2325_v34  ;;  %v5226_v34 = vld [vmem:[%s7616_s23 + $0x30] ss:$8 sps:$4 sm:$0xff]  }
 0x5dc   : > { %4727 = vmatprep.subr.bf16.mxu1 %v6069_v42  ;;  %v2279_v52 = vsel %vm2277_vm3, %v4467_v51, 0  ;;  %v5242_v51 = vld [vmem:[#allocation25 + $0x8] sm:$0xff]  }
 0x678   : > { %v1867_v23 = vpop.f32.mrb[20].mxu1 }
 0x679   : > { %v4635_v27 = vpop.f32.mrb[21].mxu1 }
 0x67a   : > { %v1870_v28 = vpop.f32.mrb[22].mxu1  ;;  %v5203_v27 = vld [vmem:[#allocation20 + $0x8] sm:$0xff]  }
 0x67b   : > { %v4636_v53 = vpop.f32.mrb[23].mxu1  ;;  %v5205_v28 = vld [vmem:[#allocation20 + $0x10] sm:$0xff]  }
 0x67c   : > { %v5207_v53 = vld [vmem:[#allocation20 + $0x18] sm:$0xff]  }
 0x680   : > { %v1910_v54 = vpop.f32.mrb[24].mxu1 }
 0x681   : > { %v1916_v55 = vpack.c.bf16 %v1910_v54, %v1867_v23  ;;  %v4641_v56 = vpop.f32.mrb[25].mxu1  ;;  %v5201_v23 = vld [vmem:[#allocation20] sm:$0xff]   ;;  %v5213_v54 = vld [vmem:[#allocation20 + $0x30] sm:$0xff]  }
 0x682   : > { %v1913_v57 = vpop.f32.mrb[26].mxu1 }
 0x683   : > { %v4642_v58 = vpop.f32.mrb[27].mxu1  ;;  %4660 = vmatmul.mubr.bf16.vlgmr.msra.gmra.mrb[4].mxu0 %v1916_v55  ;;  %v5215_v55 = vld [vmem:[#allocation20 + $0x38] sm:$0xff]  }
 0x684   : > { %4684 = vmatpush3.bf16.xpose.msra.mxu0 %v4465_v25  ;;  %4685 = vmatprep.mubr.msk.bf16.mxu0 %vm6070_vm0, %v6069_v42  ;;  %v5211_v25 = vld [vmem:[#allocation20 + $0x28] sm:$0xff]  }
 0x685   : > { %4695 = vmatprep.subr.bf16.mxu0 %v6069_v42 }
 0x68b   : > { %4686 = vmatmul.mubr.bf16.vlgmr.msra.gmra.mrb[8].mxu0 %v4463_v60 }
 0x68c   : > { %4697 = vmatprep.mubr.msk.bf16.mxu0 %vm6070_vm0, %v6069_v42  ;;  %4696 = vmatpush3.bf16.msra.mxu0 %v2279_v52  ;;  %v5243_v52 = vld [vmem:[#allocation25 + $0x10] sm:$0xff]  }
 0x68d   : > { %4707 = vmatprep.subr.bf16.mxu0 %v6069_v42 }
 0x6a0   : > { %v2120_v61 = vpop.f32.mrb[28].mxu1 }
 0x6a1   : > { %v4681_v62 = vpop.f32.mrb[29].mxu1 }
 0x6a2   : > { %v2123_v1 = vpop.f32.mrb[30].mxu1  ;;  %v5208_v62 = vld [vmem:[#allocation22 + $0x18] sm:$0xff]  }
 0x6a3   : > { %v4682_v2 = vpop.f32.mrb[31].mxu1 }
 0x6a4   : > { %v5212_v2 = vld [vmem:[#allocation22 + $0x28] sm:$0xff]  }
 0x6ad   : > { %v2238_v3 = vpop.f32.mrb[32].mxu1 }
 0x6ae   : > { %v2239_v4 = vadd.f32 %v7023_v21, %v2238_v3  ;;  %v4693_v5 = vpop.f32.mrb[33].mxu1  ;;  %v5214_v3 = vld [vmem:[#allocation22 + $0x30] sm:$0xff]  }
 0x6af   : > { %v2241_v6 = vpop.f32.mrb[34].mxu1 }
 0x6b0   : > { %v4694_v7 = vpop.f32.mrb[35].mxu1  ;;  %v2248_v8 = vsel %vm2244_vm2, %v2239_v4, -inf }
 0x6b1   : > { %2249 = vmax.xlane.f32.xlu1 %v2248_v8  ;;  %v5216_v8 = vld [vmem:[#allocation22 + $0x38] sm:$0xff]  }
 0x73e   : > { %v2250_v9 = vpop.xlane.xlu1 %2249 }
 0x73f   : > { %v2252_v10 = vsub.f32 %v2239_v4, %v2250_v9  ;;  %v5219_v9 = vld [vmem:[%s7615_s9 + $0x4] ss:$8 sps:$4 sm:$0xff]   ;;  %s7283_s9 = scalar_lea.vmem [#allocation35], %s6828_s5  ;;  %s7621_s5 = sld [smem:[#allocation57_spill]] }
 0x741   : > { %v2255_v11 = vmul.f32 1.442695, %v2252_v10 }
 0x743   : > { %5289 = vpow2.f32 %v2255_v11 }
 0x745   : > { %p7623_p11 = scmp.ne.s32.totalorder %s7621_s5, 0 }
 0x74d   : > { %v5290_v12 = vpop.eup %5289 }
 0x74e   : > { %v2260_v44 = vsel %vm2244_vm2, %v5290_v12, 0.0 }
 0x74f   : > { %2261 = vadd.xlane.f32.xlu1 %v2260_v44 }
 0x756   : > { %v2031_v15 = vpop.f32.mrb[4].mxu0 }
 0x757   : > { %v7028_v16 = vadd.f32 %v2120_v61, %v2031_v15  ;;  %v4661_v18 = vpop.f32.mrb[5].mxu0  ;;  %v5204_v61 = vld [vmem:[#allocation22 + $0x8] sm:$0xff]  }
 0x758   : > { %v2034_v19 = vpop.f32.mrb[6].mxu0  ;;  %v5217_v18 = vld [vmem:[%s7616_s23] ss:$8 sps:$4 sm:$0xff]  }
 0x759   : > { %v7030_v20 = vadd.f32 %v2123_v1, %v2034_v19  ;;  %v4662_v22 = vpop.f32.mrb[7].mxu0  ;;  %v5210_v1 = vld [vmem:[#allocation22 + $0x20] sm:$0xff]  }
 0x75e   : > { %v2198_v26 = vpop.f32.mrb[8].mxu0 }
 0x75f   : > { %v2199_v29 = vadd.f32 %v7032_v24, %v2198_v26  ;;  %v4687_v30 = vpop.f32.mrb[9].mxu0  ;;  %v5222_v26 = vld [vmem:[%s7616_s23 + $0x14] ss:$8 sps:$4 sm:$0xff]  }
 0x760   : > { %v2201_v31 = vpop.f32.mrb[10].mxu0 }
 0x761   : > { %v4688_v32 = vpop.f32.mrb[11].mxu0  ;;  %v2245_v33 = vsel %vm2244_vm2, %v2199_v29, -inf  ;;  %v5220_v31 = vld [vmem:[%s7616_s23 + $0x10] ss:$8 sps:$4 sm:$0xff]  }
 0x762   : > { %2246 = vmax.xlane.f32.xlu0 %v2245_v33  ;;  %v5225_v32 = vld [vmem:[%s7616_s23 + $0x24] ss:$8 sps:$4 sm:$0xff]   ;;  %v5223_v33 = vld [vmem:[%s7616_s23 + $0x20] ss:$8 sps:$4 sm:$0xff]  }
 0x7dc   : > { %v2262_v35 = vpop.xlane.xlu1 %2261 }
 0x7dd   : > { %5291 = vrcp.f32 %v2262_v35  ;;  %v5231_v35 = vld [vmem:[%s7616_s23 + $0x44] ss:$8 sps:$4 sm:$0xff]  }
 0x7e7   : > { %v5292_v36 = vpop.eup %5291 }
 0x7e8   : > { %v2266_v37 = vmul.f32 %v5292_v36, %v5290_v12  ;;  %v5229_v36 = vld [vmem:[%s7616_s23 + $0x40] ss:$8 sps:$4 sm:$0xff]  }
 0x7ea   : > { %v2268_v38 = vpack.c.bf16 %v2266_v37, %v2266_v37  ;;  %v5234_v37 = vld [vmem:[%s7616_s23 + $0x54] ss:$8 sps:$4 sm:$0xff]  }
 0x7ec   : > { %4704 = vmatmul.mubr.msk.bf16.vlgmr.msra.gmra.mrb[36].mxu1 %vm2244_vm2, %v2268_v38  ;;  %v5232_v38 = vld [vmem:[%s7616_s23 + $0x50] ss:$8 sps:$4 sm:$0xff]  }
 0x7ed   : > { %4743 = vmatprep.mubr.msk.bf16.mxu1 %vm6070_vm0, %v6069_v42  ;;  %4728 = vmatpush3.bf16.msra.mxu1 %v5201_v23  ;;  %v5244_v23 = vld [vmem:[#allocation25 + $0x18] sm:$0xff]  }
 0x7ee   : > { %4729 = vmatprep.subr.bf16.mxu1 %v6069_v42 }
 0x7ef   : > { %v2247_v43 = vpop.xlane.xlu0 %2246 }
 0x7f0   : > { %v2251_v46 = vsub.f32 %v2199_v29, %v2247_v43  ;;  %v5237_v43 = vld [vmem:[%s7616_s23 + $0x64] ss:$8 sps:$4 sm:$0xff]  }
 0x7f1   : > { %4730 = vmatpush3.bf16.msra.mxu1 %v5203_v27  ;;  %v5245_v27 = vld [vmem:[#allocation25 + $0x20] sm:$0xff]  }
 0x7f2   : > { %v2253_v48 = vmul.f32 1.442695, %v2251_v46  ;;  %4731 = vmatprep.subr.bf16.mxu1 %v6069_v42  ;;  %v5235_v46 = vld [vmem:[%s7616_s23 + $0x60] ss:$8 sps:$4 sm:$0xff]  }
 0x7f4   : > { %5293 = vpow2.f32 %v2253_v48  ;;  %v5240_v48 = vld [vmem:[%s7616_s23 + $0x74] ss:$8 sps:$4 sm:$0xff]  }
 0x7f5   : > { %4732 = vmatpush3.bf16.msra.mxu1 %v5205_v28  ;;  %v5246_v28 = vld [vmem:[#allocation25 + $0x28] sm:$0xff]  }
 0x7f6   : > { %4733 = vmatprep.subr.bf16.mxu1 %v6069_v42 }
 0x7f9   : > { %4734 = vmatpush3.bf16.msra.mxu1 %v5207_v53  ;;  %v5247_v53 = vld [vmem:[#allocation25 + $0x30] sm:$0xff]  }
 0x7fa   : > { %4735 = vmatprep.subr.bf16.mxu1 %v6069_v42 }
 0x7fd   : > { %4736 = vmatpush3.bf16.msra.mxu1 %v5209_v17  ;;  %v4346_v17 = vld [vmem:[#allocation19] ss:$0 sm:$0xff] }
 0x7fe   : > { %v5294_v49 = vpop.eup %5293  ;;  %4737 = vmatprep.subr.bf16.mxu1 %v6069_v42 }
 0x7ff   : > { %v2257_v50 = vsel %vm2244_vm2, %v5294_v49, 0.0 }
 0x800   : > { %2258 = vadd.xlane.f32.xlu0 %v2257_v50  ;;  %v5241_v50 = vld [vmem:[#allocation25] sm:$0xff]  }
 0x801   : > { %4738 = vmatpush3.bf16.msra.mxu1 %v5211_v25  ;;  %v2134_v25 = vadd.f32 %v4346_v17, %v7028_v16 }
 0x802   : > { %4739 = vmatprep.subr.bf16.mxu1 %v6069_v42 }
 0x805   : > { %4740 = vmatpush3.bf16.msra.mxu1 %v5213_v54  ;;  %v2135_v54 = vadd.f32 %v4346_v17, %v7030_v20 }
 0x806   : > { %4741 = vmatprep.subr.bf16.mxu1 %v6069_v42 }
 0x809   : > { %4742 = vmatpush3.bf16.msra.mxu1 %v5215_v55 }
 0x80a   : > { %4747 = vmatprep.subr.bf16.mxu1 %v6069_v42 }
 0x80c   : > { %4744 = vmatmul.mubr.bf16.vlgmr.msra.gmra.mrb[40].mxu1 %v6896_v41  ;;  %v5206_v41 = vld [vmem:[#allocation22 + $0x10] sm:$0xff]  }
 0x80d   : > { %4763 = vmatprep.mubr.msk.bf16.mxu1 %vm6070_vm0, %v6069_v42  ;;  %4748 = vmatpush3.bf16.msra.mxu1 %v5241_v50 }
 0x80e   : > { %4749 = vmatprep.subr.bf16.mxu1 %v6069_v42 }
 0x811   : > { %4750 = vmatpush3.bf16.msra.mxu1 %v5242_v51 }
 0x812   : > { %4751 = vmatprep.subr.bf16.mxu1 %v6069_v42 }
 0x815   : > { %4752 = vmatpush3.bf16.msra.mxu1 %v5243_v52 }
 0x816   : > { %4753 = vmatprep.subr.bf16.mxu1 %v6069_v42 }
 0x819   : > { %4754 = vmatpush3.bf16.msra.mxu1 %v5244_v23 }
 0x81a   : > { %4755 = vmatprep.subr.bf16.mxu1 %v6069_v42 }
 0x81d   : > { %4756 = vmatpush3.bf16.msra.mxu1 %v5245_v27 }
 0x81e   : > { %4757 = vmatprep.subr.bf16.mxu1 %v6069_v42 }
 0x821   : > { %4758 = vmatpush3.bf16.msra.mxu1 %v5246_v28 }
 0x822   : > { %4759 = vmatprep.subr.bf16.mxu1 %v6069_v42 }
 0x825   : > { %4760 = vmatpush3.bf16.msra.mxu1 %v5247_v53 }
 0x826   : > { %4761 = vmatprep.subr.bf16.mxu1 %v6069_v42 }
 0x88d   : > { %v2259_v56 = vpop.xlane.xlu0 %2258 }
 0x88e   : > { %5295 = vrcp.f32 %v2259_v56  ;;  %v4373_v56 = vld [vmem:[#allocation23] ss:$0 sm:$0xff] }
 0x898   : > { %v5296_v57 = vpop.eup %5295 }
 0x899   : > { %v2265_v58 = vmul.f32 %v5296_v57, %v5294_v49  ;;  %v5238_v49 = vld [vmem:[%s7616_s23 + $0x70] ss:$8 sps:$4 sm:$0xff]   ;;  %v2136_v57 = vmax.f32 %v2134_v25, 0.0 }
 0x89b   : > { %v2267_v60 = vpack.c.bf16 %v2265_v58, %v2265_v58 }
 0x89d   : > { %4698 = vmatmul.mubr.msk.bf16.vlgmr.msra.gmra.mrb[12].mxu0 %vm2244_vm2, %v2267_v60 }
 0x89e   : > { %4708 = vmatpush3.bf16.msra.mxu0 %v5202_v59  ;;  %4723 = vmatprep.mubr.msk.bf16.mxu0 %vm6070_vm0, %v6069_v42 }
 0x89f   : > { %4709 = vmatprep.subr.bf16.mxu0 %v6069_v42 }
 0x8a2   : > { %4710 = vmatpush3.bf16.msra.mxu0 %v5204_v61  ;;  %v2137_v61 = vmax.f32 %v2135_v54, 0.0 }
 0x8a3   : > { %4711 = vmatprep.subr.bf16.mxu0 %v6069_v42 }
 0x8a4   : > { %v2590_v20 = vadd.f32 %v2137_v61, %v6892_v40  ;;  %v7146_v40 = vld [vmem:[%s1064_s7] sm:$0xff]  ;;  %v3299_v61 = vld [vmem:[%s7199_s22 + $0x8] sm:$0xff] }
 0x8a6   : > { %4712 = vmatpush3.bf16.msra.mxu0 %v5206_v41 }
 0x8a7   : > { %4713 = vmatprep.subr.bf16.mxu0 %v6069_v42 }
 0x8aa   : > { %4714 = vmatpush3.bf16.msra.mxu0 %v5208_v62 }
 0x8ab   : > { %4715 = vmatprep.subr.bf16.mxu0 %v6069_v42 }
 0x8ae   : > { %4716 = vmatpush3.bf16.msra.mxu0 %v5210_v1 }
 0x8af   : > { %4717 = vmatprep.subr.bf16.mxu0 %v6069_v42 }
 0x8b2   : > { %4718 = vmatpush3.bf16.msra.mxu0 %v5212_v2  ;;  %v2589_v2 = vadd.f32 %v2136_v57, %v6888_v39  ;;  %v5248_v39 = vld [vmem:[#allocation25 + $0x38] sm:$0xff]  }
 0x8b3   : > { %4719 = vmatprep.subr.bf16.mxu0 %v6069_v42  ;;  %4762 = vmatpush3.bf16.msra.mxu1 %v5248_v39 }
 0x8b4   : > { %4773 = vmatprep.subr.bf16.mxu1 %v6069_v42 }
 0x8b6   : > { %4720 = vmatpush3.bf16.msra.mxu0 %v5214_v3 }
 0x8b7   : > { %4721 = vmatprep.subr.bf16.mxu0 %v6069_v42 }
 0x8ba   : > { %4722 = vmatpush3.bf16.msra.mxu0 %v5216_v8  ;;  %v7150_v8 = vld [vmem:[%s1064_s7 + $0x8] sm:$0xff]  ;;  %s3865_s7 = sshll.u32 %s7283_s9, 4  ;;  %s7331_s7 = int_to_ptr.vmem [resolvable:$true] %s3865_s7 }
 0x8bb   : > { %2702 = vmatprep.subr.bf16.mxu0 %v5219_v9  ;;  %v1272_v9 = vpack.c.bf16 %v7150_v8, %v7146_v40 }
 0x8bd   : > { %4764 = vmatmul.mubr.bf16.vlgmr.msra.gmra.mrb[44].mxu1 %v1272_v9 }
 0x8be   : > { %4775 = vmatprep.mubr.msk.bf16.mxu1 %vm6070_vm0, %v6069_v42 }
 0x8bf   : > { %v2361_v4 = vpop.f32.mrb[36].mxu1 }
 0x8c0   : > { %v4705_v5 = vpop.f32.mrb[37].mxu1 }
 0x8c1   : > { %v2364_v6 = vpop.f32.mrb[38].mxu1 }
 0x8c2   : > { %v4706_v7 = vpop.f32.mrb[39].mxu1 }
 0x8df   : > { %v7072_v10 = vpop.f32.mrb[40].mxu1 }
 0x8e0   : > { %v4745_v11 = vpop.f32.mrb[41].mxu1 }
 0x8e1   : > { %v7074_v12 = vpop.f32.mrb[42].mxu1 }
 0x8e2   : > { %v4746_v44 = vpop.f32.mrb[43].mxu1 }
 0x970   : > { %v2315_v15 = vpop.f32.mrb[12].mxu0 }
 0x971   : > { %v2367_v19 = vpack.c.bf16 %v2361_v4, %v2315_v15  ;;  %v4699_v22 = vpop.f32.mrb[13].mxu0 }
 0x972   : > { %v2318_v29 = vpop.f32.mrb[14].mxu0 }
 0x973   : > { %v4700_v30 = vpop.f32.mrb[15].mxu0  ;;  %4724 = vmatmul.mubr.bf16.vlgmr.msra.gmra.mrb[16].mxu0 %v2367_v19 }
 0x974   : > { %2703 = vmatpush1.bf16.msra.mxu0 %v5217_v18  ;;  %2734 = vmatprep.mubr.bf16.mxu0 %v6068_v0 }
 0x975   : > { %2704 = vmatprep.subr.bf16.mxu0 %v5222_v26 }
 0x978   : > { %2705 = vmatpush1.bf16.msra.mxu0 %v5220_v31 }
 0x979   : > { %2706 = vmatprep.subr.bf16.mxu0 %v5225_v32 }
 0x97c   : > { %2707 = vmatpush1.bf16.msra.mxu0 %v5223_v33 }
 0x97d   : > { %2708 = vmatprep.subr.bf16.mxu0 %v5228_v13  ;;  %v4390_v13 = vld [vmem:[%s7618_s17] ss:$0 sm:$0xff] }
 0x980   : > { %2709 = vmatpush1.bf16.msra.mxu0 %v5226_v34 }
 0x981   : > { %2710 = vmatprep.subr.bf16.mxu0 %v5231_v35 }
 0x984   : > { %2711 = vmatpush1.bf16.msra.mxu0 %v5229_v36 }
 0x985   : > { %2712 = vmatprep.subr.bf16.mxu0 %v5234_v37 }
 0x988   : > { %2713 = vmatpush1.bf16.msra.mxu0 %v5232_v38 }
 0x989   : > { %2714 = vmatprep.subr.bf16.mxu0 %v5237_v43 }
 0x98c   : > { %2715 = vmatpush1.bf16.msra.mxu0 %v5235_v46 }
 0x98d   : > { %2716 = vmatprep.subr.bf16.mxu0 %v5240_v48 }
 0x990   : > { %2717 = vmatpush1.bf16.msra.mxu0 %v5238_v49  ;;  %v2856_v34 = vpop.f32.mrb[44].mxu1 }
 0x991   : > { %4767 = vmatprep.subr.bf16.mxu0 %v6069_v42  ;;  %v2857_v35 = vadd.f32 %v4390_v13, %v2856_v34  ;;  %v4765_v36 = vpop.f32.mrb[45].mxu1 }
 0x992   : > { %v2859_v37 = vpop.f32.mrb[46].mxu1 }
 0x993   : > { %v7177_v38 = vmax.f32 %v2857_v35, 0.0  ;;  %v2860_v43 = vadd.f32 %v4390_v13, %v2859_v37  ;;  %v4766_v46 = vpop.f32.mrb[47].mxu1  ;;  %v3301_v13 = vld [vmem:[%s7199_s22 + $0x18] sm:$0xff] }
 0x995   : > { %v7179_v48 = vmax.f32 %v2860_v43, 0.0  ;;  %v4471_v49 = vpack.c.bf16 %v7177_v38, %v7177_v38 }
 0x997   : > { %v2865_v50 = vpack.c.bf16 %v7179_v48, %v7177_v38  ;;  %v4472_v51 = vpack.c.bf16 %v7179_v48, %v7179_v48  ;;  %v2986_v52 = vsel %vm2277_vm3, %v4471_v49, 0  ;;  %v5258_v38 = vld [vmem:[#allocation28 + $0x8] sm:$0xff]   ;;  %v5259_v48 = vld [vmem:[#allocation28 + $0x10] sm:$0xff]  }
 0x999   : > { %v3032_v23 = vsel %vm2277_vm3, %v4472_v51, 0 }
 0xa46   : > { %v2482_v55 = vpop.f32.mrb[16].mxu0 }
 0xa47   : > { %v2572_v58 = vadd.f32 %v7072_v10, %v2482_v55  ;;  %v4725_v59 = vpop.f32.mrb[17].mxu0  ;;  %v2610_v10 = vld [vmem:[%s7617_s6] sm:$0x3]  ;;  %s3849_s6 = sshll.u32 %s7137_s27, 4  ;;  %s7291_s6 = int_to_ptr.vmem [resolvable:$true] %s3849_s6 }
 0xa48   : > { %v2485_v60 = vpop.f32.mrb[18].mxu0  ;;  %v2615_v11 = vrot.slane %v2610_v10, %v6908_v45 }
 0xa49   : > { %v2585_v41 = vadd.f32 %v4373_v56, %v2572_v58  ;;  %v2575_v62 = vadd.f32 %v7074_v12, %v2485_v60  ;;  %v4726_v1 = vpop.f32.mrb[19].mxu0  ;;  %v7161_v12 = vrot.slane %v2610_v10, %v6911_v47 }
 0xa4b   : > { %v2587_v3 = vmax.f32 %v2585_v41, 0.0  ;;  %v2586_v16 = vadd.f32 %v4373_v56, %v2575_v62  ;;  %v3298_v41 = vld [vmem:[%s7199_s22] sm:$0xff]  ;;  %v6071_v62 = vmov 1  }
 0xa4d   : > { %v2591_v4 = vadd.f32 %v2589_v2, %v2587_v3  ;;  %v2588_v5 = vmax.f32 %v2586_v16, 0.0 }
 0xa4f   : > { %3804 = vst [vmem:[%s7137_s27] sm:$0xff] %v2591_v4  ;;  %v2592_v6 = vadd.f32 %v2590_v20, %v2588_v5  ;;  %v3302_v5 = vld [vmem:[%s6839_s3] sm:$0x3] }
 0xa51   : > { %v2593_v7 = vpack.c.bf16 %v2592_v6, %v2591_v4  ;;  %3805 = vst [vmem:[%s7137_s27 + $0x8] sm:$0xff] %v2592_v6  ;;  %s6072_s27 = smov [#allocation33]  }
 0xa53   : > { %2735 = vmatmul.mubr.bf16.vlgmr.msra.gmra.mrb[20].mxu0 %v2593_v7  ;;  %v3359_v7 = vrot.slane %v3302_v5, %v6911_v47 }
 0xa54   : > { %4769 = vmatprep.mubr.msk.bf16.mxu0 %vm6070_vm0, %v6069_v42 }
 0xb26   : > { %v2736_v44 = vpop.f32.mrb[20].mxu0 }
 0xb27   : > { %v2737_v15 = vadd.f32 %v2736_v44, %v2615_v11  ;;  %v2738_v18 = vpop.f32.mrb[21].mxu0 }
 0xb28   : > { %v7164_v19 = vadd.f32 %v2738_v18, %v7161_v12  ;;  %v2740_v22 = vpop.f32.mrb[22].mxu0 }
 0xb29   : > { %v2745_v26 = vmax.f32 %v2737_v15, 0.0  ;;  %v2741_v29 = vadd.f32 %v2740_v22, %v2615_v11  ;;  %v7166_v30 = vpop.f32.mrb[23].mxu0  ;;  %v3327_v15 = vrot.slane %v3302_v5, %v6908_v45 }
 0xb2b   : > { %v4469_v31 = vpack.c.bf16 %v2745_v26, %v2745_v26  ;;  %v2747_v32 = vmax.f32 %v2741_v29, 0.0 }
 0xb2d   : > { %v4470_v33 = vpack.c.bf16 %v2747_v32, %v2747_v32  ;;  %4768 = vmatpush3.bf16.xpose.msra.mxu0 %v4469_v31  ;;  %v3300_v32 = vld [vmem:[%s7199_s22 + $0x10] sm:$0xff]  ;;  %s5873_s22 = scalar_lea.vmem %s7291_s6, 256 }
 0xb2e   : > { %4779 = vmatprep.subr.bf16.mxu0 %v6069_v42  ;;  %p5874_p7 = scmp.ne.s32.totalorder %s7291_s6, %s5873_s22 }
 0xb2f   : > { %4774 = vmatpush3.bf16.xpose.msra.mxu1 %v4470_v33 }
 0xb30   : > { %4785 = vmatprep.subr.bf16.mxu1 %v6069_v42  ;;  %p5875_p12 = pnand %p5874_p7, %p7623_p11 }
 0xb32   : > { %p5876_p4 = pneg %p5875_p12 }
 0xb34   : > { %4770 = vmatmul.mubr.bf16.vlgmr.msra.gmra.mrb[24].mxu0 %v4469_v31 }
 0xb35   : > { %4781 = vmatprep.mubr.msk.bf16.mxu0 %vm6070_vm0, %v6069_v42  ;;  %4780 = vmatpush3.bf16.msra.mxu0 %v2986_v52 }
 0xb36   : > { %4776 = vmatmul.mubr.bf16.vlgmr.msra.gmra.mrb[48].mxu1 %v4470_v33  ;;  %4791 = vmatprep.subr.bf16.mxu0 %v6069_v42 }
 0xb37   : > { %4787 = vmatprep.mubr.msk.bf16.mxu1 %vm6070_vm0, %v6069_v42  ;;  %4786 = vmatpush3.bf16.msra.mxu1 %v3032_v23  ;;  %v3303_v23 = vld [vmem:[%s6839_s3 + $0x2] sm:$0x3]  ;;  %s5877_s3 = sshll.u32 %s6072_s27, 4  ;;  %s5878_s3 = int_to_ptr.vmem [resolvable:$false] %s5877_s3 }
 0xb38   : > { %4811 = vmatprep.subr.bf16.mxu1 %v6069_v42  ;;  %s5879_s19 = scalar_lea.vmem %s5878_s3, 512  ;;  %p5880_p10 = scmp.lt.s32.totalorder %s7291_s6, %s5878_s3 }
 0xb39   : > { %p5881_p2 = scmp.lt.s32.totalorder %s5879_s19, %s5873_s22 }
 0xb3b   : > { %p5882_p3 = por %p5881_p2, %p5880_p10 }
 0xb3d   : > { %p5883_p5 = pnand %p5882_p3, %p5876_p4 }
 0xc07   : > { %v2907_v27 = vpop.f32.mrb[24].mxu0 }
 0xc08   : > { %v2908_v28 = vadd.f32 %v7032_v24, %v2907_v27  ;;  %v4771_v53 = vpop.f32.mrb[25].mxu0 }
 0xc09   : > { %v2910_v17 = vpop.f32.mrb[26].mxu0  ;;  %v2947_v25 = vpop.f32.mrb[48].mxu1  ;;  %v3331_v53 = vrot.slane %v3303_v23, %v6908_v45 }
 0xc0a   : > { %v2948_v54 = vadd.f32 %v7023_v21, %v2947_v25  ;;  %v4772_v55 = vpop.f32.mrb[27].mxu0  ;;  %v4777_v56 = vpop.f32.mrb[49].mxu1  ;;  %v2953_v57 = vsel %vm2244_vm2, %v2908_v28, -inf }
 0xc0b   : > { %2954 = vmax.xlane.f32.xlu0 %v2953_v57  ;;  %v2950_v58 = vpop.f32.mrb[50].mxu1  ;;  %v3363_v57 = vrot.slane %v3303_v23, %v6911_v47 }
 0xc0c   : > { %v4778_v59 = vpop.f32.mrb[51].mxu1  ;;  %v2956_v60 = vsel %vm2244_vm2, %v2948_v54, -inf }
 0xc0d   : > { %2957 = vmax.xlane.f32.xlu1 %v2956_v60 }
 0xc1e   : > { %3311 = vperm.xlu1 %5124, %v3299_v61  }
 0xc22   : > { %5125 = vset.pattern.permute.xlu1 %v6071_v62 }
 0xc23   : > { %3341 = vperm.xlu1 %5125, %v3298_v41  }
 0xc27   : > { %3345 = vperm.xlu1 %5125, %v3299_v61  }
 0xc2b   : > { %5126 = vset.pattern.permute.xlu1 %v6068_v0 }
 0xc98   : > { %v2955_v1 = vpop.xlane.xlu0 %2954 }
 0xc99   : > { %v2959_v2 = vsub.f32 %v2908_v28, %v2955_v1 }
 0xc9a   : > { %v2958_v3 = vpop.xlane.xlu1 %2957 }
 0xc9b   : > { %v2961_v16 = vmul.f32 1.442695, %v2959_v2  ;;  %v2960_v20 = vsub.f32 %v2948_v54, %v2958_v3  ;;  %v5249_v3 = vld [vmem:[#allocation26] sm:$0xff]  }
 0xc9d   : > { %5297 = vpow2.f32 %v2961_v16  ;;  %v2963_v4 = vmul.f32 1.442695, %v2960_v20 }
 0xc9e   : > { %v3312_v6 = vpop.permute.xlu1 %3311 }
 0xc9f   : > { %5299 = vpow2.f32 %v2963_v4  ;;  %v3333_v22 = vsub.f32 %v3312_v6, %v3327_v15 }
 0xca1   : > { %v3337_v29 = vmul.f32 %v3333_v22, %v3333_v22 }
 0xca2   : > { %v3342_v39 = vpop.permute.xlu1 %3341 }
 0xca3   : > { %v3364_v9 = vsub.f32 %v3342_v39, %v3359_v7 }
 0xca5   : > { %v3368_v55 = vmul.f32 %v3364_v9, %v3364_v9 }
 0xca6   : > { %v3346_v18 = vpop.permute.xlu1 %3345 }
 0xca7   : > { %v5298_v10 = vpop.eup %5297  ;;  %v3365_v26 = vsub.f32 %v3346_v18, %v3359_v7  ;;  %v5250_v7 = vld [vmem:[#allocation26 + $0x8] sm:$0xff]  }
 0xca8   : > { %v2965_v11 = vsel %vm2244_vm2, %v5298_v10, 0.0 }
 0xca9   : > { %v5300_v0 = vpop.eup %5299  ;;  %2966 = vadd.xlane.f32.xlu0 %v2965_v11  ;;  %v3369_v31 = vmul.f32 %v3365_v26, %v3365_v26  ;;  %v5251_v11 = vld [vmem:[#allocation26 + $0x10] sm:$0xff]  }
 0xcaa   : > { %v2968_v44 = vsel %vm2244_vm2, %v5300_v0, 0.0 }
 0xcab   : > { %2969 = vadd.xlane.f32.xlu1 %v2968_v44  ;;  %v3373_v33 = vadd.f32 %v3369_v31, %v3337_v29 }
 0xcad   : > { %5301 = vrsqrt.f32 %v3373_v33  ;;  %vm3385_vm4 = vcmp.eq.f32.partialorder %v3373_v33, inf  ;;  %v3388_v36 = vand.u32 2147483648, %v3373_v33  ;;  %vm3387_vm5 = vcmp.eq.f32.partialorder %v3373_v33, 0.0 }
 0xcb7   : > { %v5302_v34 = vpop.eup %5301 }
 0xcb8   : > { %v3384_v35 = vmul.f32 %v5302_v34, %v3373_v33 }
 0xcba   : > { %v3386_v37 = vsel %vm3385_vm4, %v3373_v33, %v3384_v35 }
 0xcbb   : > { %v3389_v43 = vsel %vm3387_vm5, %v3388_v36, %v3386_v37  ;;  %v5254_v37 = vld [vmem:[#allocation26 + $0x28] sm:$0xff]  }
 0xcbc   : > { %3316 = vperm.xlu1 %5126, %v3300_v32   ;;  %v7212_v46 = vadd.f32 %v7032_v24, %v3389_v43 }
 0xcbe   : > { %v3411_v49 = vsel %vm2244_vm2, %v7212_v46, -inf }
 0xcbf   : > { %3306 = vperm.xlu0 %5123, %v3298_v41  }
 0xcc0   : > { %3321 = vperm.xlu1 %5126, %v3301_v13  }
 0xcc3   : > { %5128 = vset.pattern.permute.xlu0 %v6071_v62 }
 0xcc4   : > { %5127 = vset.pattern.permute.xlu1 %v6071_v62 }
 0xcc5   : > { %3349 = vperm.xlu1 %5127, %v3300_v32   ;;  %v5253_v32 = vld [vmem:[#allocation26 + $0x20] sm:$0xff]  }
 0xcc9   : > { %3353 = vperm.xlu1 %5127, %v3301_v13  }
 0xcde   : > { %3412 = vmax.xlane.f32.xlu0 %v3411_v49 }
 0xd36   : > { %v2967_v51 = vpop.xlane.xlu0 %2966 }
 0xd37   : > { %5303 = vrcp.f32 %v2967_v51 }
 0xd38   : > { %v2970_v52 = vpop.xlane.xlu1 %2969 }
 0xd39   : > { %5305 = vrcp.f32 %v2970_v52  ;;  %v2743_v52 = vadd.f32 %v7166_v30, %v7161_v12 }
 0xd3c   : > { %v3317_v27 = vpop.permute.xlu1 %3316 }
 0xd3d   : > { %v3334_v60 = vsub.f32 %v3317_v27, %v3331_v53 }
 0xd3e   : > { %v3307_v28 = vpop.permute.xlu0 %3306 }
 0xd3f   : > { %v3332_v17 = vsub.f32 %v3307_v28, %v3327_v15  ;;  %v3338_v16 = vmul.f32 %v3334_v60, %v3334_v60  ;;  %v5252_v15 = vld [vmem:[#allocation26 + $0x18] sm:$0xff]   ;;  %v5255_v28 = vld [vmem:[#allocation26 + $0x30] sm:$0xff]   ;;  %v5257_v60 = vld [vmem:[#allocation28] sm:$0xff]  }
 0xd40   : > { %v3322_v25 = vpop.permute.xlu1 %3321 }
 0xd41   : > { %v5304_v54 = vpop.eup %5303  ;;  %v3336_v56 = vmul.f32 %v3332_v17, %v3332_v17  ;;  %v3335_v20 = vsub.f32 %v3322_v25, %v3331_v53  ;;  %v2748_v25 = vmax.f32 %v2743_v52, 0.0 }
 0xd42   : > { %v2973_v58 = vmul.f32 %v5304_v54, %v5298_v10 }
 0xd43   : > { %v5306_v59 = vpop.eup %5305  ;;  %v3372_v61 = vadd.f32 %v3368_v55, %v3336_v56  ;;  %v3339_v39 = vmul.f32 %v3335_v20, %v3335_v20  ;;  %v5256_v55 = vld [vmem:[#allocation26 + $0x38] sm:$0xff]   ;;  %v4474_v12 = vpack.c.bf16 %v2748_v25, %v2748_v25  ;;  %v5267_v25 = vld [vmem:[#allocation31 + $0x10] sm:$0xff]  }
 0xd44   : > { %v2974_v41 = vmul.f32 %v5306_v59, %v5300_v0  ;;  %v3350_v62 = vpop.permute.xlu1 %3349  ;;  %v2975_v1 = vpack.c.bf16 %v2973_v58, %v2973_v58 }
 0xd45   : > { %5307 = vrsqrt.f32 %v3372_v61  ;;  %v3366_v2 = vsub.f32 %v3350_v62, %v3363_v57  ;;  %vm3378_vm6 = vcmp.eq.f32.partialorder %v3372_v61, inf  ;;  %v3381_v18 = vand.u32 2147483648, %v3372_v61  ;;  %v5264_v62 = vld [vmem:[#allocation28 + $0x38] sm:$0xff]  }
 0xd46   : > { %4782 = vmatmul.mubr.msk.bf16.vlgmr.msra.gmra.mrb[28].mxu0 %vm2244_vm2, %v2975_v1  ;;  %v2976_v45 = vpack.c.bf16 %v2974_v41, %v2974_v41  ;;  %vm3380_vm7 = vcmp.eq.f32.partialorder %v3372_v61, 0.0  ;;  %v3510_v30 = vsel %vm2277_vm3, %v4474_v12, 0  ;;  %v5263_v41 = vld [vmem:[#allocation28 + $0x30] sm:$0xff]  }
 0xd47   : > { %v3370_v4 = vmul.f32 %v3366_v2, %v3366_v2  ;;  %4807 = vmatprep.mubr.msk.bf16.mxu0 %vm6070_vm0, %v6069_v42  ;;  %4792 = vmatpush3.bf16.msra.mxu0 %v5257_v60  ;;  %v5272_v60 = vld [vmem:[#allocation31 + $0x38] sm:$0xff]  }
 0xd48   : > { %4788 = vmatmul.mubr.msk.bf16.vlgmr.msra.gmra.mrb[52].mxu1 %vm2244_vm2, %v2976_v45  ;;  %v3354_v47 = vpop.permute.xlu1 %3353  ;;  %4793 = vmatprep.subr.bf16.mxu0 %v6069_v42 }
 0xd49   : > { %v3374_v5 = vadd.f32 %v3370_v4, %v3338_v16  ;;  %4812 = vmatpush3.bf16.msra.mxu1 %v5249_v3  ;;  %v3367_v6 = vsub.f32 %v3354_v47, %v3363_v57  ;;  %4827 = vmatprep.mubr.msk.bf16.mxu1 %vm6070_vm0, %v6069_v42 }
 0xd4a   : > { %4813 = vmatprep.subr.bf16.mxu1 %v6069_v42 }
 0xd4b   : > { %5309 = vrsqrt.f32 %v3374_v5  ;;  %v3371_v9 = vmul.f32 %v3367_v6, %v3367_v6  ;;  %vm3392_vm8 = vcmp.eq.f32.partialorder %v3374_v5, inf  ;;  %v3395_v34 = vand.u32 2147483648, %v3374_v5  ;;  %4794 = vmatpush3.bf16.msra.mxu0 %v5258_v38 }
 0xd4c   : > { %vm3394_vm9 = vcmp.eq.f32.partialorder %v3374_v5, 0.0  ;;  %4795 = vmatprep.subr.bf16.mxu0 %v6069_v42 }
 0xd4d   : > { %v3375_v10 = vadd.f32 %v3371_v9, %v3339_v39  ;;  %4814 = vmatpush3.bf16.msra.mxu1 %v5250_v7 }
 0xd4e   : > { %4815 = vmatprep.subr.bf16.mxu1 %v6069_v42 }
 0xd4f   : > { %v5308_v0 = vpop.eup %5307  ;;  %5311 = vrsqrt.f32 %v3375_v10  ;;  %vm3399_vm10 = vcmp.eq.f32.partialorder %v3375_v10, inf  ;;  %v3402_v51 = vand.u32 2147483648, %v3375_v10  ;;  %vm3401_vm11 = vcmp.eq.f32.partialorder %v3375_v10, 0.0  ;;  %4796 = vmatpush3.bf16.msra.mxu0 %v5259_v48  ;;  %v4421_v48 = vld [vmem:[%s7620_s25] ss:$0 sm:$0xff] }
 0xd50   : > { %v3377_v44 = vmul.f32 %v5308_v0, %v3372_v61  ;;  %4797 = vmatprep.subr.bf16.mxu0 %v6069_v42  ;;  %v2746_v0 = vmax.f32 %v7164_v19, 0.0 }
 0xd51   : > { %4816 = vmatpush3.bf16.msra.mxu1 %v5251_v11 }
 0xd52   : > { %4817 = vmatprep.subr.bf16.mxu1 %v6069_v42  ;;  %v3379_v22 = vsel %vm3378_vm6, %v3372_v61, %v3377_v44  ;;  %v5262_v61 = vld [vmem:[#allocation28 + $0x28] sm:$0xff]  }
 0xd53   : > { %v3382_v26 = vsel %vm3380_vm7, %v3381_v18, %v3379_v22 }
 0xd54   : > { %v7229_v29 = vadd.f32 %v7032_v24, %v3382_v26 }
 0xd55   : > { %v5310_v31 = vpop.eup %5309  ;;  %4818 = vmatpush3.bf16.msra.mxu1 %v5252_v15  ;;  %v4473_v15 = vpack.c.bf16 %v2746_v0, %v2746_v0 }
 0xd56   : > { %v3408_v33 = vsel %vm2244_vm2, %v7229_v29, -inf  ;;  %4819 = vmatprep.subr.bf16.mxu1 %v6069_v42  ;;  %v3391_v13 = vmul.f32 %v5310_v31, %v3374_v5 }
 0xd57   : > { %3409 = vmax.xlane.f32.xlu1 %v3408_v33 }
 0xd58   : > { %v3393_v35 = vsel %vm3392_vm8, %v3374_v5, %v3391_v13 }
 0xd59   : > { %v5312_v36 = vpop.eup %5311  ;;  %4820 = vmatpush3.bf16.msra.mxu1 %v5253_v32  ;;  %v3396_v43 = vsel %vm3394_vm9, %v3395_v34, %v3393_v35  ;;  %v3463_v34 = vsel %vm2277_vm3, %v4473_v15, 0  ;;  %v5275_v15 = vld [vmem:[#allocation29 + $0x10] sm:$0xff]  }
 0xd5a   : > { %4821 = vmatprep.subr.bf16.mxu1 %v6069_v42  ;;  %v7236_v24 = vadd.f32 %v7023_v21, %v3396_v43  ;;  %v3398_v49 = vmul.f32 %v5312_v36, %v3375_v10  ;;  %v5265_v43 = vld [vmem:[#allocation31] sm:$0xff]  }
 0xd5c   : > { %v3414_v23 = vsel %vm2244_vm2, %v7236_v24, -inf  ;;  %v3400_v27 = vsel %vm3399_vm10, %v3375_v10, %v3398_v49 }
 0xd5d   : > { %4822 = vmatpush3.bf16.msra.mxu1 %v5254_v37  ;;  %3415 = vmax.xlane.f32.xlu0 %v3414_v23  ;;  %v3403_v53 = vsel %vm3401_vm11, %v3402_v51, %v3400_v27 }
 0xd5e   : > { %4823 = vmatprep.subr.bf16.mxu1 %v6069_v42  ;;  %v3407_v17 = vadd.f32 %v7023_v21, %v3403_v53 }
 0xd60   : > { %v3417_v54 = vsel %vm2244_vm2, %v3407_v17, -inf }
 0xd61   : > { %4824 = vmatpush3.bf16.msra.mxu1 %v5255_v28  ;;  %3418 = vmax.xlane.f32.xlu1 %v3417_v54 }
 0xd62   : > { %4825 = vmatprep.subr.bf16.mxu1 %v6069_v42 }
 0xd65   : > { %4826 = vmatpush3.bf16.msra.mxu1 %v5256_v55 }
 0xd66   : > { %4837 = vmatprep.subr.bf16.mxu1 %v6069_v42 }
 0xd68   : > { %4828 = vmatmul.mubr.bf16.vlgmr.msra.gmra.mrb[56].mxu1 %v2865_v50  ;;  %v5260_v50 = vld [vmem:[#allocation28 + $0x18] sm:$0xff]  }
 0xd69   : > { %4838 = vmatpush3.bf16.msra.mxu1 %v3510_v30  ;;  %4839 = vmatprep.mubr.msk.bf16.mxu1 %vm6070_vm0, %v6069_v42 }
 0xd6a   : > { %4798 = vmatpush3.bf16.msra.mxu0 %v5260_v50 }
 0xd6b   : > { %v3413_v21 = vpop.xlane.xlu0 %3412  ;;  %4799 = vmatprep.subr.bf16.mxu0 %v6069_v42 }
 0xd6c   : > { %v3421_v56 = vsub.f32 %v7212_v46, %v3413_v21  ;;  %v5261_v46 = vld [vmem:[#allocation28 + $0x20] sm:$0xff]   ;;  %v5268_v21 = vld [vmem:[#allocation31 + $0x18] sm:$0xff]  }
 0xd6e   : > { %v3426_v57 = vmul.f32 1.442695, %v3421_v56  ;;  %4800 = vmatpush3.bf16.msra.mxu0 %v5261_v46 }
 0xd6f   : > { %4801 = vmatprep.subr.bf16.mxu0 %v6069_v42 }
 0xd70   : > { %5313 = vpow2.f32 %v3426_v57  ;;  %v5269_v57 = vld [vmem:[#allocation31 + $0x20] sm:$0xff]  }
 0xd72   : > { %4802 = vmatpush3.bf16.msra.mxu0 %v5262_v61  ;;  %v5273_v61 = vld [vmem:[#allocation29] sm:$0xff]  }
 0xd73   : > { %4803 = vmatprep.subr.bf16.mxu0 %v6069_v42 }
 0xd76   : > { %4804 = vmatpush3.bf16.msra.mxu0 %v5263_v41 }
 0xd77   : > { %4805 = vmatprep.subr.bf16.mxu0 %v6069_v42 }
 0xd7a   : > { %v7254_v58 = vpop.eup %5313  ;;  %4806 = vmatpush3.bf16.msra.mxu0 %v5264_v62 }
 0xd7b   : > { %v3435_v59 = vsel %vm2244_vm2, %v7254_v58, 0.0  ;;  %4831 = vmatprep.subr.bf16.mxu0 %v6069_v42 }
 0xd7c   : > { %3436 = vadd.xlane.f32.xlu1 %v3435_v59  ;;  %v5271_v59 = vld [vmem:[#allocation31 + $0x30] sm:$0xff]  }
 0xde4   : > { %v3410_v1 = vpop.xlane.xlu1 %3409 }
 0xde5   : > { %v3420_v2 = vsub.f32 %v7229_v29, %v3410_v1 }
 0xde7   : > { %v3424_v3 = vmul.f32 1.442695, %v3420_v2 }
 0xde9   : > { %5315 = vpow2.f32 %v3424_v3 }
 0xdea   : > { %v3416_v45 = vpop.xlane.xlu0 %3415 }
 0xdeb   : > { %v3422_v16 = vsub.f32 %v7236_v24, %v3416_v45 }
 0xded   : > { %v3428_v20 = vmul.f32 1.442695, %v3422_v16 }
 0xdee   : > { %v3419_v4 = vpop.xlane.xlu1 %3418 }
 0xdef   : > { %5317 = vpow2.f32 %v3428_v20  ;;  %v3423_v47 = vsub.f32 %v3407_v17, %v3419_v4  ;;  %v5266_v17 = vld [vmem:[#allocation31 + $0x8] sm:$0xff]  }
 0xdf1   : > { %v3430_v5 = vmul.f32 1.442695, %v3423_v47 }
 0xdf3   : > { %v5316_v6 = vpop.eup %5315  ;;  %5319 = vpow2.f32 %v3430_v5 }
 0xdf4   : > { %v3432_v7 = vsel %vm2244_vm2, %v5316_v6, 0.0 }
 0xdf5   : > { %3433 = vadd.xlane.f32.xlu0 %v3432_v7 }
 0xdf9   : > { %v5318_v39 = vpop.eup %5317 }
 0xdfa   : > { %v3438_v9 = vsel %vm2244_vm2, %v5318_v39, 0.0 }
 0xdfb   : > { %3439 = vadd.xlane.f32.xlu0 %v3438_v9 }
 0xdfd   : > { %v5320_v10 = vpop.eup %5319 }
 0xdfe   : > { %v3441_v11 = vsel %vm2244_vm2, %v5320_v10, 0.0 }
 0xdff   : > { %3442 = vadd.xlane.f32.xlu1 %v3441_v11 }
 0xe09   : > { %v3437_v24 = vpop.xlane.xlu1 %3436 }
 0xe0a   : > { %5321 = vrcp.f32 %v3437_v24 }
 0xe14   : > { %v5322_v52 = vpop.eup %5321 }
 0xe15   : > { %v3449_v28 = vmul.f32 %v5322_v52, %v7254_v58  ;;  %v5270_v58 = vld [vmem:[#allocation31 + $0x28] sm:$0xff]  }
 0xe19   : > { %v3022_v44 = vpop.f32.mrb[28].mxu0 }
 0xe1a   : > { %v4783_v18 = vpop.f32.mrb[29].mxu0 }
 0xe1b   : > { %v3025_v22 = vpop.f32.mrb[30].mxu0  ;;  %v3068_v26 = vpop.f32.mrb[52].mxu1  ;;  %v5277_v18 = vld [vmem:[#allocation29 + $0x20] sm:$0xff]  }
 0xe1c   : > { %v3074_v29 = vpack.c.bf16 %v3068_v26, %v3022_v44  ;;  %v4784_v31 = vpop.f32.mrb[31].mxu0  ;;  %v4789_v32 = vpop.f32.mrb[53].mxu1  ;;  %v5274_v44 = vld [vmem:[#allocation29 + $0x8] sm:$0xff]   ;;  %v5279_v26 = vld [vmem:[#allocation29 + $0x30] sm:$0xff]  }
 0xe1d   : > { %v3071_v33 = vpop.f32.mrb[54].mxu1  ;;  %v5278_v22 = vld [vmem:[#allocation29 + $0x28] sm:$0xff]  }
 0xe1e   : > { %v4790_v13 = vpop.f32.mrb[55].mxu1  ;;  %4808 = vmatmul.mubr.bf16.vlgmr.msra.gmra.mrb[32].mxu0 %v3074_v29 }
 0xe1f   : > { %4832 = vmatpush3.bf16.msra.mxu0 %v3463_v34  ;;  %4833 = vmatprep.mubr.msk.bf16.mxu0 %vm6070_vm0, %v6069_v42 }
 0xe20   : > { %4843 = vmatprep.subr.bf16.mxu0 %v5265_v43 }
 0xe3b   : > { %v3278_v35 = vpop.f32.mrb[56].mxu1 }
 0xe3c   : > { %v4829_v36 = vpop.f32.mrb[57].mxu1 }
 0xe3d   : > { %v3281_v19 = vpop.f32.mrb[58].mxu1 }
 0xe3e   : > { %v4830_v37 = vpop.f32.mrb[59].mxu1 }
 0xe82   : > { %v3434_v49 = vpop.xlane.xlu0 %3433 }
 0xe83   : > { %5323 = vrcp.f32 %v3434_v49 }
 0xe88   : > { %v3440_v51 = vpop.xlane.xlu0 %3439 }
 0xe89   : > { %5325 = vrcp.f32 %v3440_v51 }
 0xe8c   : > { %v3443_v23 = vpop.xlane.xlu1 %3442 }
 0xe8d   : > { %v5324_v27 = vpop.eup %5323  ;;  %5327 = vrcp.f32 %v3443_v23 }
 0xe8e   : > { %v3448_v53 = vmul.f32 %v5324_v27, %v5316_v6 }
 0xe90   : > { %v3452_v42 = vpack.c.bf16 %v3449_v28, %v3448_v53 }
 0xe92   : > { %4834 = vmatmul.mubr.msk.bf16.vlgmr.msra.gmra.mrb[36].mxu0 %vm2244_vm2, %v3452_v42 }
 0xe93   : > { %4844 = vmatpush3.bf16.msra.mxu0 %v5265_v43  ;;  %v5326_v54 = vpop.eup %5325 }
 0xe94   : > { %4845 = vmatprep.subr.bf16.mxu0 %v5266_v17  ;;  %v3450_v12 = vmul.f32 %v5326_v54, %v5318_v39 }
 0xe97   : > { %v5328_v55 = vpop.eup %5327  ;;  %4846 = vmatpush3.bf16.msra.mxu0 %v5266_v17 }
 0xe98   : > { %v3451_v30 = vmul.f32 %v5328_v55, %v5320_v10  ;;  %4847 = vmatprep.subr.bf16.mxu0 %v5267_v25 }
 0xe9a   : > { %v3453_v56 = vpack.c.bf16 %v3451_v30, %v3450_v12 }
 0xe9b   : > { %4848 = vmatpush3.bf16.msra.mxu0 %v5267_v25 }
 0xe9c   : > { %4840 = vmatmul.mubr.msk.bf16.vlgmr.msra.gmra.mrb[60].mxu1 %vm2244_vm2, %v3453_v56  ;;  %4849 = vmatprep.subr.bf16.mxu0 %v5268_v21 }
 0xe9f   : > { %4850 = vmatpush3.bf16.msra.mxu0 %v5268_v21 }
 0xea0   : > { %4851 = vmatprep.subr.bf16.mxu0 %v5269_v57 }
 0xea3   : > { %4852 = vmatpush3.bf16.msra.mxu0 %v5269_v57 }
 0xea4   : > { %4853 = vmatprep.subr.bf16.mxu0 %v5270_v58 }
 0xea7   : > { %4854 = vmatpush3.bf16.msra.mxu0 %v5270_v58 }
 0xea8   : > { %4855 = vmatprep.subr.bf16.mxu0 %v5271_v59 }
 0xeab   : > { %4856 = vmatpush3.bf16.msra.mxu0 %v5271_v59 }
 0xeac   : > { %4857 = vmatprep.subr.bf16.mxu0 %v5272_v60 }
 0xeaf   : > { %4858 = vmatpush3.bf16.msra.mxu0 %v5272_v60 }
 0xeb0   : > { %4863 = vmatprep.subr.bf16.mxu0 %v5273_v61 }
 0xef1   : > { %v3189_v38 = vpop.f32.mrb[32].mxu0 }
 0xef2   : > { %v3279_v50 = vadd.f32 %v3278_v35, %v3189_v38  ;;  %v4809_v46 = vpop.f32.mrb[33].mxu0 }
 0xef3   : > { %v3192_v41 = vpop.f32.mrb[34].mxu0 }
 0xef4   : > { %v3292_v62 = vadd.f32 %v4421_v48, %v3279_v50  ;;  %v3282_v1 = vadd.f32 %v3281_v19, %v3192_v41  ;;  %v4810_v2 = vpop.f32.mrb[35].mxu0 }
 0xef6   : > { %v3294_v3 = vmax.f32 %v3292_v62, 0.0  ;;  %v3293_v45 = vadd.f32 %v4421_v48, %v3282_v1 }
 0xef8   : > { %v3296_v16 = vadd.f32 %v3294_v3, %v7146_v40  ;;  %v3295_v20 = vmax.f32 %v3293_v45, 0.0 }
 0xefa   : > { %3806 = vst [vmem:[%s7283_s9] sm:$0xff] %v3296_v16  ;;  %v3297_v4 = vadd.f32 %v3295_v20, %v7150_v8  ;;  %v5276_v8 = vld [vmem:[#allocation29 + $0x18] sm:$0xff]  }
 0xefc   : > { %3807 = vst [vmem:[%s7283_s9 + $0x8] sm:$0xff] %v3297_v4 }
 0xf65   : > { %v3499_v47 = vpop.f32.mrb[36].mxu0 }
 0xf66   : > { %v4835_v5 = vpop.f32.mrb[37].mxu0 }
 0xf67   : > { %v3502_v6 = vpop.f32.mrb[38].mxu0 }
 0xf68   : > { %v3553_v7 = vpack.c.bf16 %v3502_v6, %v3499_v47  ;;  %v4836_v39 = vpop.f32.mrb[39].mxu0 }
 0xf6a   : > { %4859 = vmatprep.mubr.bf16.mxu0 %v3553_v7 }
 0xf6f   : > { %v3546_v9 = vpop.f32.mrb[60].mxu1 }
 0xf70   : > { %v4841_v10 = vpop.f32.mrb[61].mxu1 }
 0xf71   : > { %v3549_v11 = vpop.f32.mrb[62].mxu1 }
 0xf72   : > { %v3554_v0 = vpack.c.bf16 %v3549_v11, %v3546_v9  ;;  %v4842_v40 = vpop.f32.mrb[63].mxu1 }
 0xf74   : > { %4860 = vmatmul.mubr.bf16.vlgmr.msra.gmra.mrb[40].mxu0 %v3554_v0 }
 0xf75   : > { %4864 = vmatpush3.bf16.msra.mxu0 %v5273_v61  ;;  %4879 = vmatprep.mubr.bf16.mxu0 %v6915_v63  ;;  %v5280_v63 = vld [vmem:[#allocation29 + $0x38] sm:$0xff]  }
 0xf76   : > { %4865 = vmatprep.subr.bf16.mxu0 %v5274_v44 }
 0xf79   : > { %4866 = vmatpush3.bf16.msra.mxu0 %v5274_v44 }
 0xf7a   : > { %4867 = vmatprep.subr.bf16.mxu0 %v5275_v15 }
 0xf7d   : > { %4868 = vmatpush3.bf16.msra.mxu0 %v5275_v15 }
 0xf7e   : > { %4869 = vmatprep.subr.bf16.mxu0 %v5276_v8 }
 0xf81   : > { %4870 = vmatpush3.bf16.msra.mxu0 %v5276_v8 }
 0xf82   : > { %4871 = vmatprep.subr.bf16.mxu0 %v5277_v18 }
 0xf85   : > { %4872 = vmatpush3.bf16.msra.mxu0 %v5277_v18 }
 0xf86   : > { %4873 = vmatprep.subr.bf16.mxu0 %v5278_v22 }
 0xf89   : > { %4874 = vmatpush3.bf16.msra.mxu0 %v5278_v22 }
 0xf8a   : > { %4875 = vmatprep.subr.bf16.mxu0 %v5279_v26 }
 0xf8d   : > { %4876 = vmatpush3.bf16.msra.mxu0 %v5279_v26 }
 0xf8e   : > { %4877 = vmatprep.subr.bf16.mxu0 %v5280_v63 }
 0xf91   : > { %4878 = vmatpush3.bf16.msra.mxu0 %v5280_v63 }
 0xf94   : > { %4880 = vmatmul.mubr.bf16.vlgmr.msra.gmra.mrb[40].mxu0 %v6920_v14 }
 0xf95   : > { %5886 = shalt.err (!%p5883_p5)
}
 0xf96   : > { %s5887_s25 = scalar_lea.hbm %s7300_s26, 256  ;;  %s5891_s27 = scalar_lea.hbm %s7622_s4, 512 }
 0xf97   : > { %p5888_p9 = scmp.ne.s32.totalorder %s7300_s26, %s5887_s25  ;;  %p5892_p13 = scmp.lt.u32.totalorder %s7300_s26, %s7622_s4 }
 0xf98   : > { %p5893_p8 = scmp.lt.u32.totalorder %s5891_s27, %s5887_s25  ;;  %p5895_p7 = scmp.lt.u32.totalorder %s5887_s25, %s7300_s26 }
 0xf99   : > { %p5889_p6 = pnand %p5888_p9, %p7623_p11 }
 0xf9a   : > { %p5894_p1 = por %p5893_p8, %p5892_p13 }
 0xf9b   : > { %p5890_p0 = pneg %p5889_p6 }
 0xf9c   : > { %p5896_p12 = por %p5895_p7, %p5894_p1 }
 0xf9e   : > { %p5897_p4 = pnand %p5896_p12, %p5890_p0 }
 0xfa0   : > { %5900 = shalt.err (!%p5897_p4)
}
 0xfa1   : > { %s6073_s22 = smov 128   ;;  %s6074_s19 = smov 8  }
 0xfa2   : > { %4956 = dma.vmem_to_hbm [thread:$0]  (%p7623_p11), %s7291_s6, 256, %s7300_s26, %s3814_s11, %s6073_s22, %s6073_s22, %s6074_s19  }
 0xfa3   : > { %s7624_s17 = sld [smem:[#allocation84_spill]]  ;;  %s5901_s27 = scalar_lea.vmem %s7331_s7, 256 }
 0xfa4   : > { %p5902_p10 = scmp.ne.s32.totalorder %s7331_s7, %s5901_s27  ;;  %s6075_s3 = smov [#allocation35]  }
 0xfa5   : > { %s5905_s0 = sshll.u32 %s6075_s3, 4  ;;  %s5906_s0 = int_to_ptr.vmem [resolvable:$false] %s5905_s0 }
 0xfa6   : > { %p5903_p2 = pnand %p5902_p10, %p7623_p11  ;;  %s5907_s9 = scalar_lea.vmem %s5906_s0, 512 }
 0xfa7   : > { %p5908_p5 = scmp.lt.s32.totalorder %s7331_s7, %s5906_s0  ;;  %p5909_p9 = scmp.lt.s32.totalorder %s5907_s9, %s5901_s27 }
 0xfa8   : > { %p5904_p3 = pneg %p5903_p2 }
 0xfa9   : > { %s7338_s29 = scalar_lea.hbm %s7624_s17, %s4477_s20  ;;  %p5910_p6 = por %p5909_p9, %p5908_p5 }
 0xfab   : > { %p5911_p0 = pnand %p5910_p6, %p5904_p3 }
 0xfad   : > { %5914 = shalt.err (!%p5911_p0)
}
 0xfae   : > { %s5915_s6 = scalar_lea.hbm %s7338_s29, 256  ;;  %s5919_s8 = scalar_lea.hbm %s7624_s17, 512 }
 0xfaf   : > { %p5916_p13 = scmp.ne.s32.totalorder %s7338_s29, %s5915_s6  ;;  %p5920_p7 = scmp.lt.u32.totalorder %s7338_s29, %s7624_s17 }
 0xfb0   : > { %p5921_p12 = scmp.lt.u32.totalorder %s5919_s8, %s5915_s6  ;;  %p5923_p10 = scmp.lt.u32.totalorder %s5915_s6, %s7338_s29 }
 0xfb1   : > { %p5917_p8 = pnand %p5916_p13, %p7623_p11 }
 0xfb2   : > { %p5922_p4 = por %p5921_p12, %p5920_p7 }
 0xfb3   : > { %p5918_p1 = pneg %p5917_p8 }
 0xfb4   : > { %p5924_p2 = por %p5923_p10, %p5922_p4 }
 0xfb6   : > { %p5925_p3 = pnand %p5924_p2, %p5918_p1 }
 0xfb8   : > { %5928 = shalt.err (!%p5925_p3)
}
 0xfb9   : > { %4957 = dma.vmem_to_hbm [thread:$0]  (%p7623_p11), %s7331_s7, 256, %s7338_s29, %s3814_s11, %s6073_s22, %s6073_s22, %s6074_s19  }
 0xfba   : > { %s7625_s9 = sld [smem:[#allocation81_spill]]  ;;  %s7626_s28 = sshll.u32 %s6812_s15, 5  ;;  %v5329_v43 = vld [vmem:[%s6818_s16 + $0x10] sm:$0xff]  ;;  %v5330_v51 = vld [vmem:[%s6818_s16] sm:$0xff]  ;;  %v5331_v27 = vld [vmem:[%s6818_s16 + $0x18] sm:$0xff] }
 0xfbb   : > { %s1226_s6 = scalar_lea.vmem [#allocation32], %s7626_s28  ;;  %s4476_s7 = sshll.u32 %s7597_s1, 9  ;;  %v5332_v53 = vld [vmem:[%s6818_s16 + $0x8] sm:$0xff] }
 0xfbc   : > { %s3833_s20 = sshll.u32 %s1226_s6, 4  ;;  %s7627_s26 = sld [smem:[#allocation82_spill]]  ;;  %s7374_s20 = int_to_ptr.vmem [resolvable:$true] %s3833_s20 }
 0xfbd   : > { %s3809_s1 = scalar_lea.sflag [#allocation4], %s6812_s15  ;;  %s5929_s25 = scalar_lea.vmem %s7374_s20, 512 }
 0xfbe   : > { %p5930_p5 = scmp.ne.s32.totalorder %s7374_s20, %s5929_s25  ;;  %s6076_s0 = smov [#allocation32]  }
 0xfbf   : > { %s5933_s27 = sshll.u32 %s6076_s0, 4  ;;  %s5934_s27 = int_to_ptr.vmem [resolvable:$false] %s5933_s27 }
 0xfc0   : > { %v4442_v14 = vld [vmem:[%s7625_s9] ss:$0 sm:$0xff]  ;;  %p5931_p9 = pnand %p5930_p5, %p7623_p11  ;;  %s5935_s3 = scalar_lea.vmem %s5934_s27, 1024 }
 0xfc1   : > { %p5936_p0 = scmp.lt.s32.totalorder %s7374_s20, %s5934_s27  ;;  %p5937_p13 = scmp.lt.s32.totalorder %s5935_s3, %s5929_s25 }
 0xfc2   : > { %s7381_s8 = scalar_lea.hbm %s7627_s26, %s4476_s7  ;;  %p5932_p6 = pneg %p5931_p9 }
 0xfc3   : > { %p5938_p8 = por %p5937_p13, %p5936_p0 }
 0xfc5   : > { %p5939_p1 = pnand %p5938_p8, %p5932_p6 }
0x1067   : > { %v4881_v29 = vpop.f32.mrb[40].mxu0 }
0x1068   : > { %v3790_v31 = vadd.f32 %v4881_v29, %v4442_v14  ;;  %v3766_v32 = vpop.f32.mrb[41].mxu0 }
0x1069   : > { %v3788_v33 = vadd.f32 %v4442_v14, %v3766_v32  ;;  %v4882_v13 = vpop.f32.mrb[42].mxu0 }
0x106a   : > { %v3794_v34 = vmax.f32 %v3790_v31, 0.0  ;;  %v3791_v35 = vadd.f32 %v4882_v13, %v4442_v14  ;;  %v3769_v36 = vpop.f32.mrb[43].mxu0 }
0x106b   : > { %v3792_v19 = vmax.f32 %v3788_v33, 0.0  ;;  %v3789_v37 = vadd.f32 %v4442_v14, %v3769_v36 }
0x106c   : > { %v3798_v24 = vadd.f32 %v5329_v43, %v3794_v34  ;;  %v3795_v49 = vmax.f32 %v3791_v35, 0.0 }
0x106d   : > { %v3796_v52 = vadd.f32 %v5330_v51, %v3792_v19  ;;  %v3793_v23 = vmax.f32 %v3789_v37, 0.0 }
0x106e   : > { %3802 = vst [vmem:[%s1226_s6 + $0x10] sm:$0xff] %v3798_v24  ;;  %v3799_v28 = vadd.f32 %v5331_v27, %v3795_v49 }
0x106f   : > { %3800 = vst [vmem:[%s1226_s6] sm:$0xff] %v3796_v52  ;;  %v3797_v42 = vadd.f32 %v5332_v53, %v3793_v23 }
0x1070   : > { %3803 = vst [vmem:[%s1226_s6 + $0x18] sm:$0xff] %v3799_v28 }
0x1071   : > { %3801 = vst [vmem:[%s1226_s6 + $0x8] sm:$0xff] %v3797_v42 }
0x1072   : > { %5942 = shalt.err (!%p5939_p1)
}
0x1073   : > { %s5943_s16 = scalar_lea.hbm %s7381_s8, 512  ;;  %s5947_s6 = scalar_lea.hbm %s7627_s26, 1024 }
0x1074   : > { %p5944_p7 = scmp.ne.s32.totalorder %s7381_s8, %s5943_s16  ;;  %p5948_p10 = scmp.lt.u32.totalorder %s7381_s8, %s7627_s26 }
0x1075   : > { %p5949_p2 = scmp.lt.u32.totalorder %s5947_s6, %s5943_s16  ;;  %p5951_p5 = scmp.lt.u32.totalorder %s5943_s16, %s7381_s8 }
0x1076   : > { %p5945_p12 = pnand %p5944_p7, %p7623_p11 }
0x1077   : > { %p5950_p3 = por %p5949_p2, %p5948_p10 }
0x1078   : > { %p5946_p4 = pneg %p5945_p12 }
0x1079   : > { %p5952_p9 = por %p5951_p5, %p5950_p3 }
0x107b   : > { %p5953_p6 = pnand %p5952_p9, %p5946_p4 }
0x107d   : > { %5956 = shalt.err (!%p5953_p6)
}
0x107e   : > { %4955 = dma.vmem_to_hbm [thread:$0]  (%p7623_p11), %s7374_s20, 512, %s7381_s8, %s3809_s1, %s6073_s22, %s6073_s22, %s6074_s19  }
0x107f PF: > { %s7628_s29 = sld [smem:[#allocation49_spill]]  ;;  %s7629_s25 = sld [smem:[#allocation58_spill]] }
0x1080   : > { %p7631_p13 = scmp.ge.s32.totalorder %s6039_s30, 2 }
0x1085   : > { %s3880_s0 = sand.u32 1, %s7628_s29   ;;  %p7630_p0 = scmp.ne.s32.totalorder %s7629_s25, 0 }
0x1086   : > { %s3881_s27 = scalar_lea.sflag [#allocation4], %s3880_s0 }
0x1087   : > { %p5021_p8 = pnand %p7631_p13, %p7630_p0 }
0x1089   : > { %6018 = dma.done.wait (!%p5021_p8), %s3881_s27, 512  }
0x108a   : > { %6020 = vsyncadd (!%p5021_p8), %s3881_s27, 4294966784  ;;  %s7632_s5 = sadd.s32 4294967294, %s6039_s30  }
0x108b   : > { %s3889_s3 = sand.u32 1, %s7632_s5  }
0x108c   : > { %s3890_s16 = scalar_lea.sflag [#allocation34], %s3889_s3 }
0x108d   : > { %6022 = dma.done.wait (!%p5021_p8), %s3890_s16, 512  }
0x108e   : > { %6024 = vsyncadd (!%p5021_p8), %s3890_s16, 4294966784  ;;  %s7633_s30 = sld [smem:[#allocation54_spill]]  ;;  %s7634_s8 = sld [smem:[#allocation50_spill]] }
0x108f   : > { %s7635_s5 = sld [smem:[#allocation51_spill]]  ;;  %s7636_s9 = sld [smem:[#allocation55_spill]] }
0x1094   : > { %p58_p11 = scmp.ge.s32.totalorder %s7633_s30, 4  }
0x1096   :  { %60 = sbr.rel (!%p58_p11) target bundleno = 44 (0x2c), region = 304 }
0x109d   :  { %3904 = vsyncpa [#allocation3], 1 }
0x109e   :  { %3906 = vsyncpa [#allocation3 + $0x1], 1 }
0x109f   :  { %3907 = vsyncpa [#allocation6], 1 }
0x10a0   :  { %3909 = vsyncpa [#allocation6 + $0x1], 1 }
0x10a1   :  { %3910 = vsyncpa [#allocation9], 1 }
0x10a2   :  { %3912 = vsyncpa [#allocation9 + $0x1], 1 }
0x10a3   :  { %3913 = vsyncpa [#allocation12], 1 }
0x10a4   :  { %3914 = vsyncpa [#allocation15], 1 }
0x10a5   :  { %3915 = vsyncpa [#allocation18], 1 }
0x10a6   :  { %3916 = vsyncpa [#allocation21], 1 }
0x10a7   :  { %3917 = vsyncpa [#allocation24], 1 }
0x10a8   :  { %3918 = vsyncpa [#allocation27], 1 }
0x10a9   :  { %3919 = vsyncpa [#allocation30], 1 }
0x10aa   :  { %3920 = vsyncpa [#allocation4], 1 }
0x10ab   :  { %3922 = vsyncpa [#allocation4 + $0x1], 1 }
0x10ac   :  { %3923 = vsyncpa [#allocation34], 1 }
0x10ad   :  { %3925 = vsyncpa [#allocation34 + $0x1], 1 }

</bundles_post_ra>
